<compile_context>
chip_gen: v7x
topology: tpu7x:2x2x1
jax: 0.10.0
libtpu: 0.0.40
codegen_flags: <defaults>
</compile_context>

<pallas_src>
import math
from functools import partial

import jax
import jax.numpy as jnp
import numpy as np
from jax import lax
from jax.experimental import pallas as pl
from jax.experimental.pallas import tpu as pltpu

LN_EPS = 1e-5  # torch.nn.LayerNorm default eps


# ----------------------------- Pallas kernels -----------------------------

def _mru_scan_kernel(x_ref, g_ref, eye_ref, up_ref, dw_ref, pa_ref, pb_ref,
                     init_ref, y_ref, fs_ref, state_scr, *, TB, O):
    """Fused LN1 + batched M construction + log-depth prefix matrix product +
    carry apply + fused down/mru_out projection + first residual, for one block
    of TB timesteps.  All per-head (O,O) matrices live flat on the lane axis."""
    blk = pl.program_id(0)
    S = eye_ref.shape[-1]

    # Running flat (1, S) state persists across time blocks in VMEM scratch.
    @pl.when(blk == 0)
    def _():
        state_scr[...] = init_ref[...]

    # ---- fused LayerNorm-1 (weight only, bias=False) ------------------------
    x = x_ref[...]                                        # (TB, E) lane-dense
    mu = jnp.mean(x, axis=-1, keepdims=True)
    xc = x - mu
    var = jnp.mean(xc * xc, axis=-1, keepdims=True)
    ln1 = xc * lax.rsqrt(var + LN_EPS) * g_ref[...]

    # ---- batched M construction on the MXU ----------------------------------
    # m[t, (h,i,j)] = sum_e ln1[t,e] * up_scaled[e,(h,i,j)] + I[i==j]
    # (update_scale folded into up_scaled on the host).  HIGHEST: errors in M
    # compound through the recurrence.
    eye_row = eye_ref[...]                                # (1, S)
    m = jnp.dot(ln1, up_ref[...], preferred_element_type=jnp.float32,
                precision=lax.Precision.HIGHEST) + eye_row

    # ---- batched per-head matmul in the flat (TB, S) lane layout ------------
    # C[t,(h,i,j)] = sum_k A[t,(h,i,k)] * B[t,(h,k,j)]
    #             = sum_k (A @ PA_k)[t,(h,i,j)] * (B @ PB_k)[t,(h,i,j)]
    # PA_k / PB_k are 0/1 lane-selection matrices, so HIGHEST keeps the gather
    # exact in f32.  TODO(synk): benchmark HIGH here; likely sufficient.
    pas = [pa_ref[k] for k in range(O)]
    pbs = [pb_ref[k] for k in range(O)]

    def bmm_flat(a, b):
        c = None
        for k in range(O):
            ak = jnp.dot(a, pas[k], preferred_element_type=jnp.float32,
                         precision=lax.Precision.HIGHEST)
            bk = jnp.dot(b, pbs[k], preferred_element_type=jnp.float32,
                         precision=lax.Precision.HIGHEST)
            c = ak * bk if c is None else c + ak * bk
        return c

    # ---- log-depth (Hillis-Steele) inclusive prefix product over TB rows ----
    # prefix[t] = M_0 @ M_1 @ ... @ M_t   (earlier segment always on the left)
    eye_full = jnp.broadcast_to(eye_row, (TB, S))
    p = m
    d = 1
    while d < TB:
        shifted = jnp.concatenate([eye_full[:d], p[:TB - d, :]], axis=0)
        p = bmm_flat(shifted, p)
        d *= 2

    # ---- apply the carried state: states[t] = state_prev @ prefix[t] --------
    st_prev = state_scr[...]                              # (1, S)
    states = None
    for k in range(O):
        ak = jnp.dot(st_prev, pas[k], preferred_element_type=jnp.float32,
                     precision=lax.Precision.HIGHEST)     # (1, S)
        bk = jnp.dot(p, pbs[k], preferred_element_type=jnp.float32,
                     precision=lax.Precision.HIGHEST)     # (TB, S)
        states = ak * bk if states is None else states + ak * bk

    # carry = state after the last timestep of this block (kept in f32)
    state_scr[...] = states[TB - 1:TB, :]

    # ---- down-projection (mru_out folded in, bf16 weights) + first residual -
    mru = jnp.dot(states.astype(dw_ref.dtype), dw_ref[...],
                  preferred_element_type=jnp.float32)
    y_ref[...] = x + mru

    # final state only needed once, after the last time block
    @pl.when(blk == pl.num_programs(0) - 1)
    def _():
        fs_ref[...] = state_scr[...]


def _tail_kernel(x1_ref, g2_ref, w1_ref, w2_ref, o_ref):
    """Second LayerNorm + MLP + residual (first residual already fused into the
    scan kernel's output), tiled over T."""
    x1 = x1_ref[...]
    mu = jnp.mean(x1, axis=-1, keepdims=True)
    xc = x1 - mu
    var = jnp.mean(xc * xc, axis=-1, keepdims=True)
    ln2 = xc * lax.rsqrt(var + LN_EPS) * g2_ref[...]
    # bf16 operands, f32 accumulation on the MXU
    h = jnp.dot(ln2.astype(w1_ref.dtype), w1_ref[...],
                preferred_element_type=jnp.float32)
    # torch.nn.GELU default = exact erf.
    # TODO(synk): approximate=True (tanh) / bf16 activation would relieve the
    #             single EUP port on v5e if torch-exactness is not required.
    h = jax.nn.gelu(h, approximate=False)
    mlp = jnp.dot(h.astype(w2_ref.dtype), w2_ref[...],
                  preferred_element_type=jnp.float32)
    o_ref[...] = x1 + mlp


# ------------------------- host-side weight prep ---------------------------

def prepare_params(params, cfg):
    """One-time (outside the forward) weight preprocessing:
       - block-diagonal expansion of up/down so the per-timestep projections
         become single lane-dense MXU matmuls,
       - fold update_scale / out_scale / mru_out into those matrices,
       - build the 0/1 lane-selection matrices used by the flat batched
         per-head matmul of the associative scan,
       - pre-transpose the MLP weights and cast weight-only operands to bf16."""
    H, O, C = cfg["n_state_heads"], cfg["state_head_order"], cfg["embedding_chunk_size"]
    E, S = H * O * C, H * O * O
    f32, bf16 = jnp.float32, jnp.bfloat16
    update_scale = 0.08 * (1.0 / O) * (E / C)
    out_scale = E / O

    eye_h = jnp.eye(H, dtype=f32)
    eye_o = jnp.eye(O, dtype=f32)

    # up_full[(h',o',c), (h,r,p)] = up[h,c,p] * d(h',h) * d(o',r)
    up_full = jnp.einsum("hcp,gh,qr->gqchrp", params["up"], eye_h, eye_o).reshape(E, S)
    # down_full[(h,a,b), (h',o',c)] = down[h,b,c] * d(h,h') * d(a,o')
    down_full = jnp.einsum("hbc,hg,aq->habgqc", params["down"], eye_h, eye_o).reshape(S, E)
    # fold mru_out (torch Linear: y = x @ W^T) into the down projection
    down_out = jnp.dot(down_full * out_scale, params["w_out"].T,
                       precision=lax.Precision.HIGHEST)
    eye_row = jnp.tile(jnp.eye(O, dtype=f32).reshape(-1), H).reshape(1, S)

    # 0/1 lane-selection matrices for the flat batched per-head matmul:
    #   (A @ pa[k])[t, (h,i,j)] = A[t, (h,i,k)]
    #   (B @ pb[k])[t, (h,i,j)] = B[t, (h,k,j)]
    pa = np.zeros((O, S, S), np.float32)
    pb = np.zeros((O, S, S), np.float32)
    for k in range(O):
        for h in range(H):
            for i in range(O):
                for j in range(O):
                    dst = (h * O + i) * O + j
                    pa[k, (h * O + i) * O + k, dst] = 1.0
                    pb[k, (h * O + k) * O + j, dst] = 1.0

    return {
        "up_scaled": (up_full * update_scale).astype(f32),   # (E, S) f32 (state path)
        "eye_row": eye_row,                                   # (1, S)
        "down_out": down_out.astype(bf16),                    # (S, E) bf16 weights
        "pa": jnp.asarray(pa),                                # (O, S, S)
        "pb": jnp.asarray(pb),                                # (O, S, S)
        "ln1_g": params["ln1_g"].reshape(1, E).astype(f32),
        "ln2_g": params["ln2_g"].reshape(1, E).astype(f32),
        "w1_t": params["w1"].T.astype(bf16),                  # (E, 4E) bf16
        "w2_t": params["w2"].T.astype(bf16),                  # (4E, E) bf16
    }


def _pick_time_block(T, cap):
    if T <= cap:
        return T
    for b in range(cap, 7, -1):
        if T % b == 0 and b % 8 == 0:
            return b
    raise ValueError(f"no time block <= {cap} divides T={T}; pad T to a multiple of 8")


def _nbytes(a):
    return int(a.size) * a.dtype.itemsize


def _vmem_limit(nbytes):
    """Computed VMEM budget with headroom, capped below v7x's 64 MiB physical VMEM.
    TODO(synk): raise the cap (and tile sizes) on v5e/v6e where VMEM is 128 MiB."""
    return int(min(max(2 * nbytes + (4 << 20), 16 << 20), 56 << 20))


# ------------------------------- forward -----------------------------------

def mru_lm_block_forward(x, last_state, prep, cfg, *, scan_block=None, tail_block=None,
                         single_buffer_weights=True):
    T, E = x.shape
    H, O = cfg["n_state_heads"], cfg["state_head_order"]
    S = H * O * O
    f32 = jnp.float32

    if T % 8 != 0:
        raise ValueError("sequence length T must be a multiple of 8 (sublane tile)")
    scan_tb = scan_block if scan_block is not None else _pick_time_block(T, 256)
    tail_tb = tail_block if tail_block is not None else _pick_time_block(T, 512)
    assert T % scan_tb == 0 and T % tail_tb == 0

    if last_state is None:
        init_flat = jnp.tile(jnp.eye(O, dtype=f32).reshape(-1), H).reshape(1, S)
    else:
        init_flat = last_state.astype(f32).reshape(1, S)

    def const_spec(shape):
        """Constant-index (weight-like) input: single-buffered if supported."""
        idx = lambda t, n=len(shape): (0,) * n
        if single_buffer_weights:
            return pl.BlockSpec(shape, idx, pipeline_mode=pl.Buffered(1))
        return pl.BlockSpec(shape, idx)

    # -------- scan kernel: LN1 + MRU scan + down/mru_out + first residual ----
    scan_bytes = (_nbytes(prep["up_scaled"]) + _nbytes(prep["down_out"])
                  + _nbytes(prep["pa"]) + _nbytes(prep["pb"])
                  + _nbytes(prep["ln1_g"]) + _nbytes(prep["eye_row"]) + _nbytes(init_flat)
                  + 4 * 2 * 2 * scan_tb * E        # x in + (x+mru) out, double buffered
                  + 4 * 8 * scan_tb * S)           # in-kernel M/prefix/state temporaries

    x1, fs_flat = pl.pallas_call(
        partial(_mru_scan_kernel, TB=scan_tb, O=O),
        out_shape=(
            jax.ShapeDtypeStruct((T, E), f32),     # x + mru_out(...)  (residual fused)
            jax.ShapeDtypeStruct((1, S), f32),     # final state, flat
        ),
        grid=(T // scan_tb,),
        in_specs=[
            pl.BlockSpec((scan_tb, E), lambda t: (t, 0)),   # x (lane-dense)
            const_spec((1, E)),                             # ln1 gain
            const_spec((1, S)),                             # flattened per-head identity
            const_spec((E, S)),                             # block-diag up (scaled, f32)
            const_spec((S, E)),                             # block-diag down @ w_out^T (bf16)
            const_spec((O, S, S)),                          # PA_k selection matrices
            const_spec((O, S, S)),                          # PB_k selection matrices
            const_spec((1, S)),                             # initial state, flat
        ],
        out_specs=(
            pl.BlockSpec((scan_tb, E), lambda t: (t, 0)),
            pl.BlockSpec((1, S), lambda t: (0, 0)),
        ),
        scratch_shapes=[pltpu.VMEM((1, S), f32)],           # running flat state
        compiler_params=pltpu.CompilerParams(
            dimension_semantics=("arbitrary",),              # sequential carry
            vmem_limit_bytes=_vmem_limit(scan_bytes)),
    )(x, prep["ln1_g"], prep["eye_row"], prep["up_scaled"], prep["down_out"],
      prep["pa"], prep["pb"], init_flat)

    # -------- tail kernel: LN2 + MLP + residual (per time tile) --------------
    tail_bytes = (_nbytes(prep["w1_t"]) + _nbytes(prep["w2_t"]) + _nbytes(prep["ln2_g"])
                  + 4 * 2 * 2 * tail_tb * E
                  + 4 * 2 * tail_tb * 4 * E)

    out = pl.pallas_call(
        _tail_kernel,
        out_shape=jax.ShapeDtypeStruct((T, E), f32),
        grid=(T // tail_tb,),
        in_specs=[
            pl.BlockSpec((tail_tb, E), lambda t: (t, 0)),   # x + mru (from scan kernel)
            const_spec((1, E)),                             # ln2 gain
            const_spec((E, 4 * E)),                         # w1^T (bf16)
            const_spec((4 * E, E)),                         # w2^T (bf16)
        ],
        out_specs=pl.BlockSpec((tail_tb, E), lambda t: (t, 0)),
        compiler_params=pltpu.CompilerParams(
            dimension_semantics=("parallel",),               # independent per time tile
            vmem_limit_bytes=_vmem_limit(tail_bytes)),
    )(x1, prep["ln2_g"], prep["w1_t"], prep["w2_t"])

    return out, fs_flat.reshape(H, O, O)


# ---------------------------- pure-JAX reference ----------------------------

def reference_forward(x, last_state, params, cfg):
    T, E = x.shape
    H, O, C = cfg["n_state_heads"], cfg["state_head_order"], cfg["embedding_chunk_size"]
    update_scale = 0.08 * (1.0 / O) * (E / C)

    def ln(v, g):
        mu = v.mean(-1, keepdims=True)
        var = ((v - mu) ** 2).mean(-1, keepdims=True)
        return (v - mu) / jnp.sqrt(var + LN_EPS) * g

    ln1 = ln(x, params["ln1_g"])
    h = ln1.reshape(T, H, O, C)
    new_m = jnp.einsum("thoc,hcp->thop", h, params["up"],
                       precision=lax.Precision.HIGHEST) * update_scale + jnp.eye(O)

    init = last_state if last_state is not None else jnp.tile(jnp.eye(O)[None], (H, 1, 1))

    def step(carry, m):
        s = jnp.einsum("hok,hkp->hop", carry, m, precision=lax.Precision.HIGHEST)
        return s, s

    final_state, states = lax.scan(step, init, new_m)
    y = jnp.einsum("thop,hpc->thoc", states, params["down"]) * (E / O)
    y = y.reshape(T, E)
    x1 = x + y @ params["w_out"].T
    mlp = jax.nn.gelu(ln(x1, params["ln2_g"]) @ params["w1"].T, approximate=False) @ params["w2"].T
    return x1 + mlp, final_state


# ---------------------------------- main ------------------------------------

if __name__ == "__main__":
    # small config consistent with the module's constraints
    E = 32            # embedding_size
    H = 2             # n_state_heads
    state_size = 32   # -> state_head_size = 16, state_head_order O = 4
    n_blocks = 2
    T = 32            # sequence length (multiple time blocks exercise state carry)

    O = math.isqrt(state_size // H)
    C = E // (O * H)
    cfg = {"n_state_heads": H, "state_head_order": O, "embedding_chunk_size": C}

    key = jax.random.PRNGKey(0)
    ks = jax.random.split(key, 8)
    f32 = jnp.float32

    # deterministic parameter init (shapes from the module's __init__).
    # NOTE: torch inits state_matrices_up to zeros; we use a small normal so the
    # recurrence is non-trivial -- semantics are unchanged.
    params = {
        "up": 0.02 * jax.random.normal(ks[0], (H, C, O), f32),
        "down": (0.02 * math.sqrt(state_size) / (E / O))
                * jax.random.normal(ks[1], (H, O, C), f32),
        "w_out": (0.02 / math.sqrt(n_blocks)) * jax.random.normal(ks[2], (E, E), f32),
        "ln1_g": jnp.ones((E,), f32),
        "ln2_g": jnp.ones((E,), f32),
        "w1": 0.02 * jax.random.normal(ks[3], (4 * E, E), f32),
        "w2": (0.02 / math.sqrt(n_blocks)) * jax.random.normal(ks[4], (E, 4 * E), f32),
    }

    x = jax.random.normal(ks[5], (T, E), f32)
    last_state = jnp.tile(jnp.eye(O, dtype=f32)[None], (H, 1, 1)) \
        + 0.05 * jax.random.normal(ks[6], (H, O, O), f32)

    prep = prepare_params(params, cfg)   # one-time host-side weight prep

    try:
        out, new_state = mru_lm_block_forward(
            x, last_state, prep, cfg, scan_block=8, tail_block=16,
            single_buffer_weights=True)
        out = jax.block_until_ready(out)
        new_state = jax.block_until_ready(new_state)
    except Exception:
        # TODO(synk): pl.Buffered(1) single-buffering of constant-index weights is
        # not supported on this jax build -- fall back to default double buffering.
        out, new_state = mru_lm_block_forward(
            x, last_state, prep, cfg, scan_block=8, tail_block=16,
            single_buffer_weights=False)
        out = jax.block_until_ready(out)
        new_state = jax.block_until_ready(new_state)

    ref_out, ref_state = reference_forward(x, last_state, params, cfg)
    np.testing.assert_allclose(np.asarray(out), np.asarray(ref_out), atol=2e-3, rtol=2e-3)
    np.testing.assert_allclose(np.asarray(new_state), np.asarray(ref_state), atol=2e-3, rtol=2e-3)

    print("KERNEL_OK")
</pallas_src>

<mosaic_0001>
module attributes {stable_mosaic.version = 11 : i64} {
  func.func @_mru_scan_kernel(%arg0: i32, %arg1: memref<8x32xf32, #tpu.memory_space<vmem>>, %arg2: memref<1x32xf32, #tpu.memory_space<vmem>>, %arg3: memref<1x32xf32, #tpu.memory_space<vmem>>, %arg4: memref<32x32xf32, #tpu.memory_space<vmem>>, %arg5: memref<32x32xbf16, #tpu.memory_space<vmem>>, %arg6: memref<4x32x32xf32, #tpu.memory_space<vmem>>, %arg7: memref<4x32x32xf32, #tpu.memory_space<vmem>>, %arg8: memref<1x32xf32, #tpu.memory_space<vmem>>, %arg9: memref<8x32xf32, #tpu.memory_space<vmem>>, %arg10: memref<1x32xf32, #tpu.memory_space<vmem>>, %arg11: memref<1x32xf32, #tpu.memory_space<vmem>>) attributes {dimension_semantics = [#tpu.dimension_semantics<arbitrary>], iteration_bounds = array<i64: 4>, scalar_prefetch = 0 : i64, scratch_operands = 1 : i64, tpu.core_type = #tpu.core_type<tc>, window_params = [{transform_indices = @transform_0, window_bounds = array<i64: 8, 32>}, {pipeline_mode = #tpu.pipeline_mode<synchronous>, transform_indices = @transform_1, window_bounds = array<i64: 1, 32>}, {pipeline_mode = #tpu.pipeline_mode<synchronous>, transform_indices = @transform_2, window_bounds = array<i64: 1, 32>}, {pipeline_mode = #tpu.pipeline_mode<synchronous>, transform_indices = @transform_3, window_bounds = array<i64: 32, 32>}, {pipeline_mode = #tpu.pipeline_mode<synchronous>, transform_indices = @transform_4, window_bounds = array<i64: 32, 32>}, {pipeline_mode = #tpu.pipeline_mode<synchronous>, transform_indices = @transform_5, window_bounds = array<i64: 4, 32, 32>}, {pipeline_mode = #tpu.pipeline_mode<synchronous>, transform_indices = @transform_6, window_bounds = array<i64: 4, 32, 32>}, {pipeline_mode = #tpu.pipeline_mode<synchronous>, transform_indices = @transform_7, window_bounds = array<i64: 1, 32>}, {transform_indices = @transform_8, window_bounds = array<i64: 8, 32>}, {pipeline_mode = #tpu.pipeline_mode<synchronous>, transform_indices = @transform_9, window_bounds = array<i64: 1, 32>}]} {
    %c0_i32 = arith.constant 0 : i32
    %0 = arith.cmpi eq, %arg0, %c0_i32 : i32
    %1 = arith.extui %0 : i1 to i32
    %c0_i32_0 = arith.constant 0 : i32
    %2 = arith.cmpi ne, %1, %c0_i32_0 : i32
    scf.if %2 {
      %c0_76 = arith.constant 0 : index
      %c0_77 = arith.constant 0 : index
      %130 = vector.load %arg8[%c0_76, %c0_77] : memref<1x32xf32, #tpu.memory_space<vmem>>, vector<1x32xf32>
      %c0_78 = arith.constant 0 : index
      %c0_79 = arith.constant 0 : index
      %131 = vector.load %arg11[%c0_78, %c0_79] : memref<1x32xf32, #tpu.memory_space<vmem>>, vector<1x32xf32>
      tpu.vector_store %arg11[%c0_78, %c0_79], %130 {strides = array<i32>} : memref<1x32xf32, #tpu.memory_space<vmem>>, vector<1x32xf32>,
    } else {
    }
    %c0 = arith.constant 0 : index
    %c0_1 = arith.constant 0 : index
    %3 = vector.load %arg1[%c0, %c0_1] : memref<8x32xf32, #tpu.memory_space<vmem>>, vector<8x32xf32>
    %cst = arith.constant dense<0.000000e+00> : vector<8xf32>
    %4 = vector.multi_reduction <add>, %3, %cst [1] : vector<8x32xf32> to vector<8xf32>
    %5 = vector.shape_cast %4 : vector<8xf32> to vector<8x1xf32>
    %cst_2 = arith.constant 3.200000e+01 : f32
    %6 = vector.broadcast %cst_2 : f32 to vector<8x1xf32>
    %7 = arith.divf %5, %6 : vector<8x1xf32>
    %8 = vector.broadcast %7 : vector<8x1xf32> to vector<8x32xf32>
    %9 = arith.subf %3, %8 : vector<8x32xf32>
    %10 = arith.mulf %9, %9 : vector<8x32xf32>
    %cst_3 = arith.constant dense<0.000000e+00> : vector<8xf32>
    %11 = vector.multi_reduction <add>, %10, %cst_3 [1] : vector<8x32xf32> to vector<8xf32>
    %12 = vector.shape_cast %11 : vector<8xf32> to vector<8x1xf32>
    %cst_4 = arith.constant 3.200000e+01 : f32
    %13 = vector.broadcast %cst_4 : f32 to vector<8x1xf32>
    %14 = arith.divf %12, %13 : vector<8x1xf32>
    %cst_5 = arith.constant 9.99999974E-6 : f32
    %15 = vector.broadcast %cst_5 : f32 to vector<8x1xf32>
    %16 = arith.addf %14, %15 : vector<8x1xf32>
    %17 = math.rsqrt %16 : vector<8x1xf32>
    %18 = vector.broadcast %17 : vector<8x1xf32> to vector<8x32xf32>
    %19 = arith.mulf %9, %18 : vector<8x32xf32>
    %c0_6 = arith.constant 0 : index
    %c0_7 = arith.constant 0 : index
    %20 = vector.load %arg2[%c0_6, %c0_7] : memref<1x32xf32, #tpu.memory_space<vmem>>, vector<1x32xf32>
    %21 = vector.broadcast %20 : vector<1x32xf32> to vector<8x32xf32>
    %22 = arith.mulf %19, %21 : vector<8x32xf32>
    %c0_8 = arith.constant 0 : index
    %c0_9 = arith.constant 0 : index
    %23 = vector.load %arg3[%c0_8, %c0_9] : memref<1x32xf32, #tpu.memory_space<vmem>>, vector<1x32xf32>
    %c0_10 = arith.constant 0 : index
    %c0_11 = arith.constant 0 : index
    %24 = vector.load %arg4[%c0_10, %c0_11] : memref<32x32xf32, #tpu.memory_space<vmem>>, vector<32x32xf32>
    %cst_12 = arith.constant dense<0.000000e+00> : vector<8x32xf32>
    %25 = tpu.matmul %22, %24, %cst_12 {dimension_numbers = #tpu.dot_dimension_numbers<[1], [0], [0], [1], [0, 0, 1, 1], [], []>, precision = #tpu.contract_precision<fp32>} : vector<8x32xf32>, vector<32x32xf32>, vector<8x32xf32> -> vector<8x32xf32>
    %26 = vector.broadcast %23 : vector<1x32xf32> to vector<8x32xf32>
    %27 = arith.addf %25, %26 : vector<8x32xf32>
    %c0_13 = arith.constant 0 : index
    %c0_14 = arith.constant 0 : index
    %c0_15 = arith.constant 0 : index
    %28 = vector.load %arg6[%c0_13, %c0_14, %c0_15] : memref<4x32x32xf32, #tpu.memory_space<vmem>>, vector<1x32x32xf32>
    %29 = vector.shape_cast %28 : vector<1x32x32xf32> to vector<32x32xf32>
    %c1 = arith.constant 1 : index
    %c0_16 = arith.constant 0 : index
    %c0_17 = arith.constant 0 : index
    %30 = vector.load %arg6[%c1, %c0_16, %c0_17] : memref<4x32x32xf32, #tpu.memory_space<vmem>>, vector<1x32x32xf32>
    %31 = vector.shape_cast %30 : vector<1x32x32xf32> to vector<32x32xf32>
    %c2 = arith.constant 2 : index
    %c0_18 = arith.constant 0 : index
    %c0_19 = arith.constant 0 : index
    %32 = vector.load %arg6[%c2, %c0_18, %c0_19] : memref<4x32x32xf32, #tpu.memory_space<vmem>>, vector<1x32x32xf32>
    %33 = vector.shape_cast %32 : vector<1x32x32xf32> to vector<32x32xf32>
    %c3 = arith.constant 3 : index
    %c0_20 = arith.constant 0 : index
    %c0_21 = arith.constant 0 : index
    %34 = vector.load %arg6[%c3, %c0_20, %c0_21] : memref<4x32x32xf32, #tpu.memory_space<vmem>>, vector<1x32x32xf32>
    %35 = vector.shape_cast %34 : vector<1x32x32xf32> to vector<32x32xf32>
    %c0_22 = arith.constant 0 : index
    %c0_23 = arith.constant 0 : index
    %c0_24 = arith.constant 0 : index
    %36 = vector.load %arg7[%c0_22, %c0_23, %c0_24] : memref<4x32x32xf32, #tpu.memory_space<vmem>>, vector<1x32x32xf32>
    %37 = vector.shape_cast %36 : vector<1x32x32xf32> to vector<32x32xf32>
    %c1_25 = arith.constant 1 : index
    %c0_26 = arith.constant 0 : index
    %c0_27 = arith.constant 0 : index
    %38 = vector.load %arg7[%c1_25, %c0_26, %c0_27] : memref<4x32x32xf32, #tpu.memory_space<vmem>>, vector<1x32x32xf32>
    %39 = vector.shape_cast %38 : vector<1x32x32xf32> to vector<32x32xf32>
    %c2_28 = arith.constant 2 : index
    %c0_29 = arith.constant 0 : index
    %c0_30 = arith.constant 0 : index
    %40 = vector.load %arg7[%c2_28, %c0_29, %c0_30] : memref<4x32x32xf32, #tpu.memory_space<vmem>>, vector<1x32x32xf32>
    %41 = vector.shape_cast %40 : vector<1x32x32xf32> to vector<32x32xf32>
    %c3_31 = arith.constant 3 : index
    %c0_32 = arith.constant 0 : index
    %c0_33 = arith.constant 0 : index
    %42 = vector.load %arg7[%c3_31, %c0_32, %c0_33] : memref<4x32x32xf32, #tpu.memory_space<vmem>>, vector<1x32x32xf32>
    %43 = vector.shape_cast %42 : vector<1x32x32xf32> to vector<32x32xf32>
    %44 = vector.shape_cast %23 : vector<1x32xf32> to vector<1x32xf32>
    %45 = vector.broadcast %44 : vector<1x32xf32> to vector<8x32xf32>
    %46 = vector.extract_strided_slice %45 {offsets = [0, 0], sizes = [1, 32], strides = [1, 1]} : vector<8x32xf32> to vector<1x32xf32>
    %47 = vector.extract_strided_slice %27 {offsets = [0, 0], sizes = [7, 32], strides = [1, 1]} : vector<8x32xf32> to vector<7x32xf32>
    %48 = tpu.concatenate %46, %47 in 0 : vector<1x32xf32>, vector<7x32xf32> -> vector<8x32xf32>
    %cst_34 = arith.constant dense<0.000000e+00> : vector<8x32xf32>
    %49 = tpu.matmul %48, %29, %cst_34 {dimension_numbers = #tpu.dot_dimension_numbers<[1], [0], [0], [1], [0, 0, 1, 1], [], []>, precision = #tpu.contract_precision<fp32>} : vector<8x32xf32>, vector<32x32xf32>, vector<8x32xf32> -> vector<8x32xf32>
    %cst_35 = arith.constant dense<0.000000e+00> : vector<8x32xf32>
    %50 = tpu.matmul %27, %37, %cst_35 {dimension_numbers = #tpu.dot_dimension_numbers<[1], [0], [0], [1], [0, 0, 1, 1], [], []>, precision = #tpu.contract_precision<fp32>} : vector<8x32xf32>, vector<32x32xf32>, vector<8x32xf32> -> vector<8x32xf32>
    %51 = arith.mulf %49, %50 : vector<8x32xf32>
    %cst_36 = arith.constant dense<0.000000e+00> : vector<8x32xf32>
    %52 = tpu.matmul %48, %31, %cst_36 {dimension_numbers = #tpu.dot_dimension_numbers<[1], [0], [0], [1], [0, 0, 1, 1], [], []>, precision = #tpu.contract_precision<fp32>} : vector<8x32xf32>, vector<32x32xf32>, vector<8x32xf32> -> vector<8x32xf32>
    %cst_37 = arith.constant dense<0.000000e+00> : vector<8x32xf32>
    %53 = tpu.matmul %27, %39, %cst_37 {dimension_numbers = #tpu.dot_dimension_numbers<[1], [0], [0], [1], [0, 0, 1, 1], [], []>, precision = #tpu.contract_precision<fp32>} : vector<8x32xf32>, vector<32x32xf32>, vector<8x32xf32> -> vector<8x32xf32>
    %54 = arith.mulf %52, %53 : vector<8x32xf32>
    %55 = arith.addf %51, %54 : vector<8x32xf32>
    %cst_38 = arith.constant dense<0.000000e+00> : vector<8x32xf32>
    %56 = tpu.matmul %48, %33, %cst_38 {dimension_numbers = #tpu.dot_dimension_numbers<[1], [0], [0], [1], [0, 0, 1, 1], [], []>, precision = #tpu.contract_precision<fp32>} : vector<8x32xf32>, vector<32x32xf32>, vector<8x32xf32> -> vector<8x32xf32>
    %cst_39 = arith.constant dense<0.000000e+00> : vector<8x32xf32>
    %57 = tpu.matmul %27, %41, %cst_39 {dimension_numbers = #tpu.dot_dimension_numbers<[1], [0], [0], [1], [0, 0, 1, 1], [], []>, precision = #tpu.contract_precision<fp32>} : vector<8x32xf32>, vector<32x32xf32>, vector<8x32xf32> -> vector<8x32xf32>
    %58 = arith.mulf %56, %57 : vector<8x32xf32>
    %59 = arith.addf %55, %58 : vector<8x32xf32>
    %cst_40 = arith.constant dense<0.000000e+00> : vector<8x32xf32>
    %60 = tpu.matmul %48, %35, %cst_40 {dimension_numbers = #tpu.dot_dimension_numbers<[1], [0], [0], [1], [0, 0, 1, 1], [], []>, precision = #tpu.contract_precision<fp32>} : vector<8x32xf32>, vector<32x32xf32>, vector<8x32xf32> -> vector<8x32xf32>
    %cst_41 = arith.constant dense<0.000000e+00> : vector<8x32xf32>
    %61 = tpu.matmul %27, %43, %cst_41 {dimension_numbers = #tpu.dot_dimension_numbers<[1], [0], [0], [1], [0, 0, 1, 1], [], []>, precision = #tpu.contract_precision<fp32>} : vector<8x32xf32>, vector<32x32xf32>, vector<8x32xf32> -> vector<8x32xf32>
    %62 = arith.mulf %60, %61 : vector<8x32xf32>
    %63 = arith.addf %59, %62 : vector<8x32xf32>
    %64 = vector.extract_strided_slice %45 {offsets = [0, 0], sizes = [2, 32], strides = [1, 1]} : vector<8x32xf32> to vector<2x32xf32>
    %65 = vector.extract_strided_slice %63 {offsets = [0, 0], sizes = [6, 32], strides = [1, 1]} : vector<8x32xf32> to vector<6x32xf32>
    %66 = tpu.concatenate %64, %65 in 0 : vector<2x32xf32>, vector<6x32xf32> -> vector<8x32xf32>
    %cst_42 = arith.constant dense<0.000000e+00> : vector<8x32xf32>
    %67 = tpu.matmul %66, %29, %cst_42 {dimension_numbers = #tpu.dot_dimension_numbers<[1], [0], [0], [1], [0, 0, 1, 1], [], []>, precision = #tpu.contract_precision<fp32>} : vector<8x32xf32>, vector<32x32xf32>, vector<8x32xf32> -> vector<8x32xf32>
    %cst_43 = arith.constant dense<0.000000e+00> : vector<8x32xf32>
    %68 = tpu.matmul %63, %37, %cst_43 {dimension_numbers = #tpu.dot_dimension_numbers<[1], [0], [0], [1], [0, 0, 1, 1], [], []>, precision = #tpu.contract_precision<fp32>} : vector<8x32xf32>, vector<32x32xf32>, vector<8x32xf32> -> vector<8x32xf32>
    %69 = arith.mulf %67, %68 : vector<8x32xf32>
    %cst_44 = arith.constant dense<0.000000e+00> : vector<8x32xf32>
    %70 = tpu.matmul %66, %31, %cst_44 {dimension_numbers = #tpu.dot_dimension_numbers<[1], [0], [0], [1], [0, 0, 1, 1], [], []>, precision = #tpu.contract_precision<fp32>} : vector<8x32xf32>, vector<32x32xf32>, vector<8x32xf32> -> vector<8x32xf32>
    %cst_45 = arith.constant dense<0.000000e+00> : vector<8x32xf32>
    %71 = tpu.matmul %63, %39, %cst_45 {dimension_numbers = #tpu.dot_dimension_numbers<[1], [0], [0], [1], [0, 0, 1, 1], [], []>, precision = #tpu.contract_precision<fp32>} : vector<8x32xf32>, vector<32x32xf32>, vector<8x32xf32> -> vector<8x32xf32>
    %72 = arith.mulf %70, %71 : vector<8x32xf32>
    %73 = arith.addf %69, %72 : vector<8x32xf32>
    %cst_46 = arith.constant dense<0.000000e+00> : vector<8x32xf32>
    %74 = tpu.matmul %66, %33, %cst_46 {dimension_numbers = #tpu.dot_dimension_numbers<[1], [0], [0], [1], [0, 0, 1, 1], [], []>, precision = #tpu.contract_precision<fp32>} : vector<8x32xf32>, vector<32x32xf32>, vector<8x32xf32> -> vector<8x32xf32>
    %cst_47 = arith.constant dense<0.000000e+00> : vector<8x32xf32>
    %75 = tpu.matmul %63, %41, %cst_47 {dimension_numbers = #tpu.dot_dimension_numbers<[1], [0], [0], [1], [0, 0, 1, 1], [], []>, precision = #tpu.contract_precision<fp32>} : vector<8x32xf32>, vector<32x32xf32>, vector<8x32xf32> -> vector<8x32xf32>
    %76 = arith.mulf %74, %75 : vector<8x32xf32>
    %77 = arith.addf %73, %76 : vector<8x32xf32>
    %cst_48 = arith.constant dense<0.000000e+00> : vector<8x32xf32>
    %78 = tpu.matmul %66, %35, %cst_48 {dimension_numbers = #tpu.dot_dimension_numbers<[1], [0], [0], [1], [0, 0, 1, 1], [], []>, precision = #tpu.contract_precision<fp32>} : vector<8x32xf32>, vector<32x32xf32>, vector<8x32xf32> -> vector<8x32xf32>
    %cst_49 = arith.constant dense<0.000000e+00> : vector<8x32xf32>
    %79 = tpu.matmul %63, %43, %cst_49 {dimension_numbers = #tpu.dot_dimension_numbers<[1], [0], [0], [1], [0, 0, 1, 1], [], []>, precision = #tpu.contract_precision<fp32>} : vector<8x32xf32>, vector<32x32xf32>, vector<8x32xf32> -> vector<8x32xf32>
    %80 = arith.mulf %78, %79 : vector<8x32xf32>
    %81 = arith.addf %77, %80 : vector<8x32xf32>
    %82 = vector.extract_strided_slice %45 {offsets = [0, 0], sizes = [4, 32], strides = [1, 1]} : vector<8x32xf32> to vector<4x32xf32>
    %83 = vector.extract_strided_slice %81 {offsets = [0, 0], sizes = [4, 32], strides = [1, 1]} : vector<8x32xf32> to vector<4x32xf32>
    %84 = tpu.concatenate %82, %83 in 0 : vector<4x32xf32>, vector<4x32xf32> -> vector<8x32xf32>
    %cst_50 = arith.constant dense<0.000000e+00> : vector<8x32xf32>
    %85 = tpu.matmul %84, %29, %cst_50 {dimension_numbers = #tpu.dot_dimension_numbers<[1], [0], [0], [1], [0, 0, 1, 1], [], []>, precision = #tpu.contract_precision<fp32>} : vector<8x32xf32>, vector<32x32xf32>, vector<8x32xf32> -> vector<8x32xf32>
    %cst_51 = arith.constant dense<0.000000e+00> : vector<8x32xf32>
    %86 = tpu.matmul %81, %37, %cst_51 {dimension_numbers = #tpu.dot_dimension_numbers<[1], [0], [0], [1], [0, 0, 1, 1], [], []>, precision = #tpu.contract_precision<fp32>} : vector<8x32xf32>, vector<32x32xf32>, vector<8x32xf32> -> vector<8x32xf32>
    %87 = arith.mulf %85, %86 : vector<8x32xf32>
    %cst_52 = arith.constant dense<0.000000e+00> : vector<8x32xf32>
    %88 = tpu.matmul %84, %31, %cst_52 {dimension_numbers = #tpu.dot_dimension_numbers<[1], [0], [0], [1], [0, 0, 1, 1], [], []>, precision = #tpu.contract_precision<fp32>} : vector<8x32xf32>, vector<32x32xf32>, vector<8x32xf32> -> vector<8x32xf32>
    %cst_53 = arith.constant dense<0.000000e+00> : vector<8x32xf32>
    %89 = tpu.matmul %81, %39, %cst_53 {dimension_numbers = #tpu.dot_dimension_numbers<[1], [0], [0], [1], [0, 0, 1, 1], [], []>, precision = #tpu.contract_precision<fp32>} : vector<8x32xf32>, vector<32x32xf32>, vector<8x32xf32> -> vector<8x32xf32>
    %90 = arith.mulf %88, %89 : vector<8x32xf32>
    %91 = arith.addf %87, %90 : vector<8x32xf32>
    %cst_54 = arith.constant dense<0.000000e+00> : vector<8x32xf32>
    %92 = tpu.matmul %84, %33, %cst_54 {dimension_numbers = #tpu.dot_dimension_numbers<[1], [0], [0], [1], [0, 0, 1, 1], [], []>, precision = #tpu.contract_precision<fp32>} : vector<8x32xf32>, vector<32x32xf32>, vector<8x32xf32> -> vector<8x32xf32>
    %cst_55 = arith.constant dense<0.000000e+00> : vector<8x32xf32>
    %93 = tpu.matmul %81, %41, %cst_55 {dimension_numbers = #tpu.dot_dimension_numbers<[1], [0], [0], [1], [0, 0, 1, 1], [], []>, precision = #tpu.contract_precision<fp32>} : vector<8x32xf32>, vector<32x32xf32>, vector<8x32xf32> -> vector<8x32xf32>
    %94 = arith.mulf %92, %93 : vector<8x32xf32>
    %95 = arith.addf %91, %94 : vector<8x32xf32>
    %cst_56 = arith.constant dense<0.000000e+00> : vector<8x32xf32>
    %96 = tpu.matmul %84, %35, %cst_56 {dimension_numbers = #tpu.dot_dimension_numbers<[1], [0], [0], [1], [0, 0, 1, 1], [], []>, precision = #tpu.contract_precision<fp32>} : vector<8x32xf32>, vector<32x32xf32>, vector<8x32xf32> -> vector<8x32xf32>
    %cst_57 = arith.constant dense<0.000000e+00> : vector<8x32xf32>
    %97 = tpu.matmul %81, %43, %cst_57 {dimension_numbers = #tpu.dot_dimension_numbers<[1], [0], [0], [1], [0, 0, 1, 1], [], []>, precision = #tpu.contract_precision<fp32>} : vector<8x32xf32>, vector<32x32xf32>, vector<8x32xf32> -> vector<8x32xf32>
    %98 = arith.mulf %96, %97 : vector<8x32xf32>
    %99 = arith.addf %95, %98 : vector<8x32xf32>
    %c0_58 = arith.constant 0 : index
    %c0_59 = arith.constant 0 : index
    %100 = vector.load %arg11[%c0_58, %c0_59] : memref<1x32xf32, #tpu.memory_space<vmem>>, vector<1x32xf32>
    %cst_60 = arith.constant dense<0.000000e+00> : vector<1x32xf32>
    %101 = tpu.matmul %100, %29, %cst_60 {dimension_numbers = #tpu.dot_dimension_numbers<[1], [0], [0], [1], [0, 0, 1, 1], [], []>, precision = #tpu.contract_precision<fp32>} : vector<1x32xf32>, vector<32x32xf32>, vector<1x32xf32> -> vector<1x32xf32>
    %cst_61 = arith.constant dense<0.000000e+00> : vector<8x32xf32>
    %102 = tpu.matmul %99, %37, %cst_61 {dimension_numbers = #tpu.dot_dimension_numbers<[1], [0], [0], [1], [0, 0, 1, 1], [], []>, precision = #tpu.contract_precision<fp32>} : vector<8x32xf32>, vector<32x32xf32>, vector<8x32xf32> -> vector<8x32xf32>
    %103 = vector.broadcast %101 : vector<1x32xf32> to vector<8x32xf32>
    %104 = arith.mulf %103, %102 : vector<8x32xf32>
    %cst_62 = arith.constant dense<0.000000e+00> : vector<1x32xf32>
    %105 = tpu.matmul %100, %31, %cst_62 {dimension_numbers = #tpu.dot_dimension_numbers<[1], [0], [0], [1], [0, 0, 1, 1], [], []>, precision = #tpu.contract_precision<fp32>} : vector<1x32xf32>, vector<32x32xf32>, vector<1x32xf32> -> vector<1x32xf32>
    %cst_63 = arith.constant dense<0.000000e+00> : vector<8x32xf32>
    %106 = tpu.matmul %99, %39, %cst_63 {dimension_numbers = #tpu.dot_dimension_numbers<[1], [0], [0], [1], [0, 0, 1, 1], [], []>, precision = #tpu.contract_precision<fp32>} : vector<8x32xf32>, vector<32x32xf32>, vector<8x32xf32> -> vector<8x32xf32>
    %107 = vector.broadcast %105 : vector<1x32xf32> to vector<8x32xf32>
    %108 = arith.mulf %107, %106 : vector<8x32xf32>
    %109 = arith.addf %104, %108 : vector<8x32xf32>
    %cst_64 = arith.constant dense<0.000000e+00> : vector<1x32xf32>
    %110 = tpu.matmul %100, %33, %cst_64 {dimension_numbers = #tpu.dot_dimension_numbers<[1], [0], [0], [1], [0, 0, 1, 1], [], []>, precision = #tpu.contract_precision<fp32>} : vector<1x32xf32>, vector<32x32xf32>, vector<1x32xf32> -> vector<1x32xf32>
    %cst_65 = arith.constant dense<0.000000e+00> : vector<8x32xf32>
    %111 = tpu.matmul %99, %41, %cst_65 {dimension_numbers = #tpu.dot_dimension_numbers<[1], [0], [0], [1], [0, 0, 1, 1], [], []>, precision = #tpu.contract_precision<fp32>} : vector<8x32xf32>, vector<32x32xf32>, vector<8x32xf32> -> vector<8x32xf32>
    %112 = vector.broadcast %110 : vector<1x32xf32> to vector<8x32xf32>
    %113 = arith.mulf %112, %111 : vector<8x32xf32>
    %114 = arith.addf %109, %113 : vector<8x32xf32>
    %cst_66 = arith.constant dense<0.000000e+00> : vector<1x32xf32>
    %115 = tpu.matmul %100, %35, %cst_66 {dimension_numbers = #tpu.dot_dimension_numbers<[1], [0], [0], [1], [0, 0, 1, 1], [], []>, precision = #tpu.contract_precision<fp32>} : vector<1x32xf32>, vector<32x32xf32>, vector<1x32xf32> -> vector<1x32xf32>
    %cst_67 = arith.constant dense<0.000000e+00> : vector<8x32xf32>
    %116 = tpu.matmul %99, %43, %cst_67 {dimension_numbers = #tpu.dot_dimension_numbers<[1], [0], [0], [1], [0, 0, 1, 1], [], []>, precision = #tpu.contract_precision<fp32>} : vector<8x32xf32>, vector<32x32xf32>, vector<8x32xf32> -> vector<8x32xf32>
    %117 = vector.broadcast %115 : vector<1x32xf32> to vector<8x32xf32>
    %118 = arith.mulf %117, %116 : vector<8x32xf32>
    %119 = arith.addf %114, %118 : vector<8x32xf32>
    %120 = vector.extract_strided_slice %119 {offsets = [7, 0], sizes = [1, 32], strides = [1, 1]} : vector<8x32xf32> to vector<1x32xf32>
    %c0_68 = arith.constant 0 : index
    %c0_69 = arith.constant 0 : index
    %121 = vector.load %arg11[%c0_68, %c0_69] : memref<1x32xf32, #tpu.memory_space<vmem>>, vector<1x32xf32>
    tpu.vector_store %arg11[%c0_68, %c0_69], %120 {strides = array<i32>} : memref<1x32xf32, #tpu.memory_space<vmem>>, vector<1x32xf32>,
    %122 = arith.truncf %119 : vector<8x32xf32> to vector<8x32xbf16>
    %c0_70 = arith.constant 0 : index
    %c0_71 = arith.constant 0 : index
    %123 = vector.load %arg5[%c0_70, %c0_71] : memref<32x32xbf16, #tpu.memory_space<vmem>>, vector<32x32xbf16>
    %cst_72 = arith.constant dense<0.000000e+00> : vector<8x32xf32>
    %124 = tpu.matmul %122, %123, %cst_72 {dimension_numbers = #tpu.dot_dimension_numbers<[1], [0], [0], [1], [0, 0, 1, 1], [], []>} : vector<8x32xbf16>, vector<32x32xbf16>, vector<8x32xf32> -> vector<8x32xf32>
    %125 = arith.addf %3, %124 : vector<8x32xf32>
    %c0_73 = arith.constant 0 : index
    %c0_74 = arith.constant 0 : index
    %126 = vector.load %arg9[%c0_73, %c0_74] : memref<8x32xf32, #tpu.memory_space<vmem>>, vector<8x32xf32>
    tpu.vector_store %arg9[%c0_73, %c0_74], %125 {strides = array<i32>} : memref<8x32xf32, #tpu.memory_space<vmem>>, vector<8x32xf32>,
    %c3_i32 = arith.constant 3 : i32
    %127 = arith.cmpi eq, %arg0, %c3_i32 : i32
    %128 = arith.extui %127 : i1 to i32
    %c0_i32_75 = arith.constant 0 : i32
    %129 = arith.cmpi ne, %128, %c0_i32_75 : i32
    scf.if %129 {
      %c0_76 = arith.constant 0 : index
      %c0_77 = arith.constant 0 : index
      %130 = vector.load %arg11[%c0_76, %c0_77] : memref<1x32xf32, #tpu.memory_space<vmem>>, vector<1x32xf32>
      %c0_78 = arith.constant 0 : index
      %c0_79 = arith.constant 0 : index
      %131 = vector.load %arg10[%c0_78, %c0_79] : memref<1x32xf32, #tpu.memory_space<vmem>>, vector<1x32xf32>
      tpu.vector_store %arg10[%c0_78, %c0_79], %130 {strides = array<i32>} : memref<1x32xf32, #tpu.memory_space<vmem>>, vector<1x32xf32>,
    } else {
    }
    return
  }
  func.func @transform_0(%arg0: i32) -> (i32, i32) {
    %c0_i32 = arith.constant 0 : i32
    %c0_i32_0 = arith.constant 0 : i32
    return %arg0, %c0_i32 : i32, i32
  }
  func.func @transform_1(%arg0: i32) -> (i32, i32) {
    %c0_i32 = arith.constant 0 : i32
    %c0_i32_0 = arith.constant 0 : i32
    %c0_i32_1 = arith.constant 0 : i32
    return %c0_i32, %c0_i32_0 : i32, i32
  }
  func.func @transform_2(%arg0: i32) -> (i32, i32) {
    %c0_i32 = arith.constant 0 : i32
    %c0_i32_0 = arith.constant 0 : i32
    %c0_i32_1 = arith.constant 0 : i32
    return %c0_i32, %c0_i32_0 : i32, i32
  }
  func.func @transform_3(%arg0: i32) -> (i32, i32) {
    %c0_i32 = arith.constant 0 : i32
    %c0_i32_0 = arith.constant 0 : i32
    %c0_i32_1 = arith.constant 0 : i32
    return %c0_i32, %c0_i32_0 : i32, i32
  }
  func.func @transform_4(%arg0: i32) -> (i32, i32) {
    %c0_i32 = arith.constant 0 : i32
    %c0_i32_0 = arith.constant 0 : i32
    %c0_i32_1 = arith.constant 0 : i32
    return %c0_i32, %c0_i32_0 : i32, i32
  }
  func.func @transform_5(%arg0: i32) -> (i32, i32, i32) {
    %c0_i32 = arith.constant 0 : i32
    %c0_i32_0 = arith.constant 0 : i32
    %c0_i32_1 = arith.constant 0 : i32
    %c0_i32_2 = arith.constant 0 : i32
    return %c0_i32, %c0_i32_0, %c0_i32_1 : i32, i32, i32
  }
  func.func @transform_6(%arg0: i32) -> (i32, i32, i32) {
    %c0_i32 = arith.constant 0 : i32
    %c0_i32_0 = arith.constant 0 : i32
    %c0_i32_1 = arith.constant 0 : i32
    %c0_i32_2 = arith.constant 0 : i32
    return %c0_i32, %c0_i32_0, %c0_i32_1 : i32, i32, i32
  }
  func.func @transform_7(%arg0: i32) -> (i32, i32) {
    %c0_i32 = arith.constant 0 : i32
    %c0_i32_0 = arith.constant 0 : i32
    %c0_i32_1 = arith.constant 0 : i32
    return %c0_i32, %c0_i32_0 : i32, i32
  }
  func.func @transform_8(%arg0: i32) -> (i32, i32) {
    %c0_i32 = arith.constant 0 : i32
    %c0_i32_0 = arith.constant 0 : i32
    return %arg0, %c0_i32 : i32, i32
  }
  func.func @transform_9(%arg0: i32) -> (i32, i32) {
    %c0_i32 = arith.constant 0 : i32
    %c0_i32_0 = arith.constant 0 : i32
    %c0_i32_1 = arith.constant 0 : i32
    return %c0_i32, %c0_i32_0 : i32, i32
  }
}

module attributes {stable_mosaic.version = 11 : i64} {
  func.func @_mru_scan_kernel(%arg0: i32, %arg1: memref<8x32xf32, #tpu.memory_space<vmem>>, %arg2: memref<1x32xf32, #tpu.memory_space<vmem>>, %arg3: memref<1x32xf32, #tpu.memory_space<vmem>>, %arg4: memref<32x32xf32, #tpu.memory_space<vmem>>, %arg5: memref<32x32xbf16, #tpu.memory_space<vmem>>, %arg6: memref<4x32x32xf32, #tpu.memory_space<vmem>>, %arg7: memref<4x32x32xf32, #tpu.memory_space<vmem>>, %arg8: memref<1x32xf32, #tpu.memory_space<vmem>>, %arg9: memref<8x32xf32, #tpu.memory_space<vmem>>, %arg10: memref<1x32xf32, #tpu.memory_space<vmem>>, %arg11: memref<1x32xf32, #tpu.memory_space<vmem>>) attributes {dimension_semantics = [#tpu.dimension_semantics<arbitrary>], iteration_bounds = array<i64: 4>, scalar_prefetch = 0 : i64, scratch_operands = 1 : i64, tpu.core_type = #tpu.core_type<tc>, window_params = [{transform_indices = @transform_0, window_bounds = array<i64: 8, 32>}, {pipeline_mode = #tpu.pipeline_mode<synchronous>, transform_indices = @transform_1, window_bounds = array<i64: 1, 32>}, {pipeline_mode = #tpu.pipeline_mode<synchronous>, transform_indices = @transform_2, window_bounds = array<i64: 1, 32>}, {pipeline_mode = #tpu.pipeline_mode<synchronous>, transform_indices = @transform_3, window_bounds = array<i64: 32, 32>}, {pipeline_mode = #tpu.pipeline_mode<synchronous>, transform_indices = @transform_4, window_bounds = array<i64: 32, 32>}, {pipeline_mode = #tpu.pipeline_mode<synchronous>, transform_indices = @transform_5, window_bounds = array<i64: 4, 32, 32>}, {pipeline_mode = #tpu.pipeline_mode<synchronous>, transform_indices = @transform_6, window_bounds = array<i64: 4, 32, 32>}, {pipeline_mode = #tpu.pipeline_mode<synchronous>, transform_indices = @transform_7, window_bounds = array<i64: 1, 32>}, {transform_indices = @transform_8, window_bounds = array<i64: 8, 32>}, {pipeline_mode = #tpu.pipeline_mode<synchronous>, transform_indices = @transform_9, window_bounds = array<i64: 1, 32>}]} {
    %c0_i32 = arith.constant 0 : i32
    %0 = arith.cmpi eq, %arg0, %c0_i32 : i32
    %1 = arith.extui %0 : i1 to i32
    %c0_i32_0 = arith.constant 0 : i32
    %2 = arith.cmpi ne, %1, %c0_i32_0 : i32
    scf.if %2 {
      %c0_76 = arith.constant 0 : index
      %c0_77 = arith.constant 0 : index
      %130 = vector.load %arg8[%c0_76, %c0_77] : memref<1x32xf32, #tpu.memory_space<vmem>>, vector<1x32xf32>
      %c0_78 = arith.constant 0 : index
      %c0_79 = arith.constant 0 : index
      %131 = vector.load %arg11[%c0_78, %c0_79] : memref<1x32xf32, #tpu.memory_space<vmem>>, vector<1x32xf32>
      tpu.vector_store %arg11[%c0_78, %c0_79], %130 {strides = array<i32>} : memref<1x32xf32, #tpu.memory_space<vmem>>, vector<1x32xf32>,
    } else {
    }
    %c0 = arith.constant 0 : index
    %c0_1 = arith.constant 0 : index
    %3 = vector.load %arg1[%c0, %c0_1] : memref<8x32xf32, #tpu.memory_space<vmem>>, vector<8x32xf32>
    %cst = arith.constant dense<0.000000e+00> : vector<8xf32>
    %4 = vector.multi_reduction <add>, %3, %cst [1] : vector<8x32xf32> to vector<8xf32>
    %5 = vector.shape_cast %4 : vector<8xf32> to vector<8x1xf32>
    %cst_2 = arith.constant 3.200000e+01 : f32
    %6 = vector.broadcast %cst_2 : f32 to vector<8x1xf32>
    %7 = arith.divf %5, %6 : vector<8x1xf32>
    %8 = vector.broadcast %7 : vector<8x1xf32> to vector<8x32xf32>
    %9 = arith.subf %3, %8 : vector<8x32xf32>
    %10 = arith.mulf %9, %9 : vector<8x32xf32>
    %cst_3 = arith.constant dense<0.000000e+00> : vector<8xf32>
    %11 = vector.multi_reduction <add>, %10, %cst_3 [1] : vector<8x32xf32> to vector<8xf32>
    %12 = vector.shape_cast %11 : vector<8xf32> to vector<8x1xf32>
    %cst_4 = arith.constant 3.200000e+01 : f32
    %13 = vector.broadcast %cst_4 : f32 to vector<8x1xf32>
    %14 = arith.divf %12, %13 : vector<8x1xf32>
    %cst_5 = arith.constant 9.99999974E-6 : f32
    %15 = vector.broadcast %cst_5 : f32 to vector<8x1xf32>
    %16 = arith.addf %14, %15 : vector<8x1xf32>
    %17 = math.rsqrt %16 : vector<8x1xf32>
    %18 = vector.broadcast %17 : vector<8x1xf32> to vector<8x32xf32>
    %19 = arith.mulf %9, %18 : vector<8x32xf32>
    %c0_6 = arith.constant 0 : index
    %c0_7 = arith.constant 0 : index
    %20 = vector.load %arg2[%c0_6, %c0_7] : memref<1x32xf32, #tpu.memory_space<vmem>>, vector<1x32xf32>
    %21 = vector.broadcast %20 : vector<1x32xf32> to vector<8x32xf32>
    %22 = arith.mulf %19, %21 : vector<8x32xf32>
    %c0_8 = arith.constant 0 : index
    %c0_9 = arith.constant 0 : index
    %23 = vector.load %arg3[%c0_8, %c0_9] : memref<1x32xf32, #tpu.memory_space<vmem>>, vector<1x32xf32>
    %c0_10 = arith.constant 0 : index
    %c0_11 = arith.constant 0 : index
    %24 = vector.load %arg4[%c0_10, %c0_11] : memref<32x32xf32, #tpu.memory_space<vmem>>, vector<32x32xf32>
    %cst_12 = arith.constant dense<0.000000e+00> : vector<8x32xf32>
    %25 = tpu.matmul %22, %24, %cst_12 {dimension_numbers = #tpu.dot_dimension_numbers<[1], [0], [0], [1], [0, 0, 1, 1], [], []>, precision = #tpu.contract_precision<fp32>} : vector<8x32xf32>, vector<32x32xf32>, vector<8x32xf32> -> vector<8x32xf32>
    %26 = vector.broadcast %23 : vector<1x32xf32> to vector<8x32xf32>
    %27 = arith.addf %25, %26 : vector<8x32xf32>
    %c0_13 = arith.constant 0 : index
    %c0_14 = arith.constant 0 : index
    %c0_15 = arith.constant 0 : index
    %28 = vector.load %arg6[%c0_13, %c0_14, %c0_15] : memref<4x32x32xf32, #tpu.memory_space<vmem>>, vector<1x32x32xf32>
    %29 = vector.shape_cast %28 : vector<1x32x32xf32> to vector<32x32xf32>
    %c1 = arith.constant 1 : index
    %c0_16 = arith.constant 0 : index
    %c0_17 = arith.constant 0 : index
    %30 = vector.load %arg6[%c1, %c0_16, %c0_17] : memref<4x32x32xf32, #tpu.memory_space<vmem>>, vector<1x32x32xf32>
    %31 = vector.shape_cast %30 : vector<1x32x32xf32> to vector<32x32xf32>
    %c2 = arith.constant 2 : index
    %c0_18 = arith.constant 0 : index
    %c0_19 = arith.constant 0 : index
    %32 = vector.load %arg6[%c2, %c0_18, %c0_19] : memref<4x32x32xf32, #tpu.memory_space<vmem>>, vector<1x32x32xf32>
    %33 = vector.shape_cast %32 : vector<1x32x32xf32> to vector<32x32xf32>
    %c3 = arith.constant 3 : index
    %c0_20 = arith.constant 0 : index
    %c0_21 = arith.constant 0 : index
    %34 = vector.load %arg6[%c3, %c0_20, %c0_21] : memref<4x32x32xf32, #tpu.memory_space<vmem>>, vector<1x32x32xf32>
    %35 = vector.shape_cast %34 : vector<1x32x32xf32> to vector<32x32xf32>
    %c0_22 = arith.constant 0 : index
    %c0_23 = arith.constant 0 : index
    %c0_24 = arith.constant 0 : index
    %36 = vector.load %arg7[%c0_22, %c0_23, %c0_24] : memref<4x32x32xf32, #tpu.memory_space<vmem>>, vector<1x32x32xf32>
    %37 = vector.shape_cast %36 : vector<1x32x32xf32> to vector<32x32xf32>
    %c1_25 = arith.constant 1 : index
    %c0_26 = arith.constant 0 : index
    %c0_27 = arith.constant 0 : index
    %38 = vector.load %arg7[%c1_25, %c0_26, %c0_27] : memref<4x32x32xf32, #tpu.memory_space<vmem>>, vector<1x32x32xf32>
    %39 = vector.shape_cast %38 : vector<1x32x32xf32> to vector<32x32xf32>
    %c2_28 = arith.constant 2 : index
    %c0_29 = arith.constant 0 : index
    %c0_30 = arith.constant 0 : index
    %40 = vector.load %arg7[%c2_28, %c0_29, %c0_30] : memref<4x32x32xf32, #tpu.memory_space<vmem>>, vector<1x32x32xf32>
    %41 = vector.shape_cast %40 : vector<1x32x32xf32> to vector<32x32xf32>
    %c3_31 = arith.constant 3 : index
    %c0_32 = arith.constant 0 : index
    %c0_33 = arith.constant 0 : index
    %42 = vector.load %arg7[%c3_31, %c0_32, %c0_33] : memref<4x32x32xf32, #tpu.memory_space<vmem>>, vector<1x32x32xf32>
    %43 = vector.shape_cast %42 : vector<1x32x32xf32> to vector<32x32xf32>
    %44 = vector.shape_cast %23 : vector<1x32xf32> to vector<1x32xf32>
    %45 = vector.broadcast %44 : vector<1x32xf32> to vector<8x32xf32>
    %46 = vector.extract_strided_slice %45 {offsets = [0, 0], sizes = [1, 32], strides = [1, 1]} : vector<8x32xf32> to vector<1x32xf32>
    %47 = vector.extract_strided_slice %27 {offsets = [0, 0], sizes = [7, 32], strides = [1, 1]} : vector<8x32xf32> to vector<7x32xf32>
    %48 = tpu.concatenate %46, %47 in 0 : vector<1x32xf32>, vector<7x32xf32> -> vector<8x32xf32>
    %cst_34 = arith.constant dense<0.000000e+00> : vector<8x32xf32>
    %49 = tpu.matmul %48, %29, %cst_34 {dimension_numbers = #tpu.dot_dimension_numbers<[1], [0], [0], [1], [0, 0, 1, 1], [], []>, precision = #tpu.contract_precision<fp32>} : vector<8x32xf32>, vector<32x32xf32>, vector<8x32xf32> -> vector<8x32xf32>
    %cst_35 = arith.constant dense<0.000000e+00> : vector<8x32xf32>
    %50 = tpu.matmul %27, %37, %cst_35 {dimension_numbers = #tpu.dot_dimension_numbers<[1], [0], [0], [1], [0, 0, 1, 1], [], []>, precision = #tpu.contract_precision<fp32>} : vector<8x32xf32>, vector<32x32xf32>, vector<8x32xf32> -> vector<8x32xf32>
    %51 = arith.mulf %49, %50 : vector<8x32xf32>
    %cst_36 = arith.constant dense<0.000000e+00> : vector<8x32xf32>
    %52 = tpu.matmul %48, %31, %cst_36 {dimension_numbers = #tpu.dot_dimension_numbers<[1], [0], [0], [1], [0, 0, 1, 1], [], []>, precision = #tpu.contract_precision<fp32>} : vector<8x32xf32>, vector<32x32xf32>, vector<8x32xf32> -> vector<8x32xf32>
    %cst_37 = arith.constant dense<0.000000e+00> : vector<8x32xf32>
    %53 = tpu.matmul %27, %39, %cst_37 {dimension_numbers = #tpu.dot_dimension_numbers<[1], [0], [0], [1], [0, 0, 1, 1], [], []>, precision = #tpu.contract_precision<fp32>} : vector<8x32xf32>, vector<32x32xf32>, vector<8x32xf32> -> vector<8x32xf32>
    %54 = arith.mulf %52, %53 : vector<8x32xf32>
    %55 = arith.addf %51, %54 : vector<8x32xf32>
    %cst_38 = arith.constant dense<0.000000e+00> : vector<8x32xf32>
    %56 = tpu.matmul %48, %33, %cst_38 {dimension_numbers = #tpu.dot_dimension_numbers<[1], [0], [0], [1], [0, 0, 1, 1], [], []>, precision = #tpu.contract_precision<fp32>} : vector<8x32xf32>, vector<32x32xf32>, vector<8x32xf32> -> vector<8x32xf32>
    %cst_39 = arith.constant dense<0.000000e+00> : vector<8x32xf32>
    %57 = tpu.matmul %27, %41, %cst_39 {dimension_numbers = #tpu.dot_dimension_numbers<[1], [0], [0], [1], [0, 0, 1, 1], [], []>, precision = #tpu.contract_precision<fp32>} : vector<8x32xf32>, vector<32x32xf32>, vector<8x32xf32> -> vector<8x32xf32>
    %58 = arith.mulf %56, %57 : vector<8x32xf32>
    %59 = arith.addf %55, %58 : vector<8x32xf32>
    %cst_40 = arith.constant dense<0.000000e+00> : vector<8x32xf32>
    %60 = tpu.matmul %48, %35, %cst_40 {dimension_numbers = #tpu.dot_dimension_numbers<[1], [0], [0], [1], [0, 0, 1, 1], [], []>, precision = #tpu.contract_precision<fp32>} : vector<8x32xf32>, vector<32x32xf32>, vector<8x32xf32> -> vector<8x32xf32>
    %cst_41 = arith.constant dense<0.000000e+00> : vector<8x32xf32>
    %61 = tpu.matmul %27, %43, %cst_41 {dimension_numbers = #tpu.dot_dimension_numbers<[1], [0], [0], [1], [0, 0, 1, 1], [], []>, precision = #tpu.contract_precision<fp32>} : vector<8x32xf32>, vector<32x32xf32>, vector<8x32xf32> -> vector<8x32xf32>
    %62 = arith.mulf %60, %61 : vector<8x32xf32>
    %63 = arith.addf %59, %62 : vector<8x32xf32>
    %64 = vector.extract_strided_slice %45 {offsets = [0, 0], sizes = [2, 32], strides = [1, 1]} : vector<8x32xf32> to vector<2x32xf32>
    %65 = vector.extract_strided_slice %63 {offsets = [0, 0], sizes = [6, 32], strides = [1, 1]} : vector<8x32xf32> to vector<6x32xf32>
    %66 = tpu.concatenate %64, %65 in 0 : vector<2x32xf32>, vector<6x32xf32> -> vector<8x32xf32>
    %cst_42 = arith.constant dense<0.000000e+00> : vector<8x32xf32>
    %67 = tpu.matmul %66, %29, %cst_42 {dimension_numbers = #tpu.dot_dimension_numbers<[1], [0], [0], [1], [0, 0, 1, 1], [], []>, precision = #tpu.contract_precision<fp32>} : vector<8x32xf32>, vector<32x32xf32>, vector<8x32xf32> -> vector<8x32xf32>
    %cst_43 = arith.constant dense<0.000000e+00> : vector<8x32xf32>
    %68 = tpu.matmul %63, %37, %cst_43 {dimension_numbers = #tpu.dot_dimension_numbers<[1], [0], [0], [1], [0, 0, 1, 1], [], []>, precision = #tpu.contract_precision<fp32>} : vector<8x32xf32>, vector<32x32xf32>, vector<8x32xf32> -> vector<8x32xf32>
    %69 = arith.mulf %67, %68 : vector<8x32xf32>
    %cst_44 = arith.constant dense<0.000000e+00> : vector<8x32xf32>
    %70 = tpu.matmul %66, %31, %cst_44 {dimension_numbers = #tpu.dot_dimension_numbers<[1], [0], [0], [1], [0, 0, 1, 1], [], []>, precision = #tpu.contract_precision<fp32>} : vector<8x32xf32>, vector<32x32xf32>, vector<8x32xf32> -> vector<8x32xf32>
    %cst_45 = arith.constant dense<0.000000e+00> : vector<8x32xf32>
    %71 = tpu.matmul %63, %39, %cst_45 {dimension_numbers = #tpu.dot_dimension_numbers<[1], [0], [0], [1], [0, 0, 1, 1], [], []>, precision = #tpu.contract_precision<fp32>} : vector<8x32xf32>, vector<32x32xf32>, vector<8x32xf32> -> vector<8x32xf32>
    %72 = arith.mulf %70, %71 : vector<8x32xf32>
    %73 = arith.addf %69, %72 : vector<8x32xf32>
    %cst_46 = arith.constant dense<0.000000e+00> : vector<8x32xf32>
    %74 = tpu.matmul %66, %33, %cst_46 {dimension_numbers = #tpu.dot_dimension_numbers<[1], [0], [0], [1], [0, 0, 1, 1], [], []>, precision = #tpu.contract_precision<fp32>} : vector<8x32xf32>, vector<32x32xf32>, vector<8x32xf32> -> vector<8x32xf32>
    %cst_47 = arith.constant dense<0.000000e+00> : vector<8x32xf32>
    %75 = tpu.matmul %63, %41, %cst_47 {dimension_numbers = #tpu.dot_dimension_numbers<[1], [0], [0], [1], [0, 0, 1, 1], [], []>, precision = #tpu.contract_precision<fp32>} : vector<8x32xf32>, vector<32x32xf32>, vector<8x32xf32> -> vector<8x32xf32>
    %76 = arith.mulf %74, %75 : vector<8x32xf32>
    %77 = arith.addf %73, %76 : vector<8x32xf32>
    %cst_48 = arith.constant dense<0.000000e+00> : vector<8x32xf32>
    %78 = tpu.matmul %66, %35, %cst_48 {dimension_numbers = #tpu.dot_dimension_numbers<[1], [0], [0], [1], [0, 0, 1, 1], [], []>, precision = #tpu.contract_precision<fp32>} : vector<8x32xf32>, vector<32x32xf32>, vector<8x32xf32> -> vector<8x32xf32>
    %cst_49 = arith.constant dense<0.000000e+00> : vector<8x32xf32>
    %79 = tpu.matmul %63, %43, %cst_49 {dimension_numbers = #tpu.dot_dimension_numbers<[1], [0], [0], [1], [0, 0, 1, 1], [], []>, precision = #tpu.contract_precision<fp32>} : vector<8x32xf32>, vector<32x32xf32>, vector<8x32xf32> -> vector<8x32xf32>
    %80 = arith.mulf %78, %79 : vector<8x32xf32>
    %81 = arith.addf %77, %80 : vector<8x32xf32>
    %82 = vector.extract_strided_slice %45 {offsets = [0, 0], sizes = [4, 32], strides = [1, 1]} : vector<8x32xf32> to vector<4x32xf32>
    %83 = vector.extract_strided_slice %81 {offsets = [0, 0], sizes = [4, 32], strides = [1, 1]} : vector<8x32xf32> to vector<4x32xf32>
    %84 = tpu.concatenate %82, %83 in 0 : vector<4x32xf32>, vector<4x32xf32> -> vector<8x32xf32>
    %cst_50 = arith.constant dense<0.000000e+00> : vector<8x32xf32>
    %85 = tpu.matmul %84, %29, %cst_50 {dimension_numbers = #tpu.dot_dimension_numbers<[1], [0], [0], [1], [0, 0, 1, 1], [], []>, precision = #tpu.contract_precision<fp32>} : vector<8x32xf32>, vector<32x32xf32>, vector<8x32xf32> -> vector<8x32xf32>
    %cst_51 = arith.constant dense<0.000000e+00> : vector<8x32xf32>
    %86 = tpu.matmul %81, %37, %cst_51 {dimension_numbers = #tpu.dot_dimension_numbers<[1], [0], [0], [1], [0, 0, 1, 1], [], []>, precision = #tpu.contract_precision<fp32>} : vector<8x32xf32>, vector<32x32xf32>, vector<8x32xf32> -> vector<8x32xf32>
    %87 = arith.mulf %85, %86 : vector<8x32xf32>
    %cst_52 = arith.constant dense<0.000000e+00> : vector<8x32xf32>
    %88 = tpu.matmul %84, %31, %cst_52 {dimension_numbers = #tpu.dot_dimension_numbers<[1], [0], [0], [1], [0, 0, 1, 1], [], []>, precision = #tpu.contract_precision<fp32>} : vector<8x32xf32>, vector<32x32xf32>, vector<8x32xf32> -> vector<8x32xf32>
    %cst_53 = arith.constant dense<0.000000e+00> : vector<8x32xf32>
    %89 = tpu.matmul %81, %39, %cst_53 {dimension_numbers = #tpu.dot_dimension_numbers<[1], [0], [0], [1], [0, 0, 1, 1], [], []>, precision = #tpu.contract_precision<fp32>} : vector<8x32xf32>, vector<32x32xf32>, vector<8x32xf32> -> vector<8x32xf32>
    %90 = arith.mulf %88, %89 : vector<8x32xf32>
    %91 = arith.addf %87, %90 : vector<8x32xf32>
    %cst_54 = arith.constant dense<0.000000e+00> : vector<8x32xf32>
    %92 = tpu.matmul %84, %33, %cst_54 {dimension_numbers = #tpu.dot_dimension_numbers<[1], [0], [0], [1], [0, 0, 1, 1], [], []>, precision = #tpu.contract_precision<fp32>} : vector<8x32xf32>, vector<32x32xf32>, vector<8x32xf32> -> vector<8x32xf32>
    %cst_55 = arith.constant dense<0.000000e+00> : vector<8x32xf32>
    %93 = tpu.matmul %81, %41, %cst_55 {dimension_numbers = #tpu.dot_dimension_numbers<[1], [0], [0], [1], [0, 0, 1, 1], [], []>, precision = #tpu.contract_precision<fp32>} : vector<8x32xf32>, vector<32x32xf32>, vector<8x32xf32> -> vector<8x32xf32>
    %94 = arith.mulf %92, %93 : vector<8x32xf32>
    %95 = arith.addf %91, %94 : vector<8x32xf32>
    %cst_56 = arith.constant dense<0.000000e+00> : vector<8x32xf32>
    %96 = tpu.matmul %84, %35, %cst_56 {dimension_numbers = #tpu.dot_dimension_numbers<[1], [0], [0], [1], [0, 0, 1, 1], [], []>, precision = #tpu.contract_precision<fp32>} : vector<8x32xf32>, vector<32x32xf32>, vector<8x32xf32> -> vector<8x32xf32>
    %cst_57 = arith.constant dense<0.000000e+00> : vector<8x32xf32>
    %97 = tpu.matmul %81, %43, %cst_57 {dimension_numbers = #tpu.dot_dimension_numbers<[1], [0], [0], [1], [0, 0, 1, 1], [], []>, precision = #tpu.contract_precision<fp32>} : vector<8x32xf32>, vector<32x32xf32>, vector<8x32xf32> -> vector<8x32xf32>
    %98 = arith.mulf %96, %97 : vector<8x32xf32>
    %99 = arith.addf %95, %98 : vector<8x32xf32>
    %c0_58 = arith.constant 0 : index
    %c0_59 = arith.constant 0 : index
    %100 = vector.load %arg11[%c0_58, %c0_59] : memref<1x32xf32, #tpu.memory_space<vmem>>, vector<1x32xf32>
    %cst_60 = arith.constant dense<0.000000e+00> : vector<1x32xf32>
    %101 = tpu.matmul %100, %29, %cst_60 {dimension_numbers = #tpu.dot_dimension_numbers<[1], [0], [0], [1], [0, 0, 1, 1], [], []>, precision = #tpu.contract_precision<fp32>} : vector<1x32xf32>, vector<32x32xf32>, vector<1x32xf32> -> vector<1x32xf32>
    %cst_61 = arith.constant dense<0.000000e+00> : vector<8x32xf32>
    %102 = tpu.matmul %99, %37, %cst_61 {dimension_numbers = #tpu.dot_dimension_numbers<[1], [0], [0], [1], [0, 0, 1, 1], [], []>, precision = #tpu.contract_precision<fp32>} : vector<8x32xf32>, vector<32x32xf32>, vector<8x32xf32> -> vector<8x32xf32>
    %103 = vector.broadcast %101 : vector<1x32xf32> to vector<8x32xf32>
    %104 = arith.mulf %103, %102 : vector<8x32xf32>
    %cst_62 = arith.constant dense<0.000000e+00> : vector<1x32xf32>
    %105 = tpu.matmul %100, %31, %cst_62 {dimension_numbers = #tpu.dot_dimension_numbers<[1], [0], [0], [1], [0, 0, 1, 1], [], []>, precision = #tpu.contract_precision<fp32>} : vector<1x32xf32>, vector<32x32xf32>, vector<1x32xf32> -> vector<1x32xf32>
    %cst_63 = arith.constant dense<0.000000e+00> : vector<8x32xf32>
    %106 = tpu.matmul %99, %39, %cst_63 {dimension_numbers = #tpu.dot_dimension_numbers<[1], [0], [0], [1], [0, 0, 1, 1], [], []>, precision = #tpu.contract_precision<fp32>} : vector<8x32xf32>, vector<32x32xf32>, vector<8x32xf32> -> vector<8x32xf32>
    %107 = vector.broadcast %105 : vector<1x32xf32> to vector<8x32xf32>
    %108 = arith.mulf %107, %106 : vector<8x32xf32>
    %109 = arith.addf %104, %108 : vector<8x32xf32>
    %cst_64 = arith.constant dense<0.000000e+00> : vector<1x32xf32>
    %110 = tpu.matmul %100, %33, %cst_64 {dimension_numbers = #tpu.dot_dimension_numbers<[1], [0], [0], [1], [0, 0, 1, 1], [], []>, precision = #tpu.contract_precision<fp32>} : vector<1x32xf32>, vector<32x32xf32>, vector<1x32xf32> -> vector<1x32xf32>
    %cst_65 = arith.constant dense<0.000000e+00> : vector<8x32xf32>
    %111 = tpu.matmul %99, %41, %cst_65 {dimension_numbers = #tpu.dot_dimension_numbers<[1], [0], [0], [1], [0, 0, 1, 1], [], []>, precision = #tpu.contract_precision<fp32>} : vector<8x32xf32>, vector<32x32xf32>, vector<8x32xf32> -> vector<8x32xf32>
    %112 = vector.broadcast %110 : vector<1x32xf32> to vector<8x32xf32>
    %113 = arith.mulf %112, %111 : vector<8x32xf32>
    %114 = arith.addf %109, %113 : vector<8x32xf32>
    %cst_66 = arith.constant dense<0.000000e+00> : vector<1x32xf32>
    %115 = tpu.matmul %100, %35, %cst_66 {dimension_numbers = #tpu.dot_dimension_numbers<[1], [0], [0], [1], [0, 0, 1, 1], [], []>, precision = #tpu.contract_precision<fp32>} : vector<1x32xf32>, vector<32x32xf32>, vector<1x32xf32> -> vector<1x32xf32>
    %cst_67 = arith.constant dense<0.000000e+00> : vector<8x32xf32>
    %116 = tpu.matmul %99, %43, %cst_67 {dimension_numbers = #tpu.dot_dimension_numbers<[1], [0], [0], [1], [0, 0, 1, 1], [], []>, precision = #tpu.contract_precision<fp32>} : vector<8x32xf32>, vector<32x32xf32>, vector<8x32xf32> -> vector<8x32xf32>
    %117 = vector.broadcast %115 : vector<1x32xf32> to vector<8x32xf32>
    %118 = arith.mulf %117, %116 : vector<8x32xf32>
    %119 = arith.addf %114, %118 : vector<8x32xf32>
    %120 = vector.extract_strided_slice %119 {offsets = [7, 0], sizes = [1, 32], strides = [1, 1]} : vector<8x32xf32> to vector<1x32xf32>
    %c0_68 = arith.constant 0 : index
    %c0_69 = arith.constant 0 : index
    %121 = vector.load %arg11[%c0_68, %c0_69] : memref<1x32xf32, #tpu.memory_space<vmem>>, vector<1x32xf32>
    tpu.vector_store %arg11[%c0_68, %c0_69], %120 {strides = array<i32>} : memref<1x32xf32, #tpu.memory_space<vmem>>, vector<1x32xf32>,
    %122 = arith.truncf %119 : vector<8x32xf32> to vector<8x32xbf16>
    %c0_70 = arith.constant 0 : index
    %c0_71 = arith.constant 0 : index
    %123 = vector.load %arg5[%c0_70, %c0_71] : memref<32x32xbf16, #tpu.memory_space<vmem>>, vector<32x32xbf16>
    %cst_72 = arith.constant dense<0.000000e+00> : vector<8x32xf32>
    %124 = tpu.matmul %122, %123, %cst_72 {dimension_numbers = #tpu.dot_dimension_numbers<[1], [0], [0], [1], [0, 0, 1, 1], [], []>} : vector<8x32xbf16>, vector<32x32xbf16>, vector<8x32xf32> -> vector<8x32xf32>
    %125 = arith.addf %3, %124 : vector<8x32xf32>
    %c0_73 = arith.constant 0 : index
    %c0_74 = arith.constant 0 : index
    %126 = vector.load %arg9[%c0_73, %c0_74] : memref<8x32xf32, #tpu.memory_space<vmem>>, vector<8x32xf32>
    tpu.vector_store %arg9[%c0_73, %c0_74], %125 {strides = array<i32>} : memref<8x32xf32, #tpu.memory_space<vmem>>, vector<8x32xf32>,
    %c3_i32 = arith.constant 3 : i32
    %127 = arith.cmpi eq, %arg0, %c3_i32 : i32
    %128 = arith.extui %127 : i1 to i32
    %c0_i32_75 = arith.constant 0 : i32
    %129 = arith.cmpi ne, %128, %c0_i32_75 : i32
    scf.if %129 {
      %c0_76 = arith.constant 0 : index
      %c0_77 = arith.constant 0 : index
      %130 = vector.load %arg11[%c0_76, %c0_77] : memref<1x32xf32, #tpu.memory_space<vmem>>, vector<1x32xf32>
      %c0_78 = arith.constant 0 : index
      %c0_79 = arith.constant 0 : index
      %131 = vector.load %arg10[%c0_78, %c0_79] : memref<1x32xf32, #tpu.memory_space<vmem>>, vector<1x32xf32>
      tpu.vector_store %arg10[%c0_78, %c0_79], %130 {strides = array<i32>} : memref<1x32xf32, #tpu.memory_space<vmem>>, vector<1x32xf32>,
    } else {
    }
    return
  }
  func.func @transform_0(%arg0: i32) -> (i32, i32) {
    %c0_i32 = arith.constant 0 : i32
    %c0_i32_0 = arith.constant 0 : i32
    return %arg0, %c0_i32 : i32, i32
  }
  func.func @transform_1(%arg0: i32) -> (i32, i32) {
    %c0_i32 = arith.constant 0 : i32
    %c0_i32_0 = arith.constant 0 : i32
    %c0_i32_1 = arith.constant 0 : i32
    return %c0_i32, %c0_i32_0 : i32, i32
  }
  func.func @transform_2(%arg0: i32) -> (i32, i32) {
    %c0_i32 = arith.constant 0 : i32
    %c0_i32_0 = arith.constant 0 : i32
    %c0_i32_1 = arith.constant 0 : i32
    return %c0_i32, %c0_i32_0 : i32, i32
  }
  func.func @transform_3(%arg0: i32) -> (i32, i32) {
    %c0_i32 = arith.constant 0 : i32
    %c0_i32_0 = arith.constant 0 : i32
    %c0_i32_1 = arith.constant 0 : i32
    return %c0_i32, %c0_i32_0 : i32, i32
  }
  func.func @transform_4(%arg0: i32) -> (i32, i32) {
    %c0_i32 = arith.constant 0 : i32
    %c0_i32_0 = arith.constant 0 : i32
    %c0_i32_1 = arith.constant 0 : i32
    return %c0_i32, %c0_i32_0 : i32, i32
  }
  func.func @transform_5(%arg0: i32) -> (i32, i32, i32) {
    %c0_i32 = arith.constant 0 : i32
    %c0_i32_0 = arith.constant 0 : i32
    %c0_i32_1 = arith.constant 0 : i32
    %c0_i32_2 = arith.constant 0 : i32
    return %c0_i32, %c0_i32_0, %c0_i32_1 : i32, i32, i32
  }
  func.func @transform_6(%arg0: i32) -> (i32, i32, i32) {
    %c0_i32 = arith.constant 0 : i32
    %c0_i32_0 = arith.constant 0 : i32
    %c0_i32_1 = arith.constant 0 : i32
    %c0_i32_2 = arith.constant 0 : i32
    return %c0_i32, %c0_i32_0, %c0_i32_1 : i32, i32, i32
  }
  func.func @transform_7(%arg0: i32) -> (i32, i32) {
    %c0_i32 = arith.constant 0 : i32
    %c0_i32_0 = arith.constant 0 : i32
    %c0_i32_1 = arith.constant 0 : i32
    return %c0_i32, %c0_i32_0 : i32, i32
  }
  func.func @transform_8(%arg0: i32) -> (i32, i32) {
    %c0_i32 = arith.constant 0 : i32
    %c0_i32_0 = arith.constant 0 : i32
    return %arg0, %c0_i32 : i32, i32
  }
  func.func @transform_9(%arg0: i32) -> (i32, i32) {
    %c0_i32 = arith.constant 0 : i32
    %c0_i32_0 = arith.constant 0 : i32
    %c0_i32_1 = arith.constant 0 : i32
    return %c0_i32, %c0_i32_0 : i32, i32
  }
}

</mosaic_0001>

<bundles_post_ra>
// kernel: tpu_custom_call.1
= control target key start
LH: loop header
LB: loop body
LE: loop exit
PB: predicated region body
PF: predicated region fallthrough
CT: control target
= control target key end

     0   :  { %s24104_s0 = inlined_call_operand.hbm [shape: f32[32,32], index: 0, kind: input, shape index: {}]   ;;  %s24105_s1 = inlined_call_operand.vmem [shape: f32[1,32], index: 1, kind: input, shape index: {}]   ;;  %s24106_s2 = inlined_call_operand.vmem [shape: f32[1,32], index: 2, kind: input, shape index: {}]   ;;  %s24107_s3 = inlined_call_operand.hbm [shape: f32[32,32], index: 3, kind: input, shape index: {}]   ;;  %s24108_s4 = inlined_call_operand.hbm [shape: bf16[32,32], index: 4, kind: input, shape index: {}]   ;;  %s24109_s5 = inlined_call_operand.hbm [shape: f32[4,32,32], index: 5, kind: input, shape index: {}]   ;;  %s24110_s6 = inlined_call_operand.hbm [shape: f32[4,32,32], index: 6, kind: input, shape index: {}]   ;;  %s24111_s7 = inlined_call_operand.vmem [shape: f32[1,32], index: 7, kind: input, shape index: {}]   ;;  %s24112_s8 = inlined_call_operand.hbm [shape: f32[32,32], index: 8, kind: output, shape index: {0}]   ;;  %s24113_s9 = inlined_call_operand.hbm [shape: f32[1,32], index: 9, kind: output, shape index: {1}]  }
   0x1   :  { %24212 = sst [smem:[#allocation59_spill]] %s24107_s3 }
   0x2   :  { %24213 = sst [smem:[#allocation60_spill]] %s24113_s9 }
   0x3   :  { %15 = vsyncpa [#allocation4], 0 }
   0x4   :  { %17 = vsyncpa [#allocation4 + $0x1], 0 }
   0x5   :  { %18 = vsyncpa [#allocation7], 0 }
   0x6   :  { %19 = vsyncpa [#allocation10], 0 }
   0x7   :  { %20 = vsyncpa [#allocation5], 0 }
   0x8   :  { %22 = vsyncpa [#allocation5 + $0x1], 0 }
   0x9   :  { %23 = vsyncpa [#allocation14], 0  ;;  %s21933_s30 = smov 0   ;;  %s21935_s10 = smov 0  }
   0xa   :  { %s21937_s11 = smov 0   ;;  %s21939_s12 = smov 0  }
   0xb LB: > { %s21869_s13 = smov [#allocation6]   ;;  %s21954_s15 = sadd.s32 4294967295, %s21867_s12   ;;  %s21867_s12 = sphi %s21939_s12, %s24369_s12   ;;  %s21863_s11 = sphi %s21937_s11, %s24368_s11   ;;  %s21859_s10 = sphi %s21935_s10, %s24367_s10   ;;  %s21855_s30 = sphi %s21933_s30, %s24366_s30  }
   0xc   : > { %s272_s14 = sshll.u32 %s21869_s13, 4  ;;  %p16791_p0 = scmp.ge.s32.totalorder %s21867_s12, 1  ;;  %s21960_s14 = int_to_ptr.vmem [resolvable:$true] %s272_s14 }
   0xd   : > { %p24117_p1 = scmp.eq.s32.totalorder %s21954_s15, 0  ;;  %p254_p2 = scmp.lt.s32.totalorder %s21867_s12, 5 }
   0xe   : > { %s21870_s17 = smov [#allocation9]   ;;  %s21871_s20 = smov [#allocation8]  }
   0xf   : > { %p21962_p4 = pnand %p16791_p0, %p254_p2  ;;  %s298_s18 = sshll.u32 %s21870_s17, 4  ;;  %s21974_s18 = int_to_ptr.vmem [resolvable:$true] %s298_s18 }
  0x10   : > { %s285_s21 = sshll.u32 %s21871_s20, 4  ;;  %s24216_s3 = sld [smem:[#allocation59_spill]]  ;;  %s21976_s21 = int_to_ptr.vmem [resolvable:$true] %s285_s21 }
  0x11   : > { %s24214_s16 = scalar_select %p21962_p4, 1, 0 }
  0x12   : > { %p21539_p5 = pneg %p21962_p4 }
  0x14   : > { %p21970_p6 = pnand %p21539_p5, %p24117_p1 }
  0x16   : > { %s21621_s24 = scalar_lea.hbm %s24216_s3, 512  ;;  %p21986_p8 = pneg %p21970_p6 }
  0x17   : > { %p21622_p7 = scmp.ne.s32.totalorder %s24216_s3, %s21621_s24  ;;  %p21628_p11 = scmp.lt.u32.totalorder %s21621_s24, %s24216_s3 }
  0x19   : > { %p21624_p9 = pnand %p21986_p8, %p21622_p7 }
  0x1b   : > { %p21625_p10 = pneg %p21624_p9 }
  0x1d   : > { %p21630_p12 = pnand %p21628_p11, %p21625_p10 }
  0x1f   : > { %21633 = shalt.err (!%p21630_p12)
}
  0x20   : > { %s21634_s13 = scalar_lea.vmem %s21960_s14, 512  ;;  %p21642_p5 = scmp.lt.s32.totalorder %s21960_s14, %s21960_s14 }
  0x21   : > { %p21635_p13 = scmp.ne.s32.totalorder %s21960_s14, %s21634_s13  ;;  %p21643_p3 = scmp.lt.s32.totalorder %s21634_s13, %s21634_s13 }
  0x23   : > { %p21637_p0 = pnand %p21635_p13, %p21986_p8  ;;  %p21644_p7 = por %p21643_p3, %p21642_p5 }
  0x25   : > { %p21638_p2 = pneg %p21637_p0 }
  0x27   : > { %p21645_p9 = pnand %p21644_p7, %p21638_p2 }
  0x29   : > { %21648 = shalt.err (!%p21645_p9)
}
  0x2a   : > { %s24115_s17 = smov 128   ;;  %s24116_s20 = smov 8  }
  0x2b   : > { %21542 = dma.hbm_to_vmem [thread:$0]  (!%p21970_p6), %s24216_s3, 512, %s21960_s14, [#allocation7], %s24115_s17, %s24115_s17, %s24116_s20  }
  0x2c   : > { %s21649_s26 = scalar_lea.hbm %s24109_s5, 2048 }
  0x2d   : > { %p21650_p3 = scmp.ne.s32.totalorder %s24109_s5, %s21649_s26  ;;  %p21656_p12 = scmp.lt.u32.totalorder %s21649_s26, %s24109_s5 }
  0x2f   : > { %p21652_p10 = pnand %p21650_p3, %p21986_p8 }
  0x31   : > { %p21653_p11 = pneg %p21652_p10 }
  0x33   : > { %p21658_p13 = pnand %p21656_p12, %p21653_p11 }
  0x35   : > { %21661 = shalt.err (!%p21658_p13)
}
  0x36   : > { %s21662_s14 = scalar_lea.vmem %s21974_s18, 2048  ;;  %p21670_p7 = scmp.lt.s32.totalorder %s21974_s18, %s21974_s18 }
  0x37   : > { %p21663_p0 = scmp.ne.s32.totalorder %s21974_s18, %s21662_s14  ;;  %p21671_p9 = scmp.lt.s32.totalorder %s21662_s14, %s21662_s14 }
  0x39   : > { %p21665_p2 = pnand %p21663_p0, %p21986_p8  ;;  %p21672_p3 = por %p21671_p9, %p21670_p7 }
  0x3b   : > { %p21666_p5 = pneg %p21665_p2 }
  0x3d   : > { %p21673_p10 = pnand %p21672_p3, %p21666_p5 }
  0x3f   : > { %21676 = shalt.err (!%p21673_p10)
}
  0x40   : > { %21548 = dma.hbm_to_vmem [thread:$0]  (!%p21970_p6), %s24109_s5, 2048, %s21974_s18, [#allocation10], %s24115_s17, %s24115_s17, %s24116_s20  }
  0x41   : > { %s21677_s25 = scalar_lea.hbm %s24108_s4, 256 }
  0x42   : > { %p21678_p11 = scmp.ne.s32.totalorder %s24108_s4, %s21677_s25  ;;  %p21684_p0 = scmp.lt.u32.totalorder %s21677_s25, %s24108_s4 }
  0x44   : > { %p21680_p12 = pnand %p21678_p11, %p21986_p8 }
  0x46   : > { %p21681_p13 = pneg %p21680_p12 }
  0x48   : > { %p21686_p2 = pnand %p21684_p0, %p21681_p13 }
  0x4a   : > { %21689 = shalt.err (!%p21686_p2)
}
  0x4b   : > { %s21690_s18 = scalar_lea.vmem %s21976_s21, 256  ;;  %p21698_p3 = scmp.lt.s32.totalorder %s21976_s21, %s21976_s21 }
  0x4c   : > { %p21691_p5 = scmp.ne.s32.totalorder %s21976_s21, %s21690_s18  ;;  %p21699_p10 = scmp.lt.s32.totalorder %s21690_s18, %s21690_s18 }
  0x4e   : > { %p21693_p7 = pnand %p21691_p5, %p21986_p8  ;;  %p21700_p11 = por %p21699_p10, %p21698_p3 }
  0x50   : > { %p21694_p9 = pneg %p21693_p7 }
  0x52   : > { %p21701_p12 = pnand %p21700_p11, %p21694_p9 }
  0x54   : > { %21704 = shalt.err (!%p21701_p12)
}
  0x55   : > { %s21874_s14 = smov 64   ;;  %s21875_s9 = smov 4  }
  0x56   : > { %21545 = dma.hbm_to_vmem [thread:$0]  (!%p21970_p6), %s24108_s4, 256, %s21976_s21, [#allocation7], %s21874_s14, %s21874_s14, %s21875_s9  }
  0x57   : > { %s21876_s24 = smov [#allocation11]   ;;  %s21705_s29 = scalar_lea.hbm %s24110_s6, 2048 }
  0x58   : > { %s311_s25 = sshll.u32 %s21876_s24, 4  ;;  %p21706_p13 = scmp.ne.s32.totalorder %s24110_s6, %s21705_s29  ;;  %s312_s25 = int_to_ptr.vmem [resolvable:$true] %s311_s25 }
  0x59   : > { %p21712_p5 = scmp.lt.u32.totalorder %s21705_s29, %s24110_s6 }
  0x5a   : > { %p21708_p0 = pnand %p21706_p13, %p21986_p8 }
  0x5c   : > { %p21709_p2 = pneg %p21708_p0 }
  0x5e   : > { %p21714_p7 = pnand %p21712_p5, %p21709_p2 }
  0x60   : > { %21717 = shalt.err (!%p21714_p7)
}
  0x61   : > { %s21718_s21 = scalar_lea.vmem %s312_s25, 2048  ;;  %p21726_p11 = scmp.lt.s32.totalorder %s312_s25, %s312_s25 }
  0x62   : > { %p21719_p9 = scmp.ne.s32.totalorder %s312_s25, %s21718_s21  ;;  %p21727_p12 = scmp.lt.s32.totalorder %s21718_s21, %s21718_s21 }
  0x64   : > { %p21721_p3 = pnand %p21719_p9, %p21986_p8  ;;  %p21728_p1 = por %p21727_p12, %p21726_p11 }
  0x66   : > { %p21722_p10 = pneg %p21721_p3 }
  0x68   : > { %p21729_p4 = pnand %p21728_p1, %p21722_p10 }
  0x6a   : > { %21732 = shalt.err (!%p21729_p4)
}
  0x6b   : > { %s24218_s14 = smov 8   ;;  %s24219_s9 = smov 128  }
  0x6c   : > { %21551 = dma.hbm_to_vmem [thread:$0]  (!%p21970_p6), %s24110_s6, 2048, %s312_s25, [#allocation10], %s24219_s9, %s24219_s9, %s24218_s14  }
  0x6d   : > { %s16790_s19 = sadd.s32 4294967294, %s21867_s12   ;;  %s22082_s27 = sadd.s32 1, %s21867_s12  }
  0x6e   : > { %s33_s22 = ssub.s32 %s21867_s12, %s22082_s27  ;;  %s36_s23 = sadd.s32 1, %s21863_s11 }
  0x6f   : > { %p34_p1 = scmp.eq.s32.totalorder %s33_s22, 0  ;;  %p43_p4 = scmp.ne.s32.totalorder %s21863_s11, %s21859_s10 }
  0x70   : > { %p44_p8 = scmp.eq.s32.totalorder %s21867_s12, 0  ;;  %p49_p13 = scmp.ne.s32.totalorder %s21859_s10, %s21855_s30 }
  0x71   : > { %s22093_s24 = scalar_select %p34_p1, %s21863_s11, %s36_s23  }
  0x72   : > { %p22095_p0 = por %p44_p8, %p43_p4  ;;  %p24221_p2 = scmp.eq.s32.totalorder %s21954_s15, 0 }
  0x73   : > { %p24119_p5 = scmp.eq.s32.totalorder %s21954_s15, 3  ;;  %p226_p7 = scmp.eq.s32.totalorder %s16790_s19, 3 }
  0x74   : > { %p22101_p6 = por %p24221_p2, %p49_p13  ;;  %p21564_p9 = scmp.lt.s32.totalorder %s21867_s12, 4 }
  0x75   : > { %s328_s28 = sand.u32 1, %s21863_s11   ;;  %p22110_p3 = por %p24119_p5, %p43_p4 }
  0x76   : > { %p22114_p10 = por %p226_p7, %p49_p13  ;;  %s16797_s18 = sshll.u32 %s328_s28, 3 }
  0x77   : > { %s24223_s29 = scalar_select %p22110_p3, 1, 0 }
  0x78   : > { %s24224_s13 = scalar_select %p22114_p10, 1, 0 }
  0x79   : > { %s16798_s21 = sshll.u32 %s21867_s12, 7  ;;  %s332_s20 = scalar_lea.vmem [#allocation3], %s16797_s18 }
  0x7a   : > { %s22122_s17 = scalar_lea.hbm %s24104_s0, %s16798_s21  ;;  %s339_s19 = sshll.u32 %s332_s20, 4  ;;  %s22124_s19 = int_to_ptr.vmem [resolvable:$true] %s339_s19 }
  0x7b   : > { %p22128_p11 = pnand %p21564_p9, %p22095_p0  ;;  %s329_s23 = scalar_lea.sflag [#allocation4], %s328_s28 }
  0x7c   : > { %s21733_s3 = scalar_lea.hbm %s22122_s17, 128  ;;  %s21738_s14 = scalar_lea.hbm %s24104_s0, 512 }
  0x7d   : > { %p21734_p12 = scmp.ne.s32.totalorder %s22122_s17, %s21733_s3  ;;  %p21735_p1 = pneg %p22128_p11 }
  0x7e   : > { %p21739_p13 = scmp.lt.u32.totalorder %s22122_s17, %s24104_s0  ;;  %p21740_p0 = scmp.lt.u32.totalorder %s21738_s14, %s21733_s3 }
  0x7f   : > { %p21736_p4 = pnand %p21735_p1, %p21734_p12  ;;  %p21742_p7 = scmp.lt.u32.totalorder %s21733_s3, %s22122_s17 }
  0x80   : > { %p21741_p2 = por %p21740_p0, %p21739_p13 }
  0x81   : > { %p21737_p8 = pneg %p21736_p4 }
  0x82   : > { %p21743_p9 = por %p21742_p7, %p21741_p2 }
  0x84   : > { %p21744_p5 = pnand %p21743_p9, %p21737_p8 }
  0x86   : > { %21747 = shalt.err (!%p21744_p5)
}
  0x87   : > { %s21748_s28 = scalar_lea.vmem %s22124_s19, 128  ;;  %s21877_s20 = smov [#allocation3]  }
  0x88   : > { %p21749_p12 = scmp.ne.s32.totalorder %s22124_s19, %s21748_s28  ;;  %s21753_s18 = sshll.u32 %s21877_s20, 4  ;;  %s21754_s18 = int_to_ptr.vmem [resolvable:$false] %s21753_s18 }
  0x89   : > { %s21755_s21 = scalar_lea.vmem %s21754_s18, 256  ;;  %p21756_p3 = scmp.lt.s32.totalorder %s22124_s19, %s21754_s18 }
  0x8a   : > { %p21751_p4 = pnand %p21749_p12, %p21735_p1  ;;  %p21757_p13 = scmp.lt.s32.totalorder %s21755_s21, %s21748_s28 }
  0x8c   : > { %p21752_p10 = pneg %p21751_p4  ;;  %p21758_p0 = por %p21757_p13, %p21756_p3 }
  0x8e   : > { %p21759_p2 = pnand %p21758_p0, %p21752_p10 }
  0x90   : > { %21762 = shalt.err (!%p21759_p2)
}
  0x91   : > { %21555 = dma.hbm_to_vmem [thread:$0]  (!%p22128_p11), %s22122_s17, 128, %s22124_s19, %s329_s23  }
  0x92   : > { %p24226_p5 = scmp.ne.s32.totalorder %s24214_s16, 0 }
  0x94   : > { %348 = sbr.rel (%p24226_p5) target bundleno = 2658 (0xa62), region = 52 }
  0x9b   : > { %s22160_s3 = sand.u32 1, %s21859_s10  }
  0x9c   : > { %s16800_s14 = sshll.u32 %s22160_s3, 3  ;;  %s351_s26 = scalar_lea.sflag [#allocation4], %s22160_s3 }
  0x9d   : > { %s22164_s9 = scalar_lea.vmem [#allocation3], %s16800_s14 }
  0x9e   : > { %21834 = dma.done.wait (%p22101_p6), %s351_s26, 128  }
  0x9f   : > { %21836 = vsyncadd (%p22101_p6), %s351_s26, 4294967168  ;;  %p24227_p3 = scmp.eq.s32.totalorder %s21954_s15, 0 }
  0xa1   : > { %21838 = dma.done.wait (%p24227_p3), [#allocation7], 768   ;;  %p24228_p10 = pmov %p24227_p3 }
  0xa2   : > { %p24229_p11 = pmov %p24227_p3 }
  0xa3   : > { %21840 = vsyncadd (%p24228_p10), [#allocation7], 4294966528 }
  0xa4   : > { %21842 = dma.done.wait (%p24229_p11), [#allocation10], 4096   ;;  %p24230_p1 = pmov %p24227_p3 }
  0xa5   : > { %s22178_s16 = scalar_lea.vmem [#allocation12], %s16800_s14  ;;  %p24231_p8 = scmp.ne.s32.totalorder %s21954_s15, 0 }
  0xa6   : > { %21844 = vsyncadd (%p24230_p1), [#allocation10], 4294963200  ;;  %v410_v0 = vld [vmem:[%s24111_s7] sm:$0x1] (!%p24231_p8)  ;;  %vm411_vm0 = vcmask (!%p24231_p8), 253952  }
  0xa7   : > { %409 = sbr.rel (%p24231_p8) target bundleno = 174 (0xae), region = 76  ;;  %412 = vst.msk [vmem:[#allocation2] sm:$0x1] (!%p24231_p8), %vm411_vm0, %v410_v0 }
  0xae PF: > { %v413_v1 = vld [vmem:[%s22164_s9] sm:$0xff]  ;;  %vm414_vm1 = vcmask 261120   ;;  %v438_v8 = vld [vmem:[#allocation6] sm:$0xff]  ;;  %v439_v9 = vld [vmem:[#allocation6 + $0x8] sm:$0xff]  ;;  %v24132_v11 = vmov 0.0|0.0   ;;  %vm21879_vm2 = vmmov 0  }
  0xaf   : > { %v415_v2 = vsel %vm414_vm1, %v413_v1, 0.0  ;;  %v440_v10 = vld [vmem:[#allocation6 + $0x10] sm:$0xff]  ;;  %20009 = vmatprep.subr.bf16.mxu0 %v24132_v11  ;;  %v452_v12 = vand.u32 4294901760, %v438_v8  ;;  %v455_v13 = vand.u32 4294901760, %v439_v9  ;;  %v441_v14 = vld [vmem:[#allocation6 + $0x18] sm:$0xff]  ;;  %19997 = vmatprep.subr.bf16.mxu1 %v24132_v11  ;;  %v24121_v17 = vmov 0.0  }
  0xb0   : > { %416 = vadd.xlane.f32.xlu0 %v415_v2  ;;  %v458_v15 = vand.u32 4294901760, %v440_v10  ;;  %v461_v16 = vand.u32 4294901760, %v441_v14  ;;  %17841 = vmatprep.mubr.msk.f32.mxu0 %vm21879_vm2, %v24121_v17  ;;  %v16807_v46 = vld [vmem:[%s24105_s1] ss:$0 sm:$0xff]  ;;  %v955_v55 = vld [vmem:[#allocation11] sm:$0xff]  ;;  %v956_v56 = vld [vmem:[#allocation11 + $0x8] sm:$0xff] }
  0xb1   : > { %17819 = vmatprep.mubr.msk.f32.mxu1 %vm21879_vm2, %v24121_v17  ;;  %v532_v18 = vsub.f32 %v438_v8, %v452_v12  ;;  %v539_v19 = vsub.f32 %v439_v9, %v455_v13  ;;  %v22194_v21 = vpack.c.bf16 %v455_v13, %v452_v12  ;;  %v1470_v57 = vand.u32 4294901760, %v955_v55  ;;  %v936_v60 = vld [vmem:[#allocation9] sm:$0xff]  ;;  %v937_v61 = vld [vmem:[#allocation9 + $0x8] sm:$0xff]  ;;  %v957_v2 = vld [vmem:[#allocation11 + $0x10] sm:$0xff]  ;;  %p16811_p6 = scmp.ne.s32.totalorder %s21954_s15, 3 }
  0xb2   : > { %v546_v20 = vsub.f32 %v440_v10, %v458_v15  ;;  %v553_v22 = vsub.f32 %v441_v14, %v461_v16  ;;  %v20001_v27 = vpack.c.bf16 %v461_v16, %v458_v15  ;;  %v1473_v58 = vand.u32 4294901760, %v956_v56  ;;  %v938_v10 = vld [vmem:[#allocation9 + $0x10] sm:$0xff]  ;;  %v939_v12 = vld [vmem:[#allocation9 + $0x18] sm:$0xff] }
  0xb3   : > { %v20010_v23 = vpack.c.bf16 %v539_v19, %v532_v18  ;;  %19999 = vmatpush3.bf16.msra.mxu1 %v22194_v21  ;;  %v533_v25 = vand.u32 4294901760, %v532_v18  ;;  %v540_v26 = vand.u32 4294901760, %v539_v19  ;;  %v1550_v62 = vsub.f32 %v955_v55, %v1470_v57 }
  0xb4   : > { %20000 = vmatprep.subr.bf16.mxu1 %v24132_v11  ;;  %v20013_v24 = vpack.c.bf16 %v553_v22, %v546_v20  ;;  %v547_v32 = vand.u32 4294901760, %v546_v20  ;;  %v554_v33 = vand.u32 4294901760, %v553_v22  ;;  %v22227_v59 = vpack.c.bf16 %v1473_v58, %v1470_v57 }
  0xb5   : > { %20011 = vmatpush3.bf16.msra.mxu0 %v20010_v23  ;;  %v534_v28 = vsub.f32 %v532_v18, %v533_v25  ;;  %v541_v29 = vsub.f32 %v539_v19, %v540_v26  ;;  %v20022_v37 = vpack.c.bf16 %v540_v26, %v533_v25  ;;  %v1557_v63 = vsub.f32 %v956_v56, %v1473_v58 }
  0xb6   : > { %20012 = vmatprep.subr.bf16.mxu0 %v24132_v11  ;;  %v548_v35 = vsub.f32 %v546_v20, %v547_v32  ;;  %v555_v36 = vsub.f32 %v553_v22, %v554_v33  ;;  %v20025_v41 = vpack.c.bf16 %v554_v33, %v547_v32  ;;  %v983_v0 = vand.u32 4294901760, %v936_v60 }
  0xb7   : > { %20002 = vmatpush3.bf16.msra.mxu1 %v20001_v27  ;;  %v535_v30 = vand.u32 4294901760, %v534_v28  ;;  %v542_v31 = vand.u32 4294901760, %v541_v29  ;;  %v989_v16 = vand.u32 4294901760, %v938_v10  ;;  %v992_v18 = vand.u32 4294901760, %v939_v12 }
  0xb8   : > { %20003 = vmatprep.subr.bf16.mxu1 %v24132_v11  ;;  %v549_v38 = vand.u32 4294901760, %v548_v35  ;;  %v556_v39 = vand.u32 4294901760, %v555_v36  ;;  %v1063_v15 = vsub.f32 %v936_v60, %v983_v0  ;;  %v443_v57 = vlaneseq }
  0xb9   : > { %20014 = vmatpush3.bf16.msra.mxu0 %v20013_v24  ;;  %v20004_v34 = vpack.c.bf16 %v542_v31, %v535_v30  ;;  %v22238_v25 = vpack.c.bf16 %v992_v18, %v989_v16  ;;  %v1077_v31 = vsub.f32 %v938_v10, %v989_v16  ;;  %vm977_vm3 = vcmask 1040384  }
  0xba   : > { %20015 = vmatprep.subr.bf16.mxu0 %v24132_v11  ;;  %v20007_v40 = vpack.c.bf16 %v556_v39, %v549_v38  ;;  %v1064_v23 = vand.u32 4294901760, %v1063_v15  ;;  %v444_v58 = vshrl.u32 %v443_v57, 7  ;;  %vm4874_vm4 = vcmask 1041408  }
  0xbb   : > { %vm8771_vm5 = vcmask 1043456   ;;  %vm16575_vm6 = vcmask 261127   ;;  %vm16644_vm7 = vcmask (!%p16811_p6), 253952  }
  0xbc   : > { %v1065_v29 = vsub.f32 %v1063_v15, %v1064_v23 }
  0xbe   : > { %v1066_v35 = vand.u32 4294901760, %v1065_v29  ;;  %v941_v29 = vld [vmem:[#allocation9 + $0x20] sm:$0xff] }
 0x13d   : > { %v417_v3 = vpop.xlane.xlu0 %416 }
 0x13e   : > { %v419_v4 = vmul.f32 0.03125, %v417_v3  ;;  %v958_v3 = vld [vmem:[#allocation11 + $0x18] sm:$0xff] }
 0x140   : > { %v420_v5 = vsub.f32 %v413_v1, %v419_v4  ;;  %v986_v1 = vand.u32 4294901760, %v937_v61  ;;  %v1476_v4 = vand.u32 4294901760, %v957_v2 }
 0x142   : > { %v421_v6 = vmul.f32 %v420_v5, %v420_v5  ;;  %v22230_v8 = vpack.c.bf16 %v986_v1, %v983_v0  ;;  %v1070_v19 = vsub.f32 %v937_v61, %v986_v1  ;;  %v1564_v20 = vsub.f32 %v957_v2, %v1476_v4 }
 0x143   : > { %v22267_v61 = vsub.s32 0, %v444_v58 }
 0x144   : > { %v422_v7 = vsel %vm414_vm1, %v421_v6, 0.0  ;;  %v1551_v6 = vand.u32 4294901760, %v1550_v62  ;;  %v1071_v26 = vand.u32 4294901760, %v1070_v19 }
 0x145   : > { %423 = vadd.xlane.f32.xlu0 %v422_v7  ;;  %v1558_v7 = vand.u32 4294901760, %v1557_v63  ;;  %24232 = vst [vmem:[#allocation20_spill] sm:$0xff] %v22267_v61 }
 0x146   : > { %v1552_v13 = vsub.f32 %v1550_v62, %v1551_v6  ;;  %v1072_v32 = vsub.f32 %v1070_v19, %v1071_v26 }
 0x147   : > { %v1559_v14 = vsub.f32 %v1557_v63, %v1558_v7 }
 0x148   : > { %v1073_v38 = vand.u32 4294901760, %v1072_v32  ;;  %v963_v32 = vld [vmem:[#allocation11 + $0x38] sm:$0xff] }
 0x149   : > { %v1560_v22 = vand.u32 4294901760, %v1559_v14 }
 0x1d2   : > { %v424_v42 = vpop.xlane.xlu0 %423 }
 0x1d3   : > { %v425_v43 = vmul.f32 0.03125, %v424_v42 }
 0x1d5   : > { %v426_v44 = vadd.f32 1e-05, %v425_v43  ;;  %v22245_v43 = vpack.c.bf16 %v1073_v38, %v1066_v35  ;;  %v944_v38 = vld [vmem:[#allocation9 + $0x38] sm:$0xff] }
 0x1d7   : > { %21618 = vrsqrt.f32 %v426_v44 }
 0x1e1   : > { %v21619_v45 = vpop.eup %21618 }
 0x1e2   : > { %v428_v47 = vmul.f32 %v21619_v45, %v420_v5  ;;  %v1479_v5 = vand.u32 4294901760, %v958_v3 }
 0x1e4   : > { %v436_v48 = vmul.f32 %v16807_v46, %v428_v47  ;;  %v22233_v9 = vpack.c.bf16 %v1479_v5, %v1476_v4  ;;  %v1571_v24 = vsub.f32 %v958_v3, %v1479_v5 }
 0x1e6   : > { %v449_v49 = vsel %vm414_vm1, %v436_v48, 0  ;;  %v1572_v30 = vand.u32 4294901760, %v1571_v24 }
 0x1e7   : > { %v520_v50 = vand.u32 4294901760, %v449_v49 }
 0x1e8   : > { %v1573_v36 = vsub.f32 %v1571_v24, %v1572_v30 }
 0x1e9   : > { %v521_v51 = vsub.f32 %v449_v49, %v520_v50  ;;  %v22251_v49 = vpack.c.bf16 %v1557_v63, %v1550_v62  ;;  %v437_v63 = vld [vmem:[%s24106_s2] sm:$0x1] }
 0x1ea   : > { %v22273_v0 = vrot.slane %v437_v63, %v22267_v61 }
 0x1eb   : > { %17842 = vmatmul.mubr.f32.vlgmr.msra.gmra.mrb[0].mxu0 %v521_v51  ;;  %v522_v52 = vand.u32 4294901760, %v521_v51 }
 0x1ec   : > { %20017 = vmatpush3.bf16.msra.mxu0 %v22194_v21  ;;  %17852 = vmatprep.mubr.msk.f32.mxu0 %vm21879_vm2, %v24121_v17 }
 0x1ed   : > { %20018 = vmatprep.subr.bf16.mxu0 %v24132_v11  ;;  %v523_v53 = vsub.f32 %v521_v51, %v522_v52  ;;  %v22255_v51 = vpack.c.bf16 %v1571_v24, %v1564_v20  ;;  %v961_v24 = vld [vmem:[#allocation11 + $0x28] sm:$0xff] }
 0x1ef   : > { %v524_v54 = vand.u32 4294901760, %v523_v53  ;;  %v22259_v53 = vpack.c.bf16 %v1558_v7, %v1551_v6 }
 0x1f0   : > { %20020 = vmatpush3.bf16.msra.mxu0 %v20001_v27 }
 0x1f1   : > { %17820 = vmatmul.mubr.f32.vlgmr.msra.gmra.mrb[0].mxu1 %v524_v54  ;;  %20021 = vmatprep.subr.bf16.mxu0 %v24132_v11  ;;  %v22261_v54 = vpack.c.bf16 %v1071_v26, %v1064_v23  ;;  %v960_v23 = vld [vmem:[#allocation11 + $0x20] sm:$0xff] }
 0x1f2   : > { %20005 = vmatpush3.bf16.msra.mxu1 %v20004_v34  ;;  %17830 = vmatprep.mubr.msk.f32.mxu1 %vm21879_vm2, %v24121_v17  ;;  %v1084_v34 = vsub.f32 %v939_v12, %v992_v18  ;;  %v2441_v26 = vand.u32 4294901760, %v960_v23 }
 0x1f3   : > { %17853 = vmatmul.mubr.f32.vlgmr.msra.gmra.mrb[0].mxu0 %v522_v52  ;;  %20006 = vmatprep.subr.bf16.mxu1 %v24132_v11 }
 0x1f4   : > { %20023 = vmatpush3.bf16.msra.mxu0 %v20022_v37  ;;  %17863 = vmatprep.mubr.msk.f32.mxu0 %vm21879_vm2, %v24121_v17  ;;  %v1078_v37 = vand.u32 4294901760, %v1077_v31  ;;  %v22257_v52 = vpack.c.bf16 %v1084_v34, %v1077_v31 }
 0x1f5   : > { %20024 = vmatprep.subr.bf16.mxu0 %v24132_v11 }
 0x1f6   : > { %20008 = vmatpush3.bf16.msra.mxu1 %v20007_v40  ;;  %v1085_v40 = vand.u32 4294901760, %v1084_v34  ;;  %v1079_v42 = vsub.f32 %v1077_v31, %v1078_v37  ;;  %v962_v31 = vld [vmem:[#allocation11 + $0x30] sm:$0xff] }
 0x1f7   : > { %20033 = vmatprep.subr.bf16.mxu1 %v24132_v11  ;;  %v2447_v35 = vand.u32 4294901760, %v962_v31 }
 0x1f8   : > { %20026 = vmatpush3.bf16.msra.mxu0 %v20025_v41  ;;  %v1574_v41 = vand.u32 4294901760, %v1573_v36  ;;  %v1086_v44 = vsub.f32 %v1084_v34, %v1085_v40  ;;  %v1080_v46 = vand.u32 4294901760, %v1079_v42  ;;  %v22265_v56 = vpack.c.bf16 %v1085_v40, %v1078_v37  ;;  %v943_v37 = vld [vmem:[#allocation9 + $0x30] sm:$0xff] }
 0x1f9   : > { %17831 = vmatmul.mubr.f32.vlgmr.msra.gmra.mrb[0].mxu1 %v520_v50  ;;  %20027 = vmatprep.subr.bf16.mxu0 %v24132_v11  ;;  %v2450_v36 = vand.u32 4294901760, %v963_v32  ;;  %v1965_v42 = vand.u32 4294901760, %v944_v38  ;;  %v22370_v58 = vsub.f32 %v962_v31, %v2447_v35 }
 0x1fa   : > { %17885 = vmatprep.mubr.msk.f32.mxu1 %vm21879_vm2, %v24121_v17  ;;  %20035 = vmatpush3.bf16.msra.mxu1 %v22230_v8  ;;  %v1087_v47 = vand.u32 4294901760, %v1086_v44 }
 0x1fb   : > { %17864 = vmatmul.mubr.f32.vlgmr.msra.gmra.mrb[0].mxu0 %v520_v50  ;;  %20036 = vmatprep.subr.bf16.mxu1 %v24132_v11 }
 0x1fc   : > { %20029 = vmatpush3.bf16.msra.mxu0 %v22194_v21  ;;  %17874 = vmatprep.mubr.msk.f32.mxu0 %vm21879_vm2, %v24121_v17  ;;  %v1553_v21 = vand.u32 4294901760, %v1552_v13  ;;  %v22249_v48 = vpack.c.bf16 %v1087_v47, %v1080_v46 }
 0x1fd   : > { %20030 = vmatprep.subr.bf16.mxu0 %v24132_v11 }
 0x1fe   : > { %v22241_v28 = vpack.c.bf16 %v1560_v22, %v1553_v21  ;;  %20038 = vmatpush3.bf16.msra.mxu1 %v22238_v25 }
 0x1ff   : > { %20039 = vmatprep.subr.bf16.mxu1 %v24132_v11 }
 0x200   : > { %20032 = vmatpush3.bf16.msra.mxu0 %v20001_v27  ;;  %v1565_v27 = vand.u32 4294901760, %v1564_v20 }
 0x201   : > { %20069 = vmatprep.subr.bf16.mxu0 %v24132_v11 }
 0x202   : > { %v1566_v33 = vsub.f32 %v1564_v20, %v1565_v27  ;;  %v22263_v55 = vpack.c.bf16 %v1572_v30, %v1565_v27  ;;  %v2444_v27 = vand.u32 4294901760, %v961_v24  ;;  %v942_v30 = vld [vmem:[#allocation9 + $0x28] sm:$0xff] }
 0x203   : > { %17875 = vmatmul.mubr.f32.vlgmr.msra.gmra.mrb[0].mxu0 %v520_v50  ;;  %v22253_v50 = vpack.c.bf16 %v1070_v19, %v1063_v15  ;;  %v1959_v34 = vand.u32 4294901760, %v942_v30 }
 0x204   : > { %17951 = vmatprep.mubr.msk.f32.mxu0 %vm21879_vm2, %v24121_v17  ;;  %20071 = vmatpush3.bf16.msra.mxu0 %v22227_v59  ;;  %v1567_v39 = vand.u32 4294901760, %v1566_v33  ;;  %v1956_v33 = vand.u32 4294901760, %v941_v29  ;;  %v22357_v40 = vsub.f32 %v961_v24, %v2444_v27 }
 0x205   : > { %20072 = vmatprep.subr.bf16.mxu0 %v24132_v11  ;;  %v22364_v46 = vsub.f32 %v942_v30, %v1959_v34 }
 0x206   : > { %v22247_v45 = vpack.c.bf16 %v1574_v41, %v1567_v39  ;;  %v22355_v39 = vsub.f32 %v960_v23, %v2441_v26  ;;  %v1962_v41 = vand.u32 4294901760, %v943_v37  ;;  %v22362_v44 = vsub.f32 %v941_v29, %v1956_v33 }
 0x207   : > { %v2529_v57 = vand.u32 4294901760, %v22357_v40 }
 0x208   : > { %20074 = vmatpush3.bf16.msra.mxu0 %v22233_v9  ;;  %v2522_v47 = vand.u32 4294901760, %v22355_v39 }
 0x209   : > { %20075 = vmatprep.subr.bf16.mxu0 %v24132_v11 }
 0x2cc   : > { %v617_v60 = vpop.f32.mrb[0].mxu1 }
 0x2cd   : > { %v17832_v62 = vpop.f32.mrb[1].mxu1  ;;  %v21185_v1 = vadd.f32 %v617_v60, %v22273_v0  ;;  %v22372_v60 = vsub.f32 %v963_v32, %v2450_v36  ;;  %v22426_v32 = vpack.c.bf16 %v1965_v42, %v1962_v41 }
 0x2ce   : > { %v22378_v62 = vpack.c.bf16 %v2444_v27, %v2441_v26 }
 0x2d6   : > { %v932_v2 = vpop.f32.mrb[0].mxu0 }
 0x2d7   : > { %v21186_v3 = vadd.f32 %v21185_v1, %v932_v2  ;;  %v17876_v4 = vpop.f32.mrb[1].mxu0  ;;  %v2044_v1 = vand.u32 4294901760, %v22364_v46  ;;  %v22385_v2 = vsub.f32 %v943_v37, %v1962_v41 }
 0x2d8   : > { %v2523_v4 = vsub.f32 %v22355_v39, %v2522_v47 }
 0x2d9   : > { %v975_v5 = vrot.slane %v21186_v3, 7  ;;  %v1467_v6 = vsel %vm414_vm1, %v21186_v3, 0  ;;  %v22387_v3 = vsub.f32 %v944_v38, %v1965_v42  ;;  %v2045_v23 = vsub.f32 %v22364_v46, %v2044_v1 }
 0x2da   : > { %v22277_v7 = vand.u32 4294901760, %v1467_v6  ;;  %v2051_v24 = vand.u32 4294901760, %v22385_v2  ;;  %v2524_v27 = vand.u32 4294901760, %v2523_v4 }
 0x2db   : > { %v978_v10 = vsel %vm977_vm3, %v437_v63, %v975_v5  ;;  %v2037_v63 = vand.u32 4294901760, %v22362_v44  ;;  %v2530_v5 = vsub.f32 %v22357_v40, %v2529_v57  ;;  %v2058_v26 = vand.u32 4294901760, %v22387_v3 }
 0x2dc   : > { %v980_v12 = vsel %vm414_vm1, %v978_v10, 0  ;;  %v22281_v13 = vsub.f32 %v1467_v6, %v22277_v7  ;;  %v2536_v6 = vand.u32 4294901760, %v22370_v58  ;;  %v2543_v10 = vand.u32 4294901760, %v22372_v60 }
 0x2dd   : > { %v22283_v14 = vand.u32 4294901760, %v980_v12  ;;  %v2531_v29 = vand.u32 4294901760, %v2530_v5 }
 0x2de   : > { %v22286_v15 = vand.u32 4294901760, %v22281_v13  ;;  %v2537_v30 = vsub.f32 %v22370_v58, %v2536_v6  ;;  %v2544_v31 = vsub.f32 %v22372_v60, %v2543_v10 }
 0x2df   : > { %v22289_v16 = vsub.f32 %v980_v12, %v22283_v14  ;;  %v22400_v12 = vpack.c.bf16 %v1959_v34, %v1956_v33  ;;  %v2046_v34 = vand.u32 4294901760, %v2045_v23  ;;  %v22439_v37 = vpack.c.bf16 %v2531_v29, %v2524_v27 }
 0x2e0   : > { %v1541_v18 = vsub.f32 %v22281_v13, %v22286_v15  ;;  %v2538_v38 = vand.u32 4294901760, %v2537_v30  ;;  %v2545_v41 = vand.u32 4294901760, %v2544_v31  ;;  %v22463_v27 = vpack.c.bf16 %v22357_v40, %v22355_v39 }
 0x2e1   : > { %v22294_v19 = vand.u32 4294901760, %v22289_v16  ;;  %v22470_v29 = vpack.c.bf16 %v22364_v46, %v22362_v44  ;;  %v22476_v30 = vpack.c.bf16 %v22372_v60, %v22370_v58  ;;  %v22485_v31 = vpack.c.bf16 %v22387_v3, %v22385_v2  ;;  %v968_v46 = vld [vmem:[#allocation11 + $0x58] sm:$0xff] }
 0x2e2   : > { %v22296_v20 = vand.u32 4294901760, %v1541_v18  ;;  %v22402_v18 = vpack.c.bf16 %v2450_v36, %v2447_v35  ;;  %v2052_v35 = vsub.f32 %v22385_v2, %v2051_v24  ;;  %v2059_v36 = vsub.f32 %v22387_v3, %v2058_v26 }
 0x2e3   : > { %v1054_v21 = vsub.f32 %v22289_v16, %v22294_v19  ;;  %24233 = vst [vmem:[#allocation21_spill] sm:$0xff] %v22476_v30  ;;  %24234 = vst [vmem:[#allocation22_spill] sm:$0xff] %v22485_v31  ;;  %v22526_v39 = vpack.c.bf16 %v2543_v10, %v2536_v6  ;;  %v22537_v58 = vpack.c.bf16 %v2058_v26, %v2051_v24  ;;  %v3422_v6 = vand.u32 4294901760, %v968_v46  ;;  %v948_v10 = vld [vmem:[#allocation9 + $0x50] sm:$0xff] }
 0x2e4   : > { %17952 = vmatmul.mubr.f32.vlgmr.msra.gmra.mrb[2].mxu0 %v22296_v20  ;;  %v2053_v4 = vand.u32 4294901760, %v2052_v35  ;;  %v2060_v5 = vand.u32 4294901760, %v2059_v36  ;;  %v966_v35 = vld [vmem:[#allocation11 + $0x48] sm:$0xff]  ;;  %v22518_v36 = vpack.c.bf16 %v2044_v1, %v2037_v63  ;;  %v2934_v3 = vand.u32 4294901760, %v948_v10 }
 0x2e5   : > { %20077 = vmatpush3.bf16.msra.mxu0 %v22241_v28  ;;  %v22302_v22 = vand.u32 4294901760, %v1054_v21  ;;  %17962 = vmatprep.mubr.msk.f32.mxu0 %vm21879_vm2, %v24121_v17  ;;  %v2038_v21 = vsub.f32 %v22362_v44, %v2037_v63  ;;  %24237 = vst [vmem:[#allocation25_spill] sm:$0xff] %v22526_v39  ;;  %v967_v44 = vld [vmem:[#allocation11 + $0x50] sm:$0xff]  ;;  %24238 = vst [vmem:[#allocation26_spill] sm:$0xff] %v22537_v58  ;;  %v22560_v61 = vsub.f32 %v968_v46, %v3422_v6 }
 0x2e6   : > { %20078 = vmatprep.subr.bf16.mxu0 %v24132_v11  ;;  %v22455_v23 = vpack.c.bf16 %v2060_v5, %v2053_v4  ;;  %24236 = vst [vmem:[#allocation24_spill] sm:$0xff] %v22518_v36  ;;  %v3419_v1 = vand.u32 4294901760, %v967_v44  ;;  %v22573_v46 = vsub.f32 %v948_v10, %v2934_v3 }
 0x2e7   : > { %17886 = vmatmul.mubr.f32.vlgmr.msra.gmra.mrb[2].mxu1 %v22302_v22  ;;  %v2039_v33 = vand.u32 4294901760, %v2038_v21  ;;  %v22448_v21 = vpack.c.bf16 %v2545_v41, %v2538_v38  ;;  %v947_v38 = vld [vmem:[#allocation9 + $0x48] sm:$0xff]  ;;  %v949_v41 = vld [vmem:[#allocation9 + $0x58] sm:$0xff] }
 0x2e8   : > { %20041 = vmatpush3.bf16.msra.mxu1 %v22245_v43  ;;  %17896 = vmatprep.mubr.msk.f32.mxu1 %vm21879_vm2, %v24121_v17  ;;  %v2931_v63 = vand.u32 4294901760, %v947_v38  ;;  %v2937_v24 = vand.u32 4294901760, %v949_v41 }
 0x2e9   : > { %20080 = vmatpush3.bf16.msra.mxu0 %v22247_v45  ;;  %20042 = vmatprep.subr.bf16.mxu1 %v24132_v11  ;;  %v22444_v42 = vpack.c.bf16 %v2046_v34, %v2039_v33  ;;  %v22509_v33 = vpack.c.bf16 %v2529_v57, %v2522_v47  ;;  %v965_v34 = vld [vmem:[#allocation11 + $0x40] sm:$0xff]  ;;  %v3416_v47 = vand.u32 4294901760, %v966_v35 }
 0x2ea   : > { %20081 = vmatprep.subr.bf16.mxu0 %v24132_v11  ;;  %v3413_v40 = vand.u32 4294901760, %v965_v34  ;;  %v946_v57 = vld [vmem:[#allocation9 + $0x40] sm:$0xff]  ;;  %v22552_v5 = vsub.f32 %v947_v38, %v2931_v63 }
 0x2eb   : > { %24235 = vst [vmem:[#allocation23_spill] sm:$0xff] %v22509_v33  ;;  %v2928_v60 = vand.u32 4294901760, %v946_v57  ;;  %v22545_v2 = vsub.f32 %v966_v35, %v3416_v47  ;;  %v22575_v35 = vsub.f32 %v949_v41, %v2937_v24  ;;  %v22590_v41 = vpack.c.bf16 %v3422_v6, %v3419_v1 }
 0x2ec   : > { %20044 = vmatpush3.bf16.msra.mxu1 %v22249_v48  ;;  %17963 = vmatmul.mubr.f32.vlgmr.msra.gmra.mrb[2].mxu0 %v22277_v7  ;;  %v22543_v4 = vsub.f32 %v965_v34, %v3413_v40 }
 0x2ed   : > { %20083 = vmatpush3.bf16.msra.mxu0 %v22251_v49  ;;  %20045 = vmatprep.subr.bf16.mxu1 %v24132_v11  ;;  %v22550_v26 = vsub.f32 %v946_v57, %v2928_v60  ;;  %v22566_v57 = vpack.c.bf16 %v3416_v47, %v3413_v40  ;;  %v24241_v47 = vand.u32 4294901760, %v22545_v2  ;;  %v22588_v10 = vpack.c.bf16 %v2931_v63, %v2928_v60 }
 0x2ee   : > { %20084 = vmatprep.subr.bf16.mxu0 %v24132_v11  ;;  %17973 = vmatprep.mubr.msk.f32.mxu0 %vm21879_vm2, %v24121_v17  ;;  %v24129_v34 = vand.u32 4294901760, %v22543_v4  ;;  %24243 = vst [vmem:[#allocation29_spill] sm:$0xff] %v22590_v41  ;;  %v24246_v60 = vmov 0.0|0.0  }
 0x2ef   : > { %17897 = vmatmul.mubr.f32.vlgmr.msra.gmra.mrb[2].mxu1 %v22283_v14  ;;  %24240 = vst [vmem:[#allocation27_spill] sm:$0xff] %v22566_v57  ;;  %24242 = vst [vmem:[#allocation28_spill] sm:$0xff] %v22588_v10 }
 0x2f0   : > { %20047 = vmatpush3.bf16.msra.mxu1 %v22253_v50  ;;  %17907 = vmatprep.mubr.msk.f32.mxu1 %vm21879_vm2, %v24121_v17  ;;  %v3495_v40 = vsub.f32 %v22543_v4, %v24129_v34  ;;  %v24244_v34 = vand.u32 4294901760, %v22550_v26 }
 0x2f1   : > { %20086 = vmatpush3.bf16.msra.mxu0 %v22255_v51  ;;  %20048 = vmatprep.subr.bf16.mxu1 %v24132_v11 }
 0x2f2   : > { %20087 = vmatprep.subr.bf16.mxu0 %v24132_v11  ;;  %v3496_v63 = vand.u32 4294901760, %v3495_v40 }
 0x2f4   : > { %20050 = vmatpush3.bf16.msra.mxu1 %v22257_v52  ;;  %17974 = vmatmul.mubr.f32.vlgmr.msra.gmra.mrb[2].mxu0 %v22281_v13 }
 0x2f5   : > { %20089 = vmatpush3.bf16.msra.mxu0 %v22227_v59  ;;  %20051 = vmatprep.subr.bf16.mxu1 %v24132_v11 }
 0x2f6   : > { %20090 = vmatprep.subr.bf16.mxu0 %v24132_v11  ;;  %17984 = vmatprep.mubr.msk.f32.mxu0 %vm21879_vm2, %v24121_v17 }
 0x2f7   : > { %17908 = vmatmul.mubr.f32.vlgmr.msra.gmra.mrb[2].mxu1 %v22289_v16 }
 0x2f8   : > { %20053 = vmatpush3.bf16.msra.mxu1 %v22230_v8  ;;  %17918 = vmatprep.mubr.msk.f32.mxu1 %vm21879_vm2, %v24121_v17 }
 0x2f9   : > { %20092 = vmatpush3.bf16.msra.mxu0 %v22233_v9  ;;  %20054 = vmatprep.subr.bf16.mxu1 %v24132_v11 }
 0x2fa   : > { %20093 = vmatprep.subr.bf16.mxu0 %v24132_v11 }
 0x2fc   : > { %20056 = vmatpush3.bf16.msra.mxu1 %v22238_v25  ;;  %17985 = vmatmul.mubr.f32.vlgmr.msra.gmra.mrb[2].mxu0 %v22286_v15 }
 0x2fd   : > { %20095 = vmatpush3.bf16.msra.mxu0 %v22259_v53  ;;  %20057 = vmatprep.subr.bf16.mxu1 %v24132_v11 }
 0x2fe   : > { %20096 = vmatprep.subr.bf16.mxu0 %v24132_v11  ;;  %17995 = vmatprep.mubr.msk.f32.mxu0 %vm21879_vm2, %v24121_v17 }
 0x2ff   : > { %17919 = vmatmul.mubr.f32.vlgmr.msra.gmra.mrb[2].mxu1 %v22294_v19 }
 0x300   : > { %20059 = vmatpush3.bf16.msra.mxu1 %v22261_v54  ;;  %17929 = vmatprep.mubr.msk.f32.mxu1 %vm21879_vm2, %v24121_v17 }
 0x301   : > { %20098 = vmatpush3.bf16.msra.mxu0 %v22263_v55  ;;  %20060 = vmatprep.subr.bf16.mxu1 %v24132_v11 }
 0x302   : > { %20099 = vmatprep.subr.bf16.mxu0 %v24132_v11 }
 0x304   : > { %20062 = vmatpush3.bf16.msra.mxu1 %v22265_v56  ;;  %17996 = vmatmul.mubr.f32.vlgmr.msra.gmra.mrb[2].mxu0 %v22277_v7 }
 0x305   : > { %20101 = vmatpush3.bf16.msra.mxu0 %v22227_v59  ;;  %20063 = vmatprep.subr.bf16.mxu1 %v24132_v11 }
 0x306   : > { %20102 = vmatprep.subr.bf16.mxu0 %v24132_v11  ;;  %18006 = vmatprep.mubr.msk.f32.mxu0 %vm21879_vm2, %v24121_v17 }
 0x307   : > { %17930 = vmatmul.mubr.f32.vlgmr.msra.gmra.mrb[2].mxu1 %v22283_v14 }
 0x308   : > { %20065 = vmatpush3.bf16.msra.mxu1 %v22230_v8  ;;  %17940 = vmatprep.mubr.msk.f32.mxu1 %vm21879_vm2, %v24121_v17 }
 0x309   : > { %20104 = vmatpush3.bf16.msra.mxu0 %v22233_v9  ;;  %20066 = vmatprep.subr.bf16.mxu1 %v24132_v11 }
 0x30a   : > { %20141 = vmatprep.subr.bf16.mxu0 %v24132_v11 }
 0x30c   : > { %20068 = vmatpush3.bf16.msra.mxu1 %v22238_v25  ;;  %18007 = vmatmul.mubr.f32.vlgmr.msra.gmra.mrb[2].mxu0 %v22277_v7 }
 0x30d   : > { %20143 = vmatpush3.bf16.msra.mxu0 %v22378_v62  ;;  %20105 = vmatprep.subr.bf16.mxu1 %v24132_v11 }
 0x30e   : > { %20144 = vmatprep.subr.bf16.mxu0 %v24132_v11  ;;  %18083 = vmatprep.mubr.msk.f32.mxu0 %vm21879_vm2, %v24121_v17 }
 0x30f   : > { %17941 = vmatmul.mubr.f32.vlgmr.msra.gmra.mrb[2].mxu1 %v22283_v14 }
 0x310   : > { %20107 = vmatpush3.bf16.msra.mxu1 %v22400_v12  ;;  %18017 = vmatprep.mubr.msk.f32.mxu1 %vm21879_vm2, %v24121_v17 }
 0x311   : > { %20146 = vmatpush3.bf16.msra.mxu0 %v22402_v18  ;;  %20108 = vmatprep.subr.bf16.mxu1 %v24132_v11 }
 0x312   : > { %20147 = vmatprep.subr.bf16.mxu0 %v24132_v11 }
 0x314   : > { %20110 = vmatpush3.bf16.msra.mxu1 %v22426_v32  ;;  %18084 = vmatmul.mubr.f32.vlgmr.msra.gmra.mrb[4].mxu0 %v22296_v20 }
 0x315   : > { %20149 = vmatpush3.bf16.msra.mxu0 %v22439_v37  ;;  %20111 = vmatprep.subr.bf16.mxu1 %v24132_v11 }
 0x316   : > { %20150 = vmatprep.subr.bf16.mxu0 %v24132_v11  ;;  %18094 = vmatprep.mubr.msk.f32.mxu0 %vm21879_vm2, %v24121_v17 }
 0x317   : > { %18018 = vmatmul.mubr.f32.vlgmr.msra.gmra.mrb[4].mxu1 %v22302_v22 }
 0x318   : > { %20113 = vmatpush3.bf16.msra.mxu1 %v22444_v42  ;;  %18028 = vmatprep.mubr.msk.f32.mxu1 %vm21879_vm2, %v24121_v17 }
 0x319   : > { %20152 = vmatpush3.bf16.msra.mxu0 %v22448_v21  ;;  %20114 = vmatprep.subr.bf16.mxu1 %v24132_v11 }
 0x31a   : > { %20153 = vmatprep.subr.bf16.mxu0 %v24132_v11 }
 0x31c   : > { %20116 = vmatpush3.bf16.msra.mxu1 %v22455_v23  ;;  %18095 = vmatmul.mubr.f32.vlgmr.msra.gmra.mrb[4].mxu0 %v22277_v7 }
 0x31d   : > { %20155 = vmatpush3.bf16.msra.mxu0 %v22463_v27  ;;  %20117 = vmatprep.subr.bf16.mxu1 %v24132_v11 }
 0x31e   : > { %20156 = vmatprep.subr.bf16.mxu0 %v24132_v11  ;;  %18105 = vmatprep.mubr.msk.f32.mxu0 %vm21879_vm2, %v24121_v17 }
 0x31f   : > { %18029 = vmatmul.mubr.f32.vlgmr.msra.gmra.mrb[4].mxu1 %v22283_v14 }
 0x320   : > { %20119 = vmatpush3.bf16.msra.mxu1 %v22470_v29  ;;  %18039 = vmatprep.mubr.msk.f32.mxu1 %vm21879_vm2, %v24121_v17 }
 0x321   : > { %20158 = vmatpush3.bf16.msra.mxu0 %v22476_v30  ;;  %20120 = vmatprep.subr.bf16.mxu1 %v24132_v11 }
 0x322   : > { %20159 = vmatprep.subr.bf16.mxu0 %v24132_v11 }
 0x324   : > { %20122 = vmatpush3.bf16.msra.mxu1 %v22485_v31  ;;  %18106 = vmatmul.mubr.f32.vlgmr.msra.gmra.mrb[4].mxu0 %v22281_v13 }
 0x325   : > { %20161 = vmatpush3.bf16.msra.mxu0 %v22378_v62  ;;  %20123 = vmatprep.subr.bf16.mxu1 %v24132_v11 }
 0x326   : > { %20162 = vmatprep.subr.bf16.mxu0 %v24132_v11  ;;  %18116 = vmatprep.mubr.msk.f32.mxu0 %vm21879_vm2, %v24121_v17 }
 0x327   : > { %18040 = vmatmul.mubr.f32.vlgmr.msra.gmra.mrb[4].mxu1 %v22289_v16 }
 0x328   : > { %20125 = vmatpush3.bf16.msra.mxu1 %v22400_v12  ;;  %18050 = vmatprep.mubr.msk.f32.mxu1 %vm21879_vm2, %v24121_v17 }
 0x329   : > { %20164 = vmatpush3.bf16.msra.mxu0 %v22402_v18  ;;  %20126 = vmatprep.subr.bf16.mxu1 %v24132_v11 }
 0x32a   : > { %20165 = vmatprep.subr.bf16.mxu0 %v24132_v11 }
 0x32c   : > { %20128 = vmatpush3.bf16.msra.mxu1 %v22426_v32  ;;  %18117 = vmatmul.mubr.f32.vlgmr.msra.gmra.mrb[4].mxu0 %v22286_v15 }
 0x32d   : > { %20167 = vmatpush3.bf16.msra.mxu0 %v22509_v33  ;;  %20129 = vmatprep.subr.bf16.mxu1 %v24132_v11 }
 0x32e   : > { %20168 = vmatprep.subr.bf16.mxu0 %v24132_v11  ;;  %18127 = vmatprep.mubr.msk.f32.mxu0 %vm21879_vm2, %v24121_v17 }
 0x32f   : > { %18051 = vmatmul.mubr.f32.vlgmr.msra.gmra.mrb[4].mxu1 %v22294_v19 }
 0x330   : > { %20131 = vmatpush3.bf16.msra.mxu1 %v22518_v36  ;;  %18061 = vmatprep.mubr.msk.f32.mxu1 %vm21879_vm2, %v24121_v17  ;;  %v22558_v17 = vsub.f32 %v967_v44, %v3419_v1  ;;  %v3010_v36 = vsub.f32 %v22550_v26, %v24244_v34  ;;  %v24140_v44 = vand.u32 4294901760, %v22573_v46  ;;  %v24248_v34 = vand.u32 4294901760, %v22560_v61 }
 0x331   : > { %20170 = vmatpush3.bf16.msra.mxu0 %v22526_v39  ;;  %20132 = vmatprep.subr.bf16.mxu1 %v24132_v11  ;;  %v3502_v39 = vsub.f32 %v22545_v2, %v24241_v47  ;;  %v24245_v47 = vand.u32 4294901760, %v22552_v5 }
 0x332   : > { %20171 = vmatprep.subr.bf16.mxu0 %v24132_v11  ;;  %v24247_v6 = vand.u32 4294901760, %v22558_v17  ;;  %v3516_v31 = vsub.f32 %v22560_v61, %v24248_v34 }
 0x333   : > { %v3017_v38 = vsub.f32 %v22552_v5, %v24245_v47  ;;  %v3503_v1 = vand.u32 4294901760, %v3502_v39  ;;  %v22614_v47 = vpack.c.bf16 %v2937_v24, %v2934_v3  ;;  %v3011_v39 = vand.u32 4294901760, %v3010_v36 }
 0x334   : > { %20134 = vmatpush3.bf16.msra.mxu1 %v22537_v58  ;;  %18128 = vmatmul.mubr.f32.vlgmr.msra.gmra.mrb[4].mxu0 %v22277_v7  ;;  %v24239_v58 = vmov 0.0   ;;  %v3509_v33 = vsub.f32 %v22558_v17, %v24247_v6  ;;  %v3024_v6 = vsub.f32 %v22573_v46, %v24140_v44  ;;  %v3517_v30 = vand.u32 4294901760, %v3516_v31 }
 0x335   : > { %20173 = vmatpush3.bf16.msra.mxu0 %v22378_v62  ;;  %20135 = vmatprep.subr.bf16.mxu1 %v24132_v11  ;;  %24249 = vst [vmem:[#allocation30_spill] sm:$0xff] %v22614_v47  ;;  %v3018_v40 = vand.u32 4294901760, %v3017_v38  ;;  %v22627_v3 = vpack.c.bf16 %v3503_v1, %v3496_v63  ;;  %v22673_v63 = vpack.c.bf16 %v22575_v35, %v22573_v46  ;;  %v24258_v1 = vand.u32 4294901760, %v22543_v4 }
 0x336   : > { %20174 = vmatprep.subr.bf16.mxu0 %v24132_v11  ;;  %18138 = vmatprep.mubr.msk.f32.mxu0 %vm21879_vm2, %v24239_v58  ;;  %v3510_v24 = vand.u32 4294901760, %v3509_v33  ;;  %v3025_v38 = vand.u32 4294901760, %v3024_v6  ;;  %v22658_v33 = vpack.c.bf16 %v22552_v5, %v22550_v26  ;;  %v970_v6 = vld [vmem:[#allocation11 + $0x60] sm:$0xff] }
 0x337   : > { %18062 = vmatmul.mubr.f32.vlgmr.msra.gmra.mrb[4].mxu1 %v22283_v14  ;;  %24250 = vst [vmem:[#allocation31_spill] sm:$0xff] %v22627_v3  ;;  %v22632_v36 = vpack.c.bf16 %v3018_v40, %v3011_v39  ;;  %24257 = vst [vmem:[#allocation38_spill] sm:$0xff] %v22673_v63  ;;  %v24259_v39 = vand.u32 4294901760, %v22545_v2 }
 0x338   : > { %20137 = vmatpush3.bf16.msra.mxu1 %v22400_v12  ;;  %18072 = vmatprep.mubr.msk.f32.mxu1 %vm21879_vm2, %v24239_v58  ;;  %24255 = vst [vmem:[#allocation36_spill] sm:$0xff] %v22658_v33 }
 0x339   : > { %20176 = vmatpush3.bf16.msra.mxu0 %v22402_v18  ;;  %20138 = vmatprep.subr.bf16.mxu1 %v24132_v11  ;;  %24251 = vst [vmem:[#allocation32_spill] sm:$0xff] %v22632_v36  ;;  %v22697_v40 = vpack.c.bf16 %v24259_v39, %v24258_v1  ;;  %v4385_v39 = vand.u32 4294901760, %v970_v6 }
 0x33a   : > { %20213 = vmatprep.subr.bf16.mxu0 %v24132_v11  ;;  %v24141_v11 = vand.u32 4294901760, %v22575_v35 }
 0x33b   : > { %24260 = vst [vmem:[#allocation39_spill] sm:$0xff] %v22697_v40 }
 0x33c   : > { %20140 = vmatpush3.bf16.msra.mxu1 %v22426_v32  ;;  %18139 = vmatmul.mubr.f32.vlgmr.msra.gmra.mrb[4].mxu0 %v22277_v7  ;;  %v3031_v34 = vsub.f32 %v22575_v35, %v24141_v11  ;;  %v22636_v11 = vpack.c.bf16 %v3517_v30, %v3510_v24  ;;  %v22651_v30 = vpack.c.bf16 %v22545_v2, %v22543_v4  ;;  %v24261_v24 = vand.u32 4294901760, %v22550_v26  ;;  %v972_v26 = vld [vmem:[#allocation11 + $0x70] sm:$0xff] }
 0x33d   : > { %20215 = vmatpush3.bf16.msra.mxu0 %v22566_v57  ;;  %20177 = vmatprep.subr.bf16.mxu1 %v24246_v60  ;;  %v24264_v4 = vand.u32 4294901760, %v22558_v17  ;;  %v24265_v2 = vand.u32 4294901760, %v22560_v61 }
 0x33e   : > { %20216 = vmatprep.subr.bf16.mxu0 %v24246_v60  ;;  %18215 = vmatprep.mubr.msk.f32.mxu0 %vm21879_vm2, %v24239_v58  ;;  %v3032_v44 = vand.u32 4294901760, %v3031_v34  ;;  %24252 = vst [vmem:[#allocation33_spill] sm:$0xff] %v22636_v11  ;;  %24254 = vst [vmem:[#allocation35_spill] sm:$0xff] %v22651_v30  ;;  %v971_v34 = vld [vmem:[#allocation11 + $0x68] sm:$0xff] }
 0x33f   : > { %18073 = vmatmul.mubr.f32.vlgmr.msra.gmra.mrb[4].mxu1 %v22283_v14  ;;  %v22714_v1 = vpack.c.bf16 %v24265_v2, %v24264_v4  ;;  %v4391_v2 = vand.u32 4294901760, %v972_v26 }
 0x340   : > { %20179 = vmatpush3.bf16.msra.mxu1 %v22588_v10  ;;  %18149 = vmatprep.mubr.msk.f32.mxu1 %vm21879_vm2, %v24239_v58  ;;  %v22643_v31 = vpack.c.bf16 %v3032_v44, %v3025_v38  ;;  %v22664_v44 = vpack.c.bf16 %v22560_v61, %v22558_v17  ;;  %v24262_v38 = vand.u32 4294901760, %v22552_v5  ;;  %v973_v5 = vld [vmem:[#allocation11 + $0x78] sm:$0xff]  ;;  %v24267_v17 = vand.u32 4294901760, %v22573_v46 }
 0x341   : > { %20218 = vmatpush3.bf16.msra.mxu0 %v22590_v41  ;;  %20180 = vmatprep.subr.bf16.mxu1 %v24246_v60  ;;  %24266 = vst [vmem:[#allocation41_spill] sm:$0xff] %v22714_v1  ;;  %v24268_v61 = vand.u32 4294901760, %v22575_v35 }
 0x342   : > { %20219 = vmatprep.subr.bf16.mxu0 %v24246_v60  ;;  %24253 = vst [vmem:[#allocation34_spill] sm:$0xff] %v22643_v31  ;;  %24256 = vst [vmem:[#allocation37_spill] sm:$0xff] %v22664_v44 }
 0x344   : > { %20182 = vmatpush3.bf16.msra.mxu1 %v22614_v47  ;;  %18216 = vmatmul.mubr.f32.vlgmr.msra.gmra.mrb[6].mxu0 %v22296_v20 }
 0x345   : > { %20221 = vmatpush3.bf16.msra.mxu0 %v22627_v3  ;;  %20183 = vmatprep.subr.bf16.mxu1 %v24246_v60 }
 0x346   : > { %20222 = vmatprep.subr.bf16.mxu0 %v24246_v60  ;;  %18226 = vmatprep.mubr.msk.f32.mxu0 %vm21879_vm2, %v24239_v58 }
 0x347   : > { %18150 = vmatmul.mubr.f32.vlgmr.msra.gmra.mrb[6].mxu1 %v22302_v22 }
 0x348   : > { %20185 = vmatpush3.bf16.msra.mxu1 %v22632_v36  ;;  %18160 = vmatprep.mubr.msk.f32.mxu1 %vm21879_vm2, %v24239_v58  ;;  %v22746_v36 = vsub.f32 %v972_v26, %v4391_v2 }
 0x349   : > { %20224 = vmatpush3.bf16.msra.mxu0 %v22636_v11  ;;  %20186 = vmatprep.subr.bf16.mxu1 %v24246_v60  ;;  %v954_v11 = vld [vmem:[#allocation9 + $0x78] sm:$0xff] }
 0x34a   : > { %20225 = vmatprep.subr.bf16.mxu0 %v24246_v60 }
 0x34c   : > { %20188 = vmatpush3.bf16.msra.mxu1 %v22643_v31  ;;  %18227 = vmatmul.mubr.f32.vlgmr.msra.gmra.mrb[6].mxu0 %v22277_v7  ;;  %v953_v31 = vld [vmem:[#allocation9 + $0x70] sm:$0xff] }
 0x34d   : > { %20227 = vmatpush3.bf16.msra.mxu0 %v22651_v30  ;;  %20189 = vmatprep.subr.bf16.mxu1 %v24246_v60  ;;  %v952_v30 = vld [vmem:[#allocation9 + $0x68] sm:$0xff]  ;;  %v3906_v35 = vand.u32 4294901760, %v953_v31 }
 0x34e   : > { %20228 = vmatprep.subr.bf16.mxu0 %v24246_v60  ;;  %18237 = vmatprep.mubr.msk.f32.mxu0 %vm21879_vm2, %v24239_v58  ;;  %v3903_v4 = vand.u32 4294901760, %v952_v30 }
 0x34f   : > { %18161 = vmatmul.mubr.f32.vlgmr.msra.gmra.mrb[6].mxu1 %v22283_v14 }
 0x350   : > { %20191 = vmatpush3.bf16.msra.mxu1 %v22658_v33  ;;  %18171 = vmatprep.mubr.msk.f32.mxu1 %vm21879_vm2, %v24239_v58  ;;  %v951_v33 = vld [vmem:[#allocation9 + $0x60] sm:$0xff] }
 0x351   : > { %20230 = vmatpush3.bf16.msra.mxu0 %v22664_v44  ;;  %20192 = vmatprep.subr.bf16.mxu1 %v24246_v60  ;;  %v4388_v44 = vand.u32 4294901760, %v971_v34 }
 0x352   : > { %20231 = vmatprep.subr.bf16.mxu0 %v24246_v60 }
 0x353   : > { %v22733_v46 = vsub.f32 %v971_v34, %v4388_v44 }
 0x354   : > { %20194 = vmatpush3.bf16.msra.mxu1 %v22673_v63  ;;  %18238 = vmatmul.mubr.f32.vlgmr.msra.gmra.mrb[6].mxu0 %v22281_v13  ;;  %v22706_v63 = vpack.c.bf16 %v24262_v38, %v24261_v24  ;;  %v22725_v24 = vpack.c.bf16 %v24268_v61, %v24267_v17  ;;  %v3900_v38 = vand.u32 4294901760, %v951_v33  ;;  %v3909_v17 = vand.u32 4294901760, %v954_v11 }
 0x355   : > { %20233 = vmatpush3.bf16.msra.mxu0 %v22566_v57  ;;  %20195 = vmatprep.subr.bf16.mxu1 %v24246_v60 }
 0x356   : > { %20234 = vmatprep.subr.bf16.mxu0 %v24246_v60  ;;  %18248 = vmatprep.mubr.msk.f32.mxu0 %vm21879_vm2, %v24239_v58  ;;  %24263 = vst [vmem:[#allocation40_spill] sm:$0xff] %v22706_v63  ;;  %24269 = vst [vmem:[#allocation42_spill] sm:$0xff] %v22725_v24  ;;  %v22738_v61 = vsub.f32 %v951_v33, %v3900_v38  ;;  %v22763_v34 = vsub.f32 %v954_v11, %v3909_v17 }
 0x357   : > { %18172 = vmatmul.mubr.f32.vlgmr.msra.gmra.mrb[6].mxu1 %v22289_v16  ;;  %v22776_v11 = vpack.c.bf16 %v3903_v4, %v3900_v38 }
 0x358   : > { %20197 = vmatpush3.bf16.msra.mxu1 %v22588_v10  ;;  %18182 = vmatprep.mubr.msk.f32.mxu1 %vm21879_vm2, %v24239_v58 }
 0x359   : > { %20236 = vmatpush3.bf16.msra.mxu0 %v22590_v41  ;;  %20198 = vmatprep.subr.bf16.mxu1 %v24246_v60  ;;  %24272 = vst [vmem:[#allocation44_spill] sm:$0xff] %v22776_v11 }
 0x35a   : > { %20237 = vmatprep.subr.bf16.mxu0 %v24246_v60 }
 0x35c   : > { %20200 = vmatpush3.bf16.msra.mxu1 %v22614_v47  ;;  %18249 = vmatmul.mubr.f32.vlgmr.msra.gmra.mrb[6].mxu0 %v22286_v15 }
 0x35d   : > { %20239 = vmatpush3.bf16.msra.mxu0 %v22697_v40  ;;  %20201 = vmatprep.subr.bf16.mxu1 %v24246_v60  ;;  %v4394_v40 = vand.u32 4294901760, %v973_v5 }
 0x35e   : > { %20240 = vmatprep.subr.bf16.mxu0 %v24246_v60  ;;  %18259 = vmatprep.mubr.msk.f32.mxu0 %vm21879_vm2, %v24239_v58 }
 0x35f   : > { %18183 = vmatmul.mubr.f32.vlgmr.msra.gmra.mrb[6].mxu1 %v22294_v19  ;;  %v22748_v3 = vsub.f32 %v973_v5, %v4394_v40  ;;  %v22761_v5 = vsub.f32 %v953_v31, %v3906_v35  ;;  %v22778_v31 = vpack.c.bf16 %v4394_v40, %v4391_v2 }
 0x360   : > { %20203 = vmatpush3.bf16.msra.mxu1 %v22706_v63  ;;  %18193 = vmatprep.mubr.msk.f32.mxu1 %vm21879_vm2, %v24239_v58  ;;  %v22731_v63 = vsub.f32 %v970_v6, %v4385_v39 }
 0x361   : > { %20242 = vmatpush3.bf16.msra.mxu0 %v22714_v1  ;;  %20204 = vmatprep.subr.bf16.mxu1 %v24246_v60  ;;  %v22740_v1 = vsub.f32 %v952_v30, %v3903_v4  ;;  %v22754_v30 = vpack.c.bf16 %v4388_v44, %v4385_v39  ;;  %v24271_v39 = vand.u32 4294901760, %v22733_v46  ;;  %24273 = vst [vmem:[#allocation45_spill] sm:$0xff] %v22778_v31  ;;  %v24175_v26 = vand.u32 4294901760, %v22761_v5 }
 0x362   : > { %20243 = vmatprep.subr.bf16.mxu0 %v24246_v60  ;;  %v24166_v6 = vand.u32 4294901760, %v22731_v63  ;;  %v24276_v4 = vand.u32 4294901760, %v22746_v36 }
 0x363   : > { %24270 = vst [vmem:[#allocation43_spill] sm:$0xff] %v22754_v30 }
 0x364   : > { %20206 = vmatpush3.bf16.msra.mxu1 %v22725_v24  ;;  %18260 = vmatmul.mubr.f32.vlgmr.msra.gmra.mrb[6].mxu0 %v22277_v7  ;;  %v4467_v44 = vsub.f32 %v22731_v63, %v24166_v6  ;;  %v4474_v24 = vsub.f32 %v22733_v46, %v24271_v39  ;;  %v24274_v6 = vand.u32 4294901760, %v22738_v61  ;;  %v24275_v39 = vand.u32 4294901760, %v22740_v1 }
 0x365   : > { %20245 = vmatpush3.bf16.msra.mxu0 %v22566_v57  ;;  %20207 = vmatprep.subr.bf16.mxu1 %v24246_v60  ;;  %v4481_v2 = vsub.f32 %v22746_v36, %v24276_v4  ;;  %v3996_v4 = vsub.f32 %v22761_v5, %v24175_v26 }
 0x366   : > { %20246 = vmatprep.subr.bf16.mxu0 %v24246_v60  ;;  %18270 = vmatprep.mubr.msk.f32.mxu0 %vm21879_vm2, %v24239_v58  ;;  %v3989_v33 = vsub.f32 %v22740_v1, %v24275_v39  ;;  %v4468_v40 = vand.u32 4294901760, %v4467_v44  ;;  %v4475_v38 = vand.u32 4294901760, %v4474_v24  ;;  %v22802_v39 = vpack.c.bf16 %v3909_v17, %v3906_v35 }
 0x367   : > { %18194 = vmatmul.mubr.f32.vlgmr.msra.gmra.mrb[6].mxu1 %v22283_v14  ;;  %v4482_v17 = vand.u32 4294901760, %v4481_v2  ;;  %v24291_v2 = vand.u32 4294901760, %v22740_v1 }
 0x368   : > { %20209 = vmatpush3.bf16.msra.mxu1 %v22588_v10  ;;  %18204 = vmatprep.mubr.msk.f32.mxu1 %vm21879_vm2, %v24239_v58  ;;  %v24176_v10 = vand.u32 4294901760, %v22763_v34  ;;  %24278 = vst [vmem:[#allocation46_spill] sm:$0xff] %v22802_v39  ;;  %v3990_v44 = vand.u32 4294901760, %v3989_v33  ;;  %v22815_v35 = vpack.c.bf16 %v4475_v38, %v4468_v40  ;;  %v3997_v33 = vand.u32 4294901760, %v3996_v4 }
 0x369   : > { %20248 = vmatpush3.bf16.msra.mxu0 %v22590_v41  ;;  %20210 = vmatprep.subr.bf16.mxu1 %v24246_v60  ;;  %v3982_v41 = vsub.f32 %v22738_v61, %v24274_v6  ;;  %v24277_v6 = vand.u32 4294901760, %v22748_v3  ;;  %v24288_v40 = vand.u32 4294901760, %v22733_v46 }
 0x36a   : > { %20285 = vmatprep.subr.bf16.mxu0 %v24246_v60  ;;  %24279 = vst [vmem:[#allocation47_spill] sm:$0xff] %v22815_v35 }
 0x36b   : > { %v3983_v24 = vand.u32 4294901760, %v3982_v41 }
 0x36c   : > { %20212 = vmatpush3.bf16.msra.mxu1 %v22614_v47  ;;  %18271 = vmatmul.mubr.f32.vlgmr.msra.gmra.mrb[6].mxu0 %v22277_v7  ;;  %v4488_v47 = vsub.f32 %v22748_v3, %v24277_v6  ;;  %v4003_v6 = vsub.f32 %v22763_v34, %v24176_v10 }
 0x36d   : > { %20287 = vmatpush3.bf16.msra.mxu0 %v22754_v30  ;;  %20249 = vmatprep.subr.bf16.mxu1 %v24246_v60  ;;  %v22820_v41 = vpack.c.bf16 %v3990_v44, %v3983_v24 }
 0x36e   : > { %20288 = vmatprep.subr.bf16.mxu0 %v24246_v60  ;;  %18347 = vmatprep.mubr.msk.f32.mxu0 %vm21879_vm2, %v24239_v58  ;;  %v4489_v57 = vand.u32 4294901760, %v4488_v47  ;;  %v4004_v26 = vand.u32 4294901760, %v4003_v6  ;;  %v22852_v47 = vpack.c.bf16 %v22748_v3, %v22746_v36 }
 0x36f   : > { %18205 = vmatmul.mubr.f32.vlgmr.msra.gmra.mrb[6].mxu1 %v22283_v14  ;;  %24280 = vst [vmem:[#allocation48_spill] sm:$0xff] %v22820_v41 }
 0x370   : > { %20251 = vmatpush3.bf16.msra.mxu1 %v22776_v11  ;;  %18281 = vmatprep.mubr.msk.f32.mxu1 %vm21879_vm2, %v24239_v58  ;;  %v22824_v10 = vpack.c.bf16 %v4489_v57, %v4482_v17  ;;  %v22839_v57 = vpack.c.bf16 %v22733_v46, %v22731_v63  ;;  %24285 = vst [vmem:[#allocation53_spill] sm:$0xff] %v22852_v47  ;;  %v24294_v46 = vand.u32 4294901760, %v22748_v3 }
 0x371   : > { %20290 = vmatpush3.bf16.msra.mxu0 %v22778_v31  ;;  %20252 = vmatprep.subr.bf16.mxu1 %v24246_v60 }
 0x372   : > { %20291 = vmatprep.subr.bf16.mxu0 %v24246_v60  ;;  %24281 = vst [vmem:[#allocation49_spill] sm:$0xff] %v22824_v10  ;;  %24283 = vst [vmem:[#allocation51_spill] sm:$0xff] %v22839_v57 }
 0x374   : > { %20254 = vmatpush3.bf16.msra.mxu1 %v22802_v39  ;;  %18348 = vmatmul.mubr.f32.vlgmr.msra.gmra.mrb[8].mxu0 %v22296_v20  ;;  %v22831_v20 = vpack.c.bf16 %v4004_v26, %v3997_v33  ;;  %v22861_v26 = vpack.c.bf16 %v22763_v34, %v22761_v5 }
 0x375   : > { %20293 = vmatpush3.bf16.msra.mxu0 %v22815_v35  ;;  %20255 = vmatprep.subr.bf16.mxu1 %v24246_v60 }
 0x376   : > { %20294 = vmatprep.subr.bf16.mxu0 %v24246_v60  ;;  %18358 = vmatprep.mubr.msk.f32.mxu0 %vm21879_vm2, %v24239_v58  ;;  %24282 = vst [vmem:[#allocation50_spill] sm:$0xff] %v22831_v20  ;;  %24286 = vst [vmem:[#allocation54_spill] sm:$0xff] %v22861_v26 }
 0x377   : > { %18282 = vmatmul.mubr.f32.vlgmr.msra.gmra.mrb[8].mxu1 %v22302_v22  ;;  %v22846_v22 = vpack.c.bf16 %v22740_v1, %v22738_v61  ;;  %v24297_v1 = vand.u32 4294901760, %v22763_v34 }
 0x378   : > { %20257 = vmatpush3.bf16.msra.mxu1 %v22820_v41  ;;  %18292 = vmatprep.mubr.msk.f32.mxu1 %vm21879_vm2, %v24239_v58 }
 0x379   : > { %20296 = vmatpush3.bf16.msra.mxu0 %v22824_v10  ;;  %20258 = vmatprep.subr.bf16.mxu1 %v24246_v60  ;;  %24284 = vst [vmem:[#allocation52_spill] sm:$0xff] %v22846_v22 }
 0x37a   : > { %20297 = vmatprep.subr.bf16.mxu0 %v24246_v60 }
 0x37c   : > { %20260 = vmatpush3.bf16.msra.mxu1 %v22831_v20  ;;  %18359 = vmatmul.mubr.f32.vlgmr.msra.gmra.mrb[8].mxu0 %v22277_v7 }
 0x37d   : > { %20299 = vmatpush3.bf16.msra.mxu0 %v22839_v57  ;;  %20261 = vmatprep.subr.bf16.mxu1 %v24246_v60 }
 0x37e   : > { %20300 = vmatprep.subr.bf16.mxu0 %v24246_v60  ;;  %18369 = vmatprep.mubr.msk.f32.mxu0 %vm21879_vm2, %v24239_v58 }
 0x37f   : > { %18293 = vmatmul.mubr.f32.vlgmr.msra.gmra.mrb[8].mxu1 %v22283_v14 }
 0x380   : > { %20263 = vmatpush3.bf16.msra.mxu1 %v22846_v22  ;;  %18303 = vmatprep.mubr.msk.f32.mxu1 %vm21879_vm2, %v24239_v58 }
 0x381   : > { %20302 = vmatpush3.bf16.msra.mxu0 %v22852_v47  ;;  %20264 = vmatprep.subr.bf16.mxu1 %v24246_v60 }
 0x382   : > { %20303 = vmatprep.subr.bf16.mxu0 %v24246_v60 }
 0x384   : > { %20266 = vmatpush3.bf16.msra.mxu1 %v22861_v26  ;;  %18370 = vmatmul.mubr.f32.vlgmr.msra.gmra.mrb[8].mxu0 %v22281_v13  ;;  %v24287_v13 = vand.u32 4294901760, %v22731_v63  ;;  %v24293_v63 = vand.u32 4294901760, %v22746_v36 }
 0x385   : > { %20305 = vmatpush3.bf16.msra.mxu0 %v22754_v30  ;;  %20267 = vmatprep.subr.bf16.mxu1 %v24246_v60 }
 0x386   : > { %20306 = vmatprep.subr.bf16.mxu0 %v24246_v60  ;;  %18380 = vmatprep.mubr.msk.f32.mxu0 %vm21879_vm2, %v24239_v58  ;;  %v22885_v38 = vpack.c.bf16 %v24288_v40, %v24287_v13  ;;  %v22902_v44 = vpack.c.bf16 %v24294_v46, %v24293_v63 }
 0x387   : > { %18304 = vmatmul.mubr.f32.vlgmr.msra.gmra.mrb[8].mxu1 %v22289_v16  ;;  %v24290_v16 = vand.u32 4294901760, %v22738_v61 }
 0x388   : > { %20269 = vmatpush3.bf16.msra.mxu1 %v22776_v11  ;;  %18314 = vmatprep.mubr.msk.f32.mxu1 %vm21879_vm2, %v24239_v58  ;;  %24289 = vst [vmem:[#allocation55_spill] sm:$0xff] %v22885_v38  ;;  %24295 = vst [vmem:[#allocation57_spill] sm:$0xff] %v22902_v44 }
 0x389   : > { %20308 = vmatpush3.bf16.msra.mxu0 %v22778_v31  ;;  %20270 = vmatprep.subr.bf16.mxu1 %v24246_v60  ;;  %v22894_v24 = vpack.c.bf16 %v24291_v2, %v24290_v16 }
 0x38a   : > { %20309 = vmatprep.subr.bf16.mxu0 %v24246_v60 }
 0x38b   : > { %24292 = vst [vmem:[#allocation56_spill] sm:$0xff] %v22894_v24 }
 0x38c   : > { %20272 = vmatpush3.bf16.msra.mxu1 %v22802_v39  ;;  %18381 = vmatmul.mubr.f32.vlgmr.msra.gmra.mrb[8].mxu0 %v22286_v15  ;;  %v24296_v15 = vand.u32 4294901760, %v22761_v5 }
 0x38d   : > { %20311 = vmatpush3.bf16.msra.mxu0 %v22885_v38  ;;  %20273 = vmatprep.subr.bf16.mxu1 %v24246_v60 }
 0x38e   : > { %20312 = vmatprep.subr.bf16.mxu0 %v24246_v60  ;;  %18391 = vmatprep.mubr.msk.f32.mxu0 %vm21879_vm2, %v24239_v58  ;;  %v22913_v61 = vpack.c.bf16 %v24297_v1, %v24296_v15 }
 0x38f   : > { %18315 = vmatmul.mubr.f32.vlgmr.msra.gmra.mrb[8].mxu1 %v22294_v19 }
 0x390   : > { %20275 = vmatpush3.bf16.msra.mxu1 %v22894_v24  ;;  %24298 = vst [vmem:[#allocation58_spill] sm:$0xff] %v22913_v61  ;;  %18325 = vmatprep.mubr.msk.f32.mxu1 %vm21879_vm2, %v24239_v58 }
 0x391   : > { %20314 = vmatpush3.bf16.msra.mxu0 %v22902_v44  ;;  %20276 = vmatprep.subr.bf16.mxu1 %v24246_v60 }
 0x392   : > { %20315 = vmatprep.subr.bf16.mxu0 %v24246_v60 }
 0x394   : > { %20278 = vmatpush3.bf16.msra.mxu1 %v22913_v61  ;;  %18392 = vmatmul.mubr.f32.vlgmr.msra.gmra.mrb[8].mxu0 %v22277_v7 }
 0x395   : > { %20317 = vmatpush3.bf16.msra.mxu0 %v22754_v30  ;;  %20279 = vmatprep.subr.bf16.mxu1 %v24246_v60 }
 0x396   : > { %20318 = vmatprep.subr.bf16.mxu0 %v24246_v60  ;;  %18402 = vmatprep.mubr.msk.f32.mxu0 %vm21879_vm2, %v24239_v58 }
 0x397   : > { %18326 = vmatmul.mubr.f32.vlgmr.msra.gmra.mrb[8].mxu1 %v22283_v14 }
 0x398   : > { %20281 = vmatpush3.bf16.msra.mxu1 %v22776_v11  ;;  %18336 = vmatprep.mubr.msk.f32.mxu1 %vm21879_vm2, %v24239_v58 }
 0x399   : > { %20320 = vmatpush3.bf16.msra.mxu0 %v22778_v31  ;;  %20282 = vmatprep.subr.bf16.mxu1 %v24246_v60 }
 0x39a   : > { %20357 = vmatprep.subr.bf16.mxu0 %v24246_v60 }
 0x39c   : > { %20284 = vmatpush3.bf16.msra.mxu1 %v22802_v39  ;;  %18403 = vmatmul.mubr.f32.vlgmr.msra.gmra.mrb[8].mxu0 %v22277_v7 }
 0x39d   : > { %20359 = vmatpush3.bf16.msra.mxu0 %v22227_v59  ;;  %20321 = vmatprep.subr.bf16.mxu1 %v24246_v60 }
 0x39e   : > { %20360 = vmatprep.subr.bf16.mxu0 %v24246_v60  ;;  %18479 = vmatprep.mubr.msk.f32.mxu0 %vm21879_vm2, %v24239_v58 }
 0x39f   : > { %18337 = vmatmul.mubr.f32.vlgmr.msra.gmra.mrb[8].mxu1 %v22283_v14 }
 0x3a0   : > { %20323 = vmatpush3.bf16.msra.mxu1 %v22230_v8  ;;  %18413 = vmatprep.mubr.msk.f32.mxu1 %vm21879_vm2, %v24239_v58 }
 0x3a1   : > { %20362 = vmatpush3.bf16.msra.mxu0 %v22233_v9  ;;  %20324 = vmatprep.subr.bf16.mxu1 %v24246_v60 }
 0x3a2   : > { %20363 = vmatprep.subr.bf16.mxu0 %v24246_v60 }
 0x3a4   : > { %20326 = vmatpush3.bf16.msra.mxu1 %v22238_v25 }
 0x3a5   : > { %20327 = vmatprep.subr.bf16.mxu1 %v24246_v60 }
 0x3df   : > { %v1950_v7 = vpop.f32.mrb[2].mxu0 }
 0x3e0   : > { %v18008_v19 = vpop.f32.mrb[3].mxu0 }
 0x3e2   : > { %v1463_v3 = vpop.f32.mrb[2].mxu1 }
 0x3e3   : > { %v1954_v36 = vmul.f32 %v1950_v7, %v1463_v3  ;;  %v17942_v14 = vpop.f32.mrb[3].mxu1 }
 0x40f   : > { %v2921_v34 = vpop.f32.mrb[4].mxu0 }
 0x410   : > { %v18140_v5 = vpop.f32.mrb[5].mxu0 }
 0x412   : > { %v2436_v4 = vpop.f32.mrb[4].mxu1 }
 0x413   : > { %v2925_v6 = vmul.f32 %v2921_v34, %v2436_v4  ;;  %v18074_v17 = vpop.f32.mrb[5].mxu1 }
 0x415   : > { %v2926_v33 = vadd.f32 %v2925_v6, %v1954_v36 }
 0x43f   : > { %v3893_v13 = vpop.f32.mrb[6].mxu0 }
 0x440   : > { %v18272_v40 = vpop.f32.mrb[7].mxu0 }
 0x441   : > { %v24299_v40 = vld [vmem:[#allocation21_spill] sm:$0xff] }
 0x442   : > { %v3408_v16 = vpop.f32.mrb[6].mxu1 }
 0x443   : > { %v3897_v2 = vmul.f32 %v3893_v13, %v3408_v16  ;;  %v18206_v63 = vpop.f32.mrb[7].mxu1  ;;  %v24300_v16 = vld [vmem:[#allocation22_spill] sm:$0xff] }
 0x444   : > { %v24302_v63 = vld [vmem:[#allocation24_spill] sm:$0xff] }
 0x445   : > { %v3898_v46 = vadd.f32 %v3897_v2, %v2926_v33  ;;  %v24301_v2 = vld [vmem:[#allocation23_spill] sm:$0xff] }
 0x46f   : > { %v4865_v15 = vpop.f32.mrb[8].mxu0 }
 0x470   : > { %v18404_v1 = vpop.f32.mrb[9].mxu0 }
 0x471   : > { %v24305_v1 = vld [vmem:[#allocation27_spill] sm:$0xff] }
 0x472   : > { %v4380_v61 = vpop.f32.mrb[8].mxu1 }
 0x473   : > { %v4869_v44 = vmul.f32 %v4865_v15, %v4380_v61  ;;  %v18338_v19 = vpop.f32.mrb[9].mxu1  ;;  %v24304_v15 = vld [vmem:[#allocation26_spill] sm:$0xff] }
 0x474   : > { %v24306_v19 = vld [vmem:[#allocation28_spill] sm:$0xff] }
 0x475   : > { %v4870_v24 = vadd.f32 %v4869_v44, %v3898_v46  ;;  %v24303_v46 = vld [vmem:[#allocation25_spill] sm:$0xff] }
 0x477   : > { %v4872_v7 = vrot.slane %v4870_v24, 6  ;;  %v5364_v3 = vsel %vm414_vm1, %v4870_v24, 0 }
 0x478   : > { %v22951_v14 = vand.u32 4294901760, %v5364_v3 }
 0x479   : > { %v4875_v36 = vsel %vm4874_vm4, %v22273_v0, %v4872_v7  ;;  %v24307_v7 = vld [vmem:[#allocation29_spill] sm:$0xff] }
 0x47a   : > { %v4877_v34 = vsel %vm414_vm1, %v4875_v36, 0  ;;  %v22956_v5 = vsub.f32 %v5364_v3, %v22951_v14  ;;  %v24308_v3 = vld [vmem:[#allocation30_spill] sm:$0xff]  ;;  %v24309_v36 = vld [vmem:[#allocation31_spill] sm:$0xff] }
 0x47b   : > { %v22958_v4 = vand.u32 4294901760, %v4877_v34 }
 0x47c   : > { %v22961_v6 = vand.u32 4294901760, %v22956_v5 }
 0x47d   : > { %v22964_v44 = vsub.f32 %v4877_v34, %v22958_v4  ;;  %v24310_v34 = vld [vmem:[#allocation32_spill] sm:$0xff] }
 0x47e   : > { %v5438_v24 = vsub.f32 %v22956_v5, %v22961_v6 }
 0x47f   : > { %v22969_v61 = vand.u32 4294901760, %v22964_v44 }
 0x480   : > { %v22971_v17 = vand.u32 4294901760, %v5438_v24  ;;  %v24311_v24 = vld [vmem:[#allocation33_spill] sm:$0xff] }
 0x481   : > { %v4951_v33 = vsub.f32 %v22964_v44, %v22969_v61 }
 0x482   : > { %18480 = vmatmul.mubr.f32.vlgmr.msra.gmra.mrb[10].mxu0 %v22971_v17 }
 0x483   : > { %20365 = vmatpush3.bf16.msra.mxu0 %v22241_v28  ;;  %v22977_v13 = vand.u32 4294901760, %v4951_v33  ;;  %18490 = vmatprep.mubr.msk.f32.mxu0 %vm21879_vm2, %v24239_v58  ;;  %v24312_v33 = vld [vmem:[#allocation34_spill] sm:$0xff] }
 0x484   : > { %20366 = vmatprep.subr.bf16.mxu0 %v24246_v60 }
 0x485   : > { %18414 = vmatmul.mubr.f32.vlgmr.msra.gmra.mrb[10].mxu1 %v22977_v13 }
 0x486   : > { %20329 = vmatpush3.bf16.msra.mxu1 %v22245_v43  ;;  %18424 = vmatprep.mubr.msk.f32.mxu1 %vm21879_vm2, %v24239_v58 }
 0x487   : > { %20368 = vmatpush3.bf16.msra.mxu0 %v22247_v45  ;;  %20330 = vmatprep.subr.bf16.mxu1 %v24246_v60 }
 0x488   : > { %20369 = vmatprep.subr.bf16.mxu0 %v24246_v60 }
 0x48a   : > { %20332 = vmatpush3.bf16.msra.mxu1 %v22249_v48  ;;  %18491 = vmatmul.mubr.f32.vlgmr.msra.gmra.mrb[10].mxu0 %v22951_v14 }
 0x48b   : > { %20371 = vmatpush3.bf16.msra.mxu0 %v22251_v49  ;;  %20333 = vmatprep.subr.bf16.mxu1 %v24246_v60 }
 0x48c   : > { %20372 = vmatprep.subr.bf16.mxu0 %v24246_v60  ;;  %18501 = vmatprep.mubr.msk.f32.mxu0 %vm21879_vm2, %v24239_v58 }
 0x48d   : > { %18425 = vmatmul.mubr.f32.vlgmr.msra.gmra.mrb[10].mxu1 %v22958_v4 }
 0x48e   : > { %20335 = vmatpush3.bf16.msra.mxu1 %v22253_v50  ;;  %18435 = vmatprep.mubr.msk.f32.mxu1 %vm21879_vm2, %v24239_v58 }
 0x48f   : > { %20374 = vmatpush3.bf16.msra.mxu0 %v22255_v51  ;;  %20336 = vmatprep.subr.bf16.mxu1 %v24246_v60 }
 0x490   : > { %20375 = vmatprep.subr.bf16.mxu0 %v24246_v60 }
 0x492   : > { %20338 = vmatpush3.bf16.msra.mxu1 %v22257_v52  ;;  %18502 = vmatmul.mubr.f32.vlgmr.msra.gmra.mrb[10].mxu0 %v22956_v5 }
 0x493   : > { %20377 = vmatpush3.bf16.msra.mxu0 %v22227_v59  ;;  %20339 = vmatprep.subr.bf16.mxu1 %v24246_v60 }
 0x494   : > { %20378 = vmatprep.subr.bf16.mxu0 %v24246_v60  ;;  %18512 = vmatprep.mubr.msk.f32.mxu0 %vm21879_vm2, %v24239_v58 }
 0x495   : > { %18436 = vmatmul.mubr.f32.vlgmr.msra.gmra.mrb[10].mxu1 %v22964_v44 }
 0x496   : > { %20341 = vmatpush3.bf16.msra.mxu1 %v22230_v8  ;;  %18446 = vmatprep.mubr.msk.f32.mxu1 %vm21879_vm2, %v24239_v58 }
 0x497   : > { %20380 = vmatpush3.bf16.msra.mxu0 %v22233_v9  ;;  %20342 = vmatprep.subr.bf16.mxu1 %v24246_v60 }
 0x498   : > { %20381 = vmatprep.subr.bf16.mxu0 %v24246_v60 }
 0x49a   : > { %20344 = vmatpush3.bf16.msra.mxu1 %v22238_v25  ;;  %18513 = vmatmul.mubr.f32.vlgmr.msra.gmra.mrb[10].mxu0 %v22961_v6 }
 0x49b   : > { %20383 = vmatpush3.bf16.msra.mxu0 %v22259_v53  ;;  %20345 = vmatprep.subr.bf16.mxu1 %v24246_v60 }
 0x49c   : > { %20384 = vmatprep.subr.bf16.mxu0 %v24246_v60  ;;  %18523 = vmatprep.mubr.msk.f32.mxu0 %vm21879_vm2, %v24239_v58 }
 0x49d   : > { %18447 = vmatmul.mubr.f32.vlgmr.msra.gmra.mrb[10].mxu1 %v22969_v61 }
 0x49e   : > { %20347 = vmatpush3.bf16.msra.mxu1 %v22261_v54  ;;  %18457 = vmatprep.mubr.msk.f32.mxu1 %vm21879_vm2, %v24239_v58 }
 0x49f   : > { %20386 = vmatpush3.bf16.msra.mxu0 %v22263_v55  ;;  %20348 = vmatprep.subr.bf16.mxu1 %v24246_v60 }
 0x4a0   : > { %20387 = vmatprep.subr.bf16.mxu0 %v24246_v60 }
 0x4a2   : > { %20350 = vmatpush3.bf16.msra.mxu1 %v22265_v56  ;;  %18524 = vmatmul.mubr.f32.vlgmr.msra.gmra.mrb[10].mxu0 %v22951_v14 }
 0x4a3   : > { %20389 = vmatpush3.bf16.msra.mxu0 %v22227_v59  ;;  %20351 = vmatprep.subr.bf16.mxu1 %v24246_v60 }
 0x4a4   : > { %20390 = vmatprep.subr.bf16.mxu0 %v24246_v60  ;;  %18534 = vmatprep.mubr.msk.f32.mxu0 %vm21879_vm2, %v24239_v58 }
 0x4a5   : > { %18458 = vmatmul.mubr.f32.vlgmr.msra.gmra.mrb[10].mxu1 %v22958_v4 }
 0x4a6   : > { %20353 = vmatpush3.bf16.msra.mxu1 %v22230_v8  ;;  %18468 = vmatprep.mubr.msk.f32.mxu1 %vm21879_vm2, %v24239_v58 }
 0x4a7   : > { %20392 = vmatpush3.bf16.msra.mxu0 %v22233_v9  ;;  %20354 = vmatprep.subr.bf16.mxu1 %v24246_v60 }
 0x4a8   : > { %20429 = vmatprep.subr.bf16.mxu0 %v24246_v60 }
 0x4aa   : > { %20356 = vmatpush3.bf16.msra.mxu1 %v22238_v25  ;;  %18535 = vmatmul.mubr.f32.vlgmr.msra.gmra.mrb[10].mxu0 %v22951_v14 }
 0x4ab   : > { %20431 = vmatpush3.bf16.msra.mxu0 %v22378_v62  ;;  %20393 = vmatprep.subr.bf16.mxu1 %v24246_v60 }
 0x4ac   : > { %20432 = vmatprep.subr.bf16.mxu0 %v24246_v60  ;;  %18611 = vmatprep.mubr.msk.f32.mxu0 %vm21879_vm2, %v24239_v58 }
 0x4ad   : > { %18469 = vmatmul.mubr.f32.vlgmr.msra.gmra.mrb[10].mxu1 %v22958_v4 }
 0x4ae   : > { %20395 = vmatpush3.bf16.msra.mxu1 %v22400_v12  ;;  %18545 = vmatprep.mubr.msk.f32.mxu1 %vm21879_vm2, %v24239_v58 }
 0x4af   : > { %20434 = vmatpush3.bf16.msra.mxu0 %v22402_v18  ;;  %20396 = vmatprep.subr.bf16.mxu1 %v24246_v60 }
 0x4b0   : > { %20435 = vmatprep.subr.bf16.mxu0 %v24246_v60 }
 0x4b2   : > { %20398 = vmatpush3.bf16.msra.mxu1 %v22426_v32  ;;  %18612 = vmatmul.mubr.f32.vlgmr.msra.gmra.mrb[12].mxu0 %v22971_v17 }
 0x4b3   : > { %20437 = vmatpush3.bf16.msra.mxu0 %v22439_v37  ;;  %20399 = vmatprep.subr.bf16.mxu1 %v24246_v60 }
 0x4b4   : > { %20438 = vmatprep.subr.bf16.mxu0 %v24246_v60  ;;  %18622 = vmatprep.mubr.msk.f32.mxu0 %vm21879_vm2, %v24239_v58 }
 0x4b5   : > { %18546 = vmatmul.mubr.f32.vlgmr.msra.gmra.mrb[12].mxu1 %v22977_v13 }
 0x4b6   : > { %20401 = vmatpush3.bf16.msra.mxu1 %v22444_v42  ;;  %18556 = vmatprep.mubr.msk.f32.mxu1 %vm21879_vm2, %v24239_v58 }
 0x4b7   : > { %20440 = vmatpush3.bf16.msra.mxu0 %v22448_v21  ;;  %20402 = vmatprep.subr.bf16.mxu1 %v24246_v60 }
 0x4b8   : > { %20441 = vmatprep.subr.bf16.mxu0 %v24246_v60 }
 0x4ba   : > { %20404 = vmatpush3.bf16.msra.mxu1 %v22455_v23  ;;  %18623 = vmatmul.mubr.f32.vlgmr.msra.gmra.mrb[12].mxu0 %v22951_v14 }
 0x4bb   : > { %20443 = vmatpush3.bf16.msra.mxu0 %v22463_v27  ;;  %20405 = vmatprep.subr.bf16.mxu1 %v24246_v60 }
 0x4bc   : > { %20444 = vmatprep.subr.bf16.mxu0 %v24246_v60  ;;  %18633 = vmatprep.mubr.msk.f32.mxu0 %vm21879_vm2, %v24239_v58 }
 0x4bd   : > { %18557 = vmatmul.mubr.f32.vlgmr.msra.gmra.mrb[12].mxu1 %v22958_v4 }
 0x4be   : > { %20407 = vmatpush3.bf16.msra.mxu1 %v22470_v29  ;;  %18567 = vmatprep.mubr.msk.f32.mxu1 %vm21879_vm2, %v24239_v58 }
 0x4bf   : > { %20446 = vmatpush3.bf16.msra.mxu0 %v24299_v40  ;;  %20408 = vmatprep.subr.bf16.mxu1 %v24246_v60 }
 0x4c0   : > { %20447 = vmatprep.subr.bf16.mxu0 %v24246_v60 }
 0x4c2   : > { %20410 = vmatpush3.bf16.msra.mxu1 %v24300_v16  ;;  %18634 = vmatmul.mubr.f32.vlgmr.msra.gmra.mrb[12].mxu0 %v22956_v5 }
 0x4c3   : > { %20449 = vmatpush3.bf16.msra.mxu0 %v22378_v62  ;;  %20411 = vmatprep.subr.bf16.mxu1 %v24246_v60 }
 0x4c4   : > { %20450 = vmatprep.subr.bf16.mxu0 %v24246_v60  ;;  %18644 = vmatprep.mubr.msk.f32.mxu0 %vm21879_vm2, %v24239_v58 }
 0x4c5   : > { %18568 = vmatmul.mubr.f32.vlgmr.msra.gmra.mrb[12].mxu1 %v22964_v44 }
 0x4c6   : > { %20413 = vmatpush3.bf16.msra.mxu1 %v22400_v12  ;;  %18578 = vmatprep.mubr.msk.f32.mxu1 %vm21879_vm2, %v24239_v58 }
 0x4c7   : > { %20452 = vmatpush3.bf16.msra.mxu0 %v22402_v18  ;;  %20414 = vmatprep.subr.bf16.mxu1 %v24246_v60 }
 0x4c8   : > { %20453 = vmatprep.subr.bf16.mxu0 %v24246_v60 }
 0x4ca   : > { %20416 = vmatpush3.bf16.msra.mxu1 %v22426_v32  ;;  %18645 = vmatmul.mubr.f32.vlgmr.msra.gmra.mrb[12].mxu0 %v22961_v6 }
 0x4cb   : > { %20455 = vmatpush3.bf16.msra.mxu0 %v24301_v2  ;;  %20417 = vmatprep.subr.bf16.mxu1 %v24246_v60 }
 0x4cc   : > { %20456 = vmatprep.subr.bf16.mxu0 %v24246_v60  ;;  %18655 = vmatprep.mubr.msk.f32.mxu0 %vm21879_vm2, %v24239_v58 }
 0x4cd   : > { %18579 = vmatmul.mubr.f32.vlgmr.msra.gmra.mrb[12].mxu1 %v22969_v61 }
 0x4ce   : > { %20419 = vmatpush3.bf16.msra.mxu1 %v24302_v63  ;;  %18589 = vmatprep.mubr.msk.f32.mxu1 %vm21879_vm2, %v24239_v58 }
 0x4cf   : > { %20458 = vmatpush3.bf16.msra.mxu0 %v24303_v46  ;;  %20420 = vmatprep.subr.bf16.mxu1 %v24246_v60 }
 0x4d0   : > { %20459 = vmatprep.subr.bf16.mxu0 %v24246_v60 }
 0x4d2   : > { %20422 = vmatpush3.bf16.msra.mxu1 %v24304_v15  ;;  %18656 = vmatmul.mubr.f32.vlgmr.msra.gmra.mrb[12].mxu0 %v22951_v14 }
 0x4d3   : > { %20461 = vmatpush3.bf16.msra.mxu0 %v22378_v62  ;;  %20423 = vmatprep.subr.bf16.mxu1 %v24246_v60 }
 0x4d4   : > { %20462 = vmatprep.subr.bf16.mxu0 %v24246_v60  ;;  %18666 = vmatprep.mubr.msk.f32.mxu0 %vm21879_vm2, %v24239_v58 }
 0x4d5   : > { %18590 = vmatmul.mubr.f32.vlgmr.msra.gmra.mrb[12].mxu1 %v22958_v4 }
 0x4d6   : > { %20425 = vmatpush3.bf16.msra.mxu1 %v22400_v12  ;;  %18600 = vmatprep.mubr.msk.f32.mxu1 %vm21879_vm2, %v24239_v58 }
 0x4d7   : > { %20464 = vmatpush3.bf16.msra.mxu0 %v22402_v18  ;;  %20426 = vmatprep.subr.bf16.mxu1 %v24246_v60 }
 0x4d8   : > { %20501 = vmatprep.subr.bf16.mxu0 %v24246_v60 }
 0x4da   : > { %20428 = vmatpush3.bf16.msra.mxu1 %v22426_v32  ;;  %18667 = vmatmul.mubr.f32.vlgmr.msra.gmra.mrb[12].mxu0 %v22951_v14 }
 0x4db   : > { %20503 = vmatpush3.bf16.msra.mxu0 %v24305_v1  ;;  %20465 = vmatprep.subr.bf16.mxu1 %v24246_v60 }
 0x4dc   : > { %20504 = vmatprep.subr.bf16.mxu0 %v24246_v60  ;;  %18743 = vmatprep.mubr.msk.f32.mxu0 %vm21879_vm2, %v24239_v58 }
 0x4dd   : > { %18601 = vmatmul.mubr.f32.vlgmr.msra.gmra.mrb[12].mxu1 %v22958_v4 }
 0x4de   : > { %20467 = vmatpush3.bf16.msra.mxu1 %v24306_v19  ;;  %18677 = vmatprep.mubr.msk.f32.mxu1 %vm21879_vm2, %v24239_v58 }
 0x4df   : > { %20506 = vmatpush3.bf16.msra.mxu0 %v24307_v7  ;;  %20468 = vmatprep.subr.bf16.mxu1 %v24246_v60 }
 0x4e0   : > { %20507 = vmatprep.subr.bf16.mxu0 %v24246_v60 }
 0x4e2   : > { %20470 = vmatpush3.bf16.msra.mxu1 %v24308_v3  ;;  %18744 = vmatmul.mubr.f32.vlgmr.msra.gmra.mrb[14].mxu0 %v22971_v17 }
 0x4e3   : > { %20509 = vmatpush3.bf16.msra.mxu0 %v24309_v36  ;;  %20471 = vmatprep.subr.bf16.mxu1 %v24246_v60  ;;  %v24313_v36 = vld [vmem:[#allocation35_spill] sm:$0xff] }
 0x4e4   : > { %20510 = vmatprep.subr.bf16.mxu0 %v24246_v60  ;;  %18754 = vmatprep.mubr.msk.f32.mxu0 %vm21879_vm2, %v24239_v58 }
 0x4e5   : > { %18678 = vmatmul.mubr.f32.vlgmr.msra.gmra.mrb[14].mxu1 %v22977_v13 }
 0x4e6   : > { %20473 = vmatpush3.bf16.msra.mxu1 %v24310_v34  ;;  %18688 = vmatprep.mubr.msk.f32.mxu1 %vm21879_vm2, %v24239_v58  ;;  %v24315_v34 = vld [vmem:[#allocation37_spill] sm:$0xff] }
 0x4e7   : > { %20512 = vmatpush3.bf16.msra.mxu0 %v24311_v24  ;;  %20474 = vmatprep.subr.bf16.mxu1 %v24246_v60  ;;  %v24314_v24 = vld [vmem:[#allocation36_spill] sm:$0xff] }
 0x4e8   : > { %20513 = vmatprep.subr.bf16.mxu0 %v24246_v60 }
 0x4ea   : > { %20476 = vmatpush3.bf16.msra.mxu1 %v24312_v33  ;;  %18755 = vmatmul.mubr.f32.vlgmr.msra.gmra.mrb[14].mxu0 %v22951_v14 }
 0x4eb   : > { %20515 = vmatpush3.bf16.msra.mxu0 %v24313_v36  ;;  %20477 = vmatprep.subr.bf16.mxu1 %v24246_v60  ;;  %v24316_v36 = vld [vmem:[#allocation38_spill] sm:$0xff] }
 0x4ec   : > { %20516 = vmatprep.subr.bf16.mxu0 %v24246_v60  ;;  %18765 = vmatprep.mubr.msk.f32.mxu0 %vm21879_vm2, %v24239_v58 }
 0x4ed   : > { %18689 = vmatmul.mubr.f32.vlgmr.msra.gmra.mrb[14].mxu1 %v22958_v4 }
 0x4ee   : > { %20479 = vmatpush3.bf16.msra.mxu1 %v24314_v24  ;;  %18699 = vmatprep.mubr.msk.f32.mxu1 %vm21879_vm2, %v24239_v58  ;;  %v24319_v24 = vld [vmem:[#allocation41_spill] sm:$0xff] }
 0x4ef   : > { %20518 = vmatpush3.bf16.msra.mxu0 %v24315_v34  ;;  %20480 = vmatprep.subr.bf16.mxu1 %v24246_v60  ;;  %v24318_v34 = vld [vmem:[#allocation40_spill] sm:$0xff] }
 0x4f0   : > { %20519 = vmatprep.subr.bf16.mxu0 %v24246_v60 }
 0x4f2   : > { %20482 = vmatpush3.bf16.msra.mxu1 %v24316_v36  ;;  %18766 = vmatmul.mubr.f32.vlgmr.msra.gmra.mrb[14].mxu0 %v22956_v5  ;;  %v24317_v36 = vld [vmem:[#allocation39_spill] sm:$0xff] }
 0x4f3   : > { %20521 = vmatpush3.bf16.msra.mxu0 %v24305_v1  ;;  %20483 = vmatprep.subr.bf16.mxu1 %v24246_v60 }
 0x4f4   : > { %20522 = vmatprep.subr.bf16.mxu0 %v24246_v60  ;;  %18776 = vmatprep.mubr.msk.f32.mxu0 %vm21879_vm2, %v24239_v58 }
 0x4f5   : > { %18700 = vmatmul.mubr.f32.vlgmr.msra.gmra.mrb[14].mxu1 %v22964_v44 }
 0x4f6   : > { %20485 = vmatpush3.bf16.msra.mxu1 %v24306_v19  ;;  %18710 = vmatprep.mubr.msk.f32.mxu1 %vm21879_vm2, %v24239_v58 }
 0x4f7   : > { %20524 = vmatpush3.bf16.msra.mxu0 %v24307_v7  ;;  %20486 = vmatprep.subr.bf16.mxu1 %v24246_v60 }
 0x4f8   : > { %20525 = vmatprep.subr.bf16.mxu0 %v24246_v60 }
 0x4fa   : > { %20488 = vmatpush3.bf16.msra.mxu1 %v24308_v3  ;;  %18777 = vmatmul.mubr.f32.vlgmr.msra.gmra.mrb[14].mxu0 %v22961_v6 }
 0x4fb   : > { %20527 = vmatpush3.bf16.msra.mxu0 %v24317_v36  ;;  %20489 = vmatprep.subr.bf16.mxu1 %v24246_v60  ;;  %v24320_v36 = vld [vmem:[#allocation42_spill] sm:$0xff] }
 0x4fc   : > { %20528 = vmatprep.subr.bf16.mxu0 %v24246_v60  ;;  %18787 = vmatprep.mubr.msk.f32.mxu0 %vm21879_vm2, %v24239_v58 }
 0x4fd   : > { %18711 = vmatmul.mubr.f32.vlgmr.msra.gmra.mrb[14].mxu1 %v22969_v61 }
 0x4fe   : > { %20491 = vmatpush3.bf16.msra.mxu1 %v24318_v34  ;;  %18721 = vmatprep.mubr.msk.f32.mxu1 %vm21879_vm2, %v24239_v58 }
 0x4ff   : > { %20530 = vmatpush3.bf16.msra.mxu0 %v24319_v24  ;;  %20492 = vmatprep.subr.bf16.mxu1 %v24246_v60 }
 0x500   : > { %20531 = vmatprep.subr.bf16.mxu0 %v24246_v60 }
 0x502   : > { %20494 = vmatpush3.bf16.msra.mxu1 %v24320_v36  ;;  %18788 = vmatmul.mubr.f32.vlgmr.msra.gmra.mrb[14].mxu0 %v22951_v14 }
 0x503   : > { %20533 = vmatpush3.bf16.msra.mxu0 %v24305_v1  ;;  %20495 = vmatprep.subr.bf16.mxu1 %v24246_v60 }
 0x504   : > { %20534 = vmatprep.subr.bf16.mxu0 %v24246_v60  ;;  %18798 = vmatprep.mubr.msk.f32.mxu0 %vm21879_vm2, %v24239_v58 }
 0x505   : > { %18722 = vmatmul.mubr.f32.vlgmr.msra.gmra.mrb[14].mxu1 %v22958_v4 }
 0x506   : > { %20497 = vmatpush3.bf16.msra.mxu1 %v24306_v19  ;;  %18732 = vmatprep.mubr.msk.f32.mxu1 %vm21879_vm2, %v24239_v58 }
 0x507   : > { %20536 = vmatpush3.bf16.msra.mxu0 %v24307_v7  ;;  %20498 = vmatprep.subr.bf16.mxu1 %v24246_v60 }
 0x508   : > { %20573 = vmatprep.subr.bf16.mxu0 %v24246_v60 }
 0x50a   : > { %20500 = vmatpush3.bf16.msra.mxu1 %v24308_v3  ;;  %18799 = vmatmul.mubr.f32.vlgmr.msra.gmra.mrb[14].mxu0 %v22951_v14 }
 0x50b   : > { %20575 = vmatpush3.bf16.msra.mxu0 %v22754_v30  ;;  %20537 = vmatprep.subr.bf16.mxu1 %v24246_v60 }
 0x50c   : > { %20576 = vmatprep.subr.bf16.mxu0 %v24246_v60  ;;  %18875 = vmatprep.mubr.msk.f32.mxu0 %vm21879_vm2, %v24239_v58 }
 0x50d   : > { %18733 = vmatmul.mubr.f32.vlgmr.msra.gmra.mrb[14].mxu1 %v22958_v4 }
 0x50e   : > { %20539 = vmatpush3.bf16.msra.mxu1 %v22776_v11  ;;  %18809 = vmatprep.mubr.msk.f32.mxu1 %vm21879_vm2, %v24239_v58 }
 0x50f   : > { %20578 = vmatpush3.bf16.msra.mxu0 %v22778_v31  ;;  %20540 = vmatprep.subr.bf16.mxu1 %v24246_v60 }
 0x510   : > { %20579 = vmatprep.subr.bf16.mxu0 %v24246_v60 }
 0x512   : > { %20542 = vmatpush3.bf16.msra.mxu1 %v22802_v39  ;;  %18876 = vmatmul.mubr.f32.vlgmr.msra.gmra.mrb[16].mxu0 %v22971_v17 }
 0x513   : > { %20581 = vmatpush3.bf16.msra.mxu0 %v22815_v35  ;;  %20543 = vmatprep.subr.bf16.mxu1 %v24246_v60 }
 0x514   : > { %20582 = vmatprep.subr.bf16.mxu0 %v24246_v60  ;;  %18886 = vmatprep.mubr.msk.f32.mxu0 %vm21879_vm2, %v24239_v58 }
 0x515   : > { %18810 = vmatmul.mubr.f32.vlgmr.msra.gmra.mrb[16].mxu1 %v22977_v13 }
 0x516   : > { %20545 = vmatpush3.bf16.msra.mxu1 %v22820_v41  ;;  %18820 = vmatprep.mubr.msk.f32.mxu1 %vm21879_vm2, %v24239_v58 }
 0x517   : > { %20584 = vmatpush3.bf16.msra.mxu0 %v22824_v10  ;;  %20546 = vmatprep.subr.bf16.mxu1 %v24246_v60 }
 0x518   : > { %20585 = vmatprep.subr.bf16.mxu0 %v24246_v60 }
 0x51a   : > { %20548 = vmatpush3.bf16.msra.mxu1 %v22831_v20  ;;  %18887 = vmatmul.mubr.f32.vlgmr.msra.gmra.mrb[16].mxu0 %v22951_v14 }
 0x51b   : > { %20587 = vmatpush3.bf16.msra.mxu0 %v22839_v57  ;;  %20549 = vmatprep.subr.bf16.mxu1 %v24246_v60 }
 0x51c   : > { %20588 = vmatprep.subr.bf16.mxu0 %v24246_v60  ;;  %18897 = vmatprep.mubr.msk.f32.mxu0 %vm21879_vm2, %v24239_v58 }
 0x51d   : > { %18821 = vmatmul.mubr.f32.vlgmr.msra.gmra.mrb[16].mxu1 %v22958_v4 }
 0x51e   : > { %20551 = vmatpush3.bf16.msra.mxu1 %v22846_v22  ;;  %18831 = vmatprep.mubr.msk.f32.mxu1 %vm21879_vm2, %v24239_v58 }
 0x51f   : > { %20590 = vmatpush3.bf16.msra.mxu0 %v22852_v47  ;;  %20552 = vmatprep.subr.bf16.mxu1 %v24246_v60 }
 0x520   : > { %20591 = vmatprep.subr.bf16.mxu0 %v24246_v60 }
 0x522   : > { %20554 = vmatpush3.bf16.msra.mxu1 %v22861_v26  ;;  %18898 = vmatmul.mubr.f32.vlgmr.msra.gmra.mrb[16].mxu0 %v22956_v5  ;;  %v24321_v5 = vld [vmem:[#allocation56_spill] sm:$0xff] }
 0x523   : > { %20593 = vmatpush3.bf16.msra.mxu0 %v22754_v30  ;;  %20555 = vmatprep.subr.bf16.mxu1 %v24246_v60 }
 0x524   : > { %20594 = vmatprep.subr.bf16.mxu0 %v24246_v60  ;;  %18908 = vmatprep.mubr.msk.f32.mxu0 %vm21879_vm2, %v24239_v58 }
 0x525   : > { %18832 = vmatmul.mubr.f32.vlgmr.msra.gmra.mrb[16].mxu1 %v22964_v44  ;;  %v24322_v44 = vld [vmem:[#allocation57_spill] sm:$0xff] }
 0x526   : > { %20557 = vmatpush3.bf16.msra.mxu1 %v22776_v11  ;;  %18842 = vmatprep.mubr.msk.f32.mxu1 %vm21879_vm2, %v24239_v58 }
 0x527   : > { %20596 = vmatpush3.bf16.msra.mxu0 %v22778_v31  ;;  %20558 = vmatprep.subr.bf16.mxu1 %v24246_v60 }
 0x528   : > { %20597 = vmatprep.subr.bf16.mxu0 %v24246_v60 }
 0x52a   : > { %20560 = vmatpush3.bf16.msra.mxu1 %v22802_v39  ;;  %18909 = vmatmul.mubr.f32.vlgmr.msra.gmra.mrb[16].mxu0 %v22961_v6  ;;  %v24323_v6 = vld [vmem:[#allocation58_spill] sm:$0xff] }
 0x52b   : > { %20599 = vmatpush3.bf16.msra.mxu0 %v22885_v38  ;;  %20561 = vmatprep.subr.bf16.mxu1 %v24246_v60 }
 0x52c   : > { %20600 = vmatprep.subr.bf16.mxu0 %v24246_v60  ;;  %18919 = vmatprep.mubr.msk.f32.mxu0 %vm21879_vm2, %v24239_v58 }
 0x52d   : > { %18843 = vmatmul.mubr.f32.vlgmr.msra.gmra.mrb[16].mxu1 %v22969_v61 }
 0x52e   : > { %20563 = vmatpush3.bf16.msra.mxu1 %v24321_v5  ;;  %18853 = vmatprep.mubr.msk.f32.mxu1 %vm21879_vm2, %v24239_v58 }
 0x52f   : > { %20602 = vmatpush3.bf16.msra.mxu0 %v24322_v44  ;;  %20564 = vmatprep.subr.bf16.mxu1 %v24246_v60 }
 0x530   : > { %20603 = vmatprep.subr.bf16.mxu0 %v24246_v60 }
 0x532   : > { %20566 = vmatpush3.bf16.msra.mxu1 %v24323_v6  ;;  %18920 = vmatmul.mubr.f32.vlgmr.msra.gmra.mrb[16].mxu0 %v22951_v14 }
 0x533   : > { %20605 = vmatpush3.bf16.msra.mxu0 %v22754_v30  ;;  %20567 = vmatprep.subr.bf16.mxu1 %v24246_v60 }
 0x534   : > { %20606 = vmatprep.subr.bf16.mxu0 %v24246_v60  ;;  %18930 = vmatprep.mubr.msk.f32.mxu0 %vm21879_vm2, %v24239_v58 }
 0x535   : > { %18854 = vmatmul.mubr.f32.vlgmr.msra.gmra.mrb[16].mxu1 %v22958_v4 }
 0x536   : > { %20569 = vmatpush3.bf16.msra.mxu1 %v22776_v11  ;;  %18864 = vmatprep.mubr.msk.f32.mxu1 %vm21879_vm2, %v24239_v58 }
 0x537   : > { %20608 = vmatpush3.bf16.msra.mxu0 %v22778_v31  ;;  %20570 = vmatprep.subr.bf16.mxu1 %v24246_v60 }
 0x538   : > { %20645 = vmatprep.subr.bf16.mxu0 %v24246_v60 }
 0x53a   : > { %20572 = vmatpush3.bf16.msra.mxu1 %v22802_v39  ;;  %18931 = vmatmul.mubr.f32.vlgmr.msra.gmra.mrb[16].mxu0 %v22951_v14 }
 0x53b   : > { %20647 = vmatpush3.bf16.msra.mxu0 %v22227_v59  ;;  %20609 = vmatprep.subr.bf16.mxu1 %v24246_v60 }
 0x53c   : > { %20648 = vmatprep.subr.bf16.mxu0 %v24246_v60  ;;  %19007 = vmatprep.mubr.msk.f32.mxu0 %vm21879_vm2, %v24239_v58 }
 0x53d   : > { %18865 = vmatmul.mubr.f32.vlgmr.msra.gmra.mrb[16].mxu1 %v22958_v4 }
 0x53e   : > { %20611 = vmatpush3.bf16.msra.mxu1 %v22230_v8  ;;  %18941 = vmatprep.mubr.msk.f32.mxu1 %vm21879_vm2, %v24239_v58 }
 0x53f   : > { %20650 = vmatpush3.bf16.msra.mxu0 %v22233_v9  ;;  %20612 = vmatprep.subr.bf16.mxu1 %v24246_v60 }
 0x540   : > { %20651 = vmatprep.subr.bf16.mxu0 %v24246_v60 }
 0x542   : > { %20614 = vmatpush3.bf16.msra.mxu1 %v22238_v25 }
 0x543   : > { %20615 = vmatprep.subr.bf16.mxu1 %v24246_v60 }
 0x57d   : > { %v5847_v14 = vpop.f32.mrb[10].mxu0 }
 0x57e   : > { %v18536_v61 = vpop.f32.mrb[11].mxu0 }
 0x580   : > { %v5360_v17 = vpop.f32.mrb[10].mxu1 }
 0x581   : > { %v5851_v13 = vmul.f32 %v5847_v14, %v5360_v17  ;;  %v18470_v4 = vpop.f32.mrb[11].mxu1 }
 0x582   : > { %v24331_v4 = vld [vmem:[#allocation39_spill] sm:$0xff] }
 0x5ad   : > { %v6818_v6 = vpop.f32.mrb[12].mxu0 }
 0x5ae   : > { %v18668_v44 = vpop.f32.mrb[13].mxu0 }
 0x5b0   : > { %v6333_v5 = vpop.f32.mrb[12].mxu1 }
 0x5b1   : > { %v6822_v38 = vmul.f32 %v6818_v6, %v6333_v5  ;;  %v18602_v26 = vpop.f32.mrb[13].mxu1  ;;  %v24328_v5 = vld [vmem:[#allocation36_spill] sm:$0xff]  ;;  %v24329_v6 = vld [vmem:[#allocation37_spill] sm:$0xff] }
 0x5b3   : > { %v6823_v47 = vadd.f32 %v6822_v38, %v5851_v13  ;;  %v24326_v38 = vld [vmem:[#allocation33_spill] sm:$0xff]  ;;  %v24330_v13 = vld [vmem:[#allocation38_spill] sm:$0xff] }
 0x5dd   : > { %v7790_v22 = vpop.f32.mrb[14].mxu0 }
 0x5de   : > { %v18800_v57 = vpop.f32.mrb[15].mxu0 }
 0x5e0   : > { %v7305_v20 = vpop.f32.mrb[14].mxu1 }
 0x5e1   : > { %v7794_v10 = vmul.f32 %v7790_v22, %v7305_v20  ;;  %v18734_v41 = vpop.f32.mrb[15].mxu1  ;;  %v24324_v22 = vld [vmem:[#allocation31_spill] sm:$0xff] }
 0x5e3   : > { %v7795_v35 = vadd.f32 %v7794_v10, %v6823_v47  ;;  %v24325_v47 = vld [vmem:[#allocation32_spill] sm:$0xff] }
 0x60d   : > { %v8762_v39 = vpop.f32.mrb[16].mxu0 }
 0x60e   : > { %v18932_v31 = vpop.f32.mrb[17].mxu0 }
 0x610   : > { %v8277_v11 = vpop.f32.mrb[16].mxu1 }
 0x611   : > { %v8766_v30 = vmul.f32 %v8762_v39, %v8277_v11  ;;  %v18866_v61 = vpop.f32.mrb[17].mxu1 }
 0x612   : > { %v24332_v61 = vld [vmem:[#allocation42_spill] sm:$0xff] }
 0x613   : > { %v8767_v36 = vadd.f32 %v8766_v30, %v7795_v35 }
 0x615   : > { %v8769_v14 = vrot.slane %v8767_v36, 4  ;;  %v9261_v44 = vsel %vm414_vm1, %v8767_v36, 0  ;;  %v24327_v36 = vld [vmem:[#allocation35_spill] sm:$0xff] }
 0x616   : > { %v23314_v17 = vand.u32 4294901760, %v9261_v44 }
 0x617   : > { %v8772_v26 = vsel %vm8771_vm5, %v22273_v0, %v8769_v14  ;;  %v24333_v14 = vld [vmem:[#allocation43_spill] sm:$0xff] }
 0x618   : > { %v8774_v57 = vsel %vm414_vm1, %v8772_v26, 0  ;;  %v23319_v20 = vsub.f32 %v9261_v44, %v23314_v17  ;;  %v24334_v44 = vld [vmem:[#allocation44_spill] sm:$0xff]  ;;  %v24335_v26 = vld [vmem:[#allocation45_spill] sm:$0xff] }
 0x619   : > { %v23321_v10 = vand.u32 4294901760, %v8774_v57 }
 0x61a   : > { %v23324_v31 = vand.u32 4294901760, %v23319_v20 }
 0x61b   : > { %v23327_v30 = vsub.f32 %v8774_v57, %v23321_v10  ;;  %v24336_v57 = vld [vmem:[#allocation46_spill] sm:$0xff] }
 0x61c   : > { %v9335_v11 = vsub.f32 %v23319_v20, %v23324_v31 }
 0x61d   : > { %v23332_v39 = vand.u32 4294901760, %v23327_v30 }
 0x61e   : > { %v23334_v0 = vand.u32 4294901760, %v9335_v11  ;;  %v24337_v11 = vld [vmem:[#allocation47_spill] sm:$0xff] }
 0x61f   : > { %v8848_v35 = vsub.f32 %v23327_v30, %v23332_v39 }
 0x620   : > { %19008 = vmatmul.mubr.f32.vlgmr.msra.gmra.mrb[18].mxu0 %v23334_v0 }
 0x621   : > { %20653 = vmatpush3.bf16.msra.mxu0 %v22241_v28  ;;  %v23340_v41 = vand.u32 4294901760, %v8848_v35  ;;  %19018 = vmatprep.mubr.msk.f32.mxu0 %vm21879_vm2, %v24239_v58  ;;  %v24338_v35 = vld [vmem:[#allocation48_spill] sm:$0xff] }
 0x622   : > { %20654 = vmatprep.subr.bf16.mxu0 %v24246_v60 }
 0x623   : > { %18942 = vmatmul.mubr.f32.vlgmr.msra.gmra.mrb[18].mxu1 %v23340_v41 }
 0x624   : > { %20617 = vmatpush3.bf16.msra.mxu1 %v22245_v43  ;;  %18952 = vmatprep.mubr.msk.f32.mxu1 %vm21879_vm2, %v24239_v58 }
 0x625   : > { %20656 = vmatpush3.bf16.msra.mxu0 %v22247_v45  ;;  %20618 = vmatprep.subr.bf16.mxu1 %v24246_v60 }
 0x626   : > { %20657 = vmatprep.subr.bf16.mxu0 %v24246_v60 }
 0x628   : > { %20620 = vmatpush3.bf16.msra.mxu1 %v22249_v48  ;;  %19019 = vmatmul.mubr.f32.vlgmr.msra.gmra.mrb[18].mxu0 %v23314_v17 }
 0x629   : > { %20659 = vmatpush3.bf16.msra.mxu0 %v22251_v49  ;;  %20621 = vmatprep.subr.bf16.mxu1 %v24246_v60 }
 0x62a   : > { %20660 = vmatprep.subr.bf16.mxu0 %v24246_v60  ;;  %19029 = vmatprep.mubr.msk.f32.mxu0 %vm21879_vm2, %v24239_v58 }
 0x62b   : > { %18953 = vmatmul.mubr.f32.vlgmr.msra.gmra.mrb[18].mxu1 %v23321_v10 }
 0x62c   : > { %20623 = vmatpush3.bf16.msra.mxu1 %v22253_v50  ;;  %18963 = vmatprep.mubr.msk.f32.mxu1 %vm21879_vm2, %v24239_v58 }
 0x62d   : > { %20662 = vmatpush3.bf16.msra.mxu0 %v22255_v51  ;;  %20624 = vmatprep.subr.bf16.mxu1 %v24246_v60 }
 0x62e   : > { %20663 = vmatprep.subr.bf16.mxu0 %v24246_v60 }
 0x630   : > { %20626 = vmatpush3.bf16.msra.mxu1 %v22257_v52  ;;  %19030 = vmatmul.mubr.f32.vlgmr.msra.gmra.mrb[18].mxu0 %v23319_v20 }
 0x631   : > { %20665 = vmatpush3.bf16.msra.mxu0 %v22227_v59  ;;  %20627 = vmatprep.subr.bf16.mxu1 %v24246_v60 }
 0x632   : > { %20666 = vmatprep.subr.bf16.mxu0 %v24246_v60  ;;  %19040 = vmatprep.mubr.msk.f32.mxu0 %vm21879_vm2, %v24239_v58 }
 0x633   : > { %18964 = vmatmul.mubr.f32.vlgmr.msra.gmra.mrb[18].mxu1 %v23327_v30 }
 0x634   : > { %20629 = vmatpush3.bf16.msra.mxu1 %v22230_v8  ;;  %18974 = vmatprep.mubr.msk.f32.mxu1 %vm21879_vm2, %v24239_v58 }
 0x635   : > { %20668 = vmatpush3.bf16.msra.mxu0 %v22233_v9  ;;  %20630 = vmatprep.subr.bf16.mxu1 %v24246_v60 }
 0x636   : > { %20669 = vmatprep.subr.bf16.mxu0 %v24246_v60 }
 0x638   : > { %20632 = vmatpush3.bf16.msra.mxu1 %v22238_v25  ;;  %19041 = vmatmul.mubr.f32.vlgmr.msra.gmra.mrb[18].mxu0 %v23324_v31 }
 0x639   : > { %20671 = vmatpush3.bf16.msra.mxu0 %v22259_v53  ;;  %20633 = vmatprep.subr.bf16.mxu1 %v24246_v60 }
 0x63a   : > { %20672 = vmatprep.subr.bf16.mxu0 %v24246_v60  ;;  %19051 = vmatprep.mubr.msk.f32.mxu0 %vm21879_vm2, %v24239_v58 }
 0x63b   : > { %18975 = vmatmul.mubr.f32.vlgmr.msra.gmra.mrb[18].mxu1 %v23332_v39 }
 0x63c   : > { %20635 = vmatpush3.bf16.msra.mxu1 %v22261_v54  ;;  %18985 = vmatprep.mubr.msk.f32.mxu1 %vm21879_vm2, %v24239_v58 }
 0x63d   : > { %20674 = vmatpush3.bf16.msra.mxu0 %v22263_v55  ;;  %20636 = vmatprep.subr.bf16.mxu1 %v24246_v60 }
 0x63e   : > { %20675 = vmatprep.subr.bf16.mxu0 %v24246_v60 }
 0x640   : > { %20638 = vmatpush3.bf16.msra.mxu1 %v22265_v56  ;;  %19052 = vmatmul.mubr.f32.vlgmr.msra.gmra.mrb[18].mxu0 %v23314_v17 }
 0x641   : > { %20677 = vmatpush3.bf16.msra.mxu0 %v22227_v59  ;;  %20639 = vmatprep.subr.bf16.mxu1 %v24246_v60 }
 0x642   : > { %20678 = vmatprep.subr.bf16.mxu0 %v24246_v60  ;;  %19062 = vmatprep.mubr.msk.f32.mxu0 %vm21879_vm2, %v24239_v58 }
 0x643   : > { %18986 = vmatmul.mubr.f32.vlgmr.msra.gmra.mrb[18].mxu1 %v23321_v10 }
 0x644   : > { %20641 = vmatpush3.bf16.msra.mxu1 %v22230_v8  ;;  %18996 = vmatprep.mubr.msk.f32.mxu1 %vm21879_vm2, %v24239_v58 }
 0x645   : > { %20680 = vmatpush3.bf16.msra.mxu0 %v22233_v9  ;;  %20642 = vmatprep.subr.bf16.mxu1 %v24246_v60 }
 0x646   : > { %20717 = vmatprep.subr.bf16.mxu0 %v24246_v60 }
 0x648   : > { %20644 = vmatpush3.bf16.msra.mxu1 %v22238_v25  ;;  %19063 = vmatmul.mubr.f32.vlgmr.msra.gmra.mrb[18].mxu0 %v23314_v17 }
 0x649   : > { %20719 = vmatpush3.bf16.msra.mxu0 %v22378_v62  ;;  %20681 = vmatprep.subr.bf16.mxu1 %v24246_v60 }
 0x64a   : > { %20720 = vmatprep.subr.bf16.mxu0 %v24246_v60  ;;  %19139 = vmatprep.mubr.msk.f32.mxu0 %vm21879_vm2, %v24239_v58 }
 0x64b   : > { %18997 = vmatmul.mubr.f32.vlgmr.msra.gmra.mrb[18].mxu1 %v23321_v10 }
 0x64c   : > { %20683 = vmatpush3.bf16.msra.mxu1 %v22400_v12  ;;  %19073 = vmatprep.mubr.msk.f32.mxu1 %vm21879_vm2, %v24239_v58 }
 0x64d   : > { %20722 = vmatpush3.bf16.msra.mxu0 %v22402_v18  ;;  %20684 = vmatprep.subr.bf16.mxu1 %v24246_v60 }
 0x64e   : > { %20723 = vmatprep.subr.bf16.mxu0 %v24246_v60 }
 0x650   : > { %20686 = vmatpush3.bf16.msra.mxu1 %v22426_v32  ;;  %19140 = vmatmul.mubr.f32.vlgmr.msra.gmra.mrb[20].mxu0 %v23334_v0 }
 0x651   : > { %20725 = vmatpush3.bf16.msra.mxu0 %v22439_v37  ;;  %20687 = vmatprep.subr.bf16.mxu1 %v24246_v60 }
 0x652   : > { %20726 = vmatprep.subr.bf16.mxu0 %v24246_v60  ;;  %19150 = vmatprep.mubr.msk.f32.mxu0 %vm21879_vm2, %v24239_v58 }
 0x653   : > { %19074 = vmatmul.mubr.f32.vlgmr.msra.gmra.mrb[20].mxu1 %v23340_v41 }
 0x654   : > { %20689 = vmatpush3.bf16.msra.mxu1 %v22444_v42  ;;  %19084 = vmatprep.mubr.msk.f32.mxu1 %vm21879_vm2, %v24239_v58 }
 0x655   : > { %20728 = vmatpush3.bf16.msra.mxu0 %v22448_v21  ;;  %20690 = vmatprep.subr.bf16.mxu1 %v24246_v60 }
 0x656   : > { %20729 = vmatprep.subr.bf16.mxu0 %v24246_v60 }
 0x658   : > { %20692 = vmatpush3.bf16.msra.mxu1 %v22455_v23  ;;  %19151 = vmatmul.mubr.f32.vlgmr.msra.gmra.mrb[20].mxu0 %v23314_v17 }
 0x659   : > { %20731 = vmatpush3.bf16.msra.mxu0 %v22463_v27  ;;  %20693 = vmatprep.subr.bf16.mxu1 %v24246_v60 }
 0x65a   : > { %20732 = vmatprep.subr.bf16.mxu0 %v24246_v60  ;;  %19161 = vmatprep.mubr.msk.f32.mxu0 %vm21879_vm2, %v24239_v58 }
 0x65b   : > { %19085 = vmatmul.mubr.f32.vlgmr.msra.gmra.mrb[20].mxu1 %v23321_v10 }
 0x65c   : > { %20695 = vmatpush3.bf16.msra.mxu1 %v22470_v29  ;;  %19095 = vmatprep.mubr.msk.f32.mxu1 %vm21879_vm2, %v24239_v58 }
 0x65d   : > { %20734 = vmatpush3.bf16.msra.mxu0 %v24299_v40  ;;  %20696 = vmatprep.subr.bf16.mxu1 %v24246_v60 }
 0x65e   : > { %20735 = vmatprep.subr.bf16.mxu0 %v24246_v60 }
 0x660   : > { %20698 = vmatpush3.bf16.msra.mxu1 %v24300_v16  ;;  %19162 = vmatmul.mubr.f32.vlgmr.msra.gmra.mrb[20].mxu0 %v23319_v20 }
 0x661   : > { %20737 = vmatpush3.bf16.msra.mxu0 %v22378_v62  ;;  %20699 = vmatprep.subr.bf16.mxu1 %v24246_v60 }
 0x662   : > { %20738 = vmatprep.subr.bf16.mxu0 %v24246_v60  ;;  %19172 = vmatprep.mubr.msk.f32.mxu0 %vm21879_vm2, %v24239_v58 }
 0x663   : > { %19096 = vmatmul.mubr.f32.vlgmr.msra.gmra.mrb[20].mxu1 %v23327_v30 }
 0x664   : > { %20701 = vmatpush3.bf16.msra.mxu1 %v22400_v12  ;;  %19106 = vmatprep.mubr.msk.f32.mxu1 %vm21879_vm2, %v24239_v58 }
 0x665   : > { %20740 = vmatpush3.bf16.msra.mxu0 %v22402_v18  ;;  %20702 = vmatprep.subr.bf16.mxu1 %v24246_v60 }
 0x666   : > { %20741 = vmatprep.subr.bf16.mxu0 %v24246_v60 }
 0x668   : > { %20704 = vmatpush3.bf16.msra.mxu1 %v22426_v32  ;;  %19173 = vmatmul.mubr.f32.vlgmr.msra.gmra.mrb[20].mxu0 %v23324_v31 }
 0x669   : > { %20743 = vmatpush3.bf16.msra.mxu0 %v24301_v2  ;;  %20705 = vmatprep.subr.bf16.mxu1 %v24246_v60 }
 0x66a   : > { %20744 = vmatprep.subr.bf16.mxu0 %v24246_v60  ;;  %19183 = vmatprep.mubr.msk.f32.mxu0 %vm21879_vm2, %v24239_v58 }
 0x66b   : > { %19107 = vmatmul.mubr.f32.vlgmr.msra.gmra.mrb[20].mxu1 %v23332_v39 }
 0x66c   : > { %20707 = vmatpush3.bf16.msra.mxu1 %v24302_v63  ;;  %19117 = vmatprep.mubr.msk.f32.mxu1 %vm21879_vm2, %v24239_v58 }
 0x66d   : > { %20746 = vmatpush3.bf16.msra.mxu0 %v24303_v46  ;;  %20708 = vmatprep.subr.bf16.mxu1 %v24246_v60 }
 0x66e   : > { %20747 = vmatprep.subr.bf16.mxu0 %v24246_v60 }
 0x670   : > { %20710 = vmatpush3.bf16.msra.mxu1 %v24304_v15  ;;  %19184 = vmatmul.mubr.f32.vlgmr.msra.gmra.mrb[20].mxu0 %v23314_v17 }
 0x671   : > { %20749 = vmatpush3.bf16.msra.mxu0 %v22378_v62  ;;  %20711 = vmatprep.subr.bf16.mxu1 %v24246_v60 }
 0x672   : > { %20750 = vmatprep.subr.bf16.mxu0 %v24246_v60  ;;  %19194 = vmatprep.mubr.msk.f32.mxu0 %vm21879_vm2, %v24239_v58 }
 0x673   : > { %19118 = vmatmul.mubr.f32.vlgmr.msra.gmra.mrb[20].mxu1 %v23321_v10 }
 0x674   : > { %20713 = vmatpush3.bf16.msra.mxu1 %v22400_v12  ;;  %19128 = vmatprep.mubr.msk.f32.mxu1 %vm21879_vm2, %v24239_v58 }
 0x675   : > { %20752 = vmatpush3.bf16.msra.mxu0 %v22402_v18  ;;  %20714 = vmatprep.subr.bf16.mxu1 %v24246_v60 }
 0x676   : > { %20789 = vmatprep.subr.bf16.mxu0 %v24246_v60 }
 0x678   : > { %20716 = vmatpush3.bf16.msra.mxu1 %v22426_v32  ;;  %19195 = vmatmul.mubr.f32.vlgmr.msra.gmra.mrb[20].mxu0 %v23314_v17 }
 0x679   : > { %20791 = vmatpush3.bf16.msra.mxu0 %v24305_v1  ;;  %20753 = vmatprep.subr.bf16.mxu1 %v24246_v60 }
 0x67a   : > { %20792 = vmatprep.subr.bf16.mxu0 %v24246_v60  ;;  %19271 = vmatprep.mubr.msk.f32.mxu0 %vm21879_vm2, %v24239_v58 }
 0x67b   : > { %19129 = vmatmul.mubr.f32.vlgmr.msra.gmra.mrb[20].mxu1 %v23321_v10 }
 0x67c   : > { %20755 = vmatpush3.bf16.msra.mxu1 %v24306_v19  ;;  %19205 = vmatprep.mubr.msk.f32.mxu1 %vm21879_vm2, %v24239_v58 }
 0x67d   : > { %20794 = vmatpush3.bf16.msra.mxu0 %v24307_v7  ;;  %20756 = vmatprep.subr.bf16.mxu1 %v24246_v60 }
 0x67e   : > { %20795 = vmatprep.subr.bf16.mxu0 %v24246_v60 }
 0x680   : > { %20758 = vmatpush3.bf16.msra.mxu1 %v24308_v3  ;;  %19272 = vmatmul.mubr.f32.vlgmr.msra.gmra.mrb[22].mxu0 %v23334_v0 }
 0x681   : > { %20797 = vmatpush3.bf16.msra.mxu0 %v24324_v22  ;;  %20759 = vmatprep.subr.bf16.mxu1 %v24246_v60 }
 0x682   : > { %20798 = vmatprep.subr.bf16.mxu0 %v24246_v60  ;;  %19282 = vmatprep.mubr.msk.f32.mxu0 %vm21879_vm2, %v24239_v58 }
 0x683   : > { %19206 = vmatmul.mubr.f32.vlgmr.msra.gmra.mrb[22].mxu1 %v23340_v41 }
 0x684   : > { %20761 = vmatpush3.bf16.msra.mxu1 %v24325_v47  ;;  %19216 = vmatprep.mubr.msk.f32.mxu1 %vm21879_vm2, %v24239_v58 }
 0x685   : > { %20800 = vmatpush3.bf16.msra.mxu0 %v24326_v38  ;;  %20762 = vmatprep.subr.bf16.mxu1 %v24246_v60 }
 0x686   : > { %20801 = vmatprep.subr.bf16.mxu0 %v24246_v60 }
 0x688   : > { %20764 = vmatpush3.bf16.msra.mxu1 %v24312_v33  ;;  %19283 = vmatmul.mubr.f32.vlgmr.msra.gmra.mrb[22].mxu0 %v23314_v17 }
 0x689   : > { %20803 = vmatpush3.bf16.msra.mxu0 %v24327_v36  ;;  %20765 = vmatprep.subr.bf16.mxu1 %v24246_v60 }
 0x68a   : > { %20804 = vmatprep.subr.bf16.mxu0 %v24246_v60  ;;  %19293 = vmatprep.mubr.msk.f32.mxu0 %vm21879_vm2, %v24239_v58 }
 0x68b   : > { %19217 = vmatmul.mubr.f32.vlgmr.msra.gmra.mrb[22].mxu1 %v23321_v10 }
 0x68c   : > { %20767 = vmatpush3.bf16.msra.mxu1 %v24328_v5  ;;  %19227 = vmatprep.mubr.msk.f32.mxu1 %vm21879_vm2, %v24239_v58 }
 0x68d   : > { %20806 = vmatpush3.bf16.msra.mxu0 %v24329_v6  ;;  %20768 = vmatprep.subr.bf16.mxu1 %v24246_v60 }
 0x68e   : > { %20807 = vmatprep.subr.bf16.mxu0 %v24246_v60 }
 0x690   : > { %20770 = vmatpush3.bf16.msra.mxu1 %v24330_v13  ;;  %19294 = vmatmul.mubr.f32.vlgmr.msra.gmra.mrb[22].mxu0 %v23319_v20 }
 0x691   : > { %20809 = vmatpush3.bf16.msra.mxu0 %v24305_v1  ;;  %20771 = vmatprep.subr.bf16.mxu1 %v24246_v60 }
 0x692   : > { %20810 = vmatprep.subr.bf16.mxu0 %v24246_v60  ;;  %19304 = vmatprep.mubr.msk.f32.mxu0 %vm21879_vm2, %v24239_v58 }
 0x693   : > { %19228 = vmatmul.mubr.f32.vlgmr.msra.gmra.mrb[22].mxu1 %v23327_v30 }
 0x694   : > { %20773 = vmatpush3.bf16.msra.mxu1 %v24306_v19  ;;  %19238 = vmatprep.mubr.msk.f32.mxu1 %vm21879_vm2, %v24239_v58 }
 0x695   : > { %20812 = vmatpush3.bf16.msra.mxu0 %v24307_v7  ;;  %20774 = vmatprep.subr.bf16.mxu1 %v24246_v60 }
 0x696   : > { %20813 = vmatprep.subr.bf16.mxu0 %v24246_v60 }
 0x698   : > { %20776 = vmatpush3.bf16.msra.mxu1 %v24308_v3  ;;  %19305 = vmatmul.mubr.f32.vlgmr.msra.gmra.mrb[22].mxu0 %v23324_v31 }
 0x699   : > { %20815 = vmatpush3.bf16.msra.mxu0 %v24331_v4  ;;  %20777 = vmatprep.subr.bf16.mxu1 %v24246_v60 }
 0x69a   : > { %20816 = vmatprep.subr.bf16.mxu0 %v24246_v60  ;;  %19315 = vmatprep.mubr.msk.f32.mxu0 %vm21879_vm2, %v24239_v58 }
 0x69b   : > { %19239 = vmatmul.mubr.f32.vlgmr.msra.gmra.mrb[22].mxu1 %v23332_v39 }
 0x69c   : > { %20779 = vmatpush3.bf16.msra.mxu1 %v24318_v34  ;;  %19249 = vmatprep.mubr.msk.f32.mxu1 %vm21879_vm2, %v24239_v58 }
 0x69d   : > { %20818 = vmatpush3.bf16.msra.mxu0 %v24319_v24  ;;  %20780 = vmatprep.subr.bf16.mxu1 %v24246_v60  ;;  %v24339_v24 = vld [vmem:[#allocation49_spill] sm:$0xff] }
 0x69e   : > { %20819 = vmatprep.subr.bf16.mxu0 %v24246_v60 }
 0x6a0   : > { %20782 = vmatpush3.bf16.msra.mxu1 %v24332_v61  ;;  %19316 = vmatmul.mubr.f32.vlgmr.msra.gmra.mrb[22].mxu0 %v23314_v17 }
 0x6a1   : > { %20821 = vmatpush3.bf16.msra.mxu0 %v24305_v1  ;;  %20783 = vmatprep.subr.bf16.mxu1 %v24246_v60 }
 0x6a2   : > { %20822 = vmatprep.subr.bf16.mxu0 %v24246_v60  ;;  %19326 = vmatprep.mubr.msk.f32.mxu0 %vm21879_vm2, %v24239_v58 }
 0x6a3   : > { %19250 = vmatmul.mubr.f32.vlgmr.msra.gmra.mrb[22].mxu1 %v23321_v10 }
 0x6a4   : > { %20785 = vmatpush3.bf16.msra.mxu1 %v24306_v19  ;;  %19260 = vmatprep.mubr.msk.f32.mxu1 %vm21879_vm2, %v24239_v58 }
 0x6a5   : > { %20824 = vmatpush3.bf16.msra.mxu0 %v24307_v7  ;;  %20786 = vmatprep.subr.bf16.mxu1 %v24246_v60 }
 0x6a6   : > { %20861 = vmatprep.subr.bf16.mxu0 %v24246_v60 }
 0x6a8   : > { %20788 = vmatpush3.bf16.msra.mxu1 %v24308_v3  ;;  %19327 = vmatmul.mubr.f32.vlgmr.msra.gmra.mrb[22].mxu0 %v23314_v17 }
 0x6a9   : > { %20863 = vmatpush3.bf16.msra.mxu0 %v24333_v14  ;;  %20825 = vmatprep.subr.bf16.mxu1 %v24246_v60 }
 0x6aa   : > { %20864 = vmatprep.subr.bf16.mxu0 %v24246_v60  ;;  %19403 = vmatprep.mubr.msk.f32.mxu0 %vm21879_vm2, %v24239_v58 }
 0x6ab   : > { %19261 = vmatmul.mubr.f32.vlgmr.msra.gmra.mrb[22].mxu1 %v23321_v10 }
 0x6ac   : > { %20827 = vmatpush3.bf16.msra.mxu1 %v24334_v44  ;;  %19337 = vmatprep.mubr.msk.f32.mxu1 %vm21879_vm2, %v24239_v58 }
 0x6ad   : > { %20866 = vmatpush3.bf16.msra.mxu0 %v24335_v26  ;;  %20828 = vmatprep.subr.bf16.mxu1 %v24246_v60 }
 0x6ae   : > { %20867 = vmatprep.subr.bf16.mxu0 %v24246_v60 }
 0x6b0   : > { %20830 = vmatpush3.bf16.msra.mxu1 %v24336_v57  ;;  %19404 = vmatmul.mubr.f32.vlgmr.msra.gmra.mrb[24].mxu0 %v23334_v0  ;;  %v24340_v0 = vld [vmem:[#allocation50_spill] sm:$0xff] }
 0x6b1   : > { %20869 = vmatpush3.bf16.msra.mxu0 %v24337_v11  ;;  %20831 = vmatprep.subr.bf16.mxu1 %v24246_v60  ;;  %v24341_v11 = vld [vmem:[#allocation51_spill] sm:$0xff] }
 0x6b2   : > { %20870 = vmatprep.subr.bf16.mxu0 %v24246_v60  ;;  %19414 = vmatprep.mubr.msk.f32.mxu0 %vm21879_vm2, %v24239_v58 }
 0x6b3   : > { %19338 = vmatmul.mubr.f32.vlgmr.msra.gmra.mrb[24].mxu1 %v23340_v41  ;;  %v24342_v41 = vld [vmem:[#allocation52_spill] sm:$0xff] }
 0x6b4   : > { %20833 = vmatpush3.bf16.msra.mxu1 %v24338_v35  ;;  %19348 = vmatprep.mubr.msk.f32.mxu1 %vm21879_vm2, %v24239_v58 }
 0x6b5   : > { %20872 = vmatpush3.bf16.msra.mxu0 %v24339_v24  ;;  %20834 = vmatprep.subr.bf16.mxu1 %v24246_v60  ;;  %v24343_v24 = vld [vmem:[#allocation53_spill] sm:$0xff] }
 0x6b6   : > { %20873 = vmatprep.subr.bf16.mxu0 %v24246_v60 }
 0x6b8   : > { %20836 = vmatpush3.bf16.msra.mxu1 %v24340_v0  ;;  %19415 = vmatmul.mubr.f32.vlgmr.msra.gmra.mrb[24].mxu0 %v23314_v17 }
 0x6b9   : > { %20875 = vmatpush3.bf16.msra.mxu0 %v24341_v11  ;;  %20837 = vmatprep.subr.bf16.mxu1 %v24246_v60  ;;  %v24344_v11 = vld [vmem:[#allocation54_spill] sm:$0xff] }
 0x6ba   : > { %20876 = vmatprep.subr.bf16.mxu0 %v24246_v60  ;;  %19425 = vmatprep.mubr.msk.f32.mxu0 %vm21879_vm2, %v24239_v58 }
 0x6bb   : > { %19349 = vmatmul.mubr.f32.vlgmr.msra.gmra.mrb[24].mxu1 %v23321_v10 }
 0x6bc   : > { %20839 = vmatpush3.bf16.msra.mxu1 %v24342_v41  ;;  %19359 = vmatprep.mubr.msk.f32.mxu1 %vm21879_vm2, %v24239_v58 }
 0x6bd   : > { %20878 = vmatpush3.bf16.msra.mxu0 %v24343_v24  ;;  %20840 = vmatprep.subr.bf16.mxu1 %v24246_v60  ;;  %v24347_v24 = vld [vmem:[#allocation57_spill] sm:$0xff] }
 0x6be   : > { %20879 = vmatprep.subr.bf16.mxu0 %v24246_v60 }
 0x6c0   : > { %20842 = vmatpush3.bf16.msra.mxu1 %v24344_v11  ;;  %19426 = vmatmul.mubr.f32.vlgmr.msra.gmra.mrb[24].mxu0 %v23319_v20  ;;  %v24345_v20 = vld [vmem:[#allocation55_spill] sm:$0xff] }
 0x6c1   : > { %20881 = vmatpush3.bf16.msra.mxu0 %v24333_v14  ;;  %20843 = vmatprep.subr.bf16.mxu1 %v24246_v60 }
 0x6c2   : > { %20882 = vmatprep.subr.bf16.mxu0 %v24246_v60  ;;  %19436 = vmatprep.mubr.msk.f32.mxu0 %vm21879_vm2, %v24239_v58 }
 0x6c3   : > { %19360 = vmatmul.mubr.f32.vlgmr.msra.gmra.mrb[24].mxu1 %v23327_v30  ;;  %v24346_v30 = vld [vmem:[#allocation56_spill] sm:$0xff] }
 0x6c4   : > { %20845 = vmatpush3.bf16.msra.mxu1 %v24334_v44  ;;  %19370 = vmatprep.mubr.msk.f32.mxu1 %vm21879_vm2, %v24239_v58 }
 0x6c5   : > { %20884 = vmatpush3.bf16.msra.mxu0 %v24335_v26  ;;  %20846 = vmatprep.subr.bf16.mxu1 %v24246_v60 }
 0x6c6   : > { %20885 = vmatprep.subr.bf16.mxu0 %v24246_v60 }
 0x6c8   : > { %20848 = vmatpush3.bf16.msra.mxu1 %v24336_v57  ;;  %19437 = vmatmul.mubr.f32.vlgmr.msra.gmra.mrb[24].mxu0 %v23324_v31  ;;  %v24348_v31 = vld [vmem:[#allocation58_spill] sm:$0xff] }
 0x6c9   : > { %20887 = vmatpush3.bf16.msra.mxu0 %v24345_v20  ;;  %20849 = vmatprep.subr.bf16.mxu1 %v24246_v60 }
 0x6ca   : > { %20888 = vmatprep.subr.bf16.mxu0 %v24246_v60  ;;  %19447 = vmatprep.mubr.msk.f32.mxu0 %vm21879_vm2, %v24239_v58 }
 0x6cb   : > { %19371 = vmatmul.mubr.f32.vlgmr.msra.gmra.mrb[24].mxu1 %v23332_v39 }
 0x6cc   : > { %20851 = vmatpush3.bf16.msra.mxu1 %v24346_v30  ;;  %19381 = vmatprep.mubr.msk.f32.mxu1 %vm21879_vm2, %v24239_v58 }
 0x6cd   : > { %20890 = vmatpush3.bf16.msra.mxu0 %v24347_v24  ;;  %20852 = vmatprep.subr.bf16.mxu1 %v24246_v60 }
 0x6ce   : > { %20891 = vmatprep.subr.bf16.mxu0 %v24246_v60 }
 0x6d0   : > { %20854 = vmatpush3.bf16.msra.mxu1 %v24348_v31  ;;  %19448 = vmatmul.mubr.f32.vlgmr.msra.gmra.mrb[24].mxu0 %v23314_v17 }
 0x6d1   : > { %20893 = vmatpush3.bf16.msra.mxu0 %v24333_v14  ;;  %20855 = vmatprep.subr.bf16.mxu1 %v24246_v60 }
 0x6d2   : > { %20894 = vmatprep.subr.bf16.mxu0 %v24246_v60  ;;  %19458 = vmatprep.mubr.msk.f32.mxu0 %vm21879_vm2, %v24239_v58 }
 0x6d3   : > { %19382 = vmatmul.mubr.f32.vlgmr.msra.gmra.mrb[24].mxu1 %v23321_v10 }
 0x6d4   : > { %20857 = vmatpush3.bf16.msra.mxu1 %v24334_v44  ;;  %19392 = vmatprep.mubr.msk.f32.mxu1 %vm21879_vm2, %v24239_v58 }
 0x6d5   : > { %20896 = vmatpush3.bf16.msra.mxu0 %v24335_v26  ;;  %20858 = vmatprep.subr.bf16.mxu1 %v24246_v60 }
 0x6d6   : > { %20933 = vmatprep.subr.bf16.mxu0 %v24246_v60 }
 0x6d8   : > { %20860 = vmatpush3.bf16.msra.mxu1 %v24336_v57  ;;  %19459 = vmatmul.mubr.f32.vlgmr.msra.gmra.mrb[24].mxu0 %v23314_v17  ;;  %v12665_v17 = vld [vmem:[#allocation2] sm:$0x1] }
 0x6d9   : > { %20897 = vmatprep.subr.bf16.mxu1 %v24246_v60  ;;  %20935 = vmatpush3.bf16.msra.mxu0 %v22227_v59  ;;  %v12667_v39 = vsel %vm414_vm1, %v12665_v17, 0 }
 0x6da   : > { %20936 = vmatprep.subr.bf16.mxu0 %v24246_v60  ;;  %19535 = vmatprep.mubr.msk.f32.mxu0 %vm21879_vm2, %v24239_v58  ;;  %v23677_v24 = vand.u32 4294901760, %v12667_v39 }
 0x6db   : > { %19393 = vmatmul.mubr.f32.vlgmr.msra.gmra.mrb[24].mxu1 %v23321_v10 }
 0x6dc   : > { %20899 = vmatpush3.bf16.msra.mxu1 %v22230_v8  ;;  %19469 = vmatprep.mubr.msk.f32.mxu1 %vm21879_vm2, %v24239_v58  ;;  %v23680_v10 = vsub.f32 %v12667_v39, %v23677_v24 }
 0x6dd   : > { %20900 = vmatprep.subr.bf16.mxu1 %v24246_v60  ;;  %20938 = vmatpush3.bf16.msra.mxu0 %v22233_v9 }
 0x6de   : > { %20939 = vmatprep.subr.bf16.mxu0 %v24246_v60  ;;  %v23683_v20 = vand.u32 4294901760, %v23680_v10 }
 0x6e0   : > { %20902 = vmatpush3.bf16.msra.mxu1 %v22238_v25  ;;  %v12741_v26 = vsub.f32 %v23680_v10, %v23683_v20 }
 0x6e1   : > { %20903 = vmatprep.subr.bf16.mxu1 %v24246_v60 }
 0x6e2   : > { %v23687_v14 = vand.u32 4294901760, %v12741_v26 }
 0x6e4   : > { %19470 = vmatmul.mubr.f32.vlgmr.msra.gmra.mrb[26].mxu1 %v23687_v14 }
 0x6e5   : > { %20905 = vmatpush3.bf16.msra.mxu1 %v22245_v43  ;;  %19480 = vmatprep.mubr.msk.f32.mxu1 %vm21879_vm2, %v24239_v58 }
 0x6e6   : > { %20906 = vmatprep.subr.bf16.mxu1 %v24246_v60 }
 0x6e9   : > { %20908 = vmatpush3.bf16.msra.mxu1 %v22249_v48 }
 0x6ea   : > { %20909 = vmatprep.subr.bf16.mxu1 %v24246_v60 }
 0x6ec   : > { %19481 = vmatmul.mubr.f32.vlgmr.msra.gmra.mrb[26].mxu1 %v23677_v24 }
 0x6ed   : > { %20911 = vmatpush3.bf16.msra.mxu1 %v22253_v50  ;;  %19491 = vmatprep.mubr.msk.f32.mxu1 %vm21879_vm2, %v24239_v58 }
 0x6ee   : > { %20912 = vmatprep.subr.bf16.mxu1 %v24246_v60 }
 0x6f1   : > { %20914 = vmatpush3.bf16.msra.mxu1 %v22257_v52 }
 0x6f2   : > { %20915 = vmatprep.subr.bf16.mxu1 %v24246_v60 }
 0x6f4   : > { %19492 = vmatmul.mubr.f32.vlgmr.msra.gmra.mrb[26].mxu1 %v23680_v10 }
 0x6f5   : > { %20917 = vmatpush3.bf16.msra.mxu1 %v22230_v8  ;;  %19502 = vmatprep.mubr.msk.f32.mxu1 %vm21879_vm2, %v24239_v58 }
 0x6f6   : > { %20918 = vmatprep.subr.bf16.mxu1 %v24246_v60 }
 0x6f9   : > { %20920 = vmatpush3.bf16.msra.mxu1 %v22238_v25 }
 0x6fa   : > { %20921 = vmatprep.subr.bf16.mxu1 %v24246_v60 }
 0x6fc   : > { %19503 = vmatmul.mubr.f32.vlgmr.msra.gmra.mrb[26].mxu1 %v23683_v20 }
 0x6fd   : > { %20923 = vmatpush3.bf16.msra.mxu1 %v22261_v54  ;;  %19513 = vmatprep.mubr.msk.f32.mxu1 %vm21879_vm2, %v24239_v58 }
 0x6fe   : > { %20924 = vmatprep.subr.bf16.mxu1 %v24246_v60 }
 0x701   : > { %20926 = vmatpush3.bf16.msra.mxu1 %v22265_v56 }
 0x702   : > { %20927 = vmatprep.subr.bf16.mxu1 %v24246_v60 }
 0x704   : > { %19514 = vmatmul.mubr.f32.vlgmr.msra.gmra.mrb[26].mxu1 %v23677_v24 }
 0x705   : > { %20929 = vmatpush3.bf16.msra.mxu1 %v22230_v8  ;;  %19524 = vmatprep.mubr.msk.f32.mxu1 %vm21879_vm2, %v24239_v58 }
 0x706   : > { %20930 = vmatprep.subr.bf16.mxu1 %v24246_v60 }
 0x709   : > { %20932 = vmatpush3.bf16.msra.mxu1 %v22238_v25 }
 0x70a   : > { %20969 = vmatprep.subr.bf16.mxu1 %v24246_v60 }
 0x70c   : > { %19525 = vmatmul.mubr.f32.vlgmr.msra.gmra.mrb[26].mxu1 %v23677_v24 }
 0x70d   : > { %20971 = vmatpush3.bf16.msra.mxu1 %v22400_v12  ;;  %19601 = vmatprep.mubr.msk.f32.mxu1 %vm21879_vm2, %v24239_v58 }
 0x70e   : > { %20972 = vmatprep.subr.bf16.mxu1 %v24246_v60 }
 0x711   : > { %20974 = vmatpush3.bf16.msra.mxu1 %v22426_v32 }
 0x712   : > { %20975 = vmatprep.subr.bf16.mxu1 %v24246_v60 }
 0x714   : > { %19602 = vmatmul.mubr.f32.vlgmr.msra.gmra.mrb[28].mxu1 %v23687_v14 }
 0x715   : > { %20977 = vmatpush3.bf16.msra.mxu1 %v22444_v42  ;;  %19612 = vmatprep.mubr.msk.f32.mxu1 %vm21879_vm2, %v24239_v58 }
 0x716   : > { %20978 = vmatprep.subr.bf16.mxu1 %v24246_v60 }
 0x719   : > { %20980 = vmatpush3.bf16.msra.mxu1 %v22455_v23 }
 0x71a   : > { %20981 = vmatprep.subr.bf16.mxu1 %v24246_v60 }
 0x71b   : > { %v9744_v43 = vpop.f32.mrb[18].mxu0 }
 0x71c   : > { %v19064_v26 = vpop.f32.mrb[19].mxu0  ;;  %19613 = vmatmul.mubr.f32.vlgmr.msra.gmra.mrb[28].mxu1 %v23677_v24 }
 0x71d   : > { %20983 = vmatpush3.bf16.msra.mxu1 %v22470_v29  ;;  %19623 = vmatprep.mubr.msk.f32.mxu1 %vm21879_vm2, %v24239_v58 }
 0x71e   : > { %v9257_v48 = vpop.f32.mrb[18].mxu1  ;;  %20984 = vmatprep.subr.bf16.mxu1 %v24246_v60 }
 0x71f   : > { %v9748_v50 = vmul.f32 %v9744_v43, %v9257_v48  ;;  %v18998_v17 = vpop.f32.mrb[19].mxu1 }
 0x721   : > { %20986 = vmatpush3.bf16.msra.mxu1 %v24300_v16 }
 0x722   : > { %20987 = vmatprep.subr.bf16.mxu1 %v24246_v60 }
 0x724   : > { %19624 = vmatmul.mubr.f32.vlgmr.msra.gmra.mrb[28].mxu1 %v23680_v10 }
 0x725   : > { %20989 = vmatpush3.bf16.msra.mxu1 %v22400_v12  ;;  %19634 = vmatprep.mubr.msk.f32.mxu1 %vm21879_vm2, %v24239_v58 }
 0x726   : > { %20990 = vmatprep.subr.bf16.mxu1 %v24246_v60 }
 0x729   : > { %20992 = vmatpush3.bf16.msra.mxu1 %v22426_v32 }
 0x72a   : > { %20993 = vmatprep.subr.bf16.mxu1 %v24246_v60 }
 0x72c   : > { %19635 = vmatmul.mubr.f32.vlgmr.msra.gmra.mrb[28].mxu1 %v23683_v20 }
 0x72d   : > { %20995 = vmatpush3.bf16.msra.mxu1 %v24302_v63  ;;  %19645 = vmatprep.mubr.msk.f32.mxu1 %vm21879_vm2, %v24239_v58 }
 0x72e   : > { %20996 = vmatprep.subr.bf16.mxu1 %v24246_v60 }
 0x731   : > { %20998 = vmatpush3.bf16.msra.mxu1 %v24304_v15 }
 0x732   : > { %20999 = vmatprep.subr.bf16.mxu1 %v24246_v60 }
 0x734   : > { %19646 = vmatmul.mubr.f32.vlgmr.msra.gmra.mrb[28].mxu1 %v23677_v24 }
 0x735   : > { %21001 = vmatpush3.bf16.msra.mxu1 %v22400_v12  ;;  %19656 = vmatprep.mubr.msk.f32.mxu1 %vm21879_vm2, %v24239_v58 }
 0x736   : > { %21002 = vmatprep.subr.bf16.mxu1 %v24246_v60 }
 0x739   : > { %21004 = vmatpush3.bf16.msra.mxu1 %v22426_v32 }
 0x73a   : > { %21041 = vmatprep.subr.bf16.mxu1 %v24246_v60 }
 0x73c   : > { %19657 = vmatmul.mubr.f32.vlgmr.msra.gmra.mrb[28].mxu1 %v23677_v24 }
 0x73d   : > { %21043 = vmatpush3.bf16.msra.mxu1 %v24306_v19  ;;  %19733 = vmatprep.mubr.msk.f32.mxu1 %vm21879_vm2, %v24239_v58 }
 0x73e   : > { %21044 = vmatprep.subr.bf16.mxu1 %v24246_v60 }
 0x741   : > { %21046 = vmatpush3.bf16.msra.mxu1 %v24308_v3 }
 0x742   : > { %21047 = vmatprep.subr.bf16.mxu1 %v24246_v60 }
 0x744   : > { %19734 = vmatmul.mubr.f32.vlgmr.msra.gmra.mrb[30].mxu1 %v23687_v14 }
 0x745   : > { %21049 = vmatpush3.bf16.msra.mxu1 %v24325_v47  ;;  %19744 = vmatprep.mubr.msk.f32.mxu1 %vm21879_vm2, %v24239_v58 }
 0x746   : > { %21050 = vmatprep.subr.bf16.mxu1 %v24246_v60 }
 0x749   : > { %21052 = vmatpush3.bf16.msra.mxu1 %v24312_v33 }
 0x74a   : > { %21053 = vmatprep.subr.bf16.mxu1 %v24246_v60 }
 0x74b   : > { %v10715_v8 = vpop.f32.mrb[20].mxu0 }
 0x74c   : > { %v19196_v25 = vpop.f32.mrb[21].mxu0  ;;  %19745 = vmatmul.mubr.f32.vlgmr.msra.gmra.mrb[30].mxu1 %v23677_v24 }
 0x74d   : > { %21055 = vmatpush3.bf16.msra.mxu1 %v24328_v5  ;;  %19755 = vmatprep.mubr.msk.f32.mxu1 %vm21879_vm2, %v24239_v58  ;;  %v21620_v25 = vld [vmem:[%s22164_s9] sm:$0xff] }
 0x74e   : > { %v10230_v52 = vpop.f32.mrb[20].mxu1  ;;  %21056 = vmatprep.subr.bf16.mxu1 %v24246_v60 }
 0x74f   : > { %v10719_v54 = vmul.f32 %v10715_v8, %v10230_v52  ;;  %v19130_v56 = vpop.f32.mrb[21].mxu1 }
 0x751   : > { %v10720_v42 = vadd.f32 %v10719_v54, %v9748_v50  ;;  %21058 = vmatpush3.bf16.msra.mxu1 %v24330_v13 }
 0x752   : > { %21059 = vmatprep.subr.bf16.mxu1 %v24246_v60 }
 0x754   : > { %19756 = vmatmul.mubr.f32.vlgmr.msra.gmra.mrb[30].mxu1 %v23680_v10 }
 0x755   : > { %21061 = vmatpush3.bf16.msra.mxu1 %v24306_v19  ;;  %19766 = vmatprep.mubr.msk.f32.mxu1 %vm21879_vm2, %v24239_v58 }
 0x756   : > { %21062 = vmatprep.subr.bf16.mxu1 %v24246_v60 }
 0x759   : > { %21064 = vmatpush3.bf16.msra.mxu1 %v24308_v3 }
 0x75a   : > { %21065 = vmatprep.subr.bf16.mxu1 %v24246_v60 }
 0x75c   : > { %19767 = vmatmul.mubr.f32.vlgmr.msra.gmra.mrb[30].mxu1 %v23683_v20 }
 0x75d   : > { %21067 = vmatpush3.bf16.msra.mxu1 %v24318_v34  ;;  %19777 = vmatprep.mubr.msk.f32.mxu1 %vm21879_vm2, %v24239_v58 }
 0x75e   : > { %21068 = vmatprep.subr.bf16.mxu1 %v24246_v60 }
 0x761   : > { %21070 = vmatpush3.bf16.msra.mxu1 %v24332_v61 }
 0x762   : > { %21071 = vmatprep.subr.bf16.mxu1 %v24246_v60 }
 0x764   : > { %19778 = vmatmul.mubr.f32.vlgmr.msra.gmra.mrb[30].mxu1 %v23677_v24 }
 0x765   : > { %21073 = vmatpush3.bf16.msra.mxu1 %v24306_v19  ;;  %19788 = vmatprep.mubr.msk.f32.mxu1 %vm21879_vm2, %v24239_v58 }
 0x766   : > { %21074 = vmatprep.subr.bf16.mxu1 %v24246_v60 }
 0x769   : > { %21076 = vmatpush3.bf16.msra.mxu1 %v24308_v3 }
 0x76a   : > { %21113 = vmatprep.subr.bf16.mxu1 %v24246_v60 }
 0x76c   : > { %19789 = vmatmul.mubr.f32.vlgmr.msra.gmra.mrb[30].mxu1 %v23677_v24 }
 0x76d   : > { %21115 = vmatpush3.bf16.msra.mxu1 %v24334_v44  ;;  %19865 = vmatprep.mubr.msk.f32.mxu1 %vm21879_vm2, %v24239_v58 }
 0x76e   : > { %21116 = vmatprep.subr.bf16.mxu1 %v24246_v60 }
 0x771   : > { %21118 = vmatpush3.bf16.msra.mxu1 %v24336_v57 }
 0x772   : > { %21119 = vmatprep.subr.bf16.mxu1 %v24246_v60 }
 0x774   : > { %19866 = vmatmul.mubr.f32.vlgmr.msra.gmra.mrb[32].mxu1 %v23687_v14 }
 0x775   : > { %21121 = vmatpush3.bf16.msra.mxu1 %v24338_v35  ;;  %19876 = vmatprep.mubr.msk.f32.mxu1 %vm21879_vm2, %v24239_v58 }
 0x776   : > { %21122 = vmatprep.subr.bf16.mxu1 %v24246_v60 }
 0x779   : > { %21124 = vmatpush3.bf16.msra.mxu1 %v24340_v0 }
 0x77a   : > { %21125 = vmatprep.subr.bf16.mxu1 %v24246_v60 }
 0x77b   : > { %v11687_v12 = vpop.f32.mrb[22].mxu0 }
 0x77c   : > { %v19328_v32 = vpop.f32.mrb[23].mxu0  ;;  %19877 = vmatmul.mubr.f32.vlgmr.msra.gmra.mrb[32].mxu1 %v23677_v24 }
 0x77d   : > { %21127 = vmatpush3.bf16.msra.mxu1 %v24342_v41  ;;  %19887 = vmatprep.mubr.msk.f32.mxu1 %vm21879_vm2, %v24239_v58 }
 0x77e   : > { %v11202_v23 = vpop.f32.mrb[22].mxu1  ;;  %21128 = vmatprep.subr.bf16.mxu1 %v24246_v60 }
 0x77f   : > { %v11691_v29 = vmul.f32 %v11687_v12, %v11202_v23  ;;  %v19262_v16 = vpop.f32.mrb[23].mxu1 }
 0x781   : > { %v11692_v63 = vadd.f32 %v11691_v29, %v10720_v42  ;;  %21130 = vmatpush3.bf16.msra.mxu1 %v24344_v11 }
 0x782   : > { %21131 = vmatprep.subr.bf16.mxu1 %v24246_v60 }
 0x784   : > { %19888 = vmatmul.mubr.f32.vlgmr.msra.gmra.mrb[32].mxu1 %v23680_v10 }
 0x785   : > { %21133 = vmatpush3.bf16.msra.mxu1 %v24334_v44  ;;  %19898 = vmatprep.mubr.msk.f32.mxu1 %vm21879_vm2, %v24239_v58 }
 0x786   : > { %21134 = vmatprep.subr.bf16.mxu1 %v24246_v60 }
 0x789   : > { %21136 = vmatpush3.bf16.msra.mxu1 %v24336_v57 }
 0x78a   : > { %21137 = vmatprep.subr.bf16.mxu1 %v24246_v60 }
 0x78c   : > { %19899 = vmatmul.mubr.f32.vlgmr.msra.gmra.mrb[32].mxu1 %v23683_v20 }
 0x78d   : > { %21139 = vmatpush3.bf16.msra.mxu1 %v24346_v30  ;;  %19909 = vmatprep.mubr.msk.f32.mxu1 %vm21879_vm2, %v24239_v58 }
 0x78e   : > { %21140 = vmatprep.subr.bf16.mxu1 %v24246_v60 }
 0x791   : > { %21142 = vmatpush3.bf16.msra.mxu1 %v24348_v31 }
 0x792   : > { %21143 = vmatprep.subr.bf16.mxu1 %v24246_v60 }
 0x794   : > { %19910 = vmatmul.mubr.f32.vlgmr.msra.gmra.mrb[32].mxu1 %v23677_v24 }
 0x795   : > { %21145 = vmatpush3.bf16.msra.mxu1 %v24334_v44  ;;  %19920 = vmatprep.mubr.msk.f32.mxu1 %vm21879_vm2, %v24239_v58 }
 0x796   : > { %21146 = vmatprep.subr.bf16.mxu1 %v24246_v60 }
 0x799   : > { %21148 = vmatpush3.bf16.msra.mxu1 %v24336_v57 }
 0x79a   : > { %19989 = vmatprep.subr.bf16.mxu1 %v24239_v58 }
 0x79c   : > { %19921 = vmatmul.mubr.f32.vlgmr.msra.gmra.mrb[32].mxu1 %v23677_v24 }
 0x79d   : > { %19993 = vmatprep.mubr.msk.bf16.mxu1 %vm21879_vm2, %v24239_v58 }
 0x7ab   : > { %v12659_v15 = vpop.f32.mrb[24].mxu0 }
 0x7ac   : > { %v19460_v19 = vpop.f32.mrb[25].mxu0 }
 0x7ae   : > { %v12174_v3 = vpop.f32.mrb[24].mxu1 }
 0x7af   : > { %v12663_v34 = vmul.f32 %v12659_v15, %v12174_v3  ;;  %v19394_v33 = vpop.f32.mrb[25].mxu1 }
 0x7b1   : > { %v12664_v47 = vadd.f32 %v12663_v34, %v11692_v63 }
 0x7b3   : > { %v13155_v5 = vsel %vm414_vm1, %v12664_v47, 0 }
 0x7b4   : > { %v23837_v13 = vand.u32 4294901760, %v13155_v5 }
 0x7b6   : > { %v23841_v61 = vsub.f32 %v13155_v5, %v23837_v13 }
 0x7b8   : > { %v23848_v14 = vand.u32 4294901760, %v23841_v61 }
 0x7ba   : > { %v13229_v11 = vsub.f32 %v23841_v61, %v23848_v14 }
 0x7bc   : > { %v23854_v35 = vand.u32 4294901760, %v13229_v11 }
 0x7be   : > { %19536 = vmatmul.mubr.f32.vlgmr.msra.gmra.mrb[26].mxu0 %v23854_v35 }
 0x7bf   : > { %20941 = vmatpush3.bf16.msra.mxu0 %v22241_v28  ;;  %19546 = vmatprep.mubr.msk.f32.mxu0 %vm21879_vm2, %v24239_v58 }
 0x7c0   : > { %20942 = vmatprep.subr.bf16.mxu0 %v24246_v60 }
 0x7c3   : > { %20944 = vmatpush3.bf16.msra.mxu0 %v22247_v45  ;;  %v24349_v45 = vld [vmem:[#allocation41_spill] sm:$0xff] }
 0x7c4   : > { %20945 = vmatprep.subr.bf16.mxu0 %v24246_v60 }
 0x7c6   : > { %19547 = vmatmul.mubr.f32.vlgmr.msra.gmra.mrb[26].mxu0 %v23837_v13 }
 0x7c7   : > { %20947 = vmatpush3.bf16.msra.mxu0 %v22251_v49  ;;  %19557 = vmatprep.mubr.msk.f32.mxu0 %vm21879_vm2, %v24239_v58 }
 0x7c8   : > { %20948 = vmatprep.subr.bf16.mxu0 %v24246_v60 }
 0x7cb   : > { %20950 = vmatpush3.bf16.msra.mxu0 %v22255_v51  ;;  %v24350_v51 = vld [vmem:[#allocation43_spill] sm:$0xff] }
 0x7cc   : > { %20951 = vmatprep.subr.bf16.mxu0 %v24246_v60 }
 0x7ce   : > { %19558 = vmatmul.mubr.f32.vlgmr.msra.gmra.mrb[26].mxu0 %v23841_v61 }
 0x7cf   : > { %20953 = vmatpush3.bf16.msra.mxu0 %v22227_v59  ;;  %19568 = vmatprep.mubr.msk.f32.mxu0 %vm21879_vm2, %v24239_v58 }
 0x7d0   : > { %20954 = vmatprep.subr.bf16.mxu0 %v24246_v60 }
 0x7d3   : > { %20956 = vmatpush3.bf16.msra.mxu0 %v22233_v9 }
 0x7d4   : > { %20957 = vmatprep.subr.bf16.mxu0 %v24246_v60 }
 0x7d6   : > { %19569 = vmatmul.mubr.f32.vlgmr.msra.gmra.mrb[26].mxu0 %v23848_v14 }
 0x7d7   : > { %20959 = vmatpush3.bf16.msra.mxu0 %v22259_v53  ;;  %19579 = vmatprep.mubr.msk.f32.mxu0 %vm21879_vm2, %v24239_v58  ;;  %v24351_v53 = vld [vmem:[#allocation45_spill] sm:$0xff] }
 0x7d8   : > { %20960 = vmatprep.subr.bf16.mxu0 %v24246_v60 }
 0x7db   : > { %20962 = vmatpush3.bf16.msra.mxu0 %v22263_v55  ;;  %v24352_v55 = vld [vmem:[#allocation47_spill] sm:$0xff] }
 0x7dc   : > { %20963 = vmatprep.subr.bf16.mxu0 %v24246_v60 }
 0x7de   : > { %19580 = vmatmul.mubr.f32.vlgmr.msra.gmra.mrb[26].mxu0 %v23837_v13 }
 0x7df   : > { %20965 = vmatpush3.bf16.msra.mxu0 %v22227_v59  ;;  %19590 = vmatprep.mubr.msk.f32.mxu0 %vm21879_vm2, %v24239_v58  ;;  %v23934_v59 = vpop.f32.mrb[26].mxu1 }
 0x7e0   : > { %20966 = vmatprep.subr.bf16.mxu0 %v24246_v60 }
 0x7e3   : > { %20968 = vmatpush3.bf16.msra.mxu0 %v22233_v9  ;;  %v19526_v9 = vpop.f32.mrb[27].mxu1 }
 0x7e4   : > { %21005 = vmatprep.subr.bf16.mxu0 %v24246_v60 }
 0x7e6   : > { %19591 = vmatmul.mubr.f32.vlgmr.msra.gmra.mrb[26].mxu0 %v23837_v13 }
 0x7e7   : > { %21007 = vmatpush3.bf16.msra.mxu0 %v22378_v62  ;;  %19667 = vmatprep.mubr.msk.f32.mxu0 %vm21879_vm2, %v24239_v58 }
 0x7e8   : > { %21008 = vmatprep.subr.bf16.mxu0 %v24246_v60 }
 0x7eb   : > { %21010 = vmatpush3.bf16.msra.mxu0 %v22402_v18 }
 0x7ec   : > { %21011 = vmatprep.subr.bf16.mxu0 %v24246_v60 }
 0x7ee   : > { %19668 = vmatmul.mubr.f32.vlgmr.msra.gmra.mrb[28].mxu0 %v23854_v35 }
 0x7ef   : > { %21013 = vmatpush3.bf16.msra.mxu0 %v22439_v37  ;;  %19678 = vmatprep.mubr.msk.f32.mxu0 %vm21879_vm2, %v24239_v58  ;;  %v24355_v37 = vld [vmem:[#allocation53_spill] sm:$0xff] }
 0x7f0   : > { %21014 = vmatprep.subr.bf16.mxu0 %v24246_v60 }
 0x7f3   : > { %21016 = vmatpush3.bf16.msra.mxu0 %v22448_v21  ;;  %v24356_v21 = vld [vmem:[#allocation55_spill] sm:$0xff] }
 0x7f4   : > { %21017 = vmatprep.subr.bf16.mxu0 %v24246_v60 }
 0x7f6   : > { %19679 = vmatmul.mubr.f32.vlgmr.msra.gmra.mrb[28].mxu0 %v23837_v13 }
 0x7f7   : > { %21019 = vmatpush3.bf16.msra.mxu0 %v22463_v27  ;;  %19689 = vmatprep.mubr.msk.f32.mxu0 %vm21879_vm2, %v24239_v58  ;;  %v24357_v27 = vld [vmem:[#allocation57_spill] sm:$0xff] }
 0x7f8   : > { %21020 = vmatprep.subr.bf16.mxu0 %v24246_v60 }
 0x7fb   : > { %21022 = vmatpush3.bf16.msra.mxu0 %v24299_v40 }
 0x7fc   : > { %21023 = vmatprep.subr.bf16.mxu0 %v24246_v60 }
 0x7fe   : > { %19690 = vmatmul.mubr.f32.vlgmr.msra.gmra.mrb[28].mxu0 %v23841_v61 }
 0x7ff   : > { %21025 = vmatpush3.bf16.msra.mxu0 %v22378_v62  ;;  %19700 = vmatprep.mubr.msk.f32.mxu0 %vm21879_vm2, %v24239_v58 }
 0x800   : > { %21026 = vmatprep.subr.bf16.mxu0 %v24246_v60 }
 0x803   : > { %21028 = vmatpush3.bf16.msra.mxu0 %v22402_v18 }
 0x804   : > { %21029 = vmatprep.subr.bf16.mxu0 %v24246_v60 }
 0x806   : > { %19701 = vmatmul.mubr.f32.vlgmr.msra.gmra.mrb[28].mxu0 %v23848_v14 }
 0x807   : > { %21031 = vmatpush3.bf16.msra.mxu0 %v24301_v2  ;;  %19711 = vmatprep.mubr.msk.f32.mxu0 %vm21879_vm2, %v24239_v58 }
 0x808   : > { %21032 = vmatprep.subr.bf16.mxu0 %v24246_v60 }
 0x80b   : > { %21034 = vmatpush3.bf16.msra.mxu0 %v24303_v46 }
 0x80c   : > { %21035 = vmatprep.subr.bf16.mxu0 %v24246_v60 }
 0x80e   : > { %19712 = vmatmul.mubr.f32.vlgmr.msra.gmra.mrb[28].mxu0 %v23837_v13 }
 0x80f   : > { %21037 = vmatpush3.bf16.msra.mxu0 %v22378_v62  ;;  %19722 = vmatprep.mubr.msk.f32.mxu0 %vm21879_vm2, %v24239_v58  ;;  %v14128_v28 = vpop.f32.mrb[28].mxu1  ;;  %v24353_v62 = vld [vmem:[#allocation49_spill] sm:$0xff] }
 0x810   : > { %21038 = vmatprep.subr.bf16.mxu0 %v24246_v60  ;;  %v19658_v49 = vpop.f32.mrb[29].mxu1 }
 0x813   : > { %21040 = vmatpush3.bf16.msra.mxu0 %v22402_v18  ;;  %v24354_v18 = vld [vmem:[#allocation51_spill] sm:$0xff] }
 0x814   : > { %21077 = vmatprep.subr.bf16.mxu0 %v24246_v60 }
 0x816   : > { %19723 = vmatmul.mubr.f32.vlgmr.msra.gmra.mrb[28].mxu0 %v23837_v13 }
 0x817   : > { %21079 = vmatpush3.bf16.msra.mxu0 %v24305_v1  ;;  %19799 = vmatprep.mubr.msk.f32.mxu0 %vm21879_vm2, %v24239_v58 }
 0x818   : > { %21080 = vmatprep.subr.bf16.mxu0 %v24246_v60 }
 0x81b   : > { %21082 = vmatpush3.bf16.msra.mxu0 %v24307_v7 }
 0x81c   : > { %21083 = vmatprep.subr.bf16.mxu0 %v24246_v60 }
 0x81e   : > { %19800 = vmatmul.mubr.f32.vlgmr.msra.gmra.mrb[30].mxu0 %v23854_v35 }
 0x81f   : > { %21085 = vmatpush3.bf16.msra.mxu0 %v24324_v22  ;;  %19810 = vmatprep.mubr.msk.f32.mxu0 %vm21879_vm2, %v24239_v58 }
 0x820   : > { %21086 = vmatprep.subr.bf16.mxu0 %v24246_v60 }
 0x823   : > { %21088 = vmatpush3.bf16.msra.mxu0 %v24326_v38 }
 0x824   : > { %21089 = vmatprep.subr.bf16.mxu0 %v24246_v60 }
 0x826   : > { %19811 = vmatmul.mubr.f32.vlgmr.msra.gmra.mrb[30].mxu0 %v23837_v13 }
 0x827   : > { %21091 = vmatpush3.bf16.msra.mxu0 %v24327_v36  ;;  %19821 = vmatprep.mubr.msk.f32.mxu0 %vm21879_vm2, %v24239_v58 }
 0x828   : > { %21092 = vmatprep.subr.bf16.mxu0 %v24246_v60 }
 0x82b   : > { %21094 = vmatpush3.bf16.msra.mxu0 %v24329_v6  ;;  %v21616_v6 = vld [vmem:[#allocation8] sm:$0xff]  }
 0x82c   : > { %21095 = vmatprep.subr.bf16.mxu0 %v24246_v60  ;;  %19990 = vmatpush3.bf16.msra.mxu1 %v21616_v6 }
 0x82d   : > { %19991 = vmatprep.subr.bf16.mxu1 %v24239_v58 }
 0x82e   : > { %19822 = vmatmul.mubr.f32.vlgmr.msra.gmra.mrb[30].mxu0 %v23841_v61 }
 0x82f   : > { %21097 = vmatpush3.bf16.msra.mxu0 %v24305_v1  ;;  %19832 = vmatprep.mubr.msk.f32.mxu0 %vm21879_vm2, %v24239_v58 }
 0x830   : > { %21098 = vmatprep.subr.bf16.mxu0 %v24246_v60 }
 0x833   : > { %21100 = vmatpush3.bf16.msra.mxu0 %v24307_v7 }
 0x834   : > { %21101 = vmatprep.subr.bf16.mxu0 %v24246_v60 }
 0x836   : > { %19833 = vmatmul.mubr.f32.vlgmr.msra.gmra.mrb[30].mxu0 %v23848_v14 }
 0x837   : > { %21103 = vmatpush3.bf16.msra.mxu0 %v24331_v4  ;;  %19843 = vmatprep.mubr.msk.f32.mxu0 %vm21879_vm2, %v24239_v58  ;;  %v21617_v4 = vld [vmem:[#allocation8 + $0x8] sm:$0xff]  }
 0x838   : > { %21104 = vmatprep.subr.bf16.mxu0 %v24246_v60  ;;  %19992 = vmatpush3.bf16.msra.mxu1 %v21617_v4 }
 0x83b   : > { %21106 = vmatpush3.bf16.msra.mxu0 %v24349_v45 }
 0x83c   : > { %21107 = vmatprep.subr.bf16.mxu0 %v24246_v60 }
 0x83e   : > { %19844 = vmatmul.mubr.f32.vlgmr.msra.gmra.mrb[30].mxu0 %v23837_v13 }
 0x83f   : > { %21109 = vmatpush3.bf16.msra.mxu0 %v24305_v1  ;;  %19854 = vmatprep.mubr.msk.f32.mxu0 %vm21879_vm2, %v24239_v58  ;;  %v15104_v40 = vpop.f32.mrb[30].mxu1 }
 0x840   : > { %21110 = vmatprep.subr.bf16.mxu0 %v24246_v60  ;;  %v19790_v2 = vpop.f32.mrb[31].mxu1 }
 0x843   : > { %21112 = vmatpush3.bf16.msra.mxu0 %v24307_v7  ;;  %v24358_v7 = vld [vmem:[#allocation20_spill] sm:$0xff] }
 0x844   : > { %21149 = vmatprep.subr.bf16.mxu0 %v24246_v60  ;;  %v13645_v24 = vrot.slane %v23934_v59, %v24358_v7  ;;  %v15596_v20 = vrot.slane %v15104_v40, %v24358_v7 }
 0x846   : > { %19855 = vmatmul.mubr.f32.vlgmr.msra.gmra.mrb[30].mxu0 %v23837_v13 }
 0x847   : > { %21151 = vmatpush3.bf16.msra.mxu0 %v24350_v51  ;;  %19931 = vmatprep.mubr.msk.f32.mxu0 %vm21879_vm2, %v24239_v58 }
 0x848   : > { %21152 = vmatprep.subr.bf16.mxu0 %v24246_v60 }
 0x84b   : > { %21154 = vmatpush3.bf16.msra.mxu0 %v24351_v53 }
 0x84c   : > { %21155 = vmatprep.subr.bf16.mxu0 %v24246_v60 }
 0x84e   : > { %19932 = vmatmul.mubr.f32.vlgmr.msra.gmra.mrb[32].mxu0 %v23854_v35 }
 0x84f   : > { %21157 = vmatpush3.bf16.msra.mxu0 %v24352_v55  ;;  %19942 = vmatprep.mubr.msk.f32.mxu0 %vm21879_vm2, %v24239_v58 }
 0x850   : > { %21158 = vmatprep.subr.bf16.mxu0 %v24246_v60 }
 0x853   : > { %21160 = vmatpush3.bf16.msra.mxu0 %v24353_v62 }
 0x854   : > { %21161 = vmatprep.subr.bf16.mxu0 %v24246_v60 }
 0x856   : > { %19943 = vmatmul.mubr.f32.vlgmr.msra.gmra.mrb[32].mxu0 %v23837_v13 }
 0x857   : > { %21163 = vmatpush3.bf16.msra.mxu0 %v24354_v18  ;;  %19953 = vmatprep.mubr.msk.f32.mxu0 %vm21879_vm2, %v24239_v58 }
 0x858   : > { %21164 = vmatprep.subr.bf16.mxu0 %v24246_v60 }
 0x85b   : > { %21166 = vmatpush3.bf16.msra.mxu0 %v24355_v37 }
 0x85c   : > { %21167 = vmatprep.subr.bf16.mxu0 %v24246_v60 }
 0x85e   : > { %19954 = vmatmul.mubr.f32.vlgmr.msra.gmra.mrb[32].mxu0 %v23841_v61 }
 0x85f   : > { %21169 = vmatpush3.bf16.msra.mxu0 %v24350_v51  ;;  %19964 = vmatprep.mubr.msk.f32.mxu0 %vm21879_vm2, %v24239_v58 }
 0x860   : > { %21170 = vmatprep.subr.bf16.mxu0 %v24246_v60 }
 0x863   : > { %21172 = vmatpush3.bf16.msra.mxu0 %v24351_v53 }
 0x864   : > { %21173 = vmatprep.subr.bf16.mxu0 %v24246_v60 }
 0x866   : > { %19965 = vmatmul.mubr.f32.vlgmr.msra.gmra.mrb[32].mxu0 %v23848_v14 }
 0x867   : > { %21175 = vmatpush3.bf16.msra.mxu0 %v24356_v21  ;;  %19975 = vmatprep.mubr.msk.f32.mxu0 %vm21879_vm2, %v24239_v58 }
 0x868   : > { %21176 = vmatprep.subr.bf16.mxu0 %v24246_v60 }
 0x86b   : > { %21178 = vmatpush3.bf16.msra.mxu0 %v24357_v27 }
 0x86c   : > { %21179 = vmatprep.subr.bf16.mxu0 %v24246_v60 }
 0x86e   : > { %19976 = vmatmul.mubr.f32.vlgmr.msra.gmra.mrb[32].mxu0 %v23837_v13 }
 0x86f   : > { %21181 = vmatpush3.bf16.msra.mxu0 %v24350_v51  ;;  %19986 = vmatprep.mubr.msk.f32.mxu0 %vm21879_vm2, %v24239_v58  ;;  %v16080_v46 = vpop.f32.mrb[32].mxu1 }
 0x870   : > { %21182 = vmatprep.subr.bf16.mxu0 %v24246_v60  ;;  %v19922_v1 = vpop.f32.mrb[33].mxu1  ;;  %v14620_v60 = vrot.slane %v14128_v28, %v24358_v7  ;;  %v16572_v43 = vrot.slane %v16080_v46, %v24358_v7 }
 0x873   : > { %21184 = vmatpush3.bf16.msra.mxu0 %v24351_v53 }
 0x876   : > { %19987 = vmatmul.mubr.f32.vlgmr.msra.gmra.mrb[32].mxu0 %v23837_v13 }
 0x8b9   : > { %v13638_v22 = vpop.f32.mrb[26].mxu0 }
 0x8ba   : > { %v13646_v38 = vmul.f32 %v13645_v24, %v13638_v22  ;;  %v19592_v36 = vpop.f32.mrb[27].mxu0 }
 0x8e9   : > { %v14613_v44 = vpop.f32.mrb[28].mxu0 }
 0x8ea   : > { %v14621_v57 = vmul.f32 %v14620_v60, %v14613_v44  ;;  %v19724_v0 = vpop.f32.mrb[29].mxu0 }
 0x8ec   : > { %v14622_v41 = vadd.f32 %v14621_v57, %v13646_v38 }
 0x919   : > { %v15589_v30 = vpop.f32.mrb[30].mxu0 }
 0x91a   : > { %v15597_v31 = vmul.f32 %v15596_v20, %v15589_v30  ;;  %v19856_v39 = vpop.f32.mrb[31].mxu0 }
 0x91c   : > { %v15598_v10 = vadd.f32 %v15597_v31, %v14622_v41 }
 0x949   : > { %v16565_v26 = vpop.f32.mrb[32].mxu0 }
 0x94a   : > { %v16573_v58 = vmul.f32 %v16572_v43, %v16565_v26  ;;  %v19988_v48 = vpop.f32.mrb[33].mxu0 }
 0x94c   : > { %v16574_v50 = vadd.f32 %v16573_v58, %v15598_v10 }
 0x94e   : > { %16576 = vst.msk [vmem:[#allocation2 - $0x7] sm:$0x80] %vm16575_vm6, %v16574_v50  ;;  %v16577_v17 = vpack.c.bf16 %v16574_v50, %v16574_v50 }
 0x950   : > { %19994 = vmatmul.mubr.msk.bf16.vlgmr.msra.gmra.mrb[36].mxu1 %vm414_vm1, %v16577_v17 }
 0x955   : > { %v16643_v12 = vld [vmem:[#allocation2] sm:$0x1] (!%p16811_p6) }
 0x956   : > { %16645 = vst.msk [vmem:[#allocation13] sm:$0x1] (!%p16811_p6), %vm16644_vm7, %v16643_v12 }
 0xa20   : > { %16642 = sbr.rel (%p16811_p6) target bundleno = 2599 (0xa27), region = 80 }
 0xa23   : > { %v16631_v8 = vpop.f32.mrb[36].mxu1 }
 0xa24   : > { %v16637_v52 = vadd.f32 %v21620_v25, %v16631_v8  ;;  %v19995_v54 = vpop.f32.mrb[37].mxu1 }
 0xa25   : > { %v16634_v56 = vpop.f32.mrb[38].mxu1 }
 0xa26   : > { %16638 = vst.msk [vmem:[%s22178_s16] sm:$0xff] %vm414_vm1, %v16637_v52  ;;  %v19996_v42 = vpop.f32.mrb[39].mxu1 }
 0xa27 PF: > { %s16813_s20 = sshll.u32 %s21954_s15, 7  ;;  %s16660_s26 = sshll.u32 %s22178_s16, 4  ;;  %s16661_s26 = int_to_ptr.vmem [resolvable:$true] %s16660_s26 }
 0xa28   : > { %s24044_s14 = scalar_lea.hbm %s24112_s8, %s16813_s20  ;;  %s16647_s9 = scalar_lea.sflag [#allocation5], %s22160_s3 }
 0xa29   : > { %s21763_s17 = scalar_lea.vmem %s16661_s26, 128  ;;  %p24359_p9 = scmp.ne.s32.totalorder %s24223_s29, 0 }
 0xa2a   : > { %p21764_p7 = scmp.ne.s32.totalorder %s16661_s26, %s21763_s17  ;;  %s21881_s25 = smov [#allocation12]  }
 0xa2b   : > { %s21767_s19 = sshll.u32 %s21881_s25, 4  ;;  %s21768_s19 = int_to_ptr.vmem [resolvable:$false] %s21767_s19 }
 0xa2c   : > { %p21765_p12 = pnand %p21764_p7, %p24359_p9  ;;  %s21769_s22 = scalar_lea.vmem %s21768_s19, 256 }
 0xa2d   : > { %p21770_p13 = scmp.lt.s32.totalorder %s16661_s26, %s21768_s19  ;;  %p21771_p0 = scmp.lt.s32.totalorder %s21769_s22, %s21763_s17 }
 0xa2e   : > { %p21766_p4 = pneg %p21765_p12 }
 0xa2f   : > { %p21772_p2 = por %p21771_p0, %p21770_p13 }
 0xa31   : > { %p21773_p5 = pnand %p21772_p2, %p21766_p4 }
 0xa33   : > { %21776 = shalt.err (!%p21773_p5)
}
 0xa34   : > { %s21777_s3 = scalar_lea.hbm %s24044_s14, 128  ;;  %s21781_s28 = scalar_lea.hbm %s24112_s8, 512 }
 0xa35   : > { %p21778_p3 = scmp.ne.s32.totalorder %s24044_s14, %s21777_s3  ;;  %p21782_p1 = scmp.lt.u32.totalorder %s24044_s14, %s24112_s8 }
 0xa36   : > { %p21783_p8 = scmp.lt.u32.totalorder %s21781_s28, %s21777_s3  ;;  %p21785_p7 = scmp.lt.u32.totalorder %s21777_s3, %s24044_s14 }
 0xa37   : > { %p21779_p10 = pnand %p21778_p3, %p24359_p9 }
 0xa38   : > { %p21784_p6 = por %p21783_p8, %p21782_p1 }
 0xa39   : > { %p21780_p11 = pneg %p21779_p10 }
 0xa3a   : > { %p21786_p12 = por %p21785_p7, %p21784_p6 }
 0xa3c   : > { %p21787_p4 = pnand %p21786_p12, %p21780_p11 }
 0xa3e   : > { %21790 = shalt.err (!%p21787_p4)
}
 0xa3f   : > { %21533 = dma.vmem_to_hbm [thread:$0]  (%p24359_p9), %s16661_s26, 128, %s24044_s14, %s16647_s9  }
 0xa40   : > { %s21882_s21 = smov [#allocation13]   ;;  %p24360_p0 = scmp.eq.s32.totalorder %s21954_s15, 3 }
 0xa41   : > { %s16671_s17 = sshll.u32 %s21882_s21, 4  ;;  %s16672_s17 = int_to_ptr.vmem [resolvable:$true] %s16671_s17 }
 0xa42   : > { %s21791_s25 = scalar_lea.vmem %s16672_s17, 16  ;;  %s21797_s19 = scalar_lea.vmem %s16672_s17, 32 }
 0xa43   : > { %p21792_p13 = scmp.ne.s32.totalorder %s16672_s17, %s21791_s25  ;;  %p21798_p3 = scmp.lt.s32.totalorder %s16672_s17, %s16672_s17 }
 0xa44   : > { %p21799_p10 = scmp.lt.s32.totalorder %s21797_s19, %s21791_s25 }
 0xa45   : > { %p21793_p2 = pnand %p21792_p13, %p24360_p0 }
 0xa46   : > { %p21800_p1 = por %p21799_p10, %p21798_p3 }
 0xa47   : > { %p21794_p5 = pneg %p21793_p2 }
 0xa49   : > { %p21801_p8 = pnand %p21800_p1, %p21794_p5 }
 0xa4b   : > { %21804 = shalt.err (!%p21801_p8)
}
 0xa4c   : > { %s24361_s29 = sld [smem:[#allocation60_spill]]  ;;  %p24362_p11 = pmov %p24360_p0 }
 0xa52   : > { %s21805_s16 = scalar_lea.hbm %s24361_s29, 16 }
 0xa53   : > { %p21806_p9 = scmp.ne.s32.totalorder %s24361_s29, %s21805_s16  ;;  %p21811_p12 = scmp.lt.u32.totalorder %s21805_s16, %s24361_s29 }
 0xa55   : > { %p21807_p6 = pnand %p21806_p9, %p24362_p11 }
 0xa57   : > { %p21808_p7 = pneg %p21807_p6 }
 0xa59   : > { %p21813_p4 = pnand %p21811_p12, %p21808_p7 }
 0xa5b   : > { %21816 = shalt.err (!%p21813_p4)
}
 0xa5c   : > { %p24363_p13 = pmov %p24360_p0 }
 0xa5e   : > { %21535 = dma.vmem_to_hbm [thread:$0]  (%p24363_p13), %s16672_s17, 16, %s24361_s29, [#allocation14]  }
 0xa5f   : > { %21846 = dma.done.wait (%p24360_p0), [#allocation14], 16   ;;  %p24364_p2 = pmov %p24360_p0 }
 0xa61   : > { %21848 = vsyncadd (%p24364_p2), [#allocation14], 4294967280 }
 0xa62 PF: > { %p21571_p5 = scmp.ge.s32.totalorder %s21867_s12, 2  ;;  %s16687_s18 = sand.u32 1, %s21855_s30  }
 0xa63   : > { %p24365_p3 = scmp.ne.s32.totalorder %s24224_s13, 0  ;;  %s16688_s21 = scalar_lea.sflag [#allocation5], %s16687_s18 }
 0xa65   : > { %p21557_p10 = pnand %p21571_p5, %p24365_p3 }
 0xa67   : > { %21850 = dma.done.wait (!%p21557_p10), %s16688_s21, 128  }
 0xa68   : > { %21852 = vsyncadd (!%p21557_p10), %s16688_s21, 4294967168  ;;  %p26_p1 = scmp.ge.s32.totalorder %s22082_s27, 6   ;;  %s24366_s30 = smov %s21859_s10 }
 0xa69   : > { %s24367_s10 = smov %s21863_s11  ;;  %s24368_s11 = smov %s22093_s24 }
 0xa6a   : > { %s24369_s12 = smov %s22082_s27  ;;  %28 = sbr.rel (!%p26_p1) target bundleno = 11 (0xb), region = 135 }
 0xa71   :  { %16693 = vsyncpa [#allocation4], 1 }
 0xa72   :  { %16695 = vsyncpa [#allocation4 + $0x1], 1 }
 0xa73   :  { %16696 = vsyncpa [#allocation7], 1 }
 0xa74   :  { %16697 = vsyncpa [#allocation10], 1 }
 0xa75   :  { %16698 = vsyncpa [#allocation5], 1 }
 0xa76   :  { %16700 = vsyncpa [#allocation5 + $0x1], 1 }
 0xa77   :  { %16701 = vsyncpa [#allocation14], 1 }

// kernel: tpu_custom_call.1
= control target key start
LH: loop header
LB: loop body
LE: loop exit
PB: predicated region body
PF: predicated region fallthrough
CT: control target
= control target key end

     0   :  { %s24104_s0 = inlined_call_operand.hbm [shape: f32[32,32], index: 0, kind: input, shape index: {}]   ;;  %s24105_s1 = inlined_call_operand.vmem [shape: f32[1,32], index: 1, kind: input, shape index: {}]   ;;  %s24106_s2 = inlined_call_operand.vmem [shape: f32[1,32], index: 2, kind: input, shape index: {}]   ;;  %s24107_s3 = inlined_call_operand.hbm [shape: f32[32,32], index: 3, kind: input, shape index: {}]   ;;  %s24108_s4 = inlined_call_operand.hbm [shape: bf16[32,32], index: 4, kind: input, shape index: {}]   ;;  %s24109_s5 = inlined_call_operand.hbm [shape: f32[4,32,32], index: 5, kind: input, shape index: {}]   ;;  %s24110_s6 = inlined_call_operand.hbm [shape: f32[4,32,32], index: 6, kind: input, shape index: {}]   ;;  %s24111_s7 = inlined_call_operand.vmem [shape: f32[1,32], index: 7, kind: input, shape index: {}]   ;;  %s24112_s8 = inlined_call_operand.hbm [shape: f32[32,32], index: 8, kind: output, shape index: {0}]   ;;  %s24113_s9 = inlined_call_operand.hbm [shape: f32[1,32], index: 9, kind: output, shape index: {1}]  }
   0x1   :  { %24212 = sst [smem:[#allocation59_spill]] %s24107_s3 }
   0x2   :  { %24213 = sst [smem:[#allocation60_spill]] %s24113_s9 }
   0x3   :  { %15 = vsyncpa [#allocation4], 0 }
   0x4   :  { %17 = vsyncpa [#allocation4 + $0x1], 0 }
   0x5   :  { %18 = vsyncpa [#allocation7], 0 }
   0x6   :  { %19 = vsyncpa [#allocation10], 0 }
   0x7   :  { %20 = vsyncpa [#allocation5], 0 }
   0x8   :  { %22 = vsyncpa [#allocation5 + $0x1], 0 }
   0x9   :  { %23 = vsyncpa [#allocation14], 0  ;;  %s21933_s30 = smov 0   ;;  %s21935_s10 = smov 0  }
   0xa   :  { %s21937_s11 = smov 0   ;;  %s21939_s12 = smov 0  }
   0xb LB: > { %s21869_s13 = smov [#allocation6]   ;;  %s21954_s15 = sadd.s32 4294967295, %s21867_s12   ;;  %s21867_s12 = sphi %s21939_s12, %s24369_s12   ;;  %s21863_s11 = sphi %s21937_s11, %s24368_s11   ;;  %s21859_s10 = sphi %s21935_s10, %s24367_s10   ;;  %s21855_s30 = sphi %s21933_s30, %s24366_s30  }
   0xc   : > { %s272_s14 = sshll.u32 %s21869_s13, 4  ;;  %p16791_p0 = scmp.ge.s32.totalorder %s21867_s12, 1  ;;  %s21960_s14 = int_to_ptr.vmem [resolvable:$true] %s272_s14 }
   0xd   : > { %p24117_p1 = scmp.eq.s32.totalorder %s21954_s15, 0  ;;  %p254_p2 = scmp.lt.s32.totalorder %s21867_s12, 5 }
   0xe   : > { %s21870_s17 = smov [#allocation9]   ;;  %s21871_s20 = smov [#allocation8]  }
   0xf   : > { %p21962_p4 = pnand %p16791_p0, %p254_p2  ;;  %s298_s18 = sshll.u32 %s21870_s17, 4  ;;  %s21974_s18 = int_to_ptr.vmem [resolvable:$true] %s298_s18 }
  0x10   : > { %s285_s21 = sshll.u32 %s21871_s20, 4  ;;  %s24216_s3 = sld [smem:[#allocation59_spill]]  ;;  %s21976_s21 = int_to_ptr.vmem [resolvable:$true] %s285_s21 }
  0x11   : > { %s24214_s16 = scalar_select %p21962_p4, 1, 0 }
  0x12   : > { %p21539_p5 = pneg %p21962_p4 }
  0x14   : > { %p21970_p6 = pnand %p21539_p5, %p24117_p1 }
  0x16   : > { %s21621_s24 = scalar_lea.hbm %s24216_s3, 512  ;;  %p21986_p8 = pneg %p21970_p6 }
  0x17   : > { %p21622_p7 = scmp.ne.s32.totalorder %s24216_s3, %s21621_s24  ;;  %p21628_p11 = scmp.lt.u32.totalorder %s21621_s24, %s24216_s3 }
  0x19   : > { %p21624_p9 = pnand %p21986_p8, %p21622_p7 }
  0x1b   : > { %p21625_p10 = pneg %p21624_p9 }
  0x1d   : > { %p21630_p12 = pnand %p21628_p11, %p21625_p10 }
  0x1f   : > { %21633 = shalt.err (!%p21630_p12)
}
  0x20   : > { %s21634_s13 = scalar_lea.vmem %s21960_s14, 512  ;;  %p21642_p5 = scmp.lt.s32.totalorder %s21960_s14, %s21960_s14 }
  0x21   : > { %p21635_p13 = scmp.ne.s32.totalorder %s21960_s14, %s21634_s13  ;;  %p21643_p3 = scmp.lt.s32.totalorder %s21634_s13, %s21634_s13 }
  0x23   : > { %p21637_p0 = pnand %p21635_p13, %p21986_p8  ;;  %p21644_p7 = por %p21643_p3, %p21642_p5 }
  0x25   : > { %p21638_p2 = pneg %p21637_p0 }
  0x27   : > { %p21645_p9 = pnand %p21644_p7, %p21638_p2 }
  0x29   : > { %21648 = shalt.err (!%p21645_p9)
}
  0x2a   : > { %s24115_s17 = smov 128   ;;  %s24116_s20 = smov 8  }
  0x2b   : > { %21542 = dma.hbm_to_vmem [thread:$0]  (!%p21970_p6), %s24216_s3, 512, %s21960_s14, [#allocation7], %s24115_s17, %s24115_s17, %s24116_s20  }
  0x2c   : > { %s21649_s26 = scalar_lea.hbm %s24109_s5, 2048 }
  0x2d   : > { %p21650_p3 = scmp.ne.s32.totalorder %s24109_s5, %s21649_s26  ;;  %p21656_p12 = scmp.lt.u32.totalorder %s21649_s26, %s24109_s5 }
  0x2f   : > { %p21652_p10 = pnand %p21650_p3, %p21986_p8 }
  0x31   : > { %p21653_p11 = pneg %p21652_p10 }
  0x33   : > { %p21658_p13 = pnand %p21656_p12, %p21653_p11 }
  0x35   : > { %21661 = shalt.err (!%p21658_p13)
}
  0x36   : > { %s21662_s14 = scalar_lea.vmem %s21974_s18, 2048  ;;  %p21670_p7 = scmp.lt.s32.totalorder %s21974_s18, %s21974_s18 }
  0x37   : > { %p21663_p0 = scmp.ne.s32.totalorder %s21974_s18, %s21662_s14  ;;  %p21671_p9 = scmp.lt.s32.totalorder %s21662_s14, %s21662_s14 }
  0x39   : > { %p21665_p2 = pnand %p21663_p0, %p21986_p8  ;;  %p21672_p3 = por %p21671_p9, %p21670_p7 }
  0x3b   : > { %p21666_p5 = pneg %p21665_p2 }
  0x3d   : > { %p21673_p10 = pnand %p21672_p3, %p21666_p5 }
  0x3f   : > { %21676 = shalt.err (!%p21673_p10)
}
  0x40   : > { %21548 = dma.hbm_to_vmem [thread:$0]  (!%p21970_p6), %s24109_s5, 2048, %s21974_s18, [#allocation10], %s24115_s17, %s24115_s17, %s24116_s20  }
  0x41   : > { %s21677_s25 = scalar_lea.hbm %s24108_s4, 256 }
  0x42   : > { %p21678_p11 = scmp.ne.s32.totalorder %s24108_s4, %s21677_s25  ;;  %p21684_p0 = scmp.lt.u32.totalorder %s21677_s25, %s24108_s4 }
  0x44   : > { %p21680_p12 = pnand %p21678_p11, %p21986_p8 }
  0x46   : > { %p21681_p13 = pneg %p21680_p12 }
  0x48   : > { %p21686_p2 = pnand %p21684_p0, %p21681_p13 }
  0x4a   : > { %21689 = shalt.err (!%p21686_p2)
}
  0x4b   : > { %s21690_s18 = scalar_lea.vmem %s21976_s21, 256  ;;  %p21698_p3 = scmp.lt.s32.totalorder %s21976_s21, %s21976_s21 }
  0x4c   : > { %p21691_p5 = scmp.ne.s32.totalorder %s21976_s21, %s21690_s18  ;;  %p21699_p10 = scmp.lt.s32.totalorder %s21690_s18, %s21690_s18 }
  0x4e   : > { %p21693_p7 = pnand %p21691_p5, %p21986_p8  ;;  %p21700_p11 = por %p21699_p10, %p21698_p3 }
  0x50   : > { %p21694_p9 = pneg %p21693_p7 }
  0x52   : > { %p21701_p12 = pnand %p21700_p11, %p21694_p9 }
  0x54   : > { %21704 = shalt.err (!%p21701_p12)
}
  0x55   : > { %s21874_s14 = smov 64   ;;  %s21875_s9 = smov 4  }
  0x56   : > { %21545 = dma.hbm_to_vmem [thread:$0]  (!%p21970_p6), %s24108_s4, 256, %s21976_s21, [#allocation7], %s21874_s14, %s21874_s14, %s21875_s9  }
  0x57   : > { %s21876_s24 = smov [#allocation11]   ;;  %s21705_s29 = scalar_lea.hbm %s24110_s6, 2048 }
  0x58   : > { %s311_s25 = sshll.u32 %s21876_s24, 4  ;;  %p21706_p13 = scmp.ne.s32.totalorder %s24110_s6, %s21705_s29  ;;  %s312_s25 = int_to_ptr.vmem [resolvable:$true] %s311_s25 }
  0x59   : > { %p21712_p5 = scmp.lt.u32.totalorder %s21705_s29, %s24110_s6 }
  0x5a   : > { %p21708_p0 = pnand %p21706_p13, %p21986_p8 }
  0x5c   : > { %p21709_p2 = pneg %p21708_p0 }
  0x5e   : > { %p21714_p7 = pnand %p21712_p5, %p21709_p2 }
  0x60   : > { %21717 = shalt.err (!%p21714_p7)
}
  0x61   : > { %s21718_s21 = scalar_lea.vmem %s312_s25, 2048  ;;  %p21726_p11 = scmp.lt.s32.totalorder %s312_s25, %s312_s25 }
  0x62   : > { %p21719_p9 = scmp.ne.s32.totalorder %s312_s25, %s21718_s21  ;;  %p21727_p12 = scmp.lt.s32.totalorder %s21718_s21, %s21718_s21 }
  0x64   : > { %p21721_p3 = pnand %p21719_p9, %p21986_p8  ;;  %p21728_p1 = por %p21727_p12, %p21726_p11 }
  0x66   : > { %p21722_p10 = pneg %p21721_p3 }
  0x68   : > { %p21729_p4 = pnand %p21728_p1, %p21722_p10 }
  0x6a   : > { %21732 = shalt.err (!%p21729_p4)
}
  0x6b   : > { %s24218_s14 = smov 8   ;;  %s24219_s9 = smov 128  }
  0x6c   : > { %21551 = dma.hbm_to_vmem [thread:$0]  (!%p21970_p6), %s24110_s6, 2048, %s312_s25, [#allocation10], %s24219_s9, %s24219_s9, %s24218_s14  }
  0x6d   : > { %s16790_s19 = sadd.s32 4294967294, %s21867_s12   ;;  %s22082_s27 = sadd.s32 1, %s21867_s12  }
  0x6e   : > { %s33_s22 = ssub.s32 %s21867_s12, %s22082_s27  ;;  %s36_s23 = sadd.s32 1, %s21863_s11 }
  0x6f   : > { %p34_p1 = scmp.eq.s32.totalorder %s33_s22, 0  ;;  %p43_p4 = scmp.ne.s32.totalorder %s21863_s11, %s21859_s10 }
  0x70   : > { %p44_p8 = scmp.eq.s32.totalorder %s21867_s12, 0  ;;  %p49_p13 = scmp.ne.s32.totalorder %s21859_s10, %s21855_s30 }
  0x71   : > { %s22093_s24 = scalar_select %p34_p1, %s21863_s11, %s36_s23  }
  0x72   : > { %p22095_p0 = por %p44_p8, %p43_p4  ;;  %p24221_p2 = scmp.eq.s32.totalorder %s21954_s15, 0 }
  0x73   : > { %p24119_p5 = scmp.eq.s32.totalorder %s21954_s15, 3  ;;  %p226_p7 = scmp.eq.s32.totalorder %s16790_s19, 3 }
  0x74   : > { %p22101_p6 = por %p24221_p2, %p49_p13  ;;  %p21564_p9 = scmp.lt.s32.totalorder %s21867_s12, 4 }
  0x75   : > { %s328_s28 = sand.u32 1, %s21863_s11   ;;  %p22110_p3 = por %p24119_p5, %p43_p4 }
  0x76   : > { %p22114_p10 = por %p226_p7, %p49_p13  ;;  %s16797_s18 = sshll.u32 %s328_s28, 3 }
  0x77   : > { %s24223_s29 = scalar_select %p22110_p3, 1, 0 }
  0x78   : > { %s24224_s13 = scalar_select %p22114_p10, 1, 0 }
  0x79   : > { %s16798_s21 = sshll.u32 %s21867_s12, 7  ;;  %s332_s20 = scalar_lea.vmem [#allocation3], %s16797_s18 }
  0x7a   : > { %s22122_s17 = scalar_lea.hbm %s24104_s0, %s16798_s21  ;;  %s339_s19 = sshll.u32 %s332_s20, 4  ;;  %s22124_s19 = int_to_ptr.vmem [resolvable:$true] %s339_s19 }
  0x7b   : > { %p22128_p11 = pnand %p21564_p9, %p22095_p0  ;;  %s329_s23 = scalar_lea.sflag [#allocation4], %s328_s28 }
  0x7c   : > { %s21733_s3 = scalar_lea.hbm %s22122_s17, 128  ;;  %s21738_s14 = scalar_lea.hbm %s24104_s0, 512 }
  0x7d   : > { %p21734_p12 = scmp.ne.s32.totalorder %s22122_s17, %s21733_s3  ;;  %p21735_p1 = pneg %p22128_p11 }
  0x7e   : > { %p21739_p13 = scmp.lt.u32.totalorder %s22122_s17, %s24104_s0  ;;  %p21740_p0 = scmp.lt.u32.totalorder %s21738_s14, %s21733_s3 }
  0x7f   : > { %p21736_p4 = pnand %p21735_p1, %p21734_p12  ;;  %p21742_p7 = scmp.lt.u32.totalorder %s21733_s3, %s22122_s17 }
  0x80   : > { %p21741_p2 = por %p21740_p0, %p21739_p13 }
  0x81   : > { %p21737_p8 = pneg %p21736_p4 }
  0x82   : > { %p21743_p9 = por %p21742_p7, %p21741_p2 }
  0x84   : > { %p21744_p5 = pnand %p21743_p9, %p21737_p8 }
  0x86   : > { %21747 = shalt.err (!%p21744_p5)
}
  0x87   : > { %s21748_s28 = scalar_lea.vmem %s22124_s19, 128  ;;  %s21877_s20 = smov [#allocation3]  }
  0x88   : > { %p21749_p12 = scmp.ne.s32.totalorder %s22124_s19, %s21748_s28  ;;  %s21753_s18 = sshll.u32 %s21877_s20, 4  ;;  %s21754_s18 = int_to_ptr.vmem [resolvable:$false] %s21753_s18 }
  0x89   : > { %s21755_s21 = scalar_lea.vmem %s21754_s18, 256  ;;  %p21756_p3 = scmp.lt.s32.totalorder %s22124_s19, %s21754_s18 }
  0x8a   : > { %p21751_p4 = pnand %p21749_p12, %p21735_p1  ;;  %p21757_p13 = scmp.lt.s32.totalorder %s21755_s21, %s21748_s28 }
  0x8c   : > { %p21752_p10 = pneg %p21751_p4  ;;  %p21758_p0 = por %p21757_p13, %p21756_p3 }
  0x8e   : > { %p21759_p2 = pnand %p21758_p0, %p21752_p10 }
  0x90   : > { %21762 = shalt.err (!%p21759_p2)
}
  0x91   : > { %21555 = dma.hbm_to_vmem [thread:$0]  (!%p22128_p11), %s22122_s17, 128, %s22124_s19, %s329_s23  }
  0x92   : > { %p24226_p5 = scmp.ne.s32.totalorder %s24214_s16, 0 }
  0x94   : > { %348 = sbr.rel (%p24226_p5) target bundleno = 2658 (0xa62), region = 52 }
  0x9b   : > { %s22160_s3 = sand.u32 1, %s21859_s10  }
  0x9c   : > { %s16800_s14 = sshll.u32 %s22160_s3, 3  ;;  %s351_s26 = scalar_lea.sflag [#allocation4], %s22160_s3 }
  0x9d   : > { %s22164_s9 = scalar_lea.vmem [#allocation3], %s16800_s14 }
  0x9e   : > { %21834 = dma.done.wait (%p22101_p6), %s351_s26, 128  }
  0x9f   : > { %21836 = vsyncadd (%p22101_p6), %s351_s26, 4294967168  ;;  %p24227_p3 = scmp.eq.s32.totalorder %s21954_s15, 0 }
  0xa1   : > { %21838 = dma.done.wait (%p24227_p3), [#allocation7], 768   ;;  %p24228_p10 = pmov %p24227_p3 }
  0xa2   : > { %p24229_p11 = pmov %p24227_p3 }
  0xa3   : > { %21840 = vsyncadd (%p24228_p10), [#allocation7], 4294966528 }
  0xa4   : > { %21842 = dma.done.wait (%p24229_p11), [#allocation10], 4096   ;;  %p24230_p1 = pmov %p24227_p3 }
  0xa5   : > { %s22178_s16 = scalar_lea.vmem [#allocation12], %s16800_s14  ;;  %p24231_p8 = scmp.ne.s32.totalorder %s21954_s15, 0 }
  0xa6   : > { %21844 = vsyncadd (%p24230_p1), [#allocation10], 4294963200  ;;  %v410_v0 = vld [vmem:[%s24111_s7] sm:$0x1] (!%p24231_p8)  ;;  %vm411_vm0 = vcmask (!%p24231_p8), 253952  }
  0xa7   : > { %409 = sbr.rel (%p24231_p8) target bundleno = 174 (0xae), region = 76  ;;  %412 = vst.msk [vmem:[#allocation2] sm:$0x1] (!%p24231_p8), %vm411_vm0, %v410_v0 }
  0xae PF: > { %v413_v1 = vld [vmem:[%s22164_s9] sm:$0xff]  ;;  %vm414_vm1 = vcmask 261120   ;;  %v438_v8 = vld [vmem:[#allocation6] sm:$0xff]  ;;  %v439_v9 = vld [vmem:[#allocation6 + $0x8] sm:$0xff]  ;;  %v24132_v11 = vmov 0.0|0.0   ;;  %vm21879_vm2 = vmmov 0  }
  0xaf   : > { %v415_v2 = vsel %vm414_vm1, %v413_v1, 0.0  ;;  %v440_v10 = vld [vmem:[#allocation6 + $0x10] sm:$0xff]  ;;  %20009 = vmatprep.subr.bf16.mxu0 %v24132_v11  ;;  %v452_v12 = vand.u32 4294901760, %v438_v8  ;;  %v455_v13 = vand.u32 4294901760, %v439_v9  ;;  %v441_v14 = vld [vmem:[#allocation6 + $0x18] sm:$0xff]  ;;  %19997 = vmatprep.subr.bf16.mxu1 %v24132_v11  ;;  %v24121_v17 = vmov 0.0  }
  0xb0   : > { %416 = vadd.xlane.f32.xlu0 %v415_v2  ;;  %v458_v15 = vand.u32 4294901760, %v440_v10  ;;  %v461_v16 = vand.u32 4294901760, %v441_v14  ;;  %17841 = vmatprep.mubr.msk.f32.mxu0 %vm21879_vm2, %v24121_v17  ;;  %v16807_v46 = vld [vmem:[%s24105_s1] ss:$0 sm:$0xff]  ;;  %v955_v55 = vld [vmem:[#allocation11] sm:$0xff]  ;;  %v956_v56 = vld [vmem:[#allocation11 + $0x8] sm:$0xff] }
  0xb1   : > { %17819 = vmatprep.mubr.msk.f32.mxu1 %vm21879_vm2, %v24121_v17  ;;  %v532_v18 = vsub.f32 %v438_v8, %v452_v12  ;;  %v539_v19 = vsub.f32 %v439_v9, %v455_v13  ;;  %v22194_v21 = vpack.c.bf16 %v455_v13, %v452_v12  ;;  %v1470_v57 = vand.u32 4294901760, %v955_v55  ;;  %v936_v60 = vld [vmem:[#allocation9] sm:$0xff]  ;;  %v937_v61 = vld [vmem:[#allocation9 + $0x8] sm:$0xff]  ;;  %v957_v2 = vld [vmem:[#allocation11 + $0x10] sm:$0xff]  ;;  %p16811_p6 = scmp.ne.s32.totalorder %s21954_s15, 3 }
  0xb2   : > { %v546_v20 = vsub.f32 %v440_v10, %v458_v15  ;;  %v553_v22 = vsub.f32 %v441_v14, %v461_v16  ;;  %v20001_v27 = vpack.c.bf16 %v461_v16, %v458_v15  ;;  %v1473_v58 = vand.u32 4294901760, %v956_v56  ;;  %v938_v10 = vld [vmem:[#allocation9 + $0x10] sm:$0xff]  ;;  %v939_v12 = vld [vmem:[#allocation9 + $0x18] sm:$0xff] }
  0xb3   : > { %v20010_v23 = vpack.c.bf16 %v539_v19, %v532_v18  ;;  %19999 = vmatpush3.bf16.msra.mxu1 %v22194_v21  ;;  %v533_v25 = vand.u32 4294901760, %v532_v18  ;;  %v540_v26 = vand.u32 4294901760, %v539_v19  ;;  %v1550_v62 = vsub.f32 %v955_v55, %v1470_v57 }
  0xb4   : > { %20000 = vmatprep.subr.bf16.mxu1 %v24132_v11  ;;  %v20013_v24 = vpack.c.bf16 %v553_v22, %v546_v20  ;;  %v547_v32 = vand.u32 4294901760, %v546_v20  ;;  %v554_v33 = vand.u32 4294901760, %v553_v22  ;;  %v22227_v59 = vpack.c.bf16 %v1473_v58, %v1470_v57 }
  0xb5   : > { %20011 = vmatpush3.bf16.msra.mxu0 %v20010_v23  ;;  %v534_v28 = vsub.f32 %v532_v18, %v533_v25  ;;  %v541_v29 = vsub.f32 %v539_v19, %v540_v26  ;;  %v20022_v37 = vpack.c.bf16 %v540_v26, %v533_v25  ;;  %v1557_v63 = vsub.f32 %v956_v56, %v1473_v58 }
  0xb6   : > { %20012 = vmatprep.subr.bf16.mxu0 %v24132_v11  ;;  %v548_v35 = vsub.f32 %v546_v20, %v547_v32  ;;  %v555_v36 = vsub.f32 %v553_v22, %v554_v33  ;;  %v20025_v41 = vpack.c.bf16 %v554_v33, %v547_v32  ;;  %v983_v0 = vand.u32 4294901760, %v936_v60 }
  0xb7   : > { %20002 = vmatpush3.bf16.msra.mxu1 %v20001_v27  ;;  %v535_v30 = vand.u32 4294901760, %v534_v28  ;;  %v542_v31 = vand.u32 4294901760, %v541_v29  ;;  %v989_v16 = vand.u32 4294901760, %v938_v10  ;;  %v992_v18 = vand.u32 4294901760, %v939_v12 }
  0xb8   : > { %20003 = vmatprep.subr.bf16.mxu1 %v24132_v11  ;;  %v549_v38 = vand.u32 4294901760, %v548_v35  ;;  %v556_v39 = vand.u32 4294901760, %v555_v36  ;;  %v1063_v15 = vsub.f32 %v936_v60, %v983_v0  ;;  %v443_v57 = vlaneseq }
  0xb9   : > { %20014 = vmatpush3.bf16.msra.mxu0 %v20013_v24  ;;  %v20004_v34 = vpack.c.bf16 %v542_v31, %v535_v30  ;;  %v22238_v25 = vpack.c.bf16 %v992_v18, %v989_v16  ;;  %v1077_v31 = vsub.f32 %v938_v10, %v989_v16  ;;  %vm977_vm3 = vcmask 1040384  }
  0xba   : > { %20015 = vmatprep.subr.bf16.mxu0 %v24132_v11  ;;  %v20007_v40 = vpack.c.bf16 %v556_v39, %v549_v38  ;;  %v1064_v23 = vand.u32 4294901760, %v1063_v15  ;;  %v444_v58 = vshrl.u32 %v443_v57, 7  ;;  %vm4874_vm4 = vcmask 1041408  }
  0xbb   : > { %vm8771_vm5 = vcmask 1043456   ;;  %vm16575_vm6 = vcmask 261127   ;;  %vm16644_vm7 = vcmask (!%p16811_p6), 253952  }
  0xbc   : > { %v1065_v29 = vsub.f32 %v1063_v15, %v1064_v23 }
  0xbe   : > { %v1066_v35 = vand.u32 4294901760, %v1065_v29  ;;  %v941_v29 = vld [vmem:[#allocation9 + $0x20] sm:$0xff] }
 0x13d   : > { %v417_v3 = vpop.xlane.xlu0 %416 }
 0x13e   : > { %v419_v4 = vmul.f32 0.03125, %v417_v3  ;;  %v958_v3 = vld [vmem:[#allocation11 + $0x18] sm:$0xff] }
 0x140   : > { %v420_v5 = vsub.f32 %v413_v1, %v419_v4  ;;  %v986_v1 = vand.u32 4294901760, %v937_v61  ;;  %v1476_v4 = vand.u32 4294901760, %v957_v2 }
 0x142   : > { %v421_v6 = vmul.f32 %v420_v5, %v420_v5  ;;  %v22230_v8 = vpack.c.bf16 %v986_v1, %v983_v0  ;;  %v1070_v19 = vsub.f32 %v937_v61, %v986_v1  ;;  %v1564_v20 = vsub.f32 %v957_v2, %v1476_v4 }
 0x143   : > { %v22267_v61 = vsub.s32 0, %v444_v58 }
 0x144   : > { %v422_v7 = vsel %vm414_vm1, %v421_v6, 0.0  ;;  %v1551_v6 = vand.u32 4294901760, %v1550_v62  ;;  %v1071_v26 = vand.u32 4294901760, %v1070_v19 }
 0x145   : > { %423 = vadd.xlane.f32.xlu0 %v422_v7  ;;  %v1558_v7 = vand.u32 4294901760, %v1557_v63  ;;  %24232 = vst [vmem:[#allocation20_spill] sm:$0xff] %v22267_v61 }
 0x146   : > { %v1552_v13 = vsub.f32 %v1550_v62, %v1551_v6  ;;  %v1072_v32 = vsub.f32 %v1070_v19, %v1071_v26 }
 0x147   : > { %v1559_v14 = vsub.f32 %v1557_v63, %v1558_v7 }
 0x148   : > { %v1073_v38 = vand.u32 4294901760, %v1072_v32  ;;  %v963_v32 = vld [vmem:[#allocation11 + $0x38] sm:$0xff] }
 0x149   : > { %v1560_v22 = vand.u32 4294901760, %v1559_v14 }
 0x1d2   : > { %v424_v42 = vpop.xlane.xlu0 %423 }
 0x1d3   : > { %v425_v43 = vmul.f32 0.03125, %v424_v42 }
 0x1d5   : > { %v426_v44 = vadd.f32 1e-05, %v425_v43  ;;  %v22245_v43 = vpack.c.bf16 %v1073_v38, %v1066_v35  ;;  %v944_v38 = vld [vmem:[#allocation9 + $0x38] sm:$0xff] }
 0x1d7   : > { %21618 = vrsqrt.f32 %v426_v44 }
 0x1e1   : > { %v21619_v45 = vpop.eup %21618 }
 0x1e2   : > { %v428_v47 = vmul.f32 %v21619_v45, %v420_v5  ;;  %v1479_v5 = vand.u32 4294901760, %v958_v3 }
 0x1e4   : > { %v436_v48 = vmul.f32 %v16807_v46, %v428_v47  ;;  %v22233_v9 = vpack.c.bf16 %v1479_v5, %v1476_v4  ;;  %v1571_v24 = vsub.f32 %v958_v3, %v1479_v5 }
 0x1e6   : > { %v449_v49 = vsel %vm414_vm1, %v436_v48, 0  ;;  %v1572_v30 = vand.u32 4294901760, %v1571_v24 }
 0x1e7   : > { %v520_v50 = vand.u32 4294901760, %v449_v49 }
 0x1e8   : > { %v1573_v36 = vsub.f32 %v1571_v24, %v1572_v30 }
 0x1e9   : > { %v521_v51 = vsub.f32 %v449_v49, %v520_v50  ;;  %v22251_v49 = vpack.c.bf16 %v1557_v63, %v1550_v62  ;;  %v437_v63 = vld [vmem:[%s24106_s2] sm:$0x1] }
 0x1ea   : > { %v22273_v0 = vrot.slane %v437_v63, %v22267_v61 }
 0x1eb   : > { %17842 = vmatmul.mubr.f32.vlgmr.msra.gmra.mrb[0].mxu0 %v521_v51  ;;  %v522_v52 = vand.u32 4294901760, %v521_v51 }
 0x1ec   : > { %20017 = vmatpush3.bf16.msra.mxu0 %v22194_v21  ;;  %17852 = vmatprep.mubr.msk.f32.mxu0 %vm21879_vm2, %v24121_v17 }
 0x1ed   : > { %20018 = vmatprep.subr.bf16.mxu0 %v24132_v11  ;;  %v523_v53 = vsub.f32 %v521_v51, %v522_v52  ;;  %v22255_v51 = vpack.c.bf16 %v1571_v24, %v1564_v20  ;;  %v961_v24 = vld [vmem:[#allocation11 + $0x28] sm:$0xff] }
 0x1ef   : > { %v524_v54 = vand.u32 4294901760, %v523_v53  ;;  %v22259_v53 = vpack.c.bf16 %v1558_v7, %v1551_v6 }
 0x1f0   : > { %20020 = vmatpush3.bf16.msra.mxu0 %v20001_v27 }
 0x1f1   : > { %17820 = vmatmul.mubr.f32.vlgmr.msra.gmra.mrb[0].mxu1 %v524_v54  ;;  %20021 = vmatprep.subr.bf16.mxu0 %v24132_v11  ;;  %v22261_v54 = vpack.c.bf16 %v1071_v26, %v1064_v23  ;;  %v960_v23 = vld [vmem:[#allocation11 + $0x20] sm:$0xff] }
 0x1f2   : > { %20005 = vmatpush3.bf16.msra.mxu1 %v20004_v34  ;;  %17830 = vmatprep.mubr.msk.f32.mxu1 %vm21879_vm2, %v24121_v17  ;;  %v1084_v34 = vsub.f32 %v939_v12, %v992_v18  ;;  %v2441_v26 = vand.u32 4294901760, %v960_v23 }
 0x1f3   : > { %17853 = vmatmul.mubr.f32.vlgmr.msra.gmra.mrb[0].mxu0 %v522_v52  ;;  %20006 = vmatprep.subr.bf16.mxu1 %v24132_v11 }
 0x1f4   : > { %20023 = vmatpush3.bf16.msra.mxu0 %v20022_v37  ;;  %17863 = vmatprep.mubr.msk.f32.mxu0 %vm21879_vm2, %v24121_v17  ;;  %v1078_v37 = vand.u32 4294901760, %v1077_v31  ;;  %v22257_v52 = vpack.c.bf16 %v1084_v34, %v1077_v31 }
 0x1f5   : > { %20024 = vmatprep.subr.bf16.mxu0 %v24132_v11 }
 0x1f6   : > { %20008 = vmatpush3.bf16.msra.mxu1 %v20007_v40  ;;  %v1085_v40 = vand.u32 4294901760, %v1084_v34  ;;  %v1079_v42 = vsub.f32 %v1077_v31, %v1078_v37  ;;  %v962_v31 = vld [vmem:[#allocation11 + $0x30] sm:$0xff] }
 0x1f7   : > { %20033 = vmatprep.subr.bf16.mxu1 %v24132_v11  ;;  %v2447_v35 = vand.u32 4294901760, %v962_v31 }
 0x1f8   : > { %20026 = vmatpush3.bf16.msra.mxu0 %v20025_v41  ;;  %v1574_v41 = vand.u32 4294901760, %v1573_v36  ;;  %v1086_v44 = vsub.f32 %v1084_v34, %v1085_v40  ;;  %v1080_v46 = vand.u32 4294901760, %v1079_v42  ;;  %v22265_v56 = vpack.c.bf16 %v1085_v40, %v1078_v37  ;;  %v943_v37 = vld [vmem:[#allocation9 + $0x30] sm:$0xff] }
 0x1f9   : > { %17831 = vmatmul.mubr.f32.vlgmr.msra.gmra.mrb[0].mxu1 %v520_v50  ;;  %20027 = vmatprep.subr.bf16.mxu0 %v24132_v11  ;;  %v2450_v36 = vand.u32 4294901760, %v963_v32  ;;  %v1965_v42 = vand.u32 4294901760, %v944_v38  ;;  %v22370_v58 = vsub.f32 %v962_v31, %v2447_v35 }
 0x1fa   : > { %17885 = vmatprep.mubr.msk.f32.mxu1 %vm21879_vm2, %v24121_v17  ;;  %20035 = vmatpush3.bf16.msra.mxu1 %v22230_v8  ;;  %v1087_v47 = vand.u32 4294901760, %v1086_v44 }
 0x1fb   : > { %17864 = vmatmul.mubr.f32.vlgmr.msra.gmra.mrb[0].mxu0 %v520_v50  ;;  %20036 = vmatprep.subr.bf16.mxu1 %v24132_v11 }
 0x1fc   : > { %20029 = vmatpush3.bf16.msra.mxu0 %v22194_v21  ;;  %17874 = vmatprep.mubr.msk.f32.mxu0 %vm21879_vm2, %v24121_v17  ;;  %v1553_v21 = vand.u32 4294901760, %v1552_v13  ;;  %v22249_v48 = vpack.c.bf16 %v1087_v47, %v1080_v46 }
 0x1fd   : > { %20030 = vmatprep.subr.bf16.mxu0 %v24132_v11 }
 0x1fe   : > { %v22241_v28 = vpack.c.bf16 %v1560_v22, %v1553_v21  ;;  %20038 = vmatpush3.bf16.msra.mxu1 %v22238_v25 }
 0x1ff   : > { %20039 = vmatprep.subr.bf16.mxu1 %v24132_v11 }
 0x200   : > { %20032 = vmatpush3.bf16.msra.mxu0 %v20001_v27  ;;  %v1565_v27 = vand.u32 4294901760, %v1564_v20 }
 0x201   : > { %20069 = vmatprep.subr.bf16.mxu0 %v24132_v11 }
 0x202   : > { %v1566_v33 = vsub.f32 %v1564_v20, %v1565_v27  ;;  %v22263_v55 = vpack.c.bf16 %v1572_v30, %v1565_v27  ;;  %v2444_v27 = vand.u32 4294901760, %v961_v24  ;;  %v942_v30 = vld [vmem:[#allocation9 + $0x28] sm:$0xff] }
 0x203   : > { %17875 = vmatmul.mubr.f32.vlgmr.msra.gmra.mrb[0].mxu0 %v520_v50  ;;  %v22253_v50 = vpack.c.bf16 %v1070_v19, %v1063_v15  ;;  %v1959_v34 = vand.u32 4294901760, %v942_v30 }
 0x204   : > { %17951 = vmatprep.mubr.msk.f32.mxu0 %vm21879_vm2, %v24121_v17  ;;  %20071 = vmatpush3.bf16.msra.mxu0 %v22227_v59  ;;  %v1567_v39 = vand.u32 4294901760, %v1566_v33  ;;  %v1956_v33 = vand.u32 4294901760, %v941_v29  ;;  %v22357_v40 = vsub.f32 %v961_v24, %v2444_v27 }
 0x205   : > { %20072 = vmatprep.subr.bf16.mxu0 %v24132_v11  ;;  %v22364_v46 = vsub.f32 %v942_v30, %v1959_v34 }
 0x206   : > { %v22247_v45 = vpack.c.bf16 %v1574_v41, %v1567_v39  ;;  %v22355_v39 = vsub.f32 %v960_v23, %v2441_v26  ;;  %v1962_v41 = vand.u32 4294901760, %v943_v37  ;;  %v22362_v44 = vsub.f32 %v941_v29, %v1956_v33 }
 0x207   : > { %v2529_v57 = vand.u32 4294901760, %v22357_v40 }
 0x208   : > { %20074 = vmatpush3.bf16.msra.mxu0 %v22233_v9  ;;  %v2522_v47 = vand.u32 4294901760, %v22355_v39 }
 0x209   : > { %20075 = vmatprep.subr.bf16.mxu0 %v24132_v11 }
 0x2cc   : > { %v617_v60 = vpop.f32.mrb[0].mxu1 }
 0x2cd   : > { %v17832_v62 = vpop.f32.mrb[1].mxu1  ;;  %v21185_v1 = vadd.f32 %v617_v60, %v22273_v0  ;;  %v22372_v60 = vsub.f32 %v963_v32, %v2450_v36  ;;  %v22426_v32 = vpack.c.bf16 %v1965_v42, %v1962_v41 }
 0x2ce   : > { %v22378_v62 = vpack.c.bf16 %v2444_v27, %v2441_v26 }
 0x2d6   : > { %v932_v2 = vpop.f32.mrb[0].mxu0 }
 0x2d7   : > { %v21186_v3 = vadd.f32 %v21185_v1, %v932_v2  ;;  %v17876_v4 = vpop.f32.mrb[1].mxu0  ;;  %v2044_v1 = vand.u32 4294901760, %v22364_v46  ;;  %v22385_v2 = vsub.f32 %v943_v37, %v1962_v41 }
 0x2d8   : > { %v2523_v4 = vsub.f32 %v22355_v39, %v2522_v47 }
 0x2d9   : > { %v975_v5 = vrot.slane %v21186_v3, 7  ;;  %v1467_v6 = vsel %vm414_vm1, %v21186_v3, 0  ;;  %v22387_v3 = vsub.f32 %v944_v38, %v1965_v42  ;;  %v2045_v23 = vsub.f32 %v22364_v46, %v2044_v1 }
 0x2da   : > { %v22277_v7 = vand.u32 4294901760, %v1467_v6  ;;  %v2051_v24 = vand.u32 4294901760, %v22385_v2  ;;  %v2524_v27 = vand.u32 4294901760, %v2523_v4 }
 0x2db   : > { %v978_v10 = vsel %vm977_vm3, %v437_v63, %v975_v5  ;;  %v2037_v63 = vand.u32 4294901760, %v22362_v44  ;;  %v2530_v5 = vsub.f32 %v22357_v40, %v2529_v57  ;;  %v2058_v26 = vand.u32 4294901760, %v22387_v3 }
 0x2dc   : > { %v980_v12 = vsel %vm414_vm1, %v978_v10, 0  ;;  %v22281_v13 = vsub.f32 %v1467_v6, %v22277_v7  ;;  %v2536_v6 = vand.u32 4294901760, %v22370_v58  ;;  %v2543_v10 = vand.u32 4294901760, %v22372_v60 }
 0x2dd   : > { %v22283_v14 = vand.u32 4294901760, %v980_v12  ;;  %v2531_v29 = vand.u32 4294901760, %v2530_v5 }
 0x2de   : > { %v22286_v15 = vand.u32 4294901760, %v22281_v13  ;;  %v2537_v30 = vsub.f32 %v22370_v58, %v2536_v6  ;;  %v2544_v31 = vsub.f32 %v22372_v60, %v2543_v10 }
 0x2df   : > { %v22289_v16 = vsub.f32 %v980_v12, %v22283_v14  ;;  %v22400_v12 = vpack.c.bf16 %v1959_v34, %v1956_v33  ;;  %v2046_v34 = vand.u32 4294901760, %v2045_v23  ;;  %v22439_v37 = vpack.c.bf16 %v2531_v29, %v2524_v27 }
 0x2e0   : > { %v1541_v18 = vsub.f32 %v22281_v13, %v22286_v15  ;;  %v2538_v38 = vand.u32 4294901760, %v2537_v30  ;;  %v2545_v41 = vand.u32 4294901760, %v2544_v31  ;;  %v22463_v27 = vpack.c.bf16 %v22357_v40, %v22355_v39 }
 0x2e1   : > { %v22294_v19 = vand.u32 4294901760, %v22289_v16  ;;  %v22470_v29 = vpack.c.bf16 %v22364_v46, %v22362_v44  ;;  %v22476_v30 = vpack.c.bf16 %v22372_v60, %v22370_v58  ;;  %v22485_v31 = vpack.c.bf16 %v22387_v3, %v22385_v2  ;;  %v968_v46 = vld [vmem:[#allocation11 + $0x58] sm:$0xff] }
 0x2e2   : > { %v22296_v20 = vand.u32 4294901760, %v1541_v18  ;;  %v22402_v18 = vpack.c.bf16 %v2450_v36, %v2447_v35  ;;  %v2052_v35 = vsub.f32 %v22385_v2, %v2051_v24  ;;  %v2059_v36 = vsub.f32 %v22387_v3, %v2058_v26 }
 0x2e3   : > { %v1054_v21 = vsub.f32 %v22289_v16, %v22294_v19  ;;  %24233 = vst [vmem:[#allocation21_spill] sm:$0xff] %v22476_v30  ;;  %24234 = vst [vmem:[#allocation22_spill] sm:$0xff] %v22485_v31  ;;  %v22526_v39 = vpack.c.bf16 %v2543_v10, %v2536_v6  ;;  %v22537_v58 = vpack.c.bf16 %v2058_v26, %v2051_v24  ;;  %v3422_v6 = vand.u32 4294901760, %v968_v46  ;;  %v948_v10 = vld [vmem:[#allocation9 + $0x50] sm:$0xff] }
 0x2e4   : > { %17952 = vmatmul.mubr.f32.vlgmr.msra.gmra.mrb[2].mxu0 %v22296_v20  ;;  %v2053_v4 = vand.u32 4294901760, %v2052_v35  ;;  %v2060_v5 = vand.u32 4294901760, %v2059_v36  ;;  %v966_v35 = vld [vmem:[#allocation11 + $0x48] sm:$0xff]  ;;  %v22518_v36 = vpack.c.bf16 %v2044_v1, %v2037_v63  ;;  %v2934_v3 = vand.u32 4294901760, %v948_v10 }
 0x2e5   : > { %20077 = vmatpush3.bf16.msra.mxu0 %v22241_v28  ;;  %v22302_v22 = vand.u32 4294901760, %v1054_v21  ;;  %17962 = vmatprep.mubr.msk.f32.mxu0 %vm21879_vm2, %v24121_v17  ;;  %v2038_v21 = vsub.f32 %v22362_v44, %v2037_v63  ;;  %24237 = vst [vmem:[#allocation25_spill] sm:$0xff] %v22526_v39  ;;  %v967_v44 = vld [vmem:[#allocation11 + $0x50] sm:$0xff]  ;;  %24238 = vst [vmem:[#allocation26_spill] sm:$0xff] %v22537_v58  ;;  %v22560_v61 = vsub.f32 %v968_v46, %v3422_v6 }
 0x2e6   : > { %20078 = vmatprep.subr.bf16.mxu0 %v24132_v11  ;;  %v22455_v23 = vpack.c.bf16 %v2060_v5, %v2053_v4  ;;  %24236 = vst [vmem:[#allocation24_spill] sm:$0xff] %v22518_v36  ;;  %v3419_v1 = vand.u32 4294901760, %v967_v44  ;;  %v22573_v46 = vsub.f32 %v948_v10, %v2934_v3 }
 0x2e7   : > { %17886 = vmatmul.mubr.f32.vlgmr.msra.gmra.mrb[2].mxu1 %v22302_v22  ;;  %v2039_v33 = vand.u32 4294901760, %v2038_v21  ;;  %v22448_v21 = vpack.c.bf16 %v2545_v41, %v2538_v38  ;;  %v947_v38 = vld [vmem:[#allocation9 + $0x48] sm:$0xff]  ;;  %v949_v41 = vld [vmem:[#allocation9 + $0x58] sm:$0xff] }
 0x2e8   : > { %20041 = vmatpush3.bf16.msra.mxu1 %v22245_v43  ;;  %17896 = vmatprep.mubr.msk.f32.mxu1 %vm21879_vm2, %v24121_v17  ;;  %v2931_v63 = vand.u32 4294901760, %v947_v38  ;;  %v2937_v24 = vand.u32 4294901760, %v949_v41 }
 0x2e9   : > { %20080 = vmatpush3.bf16.msra.mxu0 %v22247_v45  ;;  %20042 = vmatprep.subr.bf16.mxu1 %v24132_v11  ;;  %v22444_v42 = vpack.c.bf16 %v2046_v34, %v2039_v33  ;;  %v22509_v33 = vpack.c.bf16 %v2529_v57, %v2522_v47  ;;  %v965_v34 = vld [vmem:[#allocation11 + $0x40] sm:$0xff]  ;;  %v3416_v47 = vand.u32 4294901760, %v966_v35 }
 0x2ea   : > { %20081 = vmatprep.subr.bf16.mxu0 %v24132_v11  ;;  %v3413_v40 = vand.u32 4294901760, %v965_v34  ;;  %v946_v57 = vld [vmem:[#allocation9 + $0x40] sm:$0xff]  ;;  %v22552_v5 = vsub.f32 %v947_v38, %v2931_v63 }
 0x2eb   : > { %24235 = vst [vmem:[#allocation23_spill] sm:$0xff] %v22509_v33  ;;  %v2928_v60 = vand.u32 4294901760, %v946_v57  ;;  %v22545_v2 = vsub.f32 %v966_v35, %v3416_v47  ;;  %v22575_v35 = vsub.f32 %v949_v41, %v2937_v24  ;;  %v22590_v41 = vpack.c.bf16 %v3422_v6, %v3419_v1 }
 0x2ec   : > { %20044 = vmatpush3.bf16.msra.mxu1 %v22249_v48  ;;  %17963 = vmatmul.mubr.f32.vlgmr.msra.gmra.mrb[2].mxu0 %v22277_v7  ;;  %v22543_v4 = vsub.f32 %v965_v34, %v3413_v40 }
 0x2ed   : > { %20083 = vmatpush3.bf16.msra.mxu0 %v22251_v49  ;;  %20045 = vmatprep.subr.bf16.mxu1 %v24132_v11  ;;  %v22550_v26 = vsub.f32 %v946_v57, %v2928_v60  ;;  %v22566_v57 = vpack.c.bf16 %v3416_v47, %v3413_v40  ;;  %v24241_v47 = vand.u32 4294901760, %v22545_v2  ;;  %v22588_v10 = vpack.c.bf16 %v2931_v63, %v2928_v60 }
 0x2ee   : > { %20084 = vmatprep.subr.bf16.mxu0 %v24132_v11  ;;  %17973 = vmatprep.mubr.msk.f32.mxu0 %vm21879_vm2, %v24121_v17  ;;  %v24129_v34 = vand.u32 4294901760, %v22543_v4  ;;  %24243 = vst [vmem:[#allocation29_spill] sm:$0xff] %v22590_v41  ;;  %v24246_v60 = vmov 0.0|0.0  }
 0x2ef   : > { %17897 = vmatmul.mubr.f32.vlgmr.msra.gmra.mrb[2].mxu1 %v22283_v14  ;;  %24240 = vst [vmem:[#allocation27_spill] sm:$0xff] %v22566_v57  ;;  %24242 = vst [vmem:[#allocation28_spill] sm:$0xff] %v22588_v10 }
 0x2f0   : > { %20047 = vmatpush3.bf16.msra.mxu1 %v22253_v50  ;;  %17907 = vmatprep.mubr.msk.f32.mxu1 %vm21879_vm2, %v24121_v17  ;;  %v3495_v40 = vsub.f32 %v22543_v4, %v24129_v34  ;;  %v24244_v34 = vand.u32 4294901760, %v22550_v26 }
 0x2f1   : > { %20086 = vmatpush3.bf16.msra.mxu0 %v22255_v51  ;;  %20048 = vmatprep.subr.bf16.mxu1 %v24132_v11 }
 0x2f2   : > { %20087 = vmatprep.subr.bf16.mxu0 %v24132_v11  ;;  %v3496_v63 = vand.u32 4294901760, %v3495_v40 }
 0x2f4   : > { %20050 = vmatpush3.bf16.msra.mxu1 %v22257_v52  ;;  %17974 = vmatmul.mubr.f32.vlgmr.msra.gmra.mrb[2].mxu0 %v22281_v13 }
 0x2f5   : > { %20089 = vmatpush3.bf16.msra.mxu0 %v22227_v59  ;;  %20051 = vmatprep.subr.bf16.mxu1 %v24132_v11 }
 0x2f6   : > { %20090 = vmatprep.subr.bf16.mxu0 %v24132_v11  ;;  %17984 = vmatprep.mubr.msk.f32.mxu0 %vm21879_vm2, %v24121_v17 }
 0x2f7   : > { %17908 = vmatmul.mubr.f32.vlgmr.msra.gmra.mrb[2].mxu1 %v22289_v16 }
 0x2f8   : > { %20053 = vmatpush3.bf16.msra.mxu1 %v22230_v8  ;;  %17918 = vmatprep.mubr.msk.f32.mxu1 %vm21879_vm2, %v24121_v17 }
 0x2f9   : > { %20092 = vmatpush3.bf16.msra.mxu0 %v22233_v9  ;;  %20054 = vmatprep.subr.bf16.mxu1 %v24132_v11 }
 0x2fa   : > { %20093 = vmatprep.subr.bf16.mxu0 %v24132_v11 }
 0x2fc   : > { %20056 = vmatpush3.bf16.msra.mxu1 %v22238_v25  ;;  %17985 = vmatmul.mubr.f32.vlgmr.msra.gmra.mrb[2].mxu0 %v22286_v15 }
 0x2fd   : > { %20095 = vmatpush3.bf16.msra.mxu0 %v22259_v53  ;;  %20057 = vmatprep.subr.bf16.mxu1 %v24132_v11 }
 0x2fe   : > { %20096 = vmatprep.subr.bf16.mxu0 %v24132_v11  ;;  %17995 = vmatprep.mubr.msk.f32.mxu0 %vm21879_vm2, %v24121_v17 }
 0x2ff   : > { %17919 = vmatmul.mubr.f32.vlgmr.msra.gmra.mrb[2].mxu1 %v22294_v19 }
 0x300   : > { %20059 = vmatpush3.bf16.msra.mxu1 %v22261_v54  ;;  %17929 = vmatprep.mubr.msk.f32.mxu1 %vm21879_vm2, %v24121_v17 }
 0x301   : > { %20098 = vmatpush3.bf16.msra.mxu0 %v22263_v55  ;;  %20060 = vmatprep.subr.bf16.mxu1 %v24132_v11 }
 0x302   : > { %20099 = vmatprep.subr.bf16.mxu0 %v24132_v11 }
 0x304   : > { %20062 = vmatpush3.bf16.msra.mxu1 %v22265_v56  ;;  %17996 = vmatmul.mubr.f32.vlgmr.msra.gmra.mrb[2].mxu0 %v22277_v7 }
 0x305   : > { %20101 = vmatpush3.bf16.msra.mxu0 %v22227_v59  ;;  %20063 = vmatprep.subr.bf16.mxu1 %v24132_v11 }
 0x306   : > { %20102 = vmatprep.subr.bf16.mxu0 %v24132_v11  ;;  %18006 = vmatprep.mubr.msk.f32.mxu0 %vm21879_vm2, %v24121_v17 }
 0x307   : > { %17930 = vmatmul.mubr.f32.vlgmr.msra.gmra.mrb[2].mxu1 %v22283_v14 }
 0x308   : > { %20065 = vmatpush3.bf16.msra.mxu1 %v22230_v8  ;;  %17940 = vmatprep.mubr.msk.f32.mxu1 %vm21879_vm2, %v24121_v17 }
 0x309   : > { %20104 = vmatpush3.bf16.msra.mxu0 %v22233_v9  ;;  %20066 = vmatprep.subr.bf16.mxu1 %v24132_v11 }
 0x30a   : > { %20141 = vmatprep.subr.bf16.mxu0 %v24132_v11 }
 0x30c   : > { %20068 = vmatpush3.bf16.msra.mxu1 %v22238_v25  ;;  %18007 = vmatmul.mubr.f32.vlgmr.msra.gmra.mrb[2].mxu0 %v22277_v7 }
 0x30d   : > { %20143 = vmatpush3.bf16.msra.mxu0 %v22378_v62  ;;  %20105 = vmatprep.subr.bf16.mxu1 %v24132_v11 }
 0x30e   : > { %20144 = vmatprep.subr.bf16.mxu0 %v24132_v11  ;;  %18083 = vmatprep.mubr.msk.f32.mxu0 %vm21879_vm2, %v24121_v17 }
 0x30f   : > { %17941 = vmatmul.mubr.f32.vlgmr.msra.gmra.mrb[2].mxu1 %v22283_v14 }
 0x310   : > { %20107 = vmatpush3.bf16.msra.mxu1 %v22400_v12  ;;  %18017 = vmatprep.mubr.msk.f32.mxu1 %vm21879_vm2, %v24121_v17 }
 0x311   : > { %20146 = vmatpush3.bf16.msra.mxu0 %v22402_v18  ;;  %20108 = vmatprep.subr.bf16.mxu1 %v24132_v11 }
 0x312   : > { %20147 = vmatprep.subr.bf16.mxu0 %v24132_v11 }
 0x314   : > { %20110 = vmatpush3.bf16.msra.mxu1 %v22426_v32  ;;  %18084 = vmatmul.mubr.f32.vlgmr.msra.gmra.mrb[4].mxu0 %v22296_v20 }
 0x315   : > { %20149 = vmatpush3.bf16.msra.mxu0 %v22439_v37  ;;  %20111 = vmatprep.subr.bf16.mxu1 %v24132_v11 }
 0x316   : > { %20150 = vmatprep.subr.bf16.mxu0 %v24132_v11  ;;  %18094 = vmatprep.mubr.msk.f32.mxu0 %vm21879_vm2, %v24121_v17 }
 0x317   : > { %18018 = vmatmul.mubr.f32.vlgmr.msra.gmra.mrb[4].mxu1 %v22302_v22 }
 0x318   : > { %20113 = vmatpush3.bf16.msra.mxu1 %v22444_v42  ;;  %18028 = vmatprep.mubr.msk.f32.mxu1 %vm21879_vm2, %v24121_v17 }
 0x319   : > { %20152 = vmatpush3.bf16.msra.mxu0 %v22448_v21  ;;  %20114 = vmatprep.subr.bf16.mxu1 %v24132_v11 }
 0x31a   : > { %20153 = vmatprep.subr.bf16.mxu0 %v24132_v11 }
 0x31c   : > { %20116 = vmatpush3.bf16.msra.mxu1 %v22455_v23  ;;  %18095 = vmatmul.mubr.f32.vlgmr.msra.gmra.mrb[4].mxu0 %v22277_v7 }
 0x31d   : > { %20155 = vmatpush3.bf16.msra.mxu0 %v22463_v27  ;;  %20117 = vmatprep.subr.bf16.mxu1 %v24132_v11 }
 0x31e   : > { %20156 = vmatprep.subr.bf16.mxu0 %v24132_v11  ;;  %18105 = vmatprep.mubr.msk.f32.mxu0 %vm21879_vm2, %v24121_v17 }
 0x31f   : > { %18029 = vmatmul.mubr.f32.vlgmr.msra.gmra.mrb[4].mxu1 %v22283_v14 }
 0x320   : > { %20119 = vmatpush3.bf16.msra.mxu1 %v22470_v29  ;;  %18039 = vmatprep.mubr.msk.f32.mxu1 %vm21879_vm2, %v24121_v17 }
 0x321   : > { %20158 = vmatpush3.bf16.msra.mxu0 %v22476_v30  ;;  %20120 = vmatprep.subr.bf16.mxu1 %v24132_v11 }
 0x322   : > { %20159 = vmatprep.subr.bf16.mxu0 %v24132_v11 }
 0x324   : > { %20122 = vmatpush3.bf16.msra.mxu1 %v22485_v31  ;;  %18106 = vmatmul.mubr.f32.vlgmr.msra.gmra.mrb[4].mxu0 %v22281_v13 }
 0x325   : > { %20161 = vmatpush3.bf16.msra.mxu0 %v22378_v62  ;;  %20123 = vmatprep.subr.bf16.mxu1 %v24132_v11 }
 0x326   : > { %20162 = vmatprep.subr.bf16.mxu0 %v24132_v11  ;;  %18116 = vmatprep.mubr.msk.f32.mxu0 %vm21879_vm2, %v24121_v17 }
 0x327   : > { %18040 = vmatmul.mubr.f32.vlgmr.msra.gmra.mrb[4].mxu1 %v22289_v16 }
 0x328   : > { %20125 = vmatpush3.bf16.msra.mxu1 %v22400_v12  ;;  %18050 = vmatprep.mubr.msk.f32.mxu1 %vm21879_vm2, %v24121_v17 }
 0x329   : > { %20164 = vmatpush3.bf16.msra.mxu0 %v22402_v18  ;;  %20126 = vmatprep.subr.bf16.mxu1 %v24132_v11 }
 0x32a   : > { %20165 = vmatprep.subr.bf16.mxu0 %v24132_v11 }
 0x32c   : > { %20128 = vmatpush3.bf16.msra.mxu1 %v22426_v32  ;;  %18117 = vmatmul.mubr.f32.vlgmr.msra.gmra.mrb[4].mxu0 %v22286_v15 }
 0x32d   : > { %20167 = vmatpush3.bf16.msra.mxu0 %v22509_v33  ;;  %20129 = vmatprep.subr.bf16.mxu1 %v24132_v11 }
 0x32e   : > { %20168 = vmatprep.subr.bf16.mxu0 %v24132_v11  ;;  %18127 = vmatprep.mubr.msk.f32.mxu0 %vm21879_vm2, %v24121_v17 }
 0x32f   : > { %18051 = vmatmul.mubr.f32.vlgmr.msra.gmra.mrb[4].mxu1 %v22294_v19 }
 0x330   : > { %20131 = vmatpush3.bf16.msra.mxu1 %v22518_v36  ;;  %18061 = vmatprep.mubr.msk.f32.mxu1 %vm21879_vm2, %v24121_v17  ;;  %v22558_v17 = vsub.f32 %v967_v44, %v3419_v1  ;;  %v3010_v36 = vsub.f32 %v22550_v26, %v24244_v34  ;;  %v24140_v44 = vand.u32 4294901760, %v22573_v46  ;;  %v24248_v34 = vand.u32 4294901760, %v22560_v61 }
 0x331   : > { %20170 = vmatpush3.bf16.msra.mxu0 %v22526_v39  ;;  %20132 = vmatprep.subr.bf16.mxu1 %v24132_v11  ;;  %v3502_v39 = vsub.f32 %v22545_v2, %v24241_v47  ;;  %v24245_v47 = vand.u32 4294901760, %v22552_v5 }
 0x332   : > { %20171 = vmatprep.subr.bf16.mxu0 %v24132_v11  ;;  %v24247_v6 = vand.u32 4294901760, %v22558_v17  ;;  %v3516_v31 = vsub.f32 %v22560_v61, %v24248_v34 }
 0x333   : > { %v3017_v38 = vsub.f32 %v22552_v5, %v24245_v47  ;;  %v3503_v1 = vand.u32 4294901760, %v3502_v39  ;;  %v22614_v47 = vpack.c.bf16 %v2937_v24, %v2934_v3  ;;  %v3011_v39 = vand.u32 4294901760, %v3010_v36 }
 0x334   : > { %20134 = vmatpush3.bf16.msra.mxu1 %v22537_v58  ;;  %18128 = vmatmul.mubr.f32.vlgmr.msra.gmra.mrb[4].mxu0 %v22277_v7  ;;  %v24239_v58 = vmov 0.0   ;;  %v3509_v33 = vsub.f32 %v22558_v17, %v24247_v6  ;;  %v3024_v6 = vsub.f32 %v22573_v46, %v24140_v44  ;;  %v3517_v30 = vand.u32 4294901760, %v3516_v31 }
 0x335   : > { %20173 = vmatpush3.bf16.msra.mxu0 %v22378_v62  ;;  %20135 = vmatprep.subr.bf16.mxu1 %v24132_v11  ;;  %24249 = vst [vmem:[#allocation30_spill] sm:$0xff] %v22614_v47  ;;  %v3018_v40 = vand.u32 4294901760, %v3017_v38  ;;  %v22627_v3 = vpack.c.bf16 %v3503_v1, %v3496_v63  ;;  %v22673_v63 = vpack.c.bf16 %v22575_v35, %v22573_v46  ;;  %v24258_v1 = vand.u32 4294901760, %v22543_v4 }
 0x336   : > { %20174 = vmatprep.subr.bf16.mxu0 %v24132_v11  ;;  %18138 = vmatprep.mubr.msk.f32.mxu0 %vm21879_vm2, %v24239_v58  ;;  %v3510_v24 = vand.u32 4294901760, %v3509_v33  ;;  %v3025_v38 = vand.u32 4294901760, %v3024_v6  ;;  %v22658_v33 = vpack.c.bf16 %v22552_v5, %v22550_v26  ;;  %v970_v6 = vld [vmem:[#allocation11 + $0x60] sm:$0xff] }
 0x337   : > { %18062 = vmatmul.mubr.f32.vlgmr.msra.gmra.mrb[4].mxu1 %v22283_v14  ;;  %24250 = vst [vmem:[#allocation31_spill] sm:$0xff] %v22627_v3  ;;  %v22632_v36 = vpack.c.bf16 %v3018_v40, %v3011_v39  ;;  %24257 = vst [vmem:[#allocation38_spill] sm:$0xff] %v22673_v63  ;;  %v24259_v39 = vand.u32 4294901760, %v22545_v2 }
 0x338   : > { %20137 = vmatpush3.bf16.msra.mxu1 %v22400_v12  ;;  %18072 = vmatprep.mubr.msk.f32.mxu1 %vm21879_vm2, %v24239_v58  ;;  %24255 = vst [vmem:[#allocation36_spill] sm:$0xff] %v22658_v33 }
 0x339   : > { %20176 = vmatpush3.bf16.msra.mxu0 %v22402_v18  ;;  %20138 = vmatprep.subr.bf16.mxu1 %v24132_v11  ;;  %24251 = vst [vmem:[#allocation32_spill] sm:$0xff] %v22632_v36  ;;  %v22697_v40 = vpack.c.bf16 %v24259_v39, %v24258_v1  ;;  %v4385_v39 = vand.u32 4294901760, %v970_v6 }
 0x33a   : > { %20213 = vmatprep.subr.bf16.mxu0 %v24132_v11  ;;  %v24141_v11 = vand.u32 4294901760, %v22575_v35 }
 0x33b   : > { %24260 = vst [vmem:[#allocation39_spill] sm:$0xff] %v22697_v40 }
 0x33c   : > { %20140 = vmatpush3.bf16.msra.mxu1 %v22426_v32  ;;  %18139 = vmatmul.mubr.f32.vlgmr.msra.gmra.mrb[4].mxu0 %v22277_v7  ;;  %v3031_v34 = vsub.f32 %v22575_v35, %v24141_v11  ;;  %v22636_v11 = vpack.c.bf16 %v3517_v30, %v3510_v24  ;;  %v22651_v30 = vpack.c.bf16 %v22545_v2, %v22543_v4  ;;  %v24261_v24 = vand.u32 4294901760, %v22550_v26  ;;  %v972_v26 = vld [vmem:[#allocation11 + $0x70] sm:$0xff] }
 0x33d   : > { %20215 = vmatpush3.bf16.msra.mxu0 %v22566_v57  ;;  %20177 = vmatprep.subr.bf16.mxu1 %v24246_v60  ;;  %v24264_v4 = vand.u32 4294901760, %v22558_v17  ;;  %v24265_v2 = vand.u32 4294901760, %v22560_v61 }
 0x33e   : > { %20216 = vmatprep.subr.bf16.mxu0 %v24246_v60  ;;  %18215 = vmatprep.mubr.msk.f32.mxu0 %vm21879_vm2, %v24239_v58  ;;  %v3032_v44 = vand.u32 4294901760, %v3031_v34  ;;  %24252 = vst [vmem:[#allocation33_spill] sm:$0xff] %v22636_v11  ;;  %24254 = vst [vmem:[#allocation35_spill] sm:$0xff] %v22651_v30  ;;  %v971_v34 = vld [vmem:[#allocation11 + $0x68] sm:$0xff] }
 0x33f   : > { %18073 = vmatmul.mubr.f32.vlgmr.msra.gmra.mrb[4].mxu1 %v22283_v14  ;;  %v22714_v1 = vpack.c.bf16 %v24265_v2, %v24264_v4  ;;  %v4391_v2 = vand.u32 4294901760, %v972_v26 }
 0x340   : > { %20179 = vmatpush3.bf16.msra.mxu1 %v22588_v10  ;;  %18149 = vmatprep.mubr.msk.f32.mxu1 %vm21879_vm2, %v24239_v58  ;;  %v22643_v31 = vpack.c.bf16 %v3032_v44, %v3025_v38  ;;  %v22664_v44 = vpack.c.bf16 %v22560_v61, %v22558_v17  ;;  %v24262_v38 = vand.u32 4294901760, %v22552_v5  ;;  %v973_v5 = vld [vmem:[#allocation11 + $0x78] sm:$0xff]  ;;  %v24267_v17 = vand.u32 4294901760, %v22573_v46 }
 0x341   : > { %20218 = vmatpush3.bf16.msra.mxu0 %v22590_v41  ;;  %20180 = vmatprep.subr.bf16.mxu1 %v24246_v60  ;;  %24266 = vst [vmem:[#allocation41_spill] sm:$0xff] %v22714_v1  ;;  %v24268_v61 = vand.u32 4294901760, %v22575_v35 }
 0x342   : > { %20219 = vmatprep.subr.bf16.mxu0 %v24246_v60  ;;  %24253 = vst [vmem:[#allocation34_spill] sm:$0xff] %v22643_v31  ;;  %24256 = vst [vmem:[#allocation37_spill] sm:$0xff] %v22664_v44 }
 0x344   : > { %20182 = vmatpush3.bf16.msra.mxu1 %v22614_v47  ;;  %18216 = vmatmul.mubr.f32.vlgmr.msra.gmra.mrb[6].mxu0 %v22296_v20 }
 0x345   : > { %20221 = vmatpush3.bf16.msra.mxu0 %v22627_v3  ;;  %20183 = vmatprep.subr.bf16.mxu1 %v24246_v60 }
 0x346   : > { %20222 = vmatprep.subr.bf16.mxu0 %v24246_v60  ;;  %18226 = vmatprep.mubr.msk.f32.mxu0 %vm21879_vm2, %v24239_v58 }
 0x347   : > { %18150 = vmatmul.mubr.f32.vlgmr.msra.gmra.mrb[6].mxu1 %v22302_v22 }
 0x348   : > { %20185 = vmatpush3.bf16.msra.mxu1 %v22632_v36  ;;  %18160 = vmatprep.mubr.msk.f32.mxu1 %vm21879_vm2, %v24239_v58  ;;  %v22746_v36 = vsub.f32 %v972_v26, %v4391_v2 }
 0x349   : > { %20224 = vmatpush3.bf16.msra.mxu0 %v22636_v11  ;;  %20186 = vmatprep.subr.bf16.mxu1 %v24246_v60  ;;  %v954_v11 = vld [vmem:[#allocation9 + $0x78] sm:$0xff] }
 0x34a   : > { %20225 = vmatprep.subr.bf16.mxu0 %v24246_v60 }
 0x34c   : > { %20188 = vmatpush3.bf16.msra.mxu1 %v22643_v31  ;;  %18227 = vmatmul.mubr.f32.vlgmr.msra.gmra.mrb[6].mxu0 %v22277_v7  ;;  %v953_v31 = vld [vmem:[#allocation9 + $0x70] sm:$0xff] }
 0x34d   : > { %20227 = vmatpush3.bf16.msra.mxu0 %v22651_v30  ;;  %20189 = vmatprep.subr.bf16.mxu1 %v24246_v60  ;;  %v952_v30 = vld [vmem:[#allocation9 + $0x68] sm:$0xff]  ;;  %v3906_v35 = vand.u32 4294901760, %v953_v31 }
 0x34e   : > { %20228 = vmatprep.subr.bf16.mxu0 %v24246_v60  ;;  %18237 = vmatprep.mubr.msk.f32.mxu0 %vm21879_vm2, %v24239_v58  ;;  %v3903_v4 = vand.u32 4294901760, %v952_v30 }
 0x34f   : > { %18161 = vmatmul.mubr.f32.vlgmr.msra.gmra.mrb[6].mxu1 %v22283_v14 }
 0x350   : > { %20191 = vmatpush3.bf16.msra.mxu1 %v22658_v33  ;;  %18171 = vmatprep.mubr.msk.f32.mxu1 %vm21879_vm2, %v24239_v58  ;;  %v951_v33 = vld [vmem:[#allocation9 + $0x60] sm:$0xff] }
 0x351   : > { %20230 = vmatpush3.bf16.msra.mxu0 %v22664_v44  ;;  %20192 = vmatprep.subr.bf16.mxu1 %v24246_v60  ;;  %v4388_v44 = vand.u32 4294901760, %v971_v34 }
 0x352   : > { %20231 = vmatprep.subr.bf16.mxu0 %v24246_v60 }
 0x353   : > { %v22733_v46 = vsub.f32 %v971_v34, %v4388_v44 }
 0x354   : > { %20194 = vmatpush3.bf16.msra.mxu1 %v22673_v63  ;;  %18238 = vmatmul.mubr.f32.vlgmr.msra.gmra.mrb[6].mxu0 %v22281_v13  ;;  %v22706_v63 = vpack.c.bf16 %v24262_v38, %v24261_v24  ;;  %v22725_v24 = vpack.c.bf16 %v24268_v61, %v24267_v17  ;;  %v3900_v38 = vand.u32 4294901760, %v951_v33  ;;  %v3909_v17 = vand.u32 4294901760, %v954_v11 }
 0x355   : > { %20233 = vmatpush3.bf16.msra.mxu0 %v22566_v57  ;;  %20195 = vmatprep.subr.bf16.mxu1 %v24246_v60 }
 0x356   : > { %20234 = vmatprep.subr.bf16.mxu0 %v24246_v60  ;;  %18248 = vmatprep.mubr.msk.f32.mxu0 %vm21879_vm2, %v24239_v58  ;;  %24263 = vst [vmem:[#allocation40_spill] sm:$0xff] %v22706_v63  ;;  %24269 = vst [vmem:[#allocation42_spill] sm:$0xff] %v22725_v24  ;;  %v22738_v61 = vsub.f32 %v951_v33, %v3900_v38  ;;  %v22763_v34 = vsub.f32 %v954_v11, %v3909_v17 }
 0x357   : > { %18172 = vmatmul.mubr.f32.vlgmr.msra.gmra.mrb[6].mxu1 %v22289_v16  ;;  %v22776_v11 = vpack.c.bf16 %v3903_v4, %v3900_v38 }
 0x358   : > { %20197 = vmatpush3.bf16.msra.mxu1 %v22588_v10  ;;  %18182 = vmatprep.mubr.msk.f32.mxu1 %vm21879_vm2, %v24239_v58 }
 0x359   : > { %20236 = vmatpush3.bf16.msra.mxu0 %v22590_v41  ;;  %20198 = vmatprep.subr.bf16.mxu1 %v24246_v60  ;;  %24272 = vst [vmem:[#allocation44_spill] sm:$0xff] %v22776_v11 }
 0x35a   : > { %20237 = vmatprep.subr.bf16.mxu0 %v24246_v60 }
 0x35c   : > { %20200 = vmatpush3.bf16.msra.mxu1 %v22614_v47  ;;  %18249 = vmatmul.mubr.f32.vlgmr.msra.gmra.mrb[6].mxu0 %v22286_v15 }
 0x35d   : > { %20239 = vmatpush3.bf16.msra.mxu0 %v22697_v40  ;;  %20201 = vmatprep.subr.bf16.mxu1 %v24246_v60  ;;  %v4394_v40 = vand.u32 4294901760, %v973_v5 }
 0x35e   : > { %20240 = vmatprep.subr.bf16.mxu0 %v24246_v60  ;;  %18259 = vmatprep.mubr.msk.f32.mxu0 %vm21879_vm2, %v24239_v58 }
 0x35f   : > { %18183 = vmatmul.mubr.f32.vlgmr.msra.gmra.mrb[6].mxu1 %v22294_v19  ;;  %v22748_v3 = vsub.f32 %v973_v5, %v4394_v40  ;;  %v22761_v5 = vsub.f32 %v953_v31, %v3906_v35  ;;  %v22778_v31 = vpack.c.bf16 %v4394_v40, %v4391_v2 }
 0x360   : > { %20203 = vmatpush3.bf16.msra.mxu1 %v22706_v63  ;;  %18193 = vmatprep.mubr.msk.f32.mxu1 %vm21879_vm2, %v24239_v58  ;;  %v22731_v63 = vsub.f32 %v970_v6, %v4385_v39 }
 0x361   : > { %20242 = vmatpush3.bf16.msra.mxu0 %v22714_v1  ;;  %20204 = vmatprep.subr.bf16.mxu1 %v24246_v60  ;;  %v22740_v1 = vsub.f32 %v952_v30, %v3903_v4  ;;  %v22754_v30 = vpack.c.bf16 %v4388_v44, %v4385_v39  ;;  %v24271_v39 = vand.u32 4294901760, %v22733_v46  ;;  %24273 = vst [vmem:[#allocation45_spill] sm:$0xff] %v22778_v31  ;;  %v24175_v26 = vand.u32 4294901760, %v22761_v5 }
 0x362   : > { %20243 = vmatprep.subr.bf16.mxu0 %v24246_v60  ;;  %v24166_v6 = vand.u32 4294901760, %v22731_v63  ;;  %v24276_v4 = vand.u32 4294901760, %v22746_v36 }
 0x363   : > { %24270 = vst [vmem:[#allocation43_spill] sm:$0xff] %v22754_v30 }
 0x364   : > { %20206 = vmatpush3.bf16.msra.mxu1 %v22725_v24  ;;  %18260 = vmatmul.mubr.f32.vlgmr.msra.gmra.mrb[6].mxu0 %v22277_v7  ;;  %v4467_v44 = vsub.f32 %v22731_v63, %v24166_v6  ;;  %v4474_v24 = vsub.f32 %v22733_v46, %v24271_v39  ;;  %v24274_v6 = vand.u32 4294901760, %v22738_v61  ;;  %v24275_v39 = vand.u32 4294901760, %v22740_v1 }
 0x365   : > { %20245 = vmatpush3.bf16.msra.mxu0 %v22566_v57  ;;  %20207 = vmatprep.subr.bf16.mxu1 %v24246_v60  ;;  %v4481_v2 = vsub.f32 %v22746_v36, %v24276_v4  ;;  %v3996_v4 = vsub.f32 %v22761_v5, %v24175_v26 }
 0x366   : > { %20246 = vmatprep.subr.bf16.mxu0 %v24246_v60  ;;  %18270 = vmatprep.mubr.msk.f32.mxu0 %vm21879_vm2, %v24239_v58  ;;  %v3989_v33 = vsub.f32 %v22740_v1, %v24275_v39  ;;  %v4468_v40 = vand.u32 4294901760, %v4467_v44  ;;  %v4475_v38 = vand.u32 4294901760, %v4474_v24  ;;  %v22802_v39 = vpack.c.bf16 %v3909_v17, %v3906_v35 }
 0x367   : > { %18194 = vmatmul.mubr.f32.vlgmr.msra.gmra.mrb[6].mxu1 %v22283_v14  ;;  %v4482_v17 = vand.u32 4294901760, %v4481_v2  ;;  %v24291_v2 = vand.u32 4294901760, %v22740_v1 }
 0x368   : > { %20209 = vmatpush3.bf16.msra.mxu1 %v22588_v10  ;;  %18204 = vmatprep.mubr.msk.f32.mxu1 %vm21879_vm2, %v24239_v58  ;;  %v24176_v10 = vand.u32 4294901760, %v22763_v34  ;;  %24278 = vst [vmem:[#allocation46_spill] sm:$0xff] %v22802_v39  ;;  %v3990_v44 = vand.u32 4294901760, %v3989_v33  ;;  %v22815_v35 = vpack.c.bf16 %v4475_v38, %v4468_v40  ;;  %v3997_v33 = vand.u32 4294901760, %v3996_v4 }
 0x369   : > { %20248 = vmatpush3.bf16.msra.mxu0 %v22590_v41  ;;  %20210 = vmatprep.subr.bf16.mxu1 %v24246_v60  ;;  %v3982_v41 = vsub.f32 %v22738_v61, %v24274_v6  ;;  %v24277_v6 = vand.u32 4294901760, %v22748_v3  ;;  %v24288_v40 = vand.u32 4294901760, %v22733_v46 }
 0x36a   : > { %20285 = vmatprep.subr.bf16.mxu0 %v24246_v60  ;;  %24279 = vst [vmem:[#allocation47_spill] sm:$0xff] %v22815_v35 }
 0x36b   : > { %v3983_v24 = vand.u32 4294901760, %v3982_v41 }
 0x36c   : > { %20212 = vmatpush3.bf16.msra.mxu1 %v22614_v47  ;;  %18271 = vmatmul.mubr.f32.vlgmr.msra.gmra.mrb[6].mxu0 %v22277_v7  ;;  %v4488_v47 = vsub.f32 %v22748_v3, %v24277_v6  ;;  %v4003_v6 = vsub.f32 %v22763_v34, %v24176_v10 }
 0x36d   : > { %20287 = vmatpush3.bf16.msra.mxu0 %v22754_v30  ;;  %20249 = vmatprep.subr.bf16.mxu1 %v24246_v60  ;;  %v22820_v41 = vpack.c.bf16 %v3990_v44, %v3983_v24 }
 0x36e   : > { %20288 = vmatprep.subr.bf16.mxu0 %v24246_v60  ;;  %18347 = vmatprep.mubr.msk.f32.mxu0 %vm21879_vm2, %v24239_v58  ;;  %v4489_v57 = vand.u32 4294901760, %v4488_v47  ;;  %v4004_v26 = vand.u32 4294901760, %v4003_v6  ;;  %v22852_v47 = vpack.c.bf16 %v22748_v3, %v22746_v36 }
 0x36f   : > { %18205 = vmatmul.mubr.f32.vlgmr.msra.gmra.mrb[6].mxu1 %v22283_v14  ;;  %24280 = vst [vmem:[#allocation48_spill] sm:$0xff] %v22820_v41 }
 0x370   : > { %20251 = vmatpush3.bf16.msra.mxu1 %v22776_v11  ;;  %18281 = vmatprep.mubr.msk.f32.mxu1 %vm21879_vm2, %v24239_v58  ;;  %v22824_v10 = vpack.c.bf16 %v4489_v57, %v4482_v17  ;;  %v22839_v57 = vpack.c.bf16 %v22733_v46, %v22731_v63  ;;  %24285 = vst [vmem:[#allocation53_spill] sm:$0xff] %v22852_v47  ;;  %v24294_v46 = vand.u32 4294901760, %v22748_v3 }
 0x371   : > { %20290 = vmatpush3.bf16.msra.mxu0 %v22778_v31  ;;  %20252 = vmatprep.subr.bf16.mxu1 %v24246_v60 }
 0x372   : > { %20291 = vmatprep.subr.bf16.mxu0 %v24246_v60  ;;  %24281 = vst [vmem:[#allocation49_spill] sm:$0xff] %v22824_v10  ;;  %24283 = vst [vmem:[#allocation51_spill] sm:$0xff] %v22839_v57 }
 0x374   : > { %20254 = vmatpush3.bf16.msra.mxu1 %v22802_v39  ;;  %18348 = vmatmul.mubr.f32.vlgmr.msra.gmra.mrb[8].mxu0 %v22296_v20  ;;  %v22831_v20 = vpack.c.bf16 %v4004_v26, %v3997_v33  ;;  %v22861_v26 = vpack.c.bf16 %v22763_v34, %v22761_v5 }
 0x375   : > { %20293 = vmatpush3.bf16.msra.mxu0 %v22815_v35  ;;  %20255 = vmatprep.subr.bf16.mxu1 %v24246_v60 }
 0x376   : > { %20294 = vmatprep.subr.bf16.mxu0 %v24246_v60  ;;  %18358 = vmatprep.mubr.msk.f32.mxu0 %vm21879_vm2, %v24239_v58  ;;  %24282 = vst [vmem:[#allocation50_spill] sm:$0xff] %v22831_v20  ;;  %24286 = vst [vmem:[#allocation54_spill] sm:$0xff] %v22861_v26 }
 0x377   : > { %18282 = vmatmul.mubr.f32.vlgmr.msra.gmra.mrb[8].mxu1 %v22302_v22  ;;  %v22846_v22 = vpack.c.bf16 %v22740_v1, %v22738_v61  ;;  %v24297_v1 = vand.u32 4294901760, %v22763_v34 }
 0x378   : > { %20257 = vmatpush3.bf16.msra.mxu1 %v22820_v41  ;;  %18292 = vmatprep.mubr.msk.f32.mxu1 %vm21879_vm2, %v24239_v58 }
 0x379   : > { %20296 = vmatpush3.bf16.msra.mxu0 %v22824_v10  ;;  %20258 = vmatprep.subr.bf16.mxu1 %v24246_v60  ;;  %24284 = vst [vmem:[#allocation52_spill] sm:$0xff] %v22846_v22 }
 0x37a   : > { %20297 = vmatprep.subr.bf16.mxu0 %v24246_v60 }
 0x37c   : > { %20260 = vmatpush3.bf16.msra.mxu1 %v22831_v20  ;;  %18359 = vmatmul.mubr.f32.vlgmr.msra.gmra.mrb[8].mxu0 %v22277_v7 }
 0x37d   : > { %20299 = vmatpush3.bf16.msra.mxu0 %v22839_v57  ;;  %20261 = vmatprep.subr.bf16.mxu1 %v24246_v60 }
 0x37e   : > { %20300 = vmatprep.subr.bf16.mxu0 %v24246_v60  ;;  %18369 = vmatprep.mubr.msk.f32.mxu0 %vm21879_vm2, %v24239_v58 }
 0x37f   : > { %18293 = vmatmul.mubr.f32.vlgmr.msra.gmra.mrb[8].mxu1 %v22283_v14 }
 0x380   : > { %20263 = vmatpush3.bf16.msra.mxu1 %v22846_v22  ;;  %18303 = vmatprep.mubr.msk.f32.mxu1 %vm21879_vm2, %v24239_v58 }
 0x381   : > { %20302 = vmatpush3.bf16.msra.mxu0 %v22852_v47  ;;  %20264 = vmatprep.subr.bf16.mxu1 %v24246_v60 }
 0x382   : > { %20303 = vmatprep.subr.bf16.mxu0 %v24246_v60 }
 0x384   : > { %20266 = vmatpush3.bf16.msra.mxu1 %v22861_v26  ;;  %18370 = vmatmul.mubr.f32.vlgmr.msra.gmra.mrb[8].mxu0 %v22281_v13  ;;  %v24287_v13 = vand.u32 4294901760, %v22731_v63  ;;  %v24293_v63 = vand.u32 4294901760, %v22746_v36 }
 0x385   : > { %20305 = vmatpush3.bf16.msra.mxu0 %v22754_v30  ;;  %20267 = vmatprep.subr.bf16.mxu1 %v24246_v60 }
 0x386   : > { %20306 = vmatprep.subr.bf16.mxu0 %v24246_v60  ;;  %18380 = vmatprep.mubr.msk.f32.mxu0 %vm21879_vm2, %v24239_v58  ;;  %v22885_v38 = vpack.c.bf16 %v24288_v40, %v24287_v13  ;;  %v22902_v44 = vpack.c.bf16 %v24294_v46, %v24293_v63 }
 0x387   : > { %18304 = vmatmul.mubr.f32.vlgmr.msra.gmra.mrb[8].mxu1 %v22289_v16  ;;  %v24290_v16 = vand.u32 4294901760, %v22738_v61 }
 0x388   : > { %20269 = vmatpush3.bf16.msra.mxu1 %v22776_v11  ;;  %18314 = vmatprep.mubr.msk.f32.mxu1 %vm21879_vm2, %v24239_v58  ;;  %24289 = vst [vmem:[#allocation55_spill] sm:$0xff] %v22885_v38  ;;  %24295 = vst [vmem:[#allocation57_spill] sm:$0xff] %v22902_v44 }
 0x389   : > { %20308 = vmatpush3.bf16.msra.mxu0 %v22778_v31  ;;  %20270 = vmatprep.subr.bf16.mxu1 %v24246_v60  ;;  %v22894_v24 = vpack.c.bf16 %v24291_v2, %v24290_v16 }
 0x38a   : > { %20309 = vmatprep.subr.bf16.mxu0 %v24246_v60 }
 0x38b   : > { %24292 = vst [vmem:[#allocation56_spill] sm:$0xff] %v22894_v24 }
 0x38c   : > { %20272 = vmatpush3.bf16.msra.mxu1 %v22802_v39  ;;  %18381 = vmatmul.mubr.f32.vlgmr.msra.gmra.mrb[8].mxu0 %v22286_v15  ;;  %v24296_v15 = vand.u32 4294901760, %v22761_v5 }
 0x38d   : > { %20311 = vmatpush3.bf16.msra.mxu0 %v22885_v38  ;;  %20273 = vmatprep.subr.bf16.mxu1 %v24246_v60 }
 0x38e   : > { %20312 = vmatprep.subr.bf16.mxu0 %v24246_v60  ;;  %18391 = vmatprep.mubr.msk.f32.mxu0 %vm21879_vm2, %v24239_v58  ;;  %v22913_v61 = vpack.c.bf16 %v24297_v1, %v24296_v15 }
 0x38f   : > { %18315 = vmatmul.mubr.f32.vlgmr.msra.gmra.mrb[8].mxu1 %v22294_v19 }
 0x390   : > { %20275 = vmatpush3.bf16.msra.mxu1 %v22894_v24  ;;  %24298 = vst [vmem:[#allocation58_spill] sm:$0xff] %v22913_v61  ;;  %18325 = vmatprep.mubr.msk.f32.mxu1 %vm21879_vm2, %v24239_v58 }
 0x391   : > { %20314 = vmatpush3.bf16.msra.mxu0 %v22902_v44  ;;  %20276 = vmatprep.subr.bf16.mxu1 %v24246_v60 }
 0x392   : > { %20315 = vmatprep.subr.bf16.mxu0 %v24246_v60 }
 0x394   : > { %20278 = vmatpush3.bf16.msra.mxu1 %v22913_v61  ;;  %18392 = vmatmul.mubr.f32.vlgmr.msra.gmra.mrb[8].mxu0 %v22277_v7 }
 0x395   : > { %20317 = vmatpush3.bf16.msra.mxu0 %v22754_v30  ;;  %20279 = vmatprep.subr.bf16.mxu1 %v24246_v60 }
 0x396   : > { %20318 = vmatprep.subr.bf16.mxu0 %v24246_v60  ;;  %18402 = vmatprep.mubr.msk.f32.mxu0 %vm21879_vm2, %v24239_v58 }
 0x397   : > { %18326 = vmatmul.mubr.f32.vlgmr.msra.gmra.mrb[8].mxu1 %v22283_v14 }
 0x398   : > { %20281 = vmatpush3.bf16.msra.mxu1 %v22776_v11  ;;  %18336 = vmatprep.mubr.msk.f32.mxu1 %vm21879_vm2, %v24239_v58 }
 0x399   : > { %20320 = vmatpush3.bf16.msra.mxu0 %v22778_v31  ;;  %20282 = vmatprep.subr.bf16.mxu1 %v24246_v60 }
 0x39a   : > { %20357 = vmatprep.subr.bf16.mxu0 %v24246_v60 }
 0x39c   : > { %20284 = vmatpush3.bf16.msra.mxu1 %v22802_v39  ;;  %18403 = vmatmul.mubr.f32.vlgmr.msra.gmra.mrb[8].mxu0 %v22277_v7 }
 0x39d   : > { %20359 = vmatpush3.bf16.msra.mxu0 %v22227_v59  ;;  %20321 = vmatprep.subr.bf16.mxu1 %v24246_v60 }
 0x39e   : > { %20360 = vmatprep.subr.bf16.mxu0 %v24246_v60  ;;  %18479 = vmatprep.mubr.msk.f32.mxu0 %vm21879_vm2, %v24239_v58 }
 0x39f   : > { %18337 = vmatmul.mubr.f32.vlgmr.msra.gmra.mrb[8].mxu1 %v22283_v14 }
 0x3a0   : > { %20323 = vmatpush3.bf16.msra.mxu1 %v22230_v8  ;;  %18413 = vmatprep.mubr.msk.f32.mxu1 %vm21879_vm2, %v24239_v58 }
 0x3a1   : > { %20362 = vmatpush3.bf16.msra.mxu0 %v22233_v9  ;;  %20324 = vmatprep.subr.bf16.mxu1 %v24246_v60 }
 0x3a2   : > { %20363 = vmatprep.subr.bf16.mxu0 %v24246_v60 }
 0x3a4   : > { %20326 = vmatpush3.bf16.msra.mxu1 %v22238_v25 }
 0x3a5   : > { %20327 = vmatprep.subr.bf16.mxu1 %v24246_v60 }
 0x3df   : > { %v1950_v7 = vpop.f32.mrb[2].mxu0 }
 0x3e0   : > { %v18008_v19 = vpop.f32.mrb[3].mxu0 }
 0x3e2   : > { %v1463_v3 = vpop.f32.mrb[2].mxu1 }
 0x3e3   : > { %v1954_v36 = vmul.f32 %v1950_v7, %v1463_v3  ;;  %v17942_v14 = vpop.f32.mrb[3].mxu1 }
 0x40f   : > { %v2921_v34 = vpop.f32.mrb[4].mxu0 }
 0x410   : > { %v18140_v5 = vpop.f32.mrb[5].mxu0 }
 0x412   : > { %v2436_v4 = vpop.f32.mrb[4].mxu1 }
 0x413   : > { %v2925_v6 = vmul.f32 %v2921_v34, %v2436_v4  ;;  %v18074_v17 = vpop.f32.mrb[5].mxu1 }
 0x415   : > { %v2926_v33 = vadd.f32 %v2925_v6, %v1954_v36 }
 0x43f   : > { %v3893_v13 = vpop.f32.mrb[6].mxu0 }
 0x440   : > { %v18272_v40 = vpop.f32.mrb[7].mxu0 }
 0x441   : > { %v24299_v40 = vld [vmem:[#allocation21_spill] sm:$0xff] }
 0x442   : > { %v3408_v16 = vpop.f32.mrb[6].mxu1 }
 0x443   : > { %v3897_v2 = vmul.f32 %v3893_v13, %v3408_v16  ;;  %v18206_v63 = vpop.f32.mrb[7].mxu1  ;;  %v24300_v16 = vld [vmem:[#allocation22_spill] sm:$0xff] }
 0x444   : > { %v24302_v63 = vld [vmem:[#allocation24_spill] sm:$0xff] }
 0x445   : > { %v3898_v46 = vadd.f32 %v3897_v2, %v2926_v33  ;;  %v24301_v2 = vld [vmem:[#allocation23_spill] sm:$0xff] }
 0x46f   : > { %v4865_v15 = vpop.f32.mrb[8].mxu0 }
 0x470   : > { %v18404_v1 = vpop.f32.mrb[9].mxu0 }
 0x471   : > { %v24305_v1 = vld [vmem:[#allocation27_spill] sm:$0xff] }
 0x472   : > { %v4380_v61 = vpop.f32.mrb[8].mxu1 }
 0x473   : > { %v4869_v44 = vmul.f32 %v4865_v15, %v4380_v61  ;;  %v18338_v19 = vpop.f32.mrb[9].mxu1  ;;  %v24304_v15 = vld [vmem:[#allocation26_spill] sm:$0xff] }
 0x474   : > { %v24306_v19 = vld [vmem:[#allocation28_spill] sm:$0xff] }
 0x475   : > { %v4870_v24 = vadd.f32 %v4869_v44, %v3898_v46  ;;  %v24303_v46 = vld [vmem:[#allocation25_spill] sm:$0xff] }
 0x477   : > { %v4872_v7 = vrot.slane %v4870_v24, 6  ;;  %v5364_v3 = vsel %vm414_vm1, %v4870_v24, 0 }
 0x478   : > { %v22951_v14 = vand.u32 4294901760, %v5364_v3 }
 0x479   : > { %v4875_v36 = vsel %vm4874_vm4, %v22273_v0, %v4872_v7  ;;  %v24307_v7 = vld [vmem:[#allocation29_spill] sm:$0xff] }
 0x47a   : > { %v4877_v34 = vsel %vm414_vm1, %v4875_v36, 0  ;;  %v22956_v5 = vsub.f32 %v5364_v3, %v22951_v14  ;;  %v24308_v3 = vld [vmem:[#allocation30_spill] sm:$0xff]  ;;  %v24309_v36 = vld [vmem:[#allocation31_spill] sm:$0xff] }
 0x47b   : > { %v22958_v4 = vand.u32 4294901760, %v4877_v34 }
 0x47c   : > { %v22961_v6 = vand.u32 4294901760, %v22956_v5 }
 0x47d   : > { %v22964_v44 = vsub.f32 %v4877_v34, %v22958_v4  ;;  %v24310_v34 = vld [vmem:[#allocation32_spill] sm:$0xff] }
 0x47e   : > { %v5438_v24 = vsub.f32 %v22956_v5, %v22961_v6 }
 0x47f   : > { %v22969_v61 = vand.u32 4294901760, %v22964_v44 }
 0x480   : > { %v22971_v17 = vand.u32 4294901760, %v5438_v24  ;;  %v24311_v24 = vld [vmem:[#allocation33_spill] sm:$0xff] }
 0x481   : > { %v4951_v33 = vsub.f32 %v22964_v44, %v22969_v61 }
 0x482   : > { %18480 = vmatmul.mubr.f32.vlgmr.msra.gmra.mrb[10].mxu0 %v22971_v17 }
 0x483   : > { %20365 = vmatpush3.bf16.msra.mxu0 %v22241_v28  ;;  %v22977_v13 = vand.u32 4294901760, %v4951_v33  ;;  %18490 = vmatprep.mubr.msk.f32.mxu0 %vm21879_vm2, %v24239_v58  ;;  %v24312_v33 = vld [vmem:[#allocation34_spill] sm:$0xff] }
 0x484   : > { %20366 = vmatprep.subr.bf16.mxu0 %v24246_v60 }
 0x485   : > { %18414 = vmatmul.mubr.f32.vlgmr.msra.gmra.mrb[10].mxu1 %v22977_v13 }
 0x486   : > { %20329 = vmatpush3.bf16.msra.mxu1 %v22245_v43  ;;  %18424 = vmatprep.mubr.msk.f32.mxu1 %vm21879_vm2, %v24239_v58 }
 0x487   : > { %20368 = vmatpush3.bf16.msra.mxu0 %v22247_v45  ;;  %20330 = vmatprep.subr.bf16.mxu1 %v24246_v60 }
 0x488   : > { %20369 = vmatprep.subr.bf16.mxu0 %v24246_v60 }
 0x48a   : > { %20332 = vmatpush3.bf16.msra.mxu1 %v22249_v48  ;;  %18491 = vmatmul.mubr.f32.vlgmr.msra.gmra.mrb[10].mxu0 %v22951_v14 }
 0x48b   : > { %20371 = vmatpush3.bf16.msra.mxu0 %v22251_v49  ;;  %20333 = vmatprep.subr.bf16.mxu1 %v24246_v60 }
 0x48c   : > { %20372 = vmatprep.subr.bf16.mxu0 %v24246_v60  ;;  %18501 = vmatprep.mubr.msk.f32.mxu0 %vm21879_vm2, %v24239_v58 }
 0x48d   : > { %18425 = vmatmul.mubr.f32.vlgmr.msra.gmra.mrb[10].mxu1 %v22958_v4 }
 0x48e   : > { %20335 = vmatpush3.bf16.msra.mxu1 %v22253_v50  ;;  %18435 = vmatprep.mubr.msk.f32.mxu1 %vm21879_vm2, %v24239_v58 }
 0x48f   : > { %20374 = vmatpush3.bf16.msra.mxu0 %v22255_v51  ;;  %20336 = vmatprep.subr.bf16.mxu1 %v24246_v60 }
 0x490   : > { %20375 = vmatprep.subr.bf16.mxu0 %v24246_v60 }
 0x492   : > { %20338 = vmatpush3.bf16.msra.mxu1 %v22257_v52  ;;  %18502 = vmatmul.mubr.f32.vlgmr.msra.gmra.mrb[10].mxu0 %v22956_v5 }
 0x493   : > { %20377 = vmatpush3.bf16.msra.mxu0 %v22227_v59  ;;  %20339 = vmatprep.subr.bf16.mxu1 %v24246_v60 }
 0x494   : > { %20378 = vmatprep.subr.bf16.mxu0 %v24246_v60  ;;  %18512 = vmatprep.mubr.msk.f32.mxu0 %vm21879_vm2, %v24239_v58 }
 0x495   : > { %18436 = vmatmul.mubr.f32.vlgmr.msra.gmra.mrb[10].mxu1 %v22964_v44 }
 0x496   : > { %20341 = vmatpush3.bf16.msra.mxu1 %v22230_v8  ;;  %18446 = vmatprep.mubr.msk.f32.mxu1 %vm21879_vm2, %v24239_v58 }
 0x497   : > { %20380 = vmatpush3.bf16.msra.mxu0 %v22233_v9  ;;  %20342 = vmatprep.subr.bf16.mxu1 %v24246_v60 }
 0x498   : > { %20381 = vmatprep.subr.bf16.mxu0 %v24246_v60 }
 0x49a   : > { %20344 = vmatpush3.bf16.msra.mxu1 %v22238_v25  ;;  %18513 = vmatmul.mubr.f32.vlgmr.msra.gmra.mrb[10].mxu0 %v22961_v6 }
 0x49b   : > { %20383 = vmatpush3.bf16.msra.mxu0 %v22259_v53  ;;  %20345 = vmatprep.subr.bf16.mxu1 %v24246_v60 }
 0x49c   : > { %20384 = vmatprep.subr.bf16.mxu0 %v24246_v60  ;;  %18523 = vmatprep.mubr.msk.f32.mxu0 %vm21879_vm2, %v24239_v58 }
 0x49d   : > { %18447 = vmatmul.mubr.f32.vlgmr.msra.gmra.mrb[10].mxu1 %v22969_v61 }
 0x49e   : > { %20347 = vmatpush3.bf16.msra.mxu1 %v22261_v54  ;;  %18457 = vmatprep.mubr.msk.f32.mxu1 %vm21879_vm2, %v24239_v58 }
 0x49f   : > { %20386 = vmatpush3.bf16.msra.mxu0 %v22263_v55  ;;  %20348 = vmatprep.subr.bf16.mxu1 %v24246_v60 }
 0x4a0   : > { %20387 = vmatprep.subr.bf16.mxu0 %v24246_v60 }
 0x4a2   : > { %20350 = vmatpush3.bf16.msra.mxu1 %v22265_v56  ;;  %18524 = vmatmul.mubr.f32.vlgmr.msra.gmra.mrb[10].mxu0 %v22951_v14 }
 0x4a3   : > { %20389 = vmatpush3.bf16.msra.mxu0 %v22227_v59  ;;  %20351 = vmatprep.subr.bf16.mxu1 %v24246_v60 }
 0x4a4   : > { %20390 = vmatprep.subr.bf16.mxu0 %v24246_v60  ;;  %18534 = vmatprep.mubr.msk.f32.mxu0 %vm21879_vm2, %v24239_v58 }
 0x4a5   : > { %18458 = vmatmul.mubr.f32.vlgmr.msra.gmra.mrb[10].mxu1 %v22958_v4 }
 0x4a6   : > { %20353 = vmatpush3.bf16.msra.mxu1 %v22230_v8  ;;  %18468 = vmatprep.mubr.msk.f32.mxu1 %vm21879_vm2, %v24239_v58 }
 0x4a7   : > { %20392 = vmatpush3.bf16.msra.mxu0 %v22233_v9  ;;  %20354 = vmatprep.subr.bf16.mxu1 %v24246_v60 }
 0x4a8   : > { %20429 = vmatprep.subr.bf16.mxu0 %v24246_v60 }
 0x4aa   : > { %20356 = vmatpush3.bf16.msra.mxu1 %v22238_v25  ;;  %18535 = vmatmul.mubr.f32.vlgmr.msra.gmra.mrb[10].mxu0 %v22951_v14 }
 0x4ab   : > { %20431 = vmatpush3.bf16.msra.mxu0 %v22378_v62  ;;  %20393 = vmatprep.subr.bf16.mxu1 %v24246_v60 }
 0x4ac   : > { %20432 = vmatprep.subr.bf16.mxu0 %v24246_v60  ;;  %18611 = vmatprep.mubr.msk.f32.mxu0 %vm21879_vm2, %v24239_v58 }
 0x4ad   : > { %18469 = vmatmul.mubr.f32.vlgmr.msra.gmra.mrb[10].mxu1 %v22958_v4 }
 0x4ae   : > { %20395 = vmatpush3.bf16.msra.mxu1 %v22400_v12  ;;  %18545 = vmatprep.mubr.msk.f32.mxu1 %vm21879_vm2, %v24239_v58 }
 0x4af   : > { %20434 = vmatpush3.bf16.msra.mxu0 %v22402_v18  ;;  %20396 = vmatprep.subr.bf16.mxu1 %v24246_v60 }
 0x4b0   : > { %20435 = vmatprep.subr.bf16.mxu0 %v24246_v60 }
 0x4b2   : > { %20398 = vmatpush3.bf16.msra.mxu1 %v22426_v32  ;;  %18612 = vmatmul.mubr.f32.vlgmr.msra.gmra.mrb[12].mxu0 %v22971_v17 }
 0x4b3   : > { %20437 = vmatpush3.bf16.msra.mxu0 %v22439_v37  ;;  %20399 = vmatprep.subr.bf16.mxu1 %v24246_v60 }
 0x4b4   : > { %20438 = vmatprep.subr.bf16.mxu0 %v24246_v60  ;;  %18622 = vmatprep.mubr.msk.f32.mxu0 %vm21879_vm2, %v24239_v58 }
 0x4b5   : > { %18546 = vmatmul.mubr.f32.vlgmr.msra.gmra.mrb[12].mxu1 %v22977_v13 }
 0x4b6   : > { %20401 = vmatpush3.bf16.msra.mxu1 %v22444_v42  ;;  %18556 = vmatprep.mubr.msk.f32.mxu1 %vm21879_vm2, %v24239_v58 }
 0x4b7   : > { %20440 = vmatpush3.bf16.msra.mxu0 %v22448_v21  ;;  %20402 = vmatprep.subr.bf16.mxu1 %v24246_v60 }
 0x4b8   : > { %20441 = vmatprep.subr.bf16.mxu0 %v24246_v60 }
 0x4ba   : > { %20404 = vmatpush3.bf16.msra.mxu1 %v22455_v23  ;;  %18623 = vmatmul.mubr.f32.vlgmr.msra.gmra.mrb[12].mxu0 %v22951_v14 }
 0x4bb   : > { %20443 = vmatpush3.bf16.msra.mxu0 %v22463_v27  ;;  %20405 = vmatprep.subr.bf16.mxu1 %v24246_v60 }
 0x4bc   : > { %20444 = vmatprep.subr.bf16.mxu0 %v24246_v60  ;;  %18633 = vmatprep.mubr.msk.f32.mxu0 %vm21879_vm2, %v24239_v58 }
 0x4bd   : > { %18557 = vmatmul.mubr.f32.vlgmr.msra.gmra.mrb[12].mxu1 %v22958_v4 }
 0x4be   : > { %20407 = vmatpush3.bf16.msra.mxu1 %v22470_v29  ;;  %18567 = vmatprep.mubr.msk.f32.mxu1 %vm21879_vm2, %v24239_v58 }
 0x4bf   : > { %20446 = vmatpush3.bf16.msra.mxu0 %v24299_v40  ;;  %20408 = vmatprep.subr.bf16.mxu1 %v24246_v60 }
 0x4c0   : > { %20447 = vmatprep.subr.bf16.mxu0 %v24246_v60 }
 0x4c2   : > { %20410 = vmatpush3.bf16.msra.mxu1 %v24300_v16  ;;  %18634 = vmatmul.mubr.f32.vlgmr.msra.gmra.mrb[12].mxu0 %v22956_v5 }
 0x4c3   : > { %20449 = vmatpush3.bf16.msra.mxu0 %v22378_v62  ;;  %20411 = vmatprep.subr.bf16.mxu1 %v24246_v60 }
 0x4c4   : > { %20450 = vmatprep.subr.bf16.mxu0 %v24246_v60  ;;  %18644 = vmatprep.mubr.msk.f32.mxu0 %vm21879_vm2, %v24239_v58 }
 0x4c5   : > { %18568 = vmatmul.mubr.f32.vlgmr.msra.gmra.mrb[12].mxu1 %v22964_v44 }
 0x4c6   : > { %20413 = vmatpush3.bf16.msra.mxu1 %v22400_v12  ;;  %18578 = vmatprep.mubr.msk.f32.mxu1 %vm21879_vm2, %v24239_v58 }
 0x4c7   : > { %20452 = vmatpush3.bf16.msra.mxu0 %v22402_v18  ;;  %20414 = vmatprep.subr.bf16.mxu1 %v24246_v60 }
 0x4c8   : > { %20453 = vmatprep.subr.bf16.mxu0 %v24246_v60 }
 0x4ca   : > { %20416 = vmatpush3.bf16.msra.mxu1 %v22426_v32  ;;  %18645 = vmatmul.mubr.f32.vlgmr.msra.gmra.mrb[12].mxu0 %v22961_v6 }
 0x4cb   : > { %20455 = vmatpush3.bf16.msra.mxu0 %v24301_v2  ;;  %20417 = vmatprep.subr.bf16.mxu1 %v24246_v60 }
 0x4cc   : > { %20456 = vmatprep.subr.bf16.mxu0 %v24246_v60  ;;  %18655 = vmatprep.mubr.msk.f32.mxu0 %vm21879_vm2, %v24239_v58 }
 0x4cd   : > { %18579 = vmatmul.mubr.f32.vlgmr.msra.gmra.mrb[12].mxu1 %v22969_v61 }
 0x4ce   : > { %20419 = vmatpush3.bf16.msra.mxu1 %v24302_v63  ;;  %18589 = vmatprep.mubr.msk.f32.mxu1 %vm21879_vm2, %v24239_v58 }
 0x4cf   : > { %20458 = vmatpush3.bf16.msra.mxu0 %v24303_v46  ;;  %20420 = vmatprep.subr.bf16.mxu1 %v24246_v60 }
 0x4d0   : > { %20459 = vmatprep.subr.bf16.mxu0 %v24246_v60 }
 0x4d2   : > { %20422 = vmatpush3.bf16.msra.mxu1 %v24304_v15  ;;  %18656 = vmatmul.mubr.f32.vlgmr.msra.gmra.mrb[12].mxu0 %v22951_v14 }
 0x4d3   : > { %20461 = vmatpush3.bf16.msra.mxu0 %v22378_v62  ;;  %20423 = vmatprep.subr.bf16.mxu1 %v24246_v60 }
 0x4d4   : > { %20462 = vmatprep.subr.bf16.mxu0 %v24246_v60  ;;  %18666 = vmatprep.mubr.msk.f32.mxu0 %vm21879_vm2, %v24239_v58 }
 0x4d5   : > { %18590 = vmatmul.mubr.f32.vlgmr.msra.gmra.mrb[12].mxu1 %v22958_v4 }
 0x4d6   : > { %20425 = vmatpush3.bf16.msra.mxu1 %v22400_v12  ;;  %18600 = vmatprep.mubr.msk.f32.mxu1 %vm21879_vm2, %v24239_v58 }
 0x4d7   : > { %20464 = vmatpush3.bf16.msra.mxu0 %v22402_v18  ;;  %20426 = vmatprep.subr.bf16.mxu1 %v24246_v60 }
 0x4d8   : > { %20501 = vmatprep.subr.bf16.mxu0 %v24246_v60 }
 0x4da   : > { %20428 = vmatpush3.bf16.msra.mxu1 %v22426_v32  ;;  %18667 = vmatmul.mubr.f32.vlgmr.msra.gmra.mrb[12].mxu0 %v22951_v14 }
 0x4db   : > { %20503 = vmatpush3.bf16.msra.mxu0 %v24305_v1  ;;  %20465 = vmatprep.subr.bf16.mxu1 %v24246_v60 }
 0x4dc   : > { %20504 = vmatprep.subr.bf16.mxu0 %v24246_v60  ;;  %18743 = vmatprep.mubr.msk.f32.mxu0 %vm21879_vm2, %v24239_v58 }
 0x4dd   : > { %18601 = vmatmul.mubr.f32.vlgmr.msra.gmra.mrb[12].mxu1 %v22958_v4 }
 0x4de   : > { %20467 = vmatpush3.bf16.msra.mxu1 %v24306_v19  ;;  %18677 = vmatprep.mubr.msk.f32.mxu1 %vm21879_vm2, %v24239_v58 }
 0x4df   : > { %20506 = vmatpush3.bf16.msra.mxu0 %v24307_v7  ;;  %20468 = vmatprep.subr.bf16.mxu1 %v24246_v60 }
 0x4e0   : > { %20507 = vmatprep.subr.bf16.mxu0 %v24246_v60 }
 0x4e2   : > { %20470 = vmatpush3.bf16.msra.mxu1 %v24308_v3  ;;  %18744 = vmatmul.mubr.f32.vlgmr.msra.gmra.mrb[14].mxu0 %v22971_v17 }
 0x4e3   : > { %20509 = vmatpush3.bf16.msra.mxu0 %v24309_v36  ;;  %20471 = vmatprep.subr.bf16.mxu1 %v24246_v60  ;;  %v24313_v36 = vld [vmem:[#allocation35_spill] sm:$0xff] }
 0x4e4   : > { %20510 = vmatprep.subr.bf16.mxu0 %v24246_v60  ;;  %18754 = vmatprep.mubr.msk.f32.mxu0 %vm21879_vm2, %v24239_v58 }
 0x4e5   : > { %18678 = vmatmul.mubr.f32.vlgmr.msra.gmra.mrb[14].mxu1 %v22977_v13 }
 0x4e6   : > { %20473 = vmatpush3.bf16.msra.mxu1 %v24310_v34  ;;  %18688 = vmatprep.mubr.msk.f32.mxu1 %vm21879_vm2, %v24239_v58  ;;  %v24315_v34 = vld [vmem:[#allocation37_spill] sm:$0xff] }
 0x4e7   : > { %20512 = vmatpush3.bf16.msra.mxu0 %v24311_v24  ;;  %20474 = vmatprep.subr.bf16.mxu1 %v24246_v60  ;;  %v24314_v24 = vld [vmem:[#allocation36_spill] sm:$0xff] }
 0x4e8   : > { %20513 = vmatprep.subr.bf16.mxu0 %v24246_v60 }
 0x4ea   : > { %20476 = vmatpush3.bf16.msra.mxu1 %v24312_v33  ;;  %18755 = vmatmul.mubr.f32.vlgmr.msra.gmra.mrb[14].mxu0 %v22951_v14 }
 0x4eb   : > { %20515 = vmatpush3.bf16.msra.mxu0 %v24313_v36  ;;  %20477 = vmatprep.subr.bf16.mxu1 %v24246_v60  ;;  %v24316_v36 = vld [vmem:[#allocation38_spill] sm:$0xff] }
 0x4ec   : > { %20516 = vmatprep.subr.bf16.mxu0 %v24246_v60  ;;  %18765 = vmatprep.mubr.msk.f32.mxu0 %vm21879_vm2, %v24239_v58 }
 0x4ed   : > { %18689 = vmatmul.mubr.f32.vlgmr.msra.gmra.mrb[14].mxu1 %v22958_v4 }
 0x4ee   : > { %20479 = vmatpush3.bf16.msra.mxu1 %v24314_v24  ;;  %18699 = vmatprep.mubr.msk.f32.mxu1 %vm21879_vm2, %v24239_v58  ;;  %v24319_v24 = vld [vmem:[#allocation41_spill] sm:$0xff] }
 0x4ef   : > { %20518 = vmatpush3.bf16.msra.mxu0 %v24315_v34  ;;  %20480 = vmatprep.subr.bf16.mxu1 %v24246_v60  ;;  %v24318_v34 = vld [vmem:[#allocation40_spill] sm:$0xff] }
 0x4f0   : > { %20519 = vmatprep.subr.bf16.mxu0 %v24246_v60 }
 0x4f2   : > { %20482 = vmatpush3.bf16.msra.mxu1 %v24316_v36  ;;  %18766 = vmatmul.mubr.f32.vlgmr.msra.gmra.mrb[14].mxu0 %v22956_v5  ;;  %v24317_v36 = vld [vmem:[#allocation39_spill] sm:$0xff] }
 0x4f3   : > { %20521 = vmatpush3.bf16.msra.mxu0 %v24305_v1  ;;  %20483 = vmatprep.subr.bf16.mxu1 %v24246_v60 }
 0x4f4   : > { %20522 = vmatprep.subr.bf16.mxu0 %v24246_v60  ;;  %18776 = vmatprep.mubr.msk.f32.mxu0 %vm21879_vm2, %v24239_v58 }
 0x4f5   : > { %18700 = vmatmul.mubr.f32.vlgmr.msra.gmra.mrb[14].mxu1 %v22964_v44 }
 0x4f6   : > { %20485 = vmatpush3.bf16.msra.mxu1 %v24306_v19  ;;  %18710 = vmatprep.mubr.msk.f32.mxu1 %vm21879_vm2, %v24239_v58 }
 0x4f7   : > { %20524 = vmatpush3.bf16.msra.mxu0 %v24307_v7  ;;  %20486 = vmatprep.subr.bf16.mxu1 %v24246_v60 }
 0x4f8   : > { %20525 = vmatprep.subr.bf16.mxu0 %v24246_v60 }
 0x4fa   : > { %20488 = vmatpush3.bf16.msra.mxu1 %v24308_v3  ;;  %18777 = vmatmul.mubr.f32.vlgmr.msra.gmra.mrb[14].mxu0 %v22961_v6 }
 0x4fb   : > { %20527 = vmatpush3.bf16.msra.mxu0 %v24317_v36  ;;  %20489 = vmatprep.subr.bf16.mxu1 %v24246_v60  ;;  %v24320_v36 = vld [vmem:[#allocation42_spill] sm:$0xff] }
 0x4fc   : > { %20528 = vmatprep.subr.bf16.mxu0 %v24246_v60  ;;  %18787 = vmatprep.mubr.msk.f32.mxu0 %vm21879_vm2, %v24239_v58 }
 0x4fd   : > { %18711 = vmatmul.mubr.f32.vlgmr.msra.gmra.mrb[14].mxu1 %v22969_v61 }
 0x4fe   : > { %20491 = vmatpush3.bf16.msra.mxu1 %v24318_v34  ;;  %18721 = vmatprep.mubr.msk.f32.mxu1 %vm21879_vm2, %v24239_v58 }
 0x4ff   : > { %20530 = vmatpush3.bf16.msra.mxu0 %v24319_v24  ;;  %20492 = vmatprep.subr.bf16.mxu1 %v24246_v60 }
 0x500   : > { %20531 = vmatprep.subr.bf16.mxu0 %v24246_v60 }
 0x502   : > { %20494 = vmatpush3.bf16.msra.mxu1 %v24320_v36  ;;  %18788 = vmatmul.mubr.f32.vlgmr.msra.gmra.mrb[14].mxu0 %v22951_v14 }
 0x503   : > { %20533 = vmatpush3.bf16.msra.mxu0 %v24305_v1  ;;  %20495 = vmatprep.subr.bf16.mxu1 %v24246_v60 }
 0x504   : > { %20534 = vmatprep.subr.bf16.mxu0 %v24246_v60  ;;  %18798 = vmatprep.mubr.msk.f32.mxu0 %vm21879_vm2, %v24239_v58 }
 0x505   : > { %18722 = vmatmul.mubr.f32.vlgmr.msra.gmra.mrb[14].mxu1 %v22958_v4 }
 0x506   : > { %20497 = vmatpush3.bf16.msra.mxu1 %v24306_v19  ;;  %18732 = vmatprep.mubr.msk.f32.mxu1 %vm21879_vm2, %v24239_v58 }
 0x507   : > { %20536 = vmatpush3.bf16.msra.mxu0 %v24307_v7  ;;  %20498 = vmatprep.subr.bf16.mxu1 %v24246_v60 }
 0x508   : > { %20573 = vmatprep.subr.bf16.mxu0 %v24246_v60 }
 0x50a   : > { %20500 = vmatpush3.bf16.msra.mxu1 %v24308_v3  ;;  %18799 = vmatmul.mubr.f32.vlgmr.msra.gmra.mrb[14].mxu0 %v22951_v14 }
 0x50b   : > { %20575 = vmatpush3.bf16.msra.mxu0 %v22754_v30  ;;  %20537 = vmatprep.subr.bf16.mxu1 %v24246_v60 }
 0x50c   : > { %20576 = vmatprep.subr.bf16.mxu0 %v24246_v60  ;;  %18875 = vmatprep.mubr.msk.f32.mxu0 %vm21879_vm2, %v24239_v58 }
 0x50d   : > { %18733 = vmatmul.mubr.f32.vlgmr.msra.gmra.mrb[14].mxu1 %v22958_v4 }
 0x50e   : > { %20539 = vmatpush3.bf16.msra.mxu1 %v22776_v11  ;;  %18809 = vmatprep.mubr.msk.f32.mxu1 %vm21879_vm2, %v24239_v58 }
 0x50f   : > { %20578 = vmatpush3.bf16.msra.mxu0 %v22778_v31  ;;  %20540 = vmatprep.subr.bf16.mxu1 %v24246_v60 }
 0x510   : > { %20579 = vmatprep.subr.bf16.mxu0 %v24246_v60 }
 0x512   : > { %20542 = vmatpush3.bf16.msra.mxu1 %v22802_v39  ;;  %18876 = vmatmul.mubr.f32.vlgmr.msra.gmra.mrb[16].mxu0 %v22971_v17 }
 0x513   : > { %20581 = vmatpush3.bf16.msra.mxu0 %v22815_v35  ;;  %20543 = vmatprep.subr.bf16.mxu1 %v24246_v60 }
 0x514   : > { %20582 = vmatprep.subr.bf16.mxu0 %v24246_v60  ;;  %18886 = vmatprep.mubr.msk.f32.mxu0 %vm21879_vm2, %v24239_v58 }
 0x515   : > { %18810 = vmatmul.mubr.f32.vlgmr.msra.gmra.mrb[16].mxu1 %v22977_v13 }
 0x516   : > { %20545 = vmatpush3.bf16.msra.mxu1 %v22820_v41  ;;  %18820 = vmatprep.mubr.msk.f32.mxu1 %vm21879_vm2, %v24239_v58 }
 0x517   : > { %20584 = vmatpush3.bf16.msra.mxu0 %v22824_v10  ;;  %20546 = vmatprep.subr.bf16.mxu1 %v24246_v60 }
 0x518   : > { %20585 = vmatprep.subr.bf16.mxu0 %v24246_v60 }
 0x51a   : > { %20548 = vmatpush3.bf16.msra.mxu1 %v22831_v20  ;;  %18887 = vmatmul.mubr.f32.vlgmr.msra.gmra.mrb[16].mxu0 %v22951_v14 }
 0x51b   : > { %20587 = vmatpush3.bf16.msra.mxu0 %v22839_v57  ;;  %20549 = vmatprep.subr.bf16.mxu1 %v24246_v60 }
 0x51c   : > { %20588 = vmatprep.subr.bf16.mxu0 %v24246_v60  ;;  %18897 = vmatprep.mubr.msk.f32.mxu0 %vm21879_vm2, %v24239_v58 }
 0x51d   : > { %18821 = vmatmul.mubr.f32.vlgmr.msra.gmra.mrb[16].mxu1 %v22958_v4 }
 0x51e   : > { %20551 = vmatpush3.bf16.msra.mxu1 %v22846_v22  ;;  %18831 = vmatprep.mubr.msk.f32.mxu1 %vm21879_vm2, %v24239_v58 }
 0x51f   : > { %20590 = vmatpush3.bf16.msra.mxu0 %v22852_v47  ;;  %20552 = vmatprep.subr.bf16.mxu1 %v24246_v60 }
 0x520   : > { %20591 = vmatprep.subr.bf16.mxu0 %v24246_v60 }
 0x522   : > { %20554 = vmatpush3.bf16.msra.mxu1 %v22861_v26  ;;  %18898 = vmatmul.mubr.f32.vlgmr.msra.gmra.mrb[16].mxu0 %v22956_v5  ;;  %v24321_v5 = vld [vmem:[#allocation56_spill] sm:$0xff] }
 0x523   : > { %20593 = vmatpush3.bf16.msra.mxu0 %v22754_v30  ;;  %20555 = vmatprep.subr.bf16.mxu1 %v24246_v60 }
 0x524   : > { %20594 = vmatprep.subr.bf16.mxu0 %v24246_v60  ;;  %18908 = vmatprep.mubr.msk.f32.mxu0 %vm21879_vm2, %v24239_v58 }
 0x525   : > { %18832 = vmatmul.mubr.f32.vlgmr.msra.gmra.mrb[16].mxu1 %v22964_v44  ;;  %v24322_v44 = vld [vmem:[#allocation57_spill] sm:$0xff] }
 0x526   : > { %20557 = vmatpush3.bf16.msra.mxu1 %v22776_v11  ;;  %18842 = vmatprep.mubr.msk.f32.mxu1 %vm21879_vm2, %v24239_v58 }
 0x527   : > { %20596 = vmatpush3.bf16.msra.mxu0 %v22778_v31  ;;  %20558 = vmatprep.subr.bf16.mxu1 %v24246_v60 }
 0x528   : > { %20597 = vmatprep.subr.bf16.mxu0 %v24246_v60 }
 0x52a   : > { %20560 = vmatpush3.bf16.msra.mxu1 %v22802_v39  ;;  %18909 = vmatmul.mubr.f32.vlgmr.msra.gmra.mrb[16].mxu0 %v22961_v6  ;;  %v24323_v6 = vld [vmem:[#allocation58_spill] sm:$0xff] }
 0x52b   : > { %20599 = vmatpush3.bf16.msra.mxu0 %v22885_v38  ;;  %20561 = vmatprep.subr.bf16.mxu1 %v24246_v60 }
 0x52c   : > { %20600 = vmatprep.subr.bf16.mxu0 %v24246_v60  ;;  %18919 = vmatprep.mubr.msk.f32.mxu0 %vm21879_vm2, %v24239_v58 }
 0x52d   : > { %18843 = vmatmul.mubr.f32.vlgmr.msra.gmra.mrb[16].mxu1 %v22969_v61 }
 0x52e   : > { %20563 = vmatpush3.bf16.msra.mxu1 %v24321_v5  ;;  %18853 = vmatprep.mubr.msk.f32.mxu1 %vm21879_vm2, %v24239_v58 }
 0x52f   : > { %20602 = vmatpush3.bf16.msra.mxu0 %v24322_v44  ;;  %20564 = vmatprep.subr.bf16.mxu1 %v24246_v60 }
 0x530   : > { %20603 = vmatprep.subr.bf16.mxu0 %v24246_v60 }
 0x532   : > { %20566 = vmatpush3.bf16.msra.mxu1 %v24323_v6  ;;  %18920 = vmatmul.mubr.f32.vlgmr.msra.gmra.mrb[16].mxu0 %v22951_v14 }
 0x533   : > { %20605 = vmatpush3.bf16.msra.mxu0 %v22754_v30  ;;  %20567 = vmatprep.subr.bf16.mxu1 %v24246_v60 }
 0x534   : > { %20606 = vmatprep.subr.bf16.mxu0 %v24246_v60  ;;  %18930 = vmatprep.mubr.msk.f32.mxu0 %vm21879_vm2, %v24239_v58 }
 0x535   : > { %18854 = vmatmul.mubr.f32.vlgmr.msra.gmra.mrb[16].mxu1 %v22958_v4 }
 0x536   : > { %20569 = vmatpush3.bf16.msra.mxu1 %v22776_v11  ;;  %18864 = vmatprep.mubr.msk.f32.mxu1 %vm21879_vm2, %v24239_v58 }
 0x537   : > { %20608 = vmatpush3.bf16.msra.mxu0 %v22778_v31  ;;  %20570 = vmatprep.subr.bf16.mxu1 %v24246_v60 }
 0x538   : > { %20645 = vmatprep.subr.bf16.mxu0 %v24246_v60 }
 0x53a   : > { %20572 = vmatpush3.bf16.msra.mxu1 %v22802_v39  ;;  %18931 = vmatmul.mubr.f32.vlgmr.msra.gmra.mrb[16].mxu0 %v22951_v14 }
 0x53b   : > { %20647 = vmatpush3.bf16.msra.mxu0 %v22227_v59  ;;  %20609 = vmatprep.subr.bf16.mxu1 %v24246_v60 }
 0x53c   : > { %20648 = vmatprep.subr.bf16.mxu0 %v24246_v60  ;;  %19007 = vmatprep.mubr.msk.f32.mxu0 %vm21879_vm2, %v24239_v58 }
 0x53d   : > { %18865 = vmatmul.mubr.f32.vlgmr.msra.gmra.mrb[16].mxu1 %v22958_v4 }
 0x53e   : > { %20611 = vmatpush3.bf16.msra.mxu1 %v22230_v8  ;;  %18941 = vmatprep.mubr.msk.f32.mxu1 %vm21879_vm2, %v24239_v58 }
 0x53f   : > { %20650 = vmatpush3.bf16.msra.mxu0 %v22233_v9  ;;  %20612 = vmatprep.subr.bf16.mxu1 %v24246_v60 }
 0x540   : > { %20651 = vmatprep.subr.bf16.mxu0 %v24246_v60 }
 0x542   : > { %20614 = vmatpush3.bf16.msra.mxu1 %v22238_v25 }
 0x543   : > { %20615 = vmatprep.subr.bf16.mxu1 %v24246_v60 }
 0x57d   : > { %v5847_v14 = vpop.f32.mrb[10].mxu0 }
 0x57e   : > { %v18536_v61 = vpop.f32.mrb[11].mxu0 }
 0x580   : > { %v5360_v17 = vpop.f32.mrb[10].mxu1 }
 0x581   : > { %v5851_v13 = vmul.f32 %v5847_v14, %v5360_v17  ;;  %v18470_v4 = vpop.f32.mrb[11].mxu1 }
 0x582   : > { %v24331_v4 = vld [vmem:[#allocation39_spill] sm:$0xff] }
 0x5ad   : > { %v6818_v6 = vpop.f32.mrb[12].mxu0 }
 0x5ae   : > { %v18668_v44 = vpop.f32.mrb[13].mxu0 }
 0x5b0   : > { %v6333_v5 = vpop.f32.mrb[12].mxu1 }
 0x5b1   : > { %v6822_v38 = vmul.f32 %v6818_v6, %v6333_v5  ;;  %v18602_v26 = vpop.f32.mrb[13].mxu1  ;;  %v24328_v5 = vld [vmem:[#allocation36_spill] sm:$0xff]  ;;  %v24329_v6 = vld [vmem:[#allocation37_spill] sm:$0xff] }
 0x5b3   : > { %v6823_v47 = vadd.f32 %v6822_v38, %v5851_v13  ;;  %v24326_v38 = vld [vmem:[#allocation33_spill] sm:$0xff]  ;;  %v24330_v13 = vld [vmem:[#allocation38_spill] sm:$0xff] }
 0x5dd   : > { %v7790_v22 = vpop.f32.mrb[14].mxu0 }
 0x5de   : > { %v18800_v57 = vpop.f32.mrb[15].mxu0 }
 0x5e0   : > { %v7305_v20 = vpop.f32.mrb[14].mxu1 }
 0x5e1   : > { %v7794_v10 = vmul.f32 %v7790_v22, %v7305_v20  ;;  %v18734_v41 = vpop.f32.mrb[15].mxu1  ;;  %v24324_v22 = vld [vmem:[#allocation31_spill] sm:$0xff] }
 0x5e3   : > { %v7795_v35 = vadd.f32 %v7794_v10, %v6823_v47  ;;  %v24325_v47 = vld [vmem:[#allocation32_spill] sm:$0xff] }
 0x60d   : > { %v8762_v39 = vpop.f32.mrb[16].mxu0 }
 0x60e   : > { %v18932_v31 = vpop.f32.mrb[17].mxu0 }
 0x610   : > { %v8277_v11 = vpop.f32.mrb[16].mxu1 }
 0x611   : > { %v8766_v30 = vmul.f32 %v8762_v39, %v8277_v11  ;;  %v18866_v61 = vpop.f32.mrb[17].mxu1 }
 0x612   : > { %v24332_v61 = vld [vmem:[#allocation42_spill] sm:$0xff] }
 0x613   : > { %v8767_v36 = vadd.f32 %v8766_v30, %v7795_v35 }
 0x615   : > { %v8769_v14 = vrot.slane %v8767_v36, 4  ;;  %v9261_v44 = vsel %vm414_vm1, %v8767_v36, 0  ;;  %v24327_v36 = vld [vmem:[#allocation35_spill] sm:$0xff] }
 0x616   : > { %v23314_v17 = vand.u32 4294901760, %v9261_v44 }
 0x617   : > { %v8772_v26 = vsel %vm8771_vm5, %v22273_v0, %v8769_v14  ;;  %v24333_v14 = vld [vmem:[#allocation43_spill] sm:$0xff] }
 0x618   : > { %v8774_v57 = vsel %vm414_vm1, %v8772_v26, 0  ;;  %v23319_v20 = vsub.f32 %v9261_v44, %v23314_v17  ;;  %v24334_v44 = vld [vmem:[#allocation44_spill] sm:$0xff]  ;;  %v24335_v26 = vld [vmem:[#allocation45_spill] sm:$0xff] }
 0x619   : > { %v23321_v10 = vand.u32 4294901760, %v8774_v57 }
 0x61a   : > { %v23324_v31 = vand.u32 4294901760, %v23319_v20 }
 0x61b   : > { %v23327_v30 = vsub.f32 %v8774_v57, %v23321_v10  ;;  %v24336_v57 = vld [vmem:[#allocation46_spill] sm:$0xff] }
 0x61c   : > { %v9335_v11 = vsub.f32 %v23319_v20, %v23324_v31 }
 0x61d   : > { %v23332_v39 = vand.u32 4294901760, %v23327_v30 }
 0x61e   : > { %v23334_v0 = vand.u32 4294901760, %v9335_v11  ;;  %v24337_v11 = vld [vmem:[#allocation47_spill] sm:$0xff] }
 0x61f   : > { %v8848_v35 = vsub.f32 %v23327_v30, %v23332_v39 }
 0x620   : > { %19008 = vmatmul.mubr.f32.vlgmr.msra.gmra.mrb[18].mxu0 %v23334_v0 }
 0x621   : > { %20653 = vmatpush3.bf16.msra.mxu0 %v22241_v28  ;;  %v23340_v41 = vand.u32 4294901760, %v8848_v35  ;;  %19018 = vmatprep.mubr.msk.f32.mxu0 %vm21879_vm2, %v24239_v58  ;;  %v24338_v35 = vld [vmem:[#allocation48_spill] sm:$0xff] }
 0x622   : > { %20654 = vmatprep.subr.bf16.mxu0 %v24246_v60 }
 0x623   : > { %18942 = vmatmul.mubr.f32.vlgmr.msra.gmra.mrb[18].mxu1 %v23340_v41 }
 0x624   : > { %20617 = vmatpush3.bf16.msra.mxu1 %v22245_v43  ;;  %18952 = vmatprep.mubr.msk.f32.mxu1 %vm21879_vm2, %v24239_v58 }
 0x625   : > { %20656 = vmatpush3.bf16.msra.mxu0 %v22247_v45  ;;  %20618 = vmatprep.subr.bf16.mxu1 %v24246_v60 }
 0x626   : > { %20657 = vmatprep.subr.bf16.mxu0 %v24246_v60 }
 0x628   : > { %20620 = vmatpush3.bf16.msra.mxu1 %v22249_v48  ;;  %19019 = vmatmul.mubr.f32.vlgmr.msra.gmra.mrb[18].mxu0 %v23314_v17 }
 0x629   : > { %20659 = vmatpush3.bf16.msra.mxu0 %v22251_v49  ;;  %20621 = vmatprep.subr.bf16.mxu1 %v24246_v60 }
 0x62a   : > { %20660 = vmatprep.subr.bf16.mxu0 %v24246_v60  ;;  %19029 = vmatprep.mubr.msk.f32.mxu0 %vm21879_vm2, %v24239_v58 }
 0x62b   : > { %18953 = vmatmul.mubr.f32.vlgmr.msra.gmra.mrb[18].mxu1 %v23321_v10 }
 0x62c   : > { %20623 = vmatpush3.bf16.msra.mxu1 %v22253_v50  ;;  %18963 = vmatprep.mubr.msk.f32.mxu1 %vm21879_vm2, %v24239_v58 }
 0x62d   : > { %20662 = vmatpush3.bf16.msra.mxu0 %v22255_v51  ;;  %20624 = vmatprep.subr.bf16.mxu1 %v24246_v60 }
 0x62e   : > { %20663 = vmatprep.subr.bf16.mxu0 %v24246_v60 }
 0x630   : > { %20626 = vmatpush3.bf16.msra.mxu1 %v22257_v52  ;;  %19030 = vmatmul.mubr.f32.vlgmr.msra.gmra.mrb[18].mxu0 %v23319_v20 }
 0x631   : > { %20665 = vmatpush3.bf16.msra.mxu0 %v22227_v59  ;;  %20627 = vmatprep.subr.bf16.mxu1 %v24246_v60 }
 0x632   : > { %20666 = vmatprep.subr.bf16.mxu0 %v24246_v60  ;;  %19040 = vmatprep.mubr.msk.f32.mxu0 %vm21879_vm2, %v24239_v58 }
 0x633   : > { %18964 = vmatmul.mubr.f32.vlgmr.msra.gmra.mrb[18].mxu1 %v23327_v30 }
 0x634   : > { %20629 = vmatpush3.bf16.msra.mxu1 %v22230_v8  ;;  %18974 = vmatprep.mubr.msk.f32.mxu1 %vm21879_vm2, %v24239_v58 }
 0x635   : > { %20668 = vmatpush3.bf16.msra.mxu0 %v22233_v9  ;;  %20630 = vmatprep.subr.bf16.mxu1 %v24246_v60 }
 0x636   : > { %20669 = vmatprep.subr.bf16.mxu0 %v24246_v60 }
 0x638   : > { %20632 = vmatpush3.bf16.msra.mxu1 %v22238_v25  ;;  %19041 = vmatmul.mubr.f32.vlgmr.msra.gmra.mrb[18].mxu0 %v23324_v31 }
 0x639   : > { %20671 = vmatpush3.bf16.msra.mxu0 %v22259_v53  ;;  %20633 = vmatprep.subr.bf16.mxu1 %v24246_v60 }
 0x63a   : > { %20672 = vmatprep.subr.bf16.mxu0 %v24246_v60  ;;  %19051 = vmatprep.mubr.msk.f32.mxu0 %vm21879_vm2, %v24239_v58 }
 0x63b   : > { %18975 = vmatmul.mubr.f32.vlgmr.msra.gmra.mrb[18].mxu1 %v23332_v39 }
 0x63c   : > { %20635 = vmatpush3.bf16.msra.mxu1 %v22261_v54  ;;  %18985 = vmatprep.mubr.msk.f32.mxu1 %vm21879_vm2, %v24239_v58 }
 0x63d   : > { %20674 = vmatpush3.bf16.msra.mxu0 %v22263_v55  ;;  %20636 = vmatprep.subr.bf16.mxu1 %v24246_v60 }
 0x63e   : > { %20675 = vmatprep.subr.bf16.mxu0 %v24246_v60 }
 0x640   : > { %20638 = vmatpush3.bf16.msra.mxu1 %v22265_v56  ;;  %19052 = vmatmul.mubr.f32.vlgmr.msra.gmra.mrb[18].mxu0 %v23314_v17 }
 0x641   : > { %20677 = vmatpush3.bf16.msra.mxu0 %v22227_v59  ;;  %20639 = vmatprep.subr.bf16.mxu1 %v24246_v60 }
 0x642   : > { %20678 = vmatprep.subr.bf16.mxu0 %v24246_v60  ;;  %19062 = vmatprep.mubr.msk.f32.mxu0 %vm21879_vm2, %v24239_v58 }
 0x643   : > { %18986 = vmatmul.mubr.f32.vlgmr.msra.gmra.mrb[18].mxu1 %v23321_v10 }
 0x644   : > { %20641 = vmatpush3.bf16.msra.mxu1 %v22230_v8  ;;  %18996 = vmatprep.mubr.msk.f32.mxu1 %vm21879_vm2, %v24239_v58 }
 0x645   : > { %20680 = vmatpush3.bf16.msra.mxu0 %v22233_v9  ;;  %20642 = vmatprep.subr.bf16.mxu1 %v24246_v60 }
 0x646   : > { %20717 = vmatprep.subr.bf16.mxu0 %v24246_v60 }
 0x648   : > { %20644 = vmatpush3.bf16.msra.mxu1 %v22238_v25  ;;  %19063 = vmatmul.mubr.f32.vlgmr.msra.gmra.mrb[18].mxu0 %v23314_v17 }
 0x649   : > { %20719 = vmatpush3.bf16.msra.mxu0 %v22378_v62  ;;  %20681 = vmatprep.subr.bf16.mxu1 %v24246_v60 }
 0x64a   : > { %20720 = vmatprep.subr.bf16.mxu0 %v24246_v60  ;;  %19139 = vmatprep.mubr.msk.f32.mxu0 %vm21879_vm2, %v24239_v58 }
 0x64b   : > { %18997 = vmatmul.mubr.f32.vlgmr.msra.gmra.mrb[18].mxu1 %v23321_v10 }
 0x64c   : > { %20683 = vmatpush3.bf16.msra.mxu1 %v22400_v12  ;;  %19073 = vmatprep.mubr.msk.f32.mxu1 %vm21879_vm2, %v24239_v58 }
 0x64d   : > { %20722 = vmatpush3.bf16.msra.mxu0 %v22402_v18  ;;  %20684 = vmatprep.subr.bf16.mxu1 %v24246_v60 }
 0x64e   : > { %20723 = vmatprep.subr.bf16.mxu0 %v24246_v60 }
 0x650   : > { %20686 = vmatpush3.bf16.msra.mxu1 %v22426_v32  ;;  %19140 = vmatmul.mubr.f32.vlgmr.msra.gmra.mrb[20].mxu0 %v23334_v0 }
 0x651   : > { %20725 = vmatpush3.bf16.msra.mxu0 %v22439_v37  ;;  %20687 = vmatprep.subr.bf16.mxu1 %v24246_v60 }
 0x652   : > { %20726 = vmatprep.subr.bf16.mxu0 %v24246_v60  ;;  %19150 = vmatprep.mubr.msk.f32.mxu0 %vm21879_vm2, %v24239_v58 }
 0x653   : > { %19074 = vmatmul.mubr.f32.vlgmr.msra.gmra.mrb[20].mxu1 %v23340_v41 }
 0x654   : > { %20689 = vmatpush3.bf16.msra.mxu1 %v22444_v42  ;;  %19084 = vmatprep.mubr.msk.f32.mxu1 %vm21879_vm2, %v24239_v58 }
 0x655   : > { %20728 = vmatpush3.bf16.msra.mxu0 %v22448_v21  ;;  %20690 = vmatprep.subr.bf16.mxu1 %v24246_v60 }
 0x656   : > { %20729 = vmatprep.subr.bf16.mxu0 %v24246_v60 }
 0x658   : > { %20692 = vmatpush3.bf16.msra.mxu1 %v22455_v23  ;;  %19151 = vmatmul.mubr.f32.vlgmr.msra.gmra.mrb[20].mxu0 %v23314_v17 }
 0x659   : > { %20731 = vmatpush3.bf16.msra.mxu0 %v22463_v27  ;;  %20693 = vmatprep.subr.bf16.mxu1 %v24246_v60 }
 0x65a   : > { %20732 = vmatprep.subr.bf16.mxu0 %v24246_v60  ;;  %19161 = vmatprep.mubr.msk.f32.mxu0 %vm21879_vm2, %v24239_v58 }
 0x65b   : > { %19085 = vmatmul.mubr.f32.vlgmr.msra.gmra.mrb[20].mxu1 %v23321_v10 }
 0x65c   : > { %20695 = vmatpush3.bf16.msra.mxu1 %v22470_v29  ;;  %19095 = vmatprep.mubr.msk.f32.mxu1 %vm21879_vm2, %v24239_v58 }
 0x65d   : > { %20734 = vmatpush3.bf16.msra.mxu0 %v24299_v40  ;;  %20696 = vmatprep.subr.bf16.mxu1 %v24246_v60 }
 0x65e   : > { %20735 = vmatprep.subr.bf16.mxu0 %v24246_v60 }
 0x660   : > { %20698 = vmatpush3.bf16.msra.mxu1 %v24300_v16  ;;  %19162 = vmatmul.mubr.f32.vlgmr.msra.gmra.mrb[20].mxu0 %v23319_v20 }
 0x661   : > { %20737 = vmatpush3.bf16.msra.mxu0 %v22378_v62  ;;  %20699 = vmatprep.subr.bf16.mxu1 %v24246_v60 }
 0x662   : > { %20738 = vmatprep.subr.bf16.mxu0 %v24246_v60  ;;  %19172 = vmatprep.mubr.msk.f32.mxu0 %vm21879_vm2, %v24239_v58 }
 0x663   : > { %19096 = vmatmul.mubr.f32.vlgmr.msra.gmra.mrb[20].mxu1 %v23327_v30 }
 0x664   : > { %20701 = vmatpush3.bf16.msra.mxu1 %v22400_v12  ;;  %19106 = vmatprep.mubr.msk.f32.mxu1 %vm21879_vm2, %v24239_v58 }
 0x665   : > { %20740 = vmatpush3.bf16.msra.mxu0 %v22402_v18  ;;  %20702 = vmatprep.subr.bf16.mxu1 %v24246_v60 }
 0x666   : > { %20741 = vmatprep.subr.bf16.mxu0 %v24246_v60 }
 0x668   : > { %20704 = vmatpush3.bf16.msra.mxu1 %v22426_v32  ;;  %19173 = vmatmul.mubr.f32.vlgmr.msra.gmra.mrb[20].mxu0 %v23324_v31 }
 0x669   : > { %20743 = vmatpush3.bf16.msra.mxu0 %v24301_v2  ;;  %20705 = vmatprep.subr.bf16.mxu1 %v24246_v60 }
 0x66a   : > { %20744 = vmatprep.subr.bf16.mxu0 %v24246_v60  ;;  %19183 = vmatprep.mubr.msk.f32.mxu0 %vm21879_vm2, %v24239_v58 }
 0x66b   : > { %19107 = vmatmul.mubr.f32.vlgmr.msra.gmra.mrb[20].mxu1 %v23332_v39 }
 0x66c   : > { %20707 = vmatpush3.bf16.msra.mxu1 %v24302_v63  ;;  %19117 = vmatprep.mubr.msk.f32.mxu1 %vm21879_vm2, %v24239_v58 }
 0x66d   : > { %20746 = vmatpush3.bf16.msra.mxu0 %v24303_v46  ;;  %20708 = vmatprep.subr.bf16.mxu1 %v24246_v60 }
 0x66e   : > { %20747 = vmatprep.subr.bf16.mxu0 %v24246_v60 }
 0x670   : > { %20710 = vmatpush3.bf16.msra.mxu1 %v24304_v15  ;;  %19184 = vmatmul.mubr.f32.vlgmr.msra.gmra.mrb[20].mxu0 %v23314_v17 }
 0x671   : > { %20749 = vmatpush3.bf16.msra.mxu0 %v22378_v62  ;;  %20711 = vmatprep.subr.bf16.mxu1 %v24246_v60 }
 0x672   : > { %20750 = vmatprep.subr.bf16.mxu0 %v24246_v60  ;;  %19194 = vmatprep.mubr.msk.f32.mxu0 %vm21879_vm2, %v24239_v58 }
 0x673   : > { %19118 = vmatmul.mubr.f32.vlgmr.msra.gmra.mrb[20].mxu1 %v23321_v10 }
 0x674   : > { %20713 = vmatpush3.bf16.msra.mxu1 %v22400_v12  ;;  %19128 = vmatprep.mubr.msk.f32.mxu1 %vm21879_vm2, %v24239_v58 }
 0x675   : > { %20752 = vmatpush3.bf16.msra.mxu0 %v22402_v18  ;;  %20714 = vmatprep.subr.bf16.mxu1 %v24246_v60 }
 0x676   : > { %20789 = vmatprep.subr.bf16.mxu0 %v24246_v60 }
 0x678   : > { %20716 = vmatpush3.bf16.msra.mxu1 %v22426_v32  ;;  %19195 = vmatmul.mubr.f32.vlgmr.msra.gmra.mrb[20].mxu0 %v23314_v17 }
 0x679   : > { %20791 = vmatpush3.bf16.msra.mxu0 %v24305_v1  ;;  %20753 = vmatprep.subr.bf16.mxu1 %v24246_v60 }
 0x67a   : > { %20792 = vmatprep.subr.bf16.mxu0 %v24246_v60  ;;  %19271 = vmatprep.mubr.msk.f32.mxu0 %vm21879_vm2, %v24239_v58 }
 0x67b   : > { %19129 = vmatmul.mubr.f32.vlgmr.msra.gmra.mrb[20].mxu1 %v23321_v10 }
 0x67c   : > { %20755 = vmatpush3.bf16.msra.mxu1 %v24306_v19  ;;  %19205 = vmatprep.mubr.msk.f32.mxu1 %vm21879_vm2, %v24239_v58 }
 0x67d   : > { %20794 = vmatpush3.bf16.msra.mxu0 %v24307_v7  ;;  %20756 = vmatprep.subr.bf16.mxu1 %v24246_v60 }
 0x67e   : > { %20795 = vmatprep.subr.bf16.mxu0 %v24246_v60 }
 0x680   : > { %20758 = vmatpush3.bf16.msra.mxu1 %v24308_v3  ;;  %19272 = vmatmul.mubr.f32.vlgmr.msra.gmra.mrb[22].mxu0 %v23334_v0 }
 0x681   : > { %20797 = vmatpush3.bf16.msra.mxu0 %v24324_v22  ;;  %20759 = vmatprep.subr.bf16.mxu1 %v24246_v60 }
 0x682   : > { %20798 = vmatprep.subr.bf16.mxu0 %v24246_v60  ;;  %19282 = vmatprep.mubr.msk.f32.mxu0 %vm21879_vm2, %v24239_v58 }
 0x683   : > { %19206 = vmatmul.mubr.f32.vlgmr.msra.gmra.mrb[22].mxu1 %v23340_v41 }
 0x684   : > { %20761 = vmatpush3.bf16.msra.mxu1 %v24325_v47  ;;  %19216 = vmatprep.mubr.msk.f32.mxu1 %vm21879_vm2, %v24239_v58 }
 0x685   : > { %20800 = vmatpush3.bf16.msra.mxu0 %v24326_v38  ;;  %20762 = vmatprep.subr.bf16.mxu1 %v24246_v60 }
 0x686   : > { %20801 = vmatprep.subr.bf16.mxu0 %v24246_v60 }
 0x688   : > { %20764 = vmatpush3.bf16.msra.mxu1 %v24312_v33  ;;  %19283 = vmatmul.mubr.f32.vlgmr.msra.gmra.mrb[22].mxu0 %v23314_v17 }
 0x689   : > { %20803 = vmatpush3.bf16.msra.mxu0 %v24327_v36  ;;  %20765 = vmatprep.subr.bf16.mxu1 %v24246_v60 }
 0x68a   : > { %20804 = vmatprep.subr.bf16.mxu0 %v24246_v60  ;;  %19293 = vmatprep.mubr.msk.f32.mxu0 %vm21879_vm2, %v24239_v58 }
 0x68b   : > { %19217 = vmatmul.mubr.f32.vlgmr.msra.gmra.mrb[22].mxu1 %v23321_v10 }
 0x68c   : > { %20767 = vmatpush3.bf16.msra.mxu1 %v24328_v5  ;;  %19227 = vmatprep.mubr.msk.f32.mxu1 %vm21879_vm2, %v24239_v58 }
 0x68d   : > { %20806 = vmatpush3.bf16.msra.mxu0 %v24329_v6  ;;  %20768 = vmatprep.subr.bf16.mxu1 %v24246_v60 }
 0x68e   : > { %20807 = vmatprep.subr.bf16.mxu0 %v24246_v60 }
 0x690   : > { %20770 = vmatpush3.bf16.msra.mxu1 %v24330_v13  ;;  %19294 = vmatmul.mubr.f32.vlgmr.msra.gmra.mrb[22].mxu0 %v23319_v20 }
 0x691   : > { %20809 = vmatpush3.bf16.msra.mxu0 %v24305_v1  ;;  %20771 = vmatprep.subr.bf16.mxu1 %v24246_v60 }
 0x692   : > { %20810 = vmatprep.subr.bf16.mxu0 %v24246_v60  ;;  %19304 = vmatprep.mubr.msk.f32.mxu0 %vm21879_vm2, %v24239_v58 }
 0x693   : > { %19228 = vmatmul.mubr.f32.vlgmr.msra.gmra.mrb[22].mxu1 %v23327_v30 }
 0x694   : > { %20773 = vmatpush3.bf16.msra.mxu1 %v24306_v19  ;;  %19238 = vmatprep.mubr.msk.f32.mxu1 %vm21879_vm2, %v24239_v58 }
 0x695   : > { %20812 = vmatpush3.bf16.msra.mxu0 %v24307_v7  ;;  %20774 = vmatprep.subr.bf16.mxu1 %v24246_v60 }
 0x696   : > { %20813 = vmatprep.subr.bf16.mxu0 %v24246_v60 }
 0x698   : > { %20776 = vmatpush3.bf16.msra.mxu1 %v24308_v3  ;;  %19305 = vmatmul.mubr.f32.vlgmr.msra.gmra.mrb[22].mxu0 %v23324_v31 }
 0x699   : > { %20815 = vmatpush3.bf16.msra.mxu0 %v24331_v4  ;;  %20777 = vmatprep.subr.bf16.mxu1 %v24246_v60 }
 0x69a   : > { %20816 = vmatprep.subr.bf16.mxu0 %v24246_v60  ;;  %19315 = vmatprep.mubr.msk.f32.mxu0 %vm21879_vm2, %v24239_v58 }
 0x69b   : > { %19239 = vmatmul.mubr.f32.vlgmr.msra.gmra.mrb[22].mxu1 %v23332_v39 }
 0x69c   : > { %20779 = vmatpush3.bf16.msra.mxu1 %v24318_v34  ;;  %19249 = vmatprep.mubr.msk.f32.mxu1 %vm21879_vm2, %v24239_v58 }
 0x69d   : > { %20818 = vmatpush3.bf16.msra.mxu0 %v24319_v24  ;;  %20780 = vmatprep.subr.bf16.mxu1 %v24246_v60  ;;  %v24339_v24 = vld [vmem:[#allocation49_spill] sm:$0xff] }
 0x69e   : > { %20819 = vmatprep.subr.bf16.mxu0 %v24246_v60 }
 0x6a0   : > { %20782 = vmatpush3.bf16.msra.mxu1 %v24332_v61  ;;  %19316 = vmatmul.mubr.f32.vlgmr.msra.gmra.mrb[22].mxu0 %v23314_v17 }
 0x6a1   : > { %20821 = vmatpush3.bf16.msra.mxu0 %v24305_v1  ;;  %20783 = vmatprep.subr.bf16.mxu1 %v24246_v60 }
 0x6a2   : > { %20822 = vmatprep.subr.bf16.mxu0 %v24246_v60  ;;  %19326 = vmatprep.mubr.msk.f32.mxu0 %vm21879_vm2, %v24239_v58 }
 0x6a3   : > { %19250 = vmatmul.mubr.f32.vlgmr.msra.gmra.mrb[22].mxu1 %v23321_v10 }
 0x6a4   : > { %20785 = vmatpush3.bf16.msra.mxu1 %v24306_v19  ;;  %19260 = vmatprep.mubr.msk.f32.mxu1 %vm21879_vm2, %v24239_v58 }
 0x6a5   : > { %20824 = vmatpush3.bf16.msra.mxu0 %v24307_v7  ;;  %20786 = vmatprep.subr.bf16.mxu1 %v24246_v60 }
 0x6a6   : > { %20861 = vmatprep.subr.bf16.mxu0 %v24246_v60 }
 0x6a8   : > { %20788 = vmatpush3.bf16.msra.mxu1 %v24308_v3  ;;  %19327 = vmatmul.mubr.f32.vlgmr.msra.gmra.mrb[22].mxu0 %v23314_v17 }
 0x6a9   : > { %20863 = vmatpush3.bf16.msra.mxu0 %v24333_v14  ;;  %20825 = vmatprep.subr.bf16.mxu1 %v24246_v60 }
 0x6aa   : > { %20864 = vmatprep.subr.bf16.mxu0 %v24246_v60  ;;  %19403 = vmatprep.mubr.msk.f32.mxu0 %vm21879_vm2, %v24239_v58 }
 0x6ab   : > { %19261 = vmatmul.mubr.f32.vlgmr.msra.gmra.mrb[22].mxu1 %v23321_v10 }
 0x6ac   : > { %20827 = vmatpush3.bf16.msra.mxu1 %v24334_v44  ;;  %19337 = vmatprep.mubr.msk.f32.mxu1 %vm21879_vm2, %v24239_v58 }
 0x6ad   : > { %20866 = vmatpush3.bf16.msra.mxu0 %v24335_v26  ;;  %20828 = vmatprep.subr.bf16.mxu1 %v24246_v60 }
 0x6ae   : > { %20867 = vmatprep.subr.bf16.mxu0 %v24246_v60 }
 0x6b0   : > { %20830 = vmatpush3.bf16.msra.mxu1 %v24336_v57  ;;  %19404 = vmatmul.mubr.f32.vlgmr.msra.gmra.mrb[24].mxu0 %v23334_v0  ;;  %v24340_v0 = vld [vmem:[#allocation50_spill] sm:$0xff] }
 0x6b1   : > { %20869 = vmatpush3.bf16.msra.mxu0 %v24337_v11  ;;  %20831 = vmatprep.subr.bf16.mxu1 %v24246_v60  ;;  %v24341_v11 = vld [vmem:[#allocation51_spill] sm:$0xff] }
 0x6b2   : > { %20870 = vmatprep.subr.bf16.mxu0 %v24246_v60  ;;  %19414 = vmatprep.mubr.msk.f32.mxu0 %vm21879_vm2, %v24239_v58 }
 0x6b3   : > { %19338 = vmatmul.mubr.f32.vlgmr.msra.gmra.mrb[24].mxu1 %v23340_v41  ;;  %v24342_v41 = vld [vmem:[#allocation52_spill] sm:$0xff] }
 0x6b4   : > { %20833 = vmatpush3.bf16.msra.mxu1 %v24338_v35  ;;  %19348 = vmatprep.mubr.msk.f32.mxu1 %vm21879_vm2, %v24239_v58 }
 0x6b5   : > { %20872 = vmatpush3.bf16.msra.mxu0 %v24339_v24  ;;  %20834 = vmatprep.subr.bf16.mxu1 %v24246_v60  ;;  %v24343_v24 = vld [vmem:[#allocation53_spill] sm:$0xff] }
 0x6b6   : > { %20873 = vmatprep.subr.bf16.mxu0 %v24246_v60 }
 0x6b8   : > { %20836 = vmatpush3.bf16.msra.mxu1 %v24340_v0  ;;  %19415 = vmatmul.mubr.f32.vlgmr.msra.gmra.mrb[24].mxu0 %v23314_v17 }
 0x6b9   : > { %20875 = vmatpush3.bf16.msra.mxu0 %v24341_v11  ;;  %20837 = vmatprep.subr.bf16.mxu1 %v24246_v60  ;;  %v24344_v11 = vld [vmem:[#allocation54_spill] sm:$0xff] }
 0x6ba   : > { %20876 = vmatprep.subr.bf16.mxu0 %v24246_v60  ;;  %19425 = vmatprep.mubr.msk.f32.mxu0 %vm21879_vm2, %v24239_v58 }
 0x6bb   : > { %19349 = vmatmul.mubr.f32.vlgmr.msra.gmra.mrb[24].mxu1 %v23321_v10 }
 0x6bc   : > { %20839 = vmatpush3.bf16.msra.mxu1 %v24342_v41  ;;  %19359 = vmatprep.mubr.msk.f32.mxu1 %vm21879_vm2, %v24239_v58 }
 0x6bd   : > { %20878 = vmatpush3.bf16.msra.mxu0 %v24343_v24  ;;  %20840 = vmatprep.subr.bf16.mxu1 %v24246_v60  ;;  %v24347_v24 = vld [vmem:[#allocation57_spill] sm:$0xff] }
 0x6be   : > { %20879 = vmatprep.subr.bf16.mxu0 %v24246_v60 }
 0x6c0   : > { %20842 = vmatpush3.bf16.msra.mxu1 %v24344_v11  ;;  %19426 = vmatmul.mubr.f32.vlgmr.msra.gmra.mrb[24].mxu0 %v23319_v20  ;;  %v24345_v20 = vld [vmem:[#allocation55_spill] sm:$0xff] }
 0x6c1   : > { %20881 = vmatpush3.bf16.msra.mxu0 %v24333_v14  ;;  %20843 = vmatprep.subr.bf16.mxu1 %v24246_v60 }
 0x6c2   : > { %20882 = vmatprep.subr.bf16.mxu0 %v24246_v60  ;;  %19436 = vmatprep.mubr.msk.f32.mxu0 %vm21879_vm2, %v24239_v58 }
 0x6c3   : > { %19360 = vmatmul.mubr.f32.vlgmr.msra.gmra.mrb[24].mxu1 %v23327_v30  ;;  %v24346_v30 = vld [vmem:[#allocation56_spill] sm:$0xff] }
 0x6c4   : > { %20845 = vmatpush3.bf16.msra.mxu1 %v24334_v44  ;;  %19370 = vmatprep.mubr.msk.f32.mxu1 %vm21879_vm2, %v24239_v58 }
 0x6c5   : > { %20884 = vmatpush3.bf16.msra.mxu0 %v24335_v26  ;;  %20846 = vmatprep.subr.bf16.mxu1 %v24246_v60 }
 0x6c6   : > { %20885 = vmatprep.subr.bf16.mxu0 %v24246_v60 }
 0x6c8   : > { %20848 = vmatpush3.bf16.msra.mxu1 %v24336_v57  ;;  %19437 = vmatmul.mubr.f32.vlgmr.msra.gmra.mrb[24].mxu0 %v23324_v31  ;;  %v24348_v31 = vld [vmem:[#allocation58_spill] sm:$0xff] }
 0x6c9   : > { %20887 = vmatpush3.bf16.msra.mxu0 %v24345_v20  ;;  %20849 = vmatprep.subr.bf16.mxu1 %v24246_v60 }
 0x6ca   : > { %20888 = vmatprep.subr.bf16.mxu0 %v24246_v60  ;;  %19447 = vmatprep.mubr.msk.f32.mxu0 %vm21879_vm2, %v24239_v58 }
 0x6cb   : > { %19371 = vmatmul.mubr.f32.vlgmr.msra.gmra.mrb[24].mxu1 %v23332_v39 }
 0x6cc   : > { %20851 = vmatpush3.bf16.msra.mxu1 %v24346_v30  ;;  %19381 = vmatprep.mubr.msk.f32.mxu1 %vm21879_vm2, %v24239_v58 }
 0x6cd   : > { %20890 = vmatpush3.bf16.msra.mxu0 %v24347_v24  ;;  %20852 = vmatprep.subr.bf16.mxu1 %v24246_v60 }
 0x6ce   : > { %20891 = vmatprep.subr.bf16.mxu0 %v24246_v60 }
 0x6d0   : > { %20854 = vmatpush3.bf16.msra.mxu1 %v24348_v31  ;;  %19448 = vmatmul.mubr.f32.vlgmr.msra.gmra.mrb[24].mxu0 %v23314_v17 }
 0x6d1   : > { %20893 = vmatpush3.bf16.msra.mxu0 %v24333_v14  ;;  %20855 = vmatprep.subr.bf16.mxu1 %v24246_v60 }
 0x6d2   : > { %20894 = vmatprep.subr.bf16.mxu0 %v24246_v60  ;;  %19458 = vmatprep.mubr.msk.f32.mxu0 %vm21879_vm2, %v24239_v58 }
 0x6d3   : > { %19382 = vmatmul.mubr.f32.vlgmr.msra.gmra.mrb[24].mxu1 %v23321_v10 }
 0x6d4   : > { %20857 = vmatpush3.bf16.msra.mxu1 %v24334_v44  ;;  %19392 = vmatprep.mubr.msk.f32.mxu1 %vm21879_vm2, %v24239_v58 }
 0x6d5   : > { %20896 = vmatpush3.bf16.msra.mxu0 %v24335_v26  ;;  %20858 = vmatprep.subr.bf16.mxu1 %v24246_v60 }
 0x6d6   : > { %20933 = vmatprep.subr.bf16.mxu0 %v24246_v60 }
 0x6d8   : > { %20860 = vmatpush3.bf16.msra.mxu1 %v24336_v57  ;;  %19459 = vmatmul.mubr.f32.vlgmr.msra.gmra.mrb[24].mxu0 %v23314_v17  ;;  %v12665_v17 = vld [vmem:[#allocation2] sm:$0x1] }
 0x6d9   : > { %20897 = vmatprep.subr.bf16.mxu1 %v24246_v60  ;;  %20935 = vmatpush3.bf16.msra.mxu0 %v22227_v59  ;;  %v12667_v39 = vsel %vm414_vm1, %v12665_v17, 0 }
 0x6da   : > { %20936 = vmatprep.subr.bf16.mxu0 %v24246_v60  ;;  %19535 = vmatprep.mubr.msk.f32.mxu0 %vm21879_vm2, %v24239_v58  ;;  %v23677_v24 = vand.u32 4294901760, %v12667_v39 }
 0x6db   : > { %19393 = vmatmul.mubr.f32.vlgmr.msra.gmra.mrb[24].mxu1 %v23321_v10 }
 0x6dc   : > { %20899 = vmatpush3.bf16.msra.mxu1 %v22230_v8  ;;  %19469 = vmatprep.mubr.msk.f32.mxu1 %vm21879_vm2, %v24239_v58  ;;  %v23680_v10 = vsub.f32 %v12667_v39, %v23677_v24 }
 0x6dd   : > { %20900 = vmatprep.subr.bf16.mxu1 %v24246_v60  ;;  %20938 = vmatpush3.bf16.msra.mxu0 %v22233_v9 }
 0x6de   : > { %20939 = vmatprep.subr.bf16.mxu0 %v24246_v60  ;;  %v23683_v20 = vand.u32 4294901760, %v23680_v10 }
 0x6e0   : > { %20902 = vmatpush3.bf16.msra.mxu1 %v22238_v25  ;;  %v12741_v26 = vsub.f32 %v23680_v10, %v23683_v20 }
 0x6e1   : > { %20903 = vmatprep.subr.bf16.mxu1 %v24246_v60 }
 0x6e2   : > { %v23687_v14 = vand.u32 4294901760, %v12741_v26 }
 0x6e4   : > { %19470 = vmatmul.mubr.f32.vlgmr.msra.gmra.mrb[26].mxu1 %v23687_v14 }
 0x6e5   : > { %20905 = vmatpush3.bf16.msra.mxu1 %v22245_v43  ;;  %19480 = vmatprep.mubr.msk.f32.mxu1 %vm21879_vm2, %v24239_v58 }
 0x6e6   : > { %20906 = vmatprep.subr.bf16.mxu1 %v24246_v60 }
 0x6e9   : > { %20908 = vmatpush3.bf16.msra.mxu1 %v22249_v48 }
 0x6ea   : > { %20909 = vmatprep.subr.bf16.mxu1 %v24246_v60 }
 0x6ec   : > { %19481 = vmatmul.mubr.f32.vlgmr.msra.gmra.mrb[26].mxu1 %v23677_v24 }
 0x6ed   : > { %20911 = vmatpush3.bf16.msra.mxu1 %v22253_v50  ;;  %19491 = vmatprep.mubr.msk.f32.mxu1 %vm21879_vm2, %v24239_v58 }
 0x6ee   : > { %20912 = vmatprep.subr.bf16.mxu1 %v24246_v60 }
 0x6f1   : > { %20914 = vmatpush3.bf16.msra.mxu1 %v22257_v52 }
 0x6f2   : > { %20915 = vmatprep.subr.bf16.mxu1 %v24246_v60 }
 0x6f4   : > { %19492 = vmatmul.mubr.f32.vlgmr.msra.gmra.mrb[26].mxu1 %v23680_v10 }
 0x6f5   : > { %20917 = vmatpush3.bf16.msra.mxu1 %v22230_v8  ;;  %19502 = vmatprep.mubr.msk.f32.mxu1 %vm21879_vm2, %v24239_v58 }
 0x6f6   : > { %20918 = vmatprep.subr.bf16.mxu1 %v24246_v60 }
 0x6f9   : > { %20920 = vmatpush3.bf16.msra.mxu1 %v22238_v25 }
 0x6fa   : > { %20921 = vmatprep.subr.bf16.mxu1 %v24246_v60 }
 0x6fc   : > { %19503 = vmatmul.mubr.f32.vlgmr.msra.gmra.mrb[26].mxu1 %v23683_v20 }
 0x6fd   : > { %20923 = vmatpush3.bf16.msra.mxu1 %v22261_v54  ;;  %19513 = vmatprep.mubr.msk.f32.mxu1 %vm21879_vm2, %v24239_v58 }
 0x6fe   : > { %20924 = vmatprep.subr.bf16.mxu1 %v24246_v60 }
 0x701   : > { %20926 = vmatpush3.bf16.msra.mxu1 %v22265_v56 }
 0x702   : > { %20927 = vmatprep.subr.bf16.mxu1 %v24246_v60 }
 0x704   : > { %19514 = vmatmul.mubr.f32.vlgmr.msra.gmra.mrb[26].mxu1 %v23677_v24 }
 0x705   : > { %20929 = vmatpush3.bf16.msra.mxu1 %v22230_v8  ;;  %19524 = vmatprep.mubr.msk.f32.mxu1 %vm21879_vm2, %v24239_v58 }
 0x706   : > { %20930 = vmatprep.subr.bf16.mxu1 %v24246_v60 }
 0x709   : > { %20932 = vmatpush3.bf16.msra.mxu1 %v22238_v25 }
 0x70a   : > { %20969 = vmatprep.subr.bf16.mxu1 %v24246_v60 }
 0x70c   : > { %19525 = vmatmul.mubr.f32.vlgmr.msra.gmra.mrb[26].mxu1 %v23677_v24 }
 0x70d   : > { %20971 = vmatpush3.bf16.msra.mxu1 %v22400_v12  ;;  %19601 = vmatprep.mubr.msk.f32.mxu1 %vm21879_vm2, %v24239_v58 }
 0x70e   : > { %20972 = vmatprep.subr.bf16.mxu1 %v24246_v60 }
 0x711   : > { %20974 = vmatpush3.bf16.msra.mxu1 %v22426_v32 }
 0x712   : > { %20975 = vmatprep.subr.bf16.mxu1 %v24246_v60 }
 0x714   : > { %19602 = vmatmul.mubr.f32.vlgmr.msra.gmra.mrb[28].mxu1 %v23687_v14 }
 0x715   : > { %20977 = vmatpush3.bf16.msra.mxu1 %v22444_v42  ;;  %19612 = vmatprep.mubr.msk.f32.mxu1 %vm21879_vm2, %v24239_v58 }
 0x716   : > { %20978 = vmatprep.subr.bf16.mxu1 %v24246_v60 }
 0x719   : > { %20980 = vmatpush3.bf16.msra.mxu1 %v22455_v23 }
 0x71a   : > { %20981 = vmatprep.subr.bf16.mxu1 %v24246_v60 }
 0x71b   : > { %v9744_v43 = vpop.f32.mrb[18].mxu0 }
 0x71c   : > { %v19064_v26 = vpop.f32.mrb[19].mxu0  ;;  %19613 = vmatmul.mubr.f32.vlgmr.msra.gmra.mrb[28].mxu1 %v23677_v24 }
 0x71d   : > { %20983 = vmatpush3.bf16.msra.mxu1 %v22470_v29  ;;  %19623 = vmatprep.mubr.msk.f32.mxu1 %vm21879_vm2, %v24239_v58 }
 0x71e   : > { %v9257_v48 = vpop.f32.mrb[18].mxu1  ;;  %20984 = vmatprep.subr.bf16.mxu1 %v24246_v60 }
 0x71f   : > { %v9748_v50 = vmul.f32 %v9744_v43, %v9257_v48  ;;  %v18998_v17 = vpop.f32.mrb[19].mxu1 }
 0x721   : > { %20986 = vmatpush3.bf16.msra.mxu1 %v24300_v16 }
 0x722   : > { %20987 = vmatprep.subr.bf16.mxu1 %v24246_v60 }
 0x724   : > { %19624 = vmatmul.mubr.f32.vlgmr.msra.gmra.mrb[28].mxu1 %v23680_v10 }
 0x725   : > { %20989 = vmatpush3.bf16.msra.mxu1 %v22400_v12  ;;  %19634 = vmatprep.mubr.msk.f32.mxu1 %vm21879_vm2, %v24239_v58 }
 0x726   : > { %20990 = vmatprep.subr.bf16.mxu1 %v24246_v60 }
 0x729   : > { %20992 = vmatpush3.bf16.msra.mxu1 %v22426_v32 }
 0x72a   : > { %20993 = vmatprep.subr.bf16.mxu1 %v24246_v60 }
 0x72c   : > { %19635 = vmatmul.mubr.f32.vlgmr.msra.gmra.mrb[28].mxu1 %v23683_v20 }
 0x72d   : > { %20995 = vmatpush3.bf16.msra.mxu1 %v24302_v63  ;;  %19645 = vmatprep.mubr.msk.f32.mxu1 %vm21879_vm2, %v24239_v58 }
 0x72e   : > { %20996 = vmatprep.subr.bf16.mxu1 %v24246_v60 }
 0x731   : > { %20998 = vmatpush3.bf16.msra.mxu1 %v24304_v15 }
 0x732   : > { %20999 = vmatprep.subr.bf16.mxu1 %v24246_v60 }
 0x734   : > { %19646 = vmatmul.mubr.f32.vlgmr.msra.gmra.mrb[28].mxu1 %v23677_v24 }
 0x735   : > { %21001 = vmatpush3.bf16.msra.mxu1 %v22400_v12  ;;  %19656 = vmatprep.mubr.msk.f32.mxu1 %vm21879_vm2, %v24239_v58 }
 0x736   : > { %21002 = vmatprep.subr.bf16.mxu1 %v24246_v60 }
 0x739   : > { %21004 = vmatpush3.bf16.msra.mxu1 %v22426_v32 }
 0x73a   : > { %21041 = vmatprep.subr.bf16.mxu1 %v24246_v60 }
 0x73c   : > { %19657 = vmatmul.mubr.f32.vlgmr.msra.gmra.mrb[28].mxu1 %v23677_v24 }
 0x73d   : > { %21043 = vmatpush3.bf16.msra.mxu1 %v24306_v19  ;;  %19733 = vmatprep.mubr.msk.f32.mxu1 %vm21879_vm2, %v24239_v58 }
 0x73e   : > { %21044 = vmatprep.subr.bf16.mxu1 %v24246_v60 }
 0x741   : > { %21046 = vmatpush3.bf16.msra.mxu1 %v24308_v3 }
 0x742   : > { %21047 = vmatprep.subr.bf16.mxu1 %v24246_v60 }
 0x744   : > { %19734 = vmatmul.mubr.f32.vlgmr.msra.gmra.mrb[30].mxu1 %v23687_v14 }
 0x745   : > { %21049 = vmatpush3.bf16.msra.mxu1 %v24325_v47  ;;  %19744 = vmatprep.mubr.msk.f32.mxu1 %vm21879_vm2, %v24239_v58 }
 0x746   : > { %21050 = vmatprep.subr.bf16.mxu1 %v24246_v60 }
 0x749   : > { %21052 = vmatpush3.bf16.msra.mxu1 %v24312_v33 }
 0x74a   : > { %21053 = vmatprep.subr.bf16.mxu1 %v24246_v60 }
 0x74b   : > { %v10715_v8 = vpop.f32.mrb[20].mxu0 }
 0x74c   : > { %v19196_v25 = vpop.f32.mrb[21].mxu0  ;;  %19745 = vmatmul.mubr.f32.vlgmr.msra.gmra.mrb[30].mxu1 %v23677_v24 }
 0x74d   : > { %21055 = vmatpush3.bf16.msra.mxu1 %v24328_v5  ;;  %19755 = vmatprep.mubr.msk.f32.mxu1 %vm21879_vm2, %v24239_v58  ;;  %v21620_v25 = vld [vmem:[%s22164_s9] sm:$0xff] }
 0x74e   : > { %v10230_v52 = vpop.f32.mrb[20].mxu1  ;;  %21056 = vmatprep.subr.bf16.mxu1 %v24246_v60 }
 0x74f   : > { %v10719_v54 = vmul.f32 %v10715_v8, %v10230_v52  ;;  %v19130_v56 = vpop.f32.mrb[21].mxu1 }
 0x751   : > { %v10720_v42 = vadd.f32 %v10719_v54, %v9748_v50  ;;  %21058 = vmatpush3.bf16.msra.mxu1 %v24330_v13 }
 0x752   : > { %21059 = vmatprep.subr.bf16.mxu1 %v24246_v60 }
 0x754   : > { %19756 = vmatmul.mubr.f32.vlgmr.msra.gmra.mrb[30].mxu1 %v23680_v10 }
 0x755   : > { %21061 = vmatpush3.bf16.msra.mxu1 %v24306_v19  ;;  %19766 = vmatprep.mubr.msk.f32.mxu1 %vm21879_vm2, %v24239_v58 }
 0x756   : > { %21062 = vmatprep.subr.bf16.mxu1 %v24246_v60 }
 0x759   : > { %21064 = vmatpush3.bf16.msra.mxu1 %v24308_v3 }
 0x75a   : > { %21065 = vmatprep.subr.bf16.mxu1 %v24246_v60 }
 0x75c   : > { %19767 = vmatmul.mubr.f32.vlgmr.msra.gmra.mrb[30].mxu1 %v23683_v20 }
 0x75d   : > { %21067 = vmatpush3.bf16.msra.mxu1 %v24318_v34  ;;  %19777 = vmatprep.mubr.msk.f32.mxu1 %vm21879_vm2, %v24239_v58 }
 0x75e   : > { %21068 = vmatprep.subr.bf16.mxu1 %v24246_v60 }
 0x761   : > { %21070 = vmatpush3.bf16.msra.mxu1 %v24332_v61 }
 0x762   : > { %21071 = vmatprep.subr.bf16.mxu1 %v24246_v60 }
 0x764   : > { %19778 = vmatmul.mubr.f32.vlgmr.msra.gmra.mrb[30].mxu1 %v23677_v24 }
 0x765   : > { %21073 = vmatpush3.bf16.msra.mxu1 %v24306_v19  ;;  %19788 = vmatprep.mubr.msk.f32.mxu1 %vm21879_vm2, %v24239_v58 }
 0x766   : > { %21074 = vmatprep.subr.bf16.mxu1 %v24246_v60 }
 0x769   : > { %21076 = vmatpush3.bf16.msra.mxu1 %v24308_v3 }
 0x76a   : > { %21113 = vmatprep.subr.bf16.mxu1 %v24246_v60 }
 0x76c   : > { %19789 = vmatmul.mubr.f32.vlgmr.msra.gmra.mrb[30].mxu1 %v23677_v24 }
 0x76d   : > { %21115 = vmatpush3.bf16.msra.mxu1 %v24334_v44  ;;  %19865 = vmatprep.mubr.msk.f32.mxu1 %vm21879_vm2, %v24239_v58 }
 0x76e   : > { %21116 = vmatprep.subr.bf16.mxu1 %v24246_v60 }
 0x771   : > { %21118 = vmatpush3.bf16.msra.mxu1 %v24336_v57 }
 0x772   : > { %21119 = vmatprep.subr.bf16.mxu1 %v24246_v60 }
 0x774   : > { %19866 = vmatmul.mubr.f32.vlgmr.msra.gmra.mrb[32].mxu1 %v23687_v14 }
 0x775   : > { %21121 = vmatpush3.bf16.msra.mxu1 %v24338_v35  ;;  %19876 = vmatprep.mubr.msk.f32.mxu1 %vm21879_vm2, %v24239_v58 }
 0x776   : > { %21122 = vmatprep.subr.bf16.mxu1 %v24246_v60 }
 0x779   : > { %21124 = vmatpush3.bf16.msra.mxu1 %v24340_v0 }
 0x77a   : > { %21125 = vmatprep.subr.bf16.mxu1 %v24246_v60 }
 0x77b   : > { %v11687_v12 = vpop.f32.mrb[22].mxu0 }
 0x77c   : > { %v19328_v32 = vpop.f32.mrb[23].mxu0  ;;  %19877 = vmatmul.mubr.f32.vlgmr.msra.gmra.mrb[32].mxu1 %v23677_v24 }
 0x77d   : > { %21127 = vmatpush3.bf16.msra.mxu1 %v24342_v41  ;;  %19887 = vmatprep.mubr.msk.f32.mxu1 %vm21879_vm2, %v24239_v58 }
 0x77e   : > { %v11202_v23 = vpop.f32.mrb[22].mxu1  ;;  %21128 = vmatprep.subr.bf16.mxu1 %v24246_v60 }
 0x77f   : > { %v11691_v29 = vmul.f32 %v11687_v12, %v11202_v23  ;;  %v19262_v16 = vpop.f32.mrb[23].mxu1 }
 0x781   : > { %v11692_v63 = vadd.f32 %v11691_v29, %v10720_v42  ;;  %21130 = vmatpush3.bf16.msra.mxu1 %v24344_v11 }
 0x782   : > { %21131 = vmatprep.subr.bf16.mxu1 %v24246_v60 }
 0x784   : > { %19888 = vmatmul.mubr.f32.vlgmr.msra.gmra.mrb[32].mxu1 %v23680_v10 }
 0x785   : > { %21133 = vmatpush3.bf16.msra.mxu1 %v24334_v44  ;;  %19898 = vmatprep.mubr.msk.f32.mxu1 %vm21879_vm2, %v24239_v58 }
 0x786   : > { %21134 = vmatprep.subr.bf16.mxu1 %v24246_v60 }
 0x789   : > { %21136 = vmatpush3.bf16.msra.mxu1 %v24336_v57 }
 0x78a   : > { %21137 = vmatprep.subr.bf16.mxu1 %v24246_v60 }
 0x78c   : > { %19899 = vmatmul.mubr.f32.vlgmr.msra.gmra.mrb[32].mxu1 %v23683_v20 }
 0x78d   : > { %21139 = vmatpush3.bf16.msra.mxu1 %v24346_v30  ;;  %19909 = vmatprep.mubr.msk.f32.mxu1 %vm21879_vm2, %v24239_v58 }
 0x78e   : > { %21140 = vmatprep.subr.bf16.mxu1 %v24246_v60 }
 0x791   : > { %21142 = vmatpush3.bf16.msra.mxu1 %v24348_v31 }
 0x792   : > { %21143 = vmatprep.subr.bf16.mxu1 %v24246_v60 }
 0x794   : > { %19910 = vmatmul.mubr.f32.vlgmr.msra.gmra.mrb[32].mxu1 %v23677_v24 }
 0x795   : > { %21145 = vmatpush3.bf16.msra.mxu1 %v24334_v44  ;;  %19920 = vmatprep.mubr.msk.f32.mxu1 %vm21879_vm2, %v24239_v58 }
 0x796   : > { %21146 = vmatprep.subr.bf16.mxu1 %v24246_v60 }
 0x799   : > { %21148 = vmatpush3.bf16.msra.mxu1 %v24336_v57 }
 0x79a   : > { %19989 = vmatprep.subr.bf16.mxu1 %v24239_v58 }
 0x79c   : > { %19921 = vmatmul.mubr.f32.vlgmr.msra.gmra.mrb[32].mxu1 %v23677_v24 }
 0x79d   : > { %19993 = vmatprep.mubr.msk.bf16.mxu1 %vm21879_vm2, %v24239_v58 }
 0x7ab   : > { %v12659_v15 = vpop.f32.mrb[24].mxu0 }
 0x7ac   : > { %v19460_v19 = vpop.f32.mrb[25].mxu0 }
 0x7ae   : > { %v12174_v3 = vpop.f32.mrb[24].mxu1 }
 0x7af   : > { %v12663_v34 = vmul.f32 %v12659_v15, %v12174_v3  ;;  %v19394_v33 = vpop.f32.mrb[25].mxu1 }
 0x7b1   : > { %v12664_v47 = vadd.f32 %v12663_v34, %v11692_v63 }
 0x7b3   : > { %v13155_v5 = vsel %vm414_vm1, %v12664_v47, 0 }
 0x7b4   : > { %v23837_v13 = vand.u32 4294901760, %v13155_v5 }
 0x7b6   : > { %v23841_v61 = vsub.f32 %v13155_v5, %v23837_v13 }
 0x7b8   : > { %v23848_v14 = vand.u32 4294901760, %v23841_v61 }
 0x7ba   : > { %v13229_v11 = vsub.f32 %v23841_v61, %v23848_v14 }
 0x7bc   : > { %v23854_v35 = vand.u32 4294901760, %v13229_v11 }
 0x7be   : > { %19536 = vmatmul.mubr.f32.vlgmr.msra.gmra.mrb[26].mxu0 %v23854_v35 }
 0x7bf   : > { %20941 = vmatpush3.bf16.msra.mxu0 %v22241_v28  ;;  %19546 = vmatprep.mubr.msk.f32.mxu0 %vm21879_vm2, %v24239_v58 }
 0x7c0   : > { %20942 = vmatprep.subr.bf16.mxu0 %v24246_v60 }
 0x7c3   : > { %20944 = vmatpush3.bf16.msra.mxu0 %v22247_v45  ;;  %v24349_v45 = vld [vmem:[#allocation41_spill] sm:$0xff] }
 0x7c4   : > { %20945 = vmatprep.subr.bf16.mxu0 %v24246_v60 }
 0x7c6   : > { %19547 = vmatmul.mubr.f32.vlgmr.msra.gmra.mrb[26].mxu0 %v23837_v13 }
 0x7c7   : > { %20947 = vmatpush3.bf16.msra.mxu0 %v22251_v49  ;;  %19557 = vmatprep.mubr.msk.f32.mxu0 %vm21879_vm2, %v24239_v58 }
 0x7c8   : > { %20948 = vmatprep.subr.bf16.mxu0 %v24246_v60 }
 0x7cb   : > { %20950 = vmatpush3.bf16.msra.mxu0 %v22255_v51  ;;  %v24350_v51 = vld [vmem:[#allocation43_spill] sm:$0xff] }
 0x7cc   : > { %20951 = vmatprep.subr.bf16.mxu0 %v24246_v60 }
 0x7ce   : > { %19558 = vmatmul.mubr.f32.vlgmr.msra.gmra.mrb[26].mxu0 %v23841_v61 }
 0x7cf   : > { %20953 = vmatpush3.bf16.msra.mxu0 %v22227_v59  ;;  %19568 = vmatprep.mubr.msk.f32.mxu0 %vm21879_vm2, %v24239_v58 }
 0x7d0   : > { %20954 = vmatprep.subr.bf16.mxu0 %v24246_v60 }
 0x7d3   : > { %20956 = vmatpush3.bf16.msra.mxu0 %v22233_v9 }
 0x7d4   : > { %20957 = vmatprep.subr.bf16.mxu0 %v24246_v60 }
 0x7d6   : > { %19569 = vmatmul.mubr.f32.vlgmr.msra.gmra.mrb[26].mxu0 %v23848_v14 }
 0x7d7   : > { %20959 = vmatpush3.bf16.msra.mxu0 %v22259_v53  ;;  %19579 = vmatprep.mubr.msk.f32.mxu0 %vm21879_vm2, %v24239_v58  ;;  %v24351_v53 = vld [vmem:[#allocation45_spill] sm:$0xff] }
 0x7d8   : > { %20960 = vmatprep.subr.bf16.mxu0 %v24246_v60 }
 0x7db   : > { %20962 = vmatpush3.bf16.msra.mxu0 %v22263_v55  ;;  %v24352_v55 = vld [vmem:[#allocation47_spill] sm:$0xff] }
 0x7dc   : > { %20963 = vmatprep.subr.bf16.mxu0 %v24246_v60 }
 0x7de   : > { %19580 = vmatmul.mubr.f32.vlgmr.msra.gmra.mrb[26].mxu0 %v23837_v13 }
 0x7df   : > { %20965 = vmatpush3.bf16.msra.mxu0 %v22227_v59  ;;  %19590 = vmatprep.mubr.msk.f32.mxu0 %vm21879_vm2, %v24239_v58  ;;  %v23934_v59 = vpop.f32.mrb[26].mxu1 }
 0x7e0   : > { %20966 = vmatprep.subr.bf16.mxu0 %v24246_v60 }
 0x7e3   : > { %20968 = vmatpush3.bf16.msra.mxu0 %v22233_v9  ;;  %v19526_v9 = vpop.f32.mrb[27].mxu1 }
 0x7e4   : > { %21005 = vmatprep.subr.bf16.mxu0 %v24246_v60 }
 0x7e6   : > { %19591 = vmatmul.mubr.f32.vlgmr.msra.gmra.mrb[26].mxu0 %v23837_v13 }
 0x7e7   : > { %21007 = vmatpush3.bf16.msra.mxu0 %v22378_v62  ;;  %19667 = vmatprep.mubr.msk.f32.mxu0 %vm21879_vm2, %v24239_v58 }
 0x7e8   : > { %21008 = vmatprep.subr.bf16.mxu0 %v24246_v60 }
 0x7eb   : > { %21010 = vmatpush3.bf16.msra.mxu0 %v22402_v18 }
 0x7ec   : > { %21011 = vmatprep.subr.bf16.mxu0 %v24246_v60 }
 0x7ee   : > { %19668 = vmatmul.mubr.f32.vlgmr.msra.gmra.mrb[28].mxu0 %v23854_v35 }
 0x7ef   : > { %21013 = vmatpush3.bf16.msra.mxu0 %v22439_v37  ;;  %19678 = vmatprep.mubr.msk.f32.mxu0 %vm21879_vm2, %v24239_v58  ;;  %v24355_v37 = vld [vmem:[#allocation53_spill] sm:$0xff] }
 0x7f0   : > { %21014 = vmatprep.subr.bf16.mxu0 %v24246_v60 }
 0x7f3   : > { %21016 = vmatpush3.bf16.msra.mxu0 %v22448_v21  ;;  %v24356_v21 = vld [vmem:[#allocation55_spill] sm:$0xff] }
 0x7f4   : > { %21017 = vmatprep.subr.bf16.mxu0 %v24246_v60 }
 0x7f6   : > { %19679 = vmatmul.mubr.f32.vlgmr.msra.gmra.mrb[28].mxu0 %v23837_v13 }
 0x7f7   : > { %21019 = vmatpush3.bf16.msra.mxu0 %v22463_v27  ;;  %19689 = vmatprep.mubr.msk.f32.mxu0 %vm21879_vm2, %v24239_v58  ;;  %v24357_v27 = vld [vmem:[#allocation57_spill] sm:$0xff] }
 0x7f8   : > { %21020 = vmatprep.subr.bf16.mxu0 %v24246_v60 }
 0x7fb   : > { %21022 = vmatpush3.bf16.msra.mxu0 %v24299_v40 }
 0x7fc   : > { %21023 = vmatprep.subr.bf16.mxu0 %v24246_v60 }
 0x7fe   : > { %19690 = vmatmul.mubr.f32.vlgmr.msra.gmra.mrb[28].mxu0 %v23841_v61 }
 0x7ff   : > { %21025 = vmatpush3.bf16.msra.mxu0 %v22378_v62  ;;  %19700 = vmatprep.mubr.msk.f32.mxu0 %vm21879_vm2, %v24239_v58 }
 0x800   : > { %21026 = vmatprep.subr.bf16.mxu0 %v24246_v60 }
 0x803   : > { %21028 = vmatpush3.bf16.msra.mxu0 %v22402_v18 }
 0x804   : > { %21029 = vmatprep.subr.bf16.mxu0 %v24246_v60 }
 0x806   : > { %19701 = vmatmul.mubr.f32.vlgmr.msra.gmra.mrb[28].mxu0 %v23848_v14 }
 0x807   : > { %21031 = vmatpush3.bf16.msra.mxu0 %v24301_v2  ;;  %19711 = vmatprep.mubr.msk.f32.mxu0 %vm21879_vm2, %v24239_v58 }
 0x808   : > { %21032 = vmatprep.subr.bf16.mxu0 %v24246_v60 }
 0x80b   : > { %21034 = vmatpush3.bf16.msra.mxu0 %v24303_v46 }
 0x80c   : > { %21035 = vmatprep.subr.bf16.mxu0 %v24246_v60 }
 0x80e   : > { %19712 = vmatmul.mubr.f32.vlgmr.msra.gmra.mrb[28].mxu0 %v23837_v13 }
 0x80f   : > { %21037 = vmatpush3.bf16.msra.mxu0 %v22378_v62  ;;  %19722 = vmatprep.mubr.msk.f32.mxu0 %vm21879_vm2, %v24239_v58  ;;  %v14128_v28 = vpop.f32.mrb[28].mxu1  ;;  %v24353_v62 = vld [vmem:[#allocation49_spill] sm:$0xff] }
 0x810   : > { %21038 = vmatprep.subr.bf16.mxu0 %v24246_v60  ;;  %v19658_v49 = vpop.f32.mrb[29].mxu1 }
 0x813   : > { %21040 = vmatpush3.bf16.msra.mxu0 %v22402_v18  ;;  %v24354_v18 = vld [vmem:[#allocation51_spill] sm:$0xff] }
 0x814   : > { %21077 = vmatprep.subr.bf16.mxu0 %v24246_v60 }
 0x816   : > { %19723 = vmatmul.mubr.f32.vlgmr.msra.gmra.mrb[28].mxu0 %v23837_v13 }
 0x817   : > { %21079 = vmatpush3.bf16.msra.mxu0 %v24305_v1  ;;  %19799 = vmatprep.mubr.msk.f32.mxu0 %vm21879_vm2, %v24239_v58 }
 0x818   : > { %21080 = vmatprep.subr.bf16.mxu0 %v24246_v60 }
 0x81b   : > { %21082 = vmatpush3.bf16.msra.mxu0 %v24307_v7 }
 0x81c   : > { %21083 = vmatprep.subr.bf16.mxu0 %v24246_v60 }
 0x81e   : > { %19800 = vmatmul.mubr.f32.vlgmr.msra.gmra.mrb[30].mxu0 %v23854_v35 }
 0x81f   : > { %21085 = vmatpush3.bf16.msra.mxu0 %v24324_v22  ;;  %19810 = vmatprep.mubr.msk.f32.mxu0 %vm21879_vm2, %v24239_v58 }
 0x820   : > { %21086 = vmatprep.subr.bf16.mxu0 %v24246_v60 }
 0x823   : > { %21088 = vmatpush3.bf16.msra.mxu0 %v24326_v38 }
 0x824   : > { %21089 = vmatprep.subr.bf16.mxu0 %v24246_v60 }
 0x826   : > { %19811 = vmatmul.mubr.f32.vlgmr.msra.gmra.mrb[30].mxu0 %v23837_v13 }
 0x827   : > { %21091 = vmatpush3.bf16.msra.mxu0 %v24327_v36  ;;  %19821 = vmatprep.mubr.msk.f32.mxu0 %vm21879_vm2, %v24239_v58 }
 0x828   : > { %21092 = vmatprep.subr.bf16.mxu0 %v24246_v60 }
 0x82b   : > { %21094 = vmatpush3.bf16.msra.mxu0 %v24329_v6  ;;  %v21616_v6 = vld [vmem:[#allocation8] sm:$0xff]  }
 0x82c   : > { %21095 = vmatprep.subr.bf16.mxu0 %v24246_v60  ;;  %19990 = vmatpush3.bf16.msra.mxu1 %v21616_v6 }
 0x82d   : > { %19991 = vmatprep.subr.bf16.mxu1 %v24239_v58 }
 0x82e   : > { %19822 = vmatmul.mubr.f32.vlgmr.msra.gmra.mrb[30].mxu0 %v23841_v61 }
 0x82f   : > { %21097 = vmatpush3.bf16.msra.mxu0 %v24305_v1  ;;  %19832 = vmatprep.mubr.msk.f32.mxu0 %vm21879_vm2, %v24239_v58 }
 0x830   : > { %21098 = vmatprep.subr.bf16.mxu0 %v24246_v60 }
 0x833   : > { %21100 = vmatpush3.bf16.msra.mxu0 %v24307_v7 }
 0x834   : > { %21101 = vmatprep.subr.bf16.mxu0 %v24246_v60 }
 0x836   : > { %19833 = vmatmul.mubr.f32.vlgmr.msra.gmra.mrb[30].mxu0 %v23848_v14 }
 0x837   : > { %21103 = vmatpush3.bf16.msra.mxu0 %v24331_v4  ;;  %19843 = vmatprep.mubr.msk.f32.mxu0 %vm21879_vm2, %v24239_v58  ;;  %v21617_v4 = vld [vmem:[#allocation8 + $0x8] sm:$0xff]  }
 0x838   : > { %21104 = vmatprep.subr.bf16.mxu0 %v24246_v60  ;;  %19992 = vmatpush3.bf16.msra.mxu1 %v21617_v4 }
 0x83b   : > { %21106 = vmatpush3.bf16.msra.mxu0 %v24349_v45 }
 0x83c   : > { %21107 = vmatprep.subr.bf16.mxu0 %v24246_v60 }
 0x83e   : > { %19844 = vmatmul.mubr.f32.vlgmr.msra.gmra.mrb[30].mxu0 %v23837_v13 }
 0x83f   : > { %21109 = vmatpush3.bf16.msra.mxu0 %v24305_v1  ;;  %19854 = vmatprep.mubr.msk.f32.mxu0 %vm21879_vm2, %v24239_v58  ;;  %v15104_v40 = vpop.f32.mrb[30].mxu1 }
 0x840   : > { %21110 = vmatprep.subr.bf16.mxu0 %v24246_v60  ;;  %v19790_v2 = vpop.f32.mrb[31].mxu1 }
 0x843   : > { %21112 = vmatpush3.bf16.msra.mxu0 %v24307_v7  ;;  %v24358_v7 = vld [vmem:[#allocation20_spill] sm:$0xff] }
 0x844   : > { %21149 = vmatprep.subr.bf16.mxu0 %v24246_v60  ;;  %v13645_v24 = vrot.slane %v23934_v59, %v24358_v7  ;;  %v15596_v20 = vrot.slane %v15104_v40, %v24358_v7 }
 0x846   : > { %19855 = vmatmul.mubr.f32.vlgmr.msra.gmra.mrb[30].mxu0 %v23837_v13 }
 0x847   : > { %21151 = vmatpush3.bf16.msra.mxu0 %v24350_v51  ;;  %19931 = vmatprep.mubr.msk.f32.mxu0 %vm21879_vm2, %v24239_v58 }
 0x848   : > { %21152 = vmatprep.subr.bf16.mxu0 %v24246_v60 }
 0x84b   : > { %21154 = vmatpush3.bf16.msra.mxu0 %v24351_v53 }
 0x84c   : > { %21155 = vmatprep.subr.bf16.mxu0 %v24246_v60 }
 0x84e   : > { %19932 = vmatmul.mubr.f32.vlgmr.msra.gmra.mrb[32].mxu0 %v23854_v35 }
 0x84f   : > { %21157 = vmatpush3.bf16.msra.mxu0 %v24352_v55  ;;  %19942 = vmatprep.mubr.msk.f32.mxu0 %vm21879_vm2, %v24239_v58 }
 0x850   : > { %21158 = vmatprep.subr.bf16.mxu0 %v24246_v60 }
 0x853   : > { %21160 = vmatpush3.bf16.msra.mxu0 %v24353_v62 }
 0x854   : > { %21161 = vmatprep.subr.bf16.mxu0 %v24246_v60 }
 0x856   : > { %19943 = vmatmul.mubr.f32.vlgmr.msra.gmra.mrb[32].mxu0 %v23837_v13 }
 0x857   : > { %21163 = vmatpush3.bf16.msra.mxu0 %v24354_v18  ;;  %19953 = vmatprep.mubr.msk.f32.mxu0 %vm21879_vm2, %v24239_v58 }
 0x858   : > { %21164 = vmatprep.subr.bf16.mxu0 %v24246_v60 }
 0x85b   : > { %21166 = vmatpush3.bf16.msra.mxu0 %v24355_v37 }
 0x85c   : > { %21167 = vmatprep.subr.bf16.mxu0 %v24246_v60 }
 0x85e   : > { %19954 = vmatmul.mubr.f32.vlgmr.msra.gmra.mrb[32].mxu0 %v23841_v61 }
 0x85f   : > { %21169 = vmatpush3.bf16.msra.mxu0 %v24350_v51  ;;  %19964 = vmatprep.mubr.msk.f32.mxu0 %vm21879_vm2, %v24239_v58 }
 0x860   : > { %21170 = vmatprep.subr.bf16.mxu0 %v24246_v60 }
 0x863   : > { %21172 = vmatpush3.bf16.msra.mxu0 %v24351_v53 }
 0x864   : > { %21173 = vmatprep.subr.bf16.mxu0 %v24246_v60 }
 0x866   : > { %19965 = vmatmul.mubr.f32.vlgmr.msra.gmra.mrb[32].mxu0 %v23848_v14 }
 0x867   : > { %21175 = vmatpush3.bf16.msra.mxu0 %v24356_v21  ;;  %19975 = vmatprep.mubr.msk.f32.mxu0 %vm21879_vm2, %v24239_v58 }
 0x868   : > { %21176 = vmatprep.subr.bf16.mxu0 %v24246_v60 }
 0x86b   : > { %21178 = vmatpush3.bf16.msra.mxu0 %v24357_v27 }
 0x86c   : > { %21179 = vmatprep.subr.bf16.mxu0 %v24246_v60 }
 0x86e   : > { %19976 = vmatmul.mubr.f32.vlgmr.msra.gmra.mrb[32].mxu0 %v23837_v13 }
 0x86f   : > { %21181 = vmatpush3.bf16.msra.mxu0 %v24350_v51  ;;  %19986 = vmatprep.mubr.msk.f32.mxu0 %vm21879_vm2, %v24239_v58  ;;  %v16080_v46 = vpop.f32.mrb[32].mxu1 }
 0x870   : > { %21182 = vmatprep.subr.bf16.mxu0 %v24246_v60  ;;  %v19922_v1 = vpop.f32.mrb[33].mxu1  ;;  %v14620_v60 = vrot.slane %v14128_v28, %v24358_v7  ;;  %v16572_v43 = vrot.slane %v16080_v46, %v24358_v7 }
 0x873   : > { %21184 = vmatpush3.bf16.msra.mxu0 %v24351_v53 }
 0x876   : > { %19987 = vmatmul.mubr.f32.vlgmr.msra.gmra.mrb[32].mxu0 %v23837_v13 }
 0x8b9   : > { %v13638_v22 = vpop.f32.mrb[26].mxu0 }
 0x8ba   : > { %v13646_v38 = vmul.f32 %v13645_v24, %v13638_v22  ;;  %v19592_v36 = vpop.f32.mrb[27].mxu0 }
 0x8e9   : > { %v14613_v44 = vpop.f32.mrb[28].mxu0 }
 0x8ea   : > { %v14621_v57 = vmul.f32 %v14620_v60, %v14613_v44  ;;  %v19724_v0 = vpop.f32.mrb[29].mxu0 }
 0x8ec   : > { %v14622_v41 = vadd.f32 %v14621_v57, %v13646_v38 }
 0x919   : > { %v15589_v30 = vpop.f32.mrb[30].mxu0 }
 0x91a   : > { %v15597_v31 = vmul.f32 %v15596_v20, %v15589_v30  ;;  %v19856_v39 = vpop.f32.mrb[31].mxu0 }
 0x91c   : > { %v15598_v10 = vadd.f32 %v15597_v31, %v14622_v41 }
 0x949   : > { %v16565_v26 = vpop.f32.mrb[32].mxu0 }
 0x94a   : > { %v16573_v58 = vmul.f32 %v16572_v43, %v16565_v26  ;;  %v19988_v48 = vpop.f32.mrb[33].mxu0 }
 0x94c   : > { %v16574_v50 = vadd.f32 %v16573_v58, %v15598_v10 }
 0x94e   : > { %16576 = vst.msk [vmem:[#allocation2 - $0x7] sm:$0x80] %vm16575_vm6, %v16574_v50  ;;  %v16577_v17 = vpack.c.bf16 %v16574_v50, %v16574_v50 }
 0x950   : > { %19994 = vmatmul.mubr.msk.bf16.vlgmr.msra.gmra.mrb[36].mxu1 %vm414_vm1, %v16577_v17 }
 0x955   : > { %v16643_v12 = vld [vmem:[#allocation2] sm:$0x1] (!%p16811_p6) }
 0x956   : > { %16645 = vst.msk [vmem:[#allocation13] sm:$0x1] (!%p16811_p6), %vm16644_vm7, %v16643_v12 }
 0xa20   : > { %16642 = sbr.rel (%p16811_p6) target bundleno = 2599 (0xa27), region = 80 }
 0xa23   : > { %v16631_v8 = vpop.f32.mrb[36].mxu1 }
 0xa24   : > { %v16637_v52 = vadd.f32 %v21620_v25, %v16631_v8  ;;  %v19995_v54 = vpop.f32.mrb[37].mxu1 }
 0xa25   : > { %v16634_v56 = vpop.f32.mrb[38].mxu1 }
 0xa26   : > { %16638 = vst.msk [vmem:[%s22178_s16] sm:$0xff] %vm414_vm1, %v16637_v52  ;;  %v19996_v42 = vpop.f32.mrb[39].mxu1 }
 0xa27 PF: > { %s16813_s20 = sshll.u32 %s21954_s15, 7  ;;  %s16660_s26 = sshll.u32 %s22178_s16, 4  ;;  %s16661_s26 = int_to_ptr.vmem [resolvable:$true] %s16660_s26 }
 0xa28   : > { %s24044_s14 = scalar_lea.hbm %s24112_s8, %s16813_s20  ;;  %s16647_s9 = scalar_lea.sflag [#allocation5], %s22160_s3 }
 0xa29   : > { %s21763_s17 = scalar_lea.vmem %s16661_s26, 128  ;;  %p24359_p9 = scmp.ne.s32.totalorder %s24223_s29, 0 }
 0xa2a   : > { %p21764_p7 = scmp.ne.s32.totalorder %s16661_s26, %s21763_s17  ;;  %s21881_s25 = smov [#allocation12]  }
 0xa2b   : > { %s21767_s19 = sshll.u32 %s21881_s25, 4  ;;  %s21768_s19 = int_to_ptr.vmem [resolvable:$false] %s21767_s19 }
 0xa2c   : > { %p21765_p12 = pnand %p21764_p7, %p24359_p9  ;;  %s21769_s22 = scalar_lea.vmem %s21768_s19, 256 }
 0xa2d   : > { %p21770_p13 = scmp.lt.s32.totalorder %s16661_s26, %s21768_s19  ;;  %p21771_p0 = scmp.lt.s32.totalorder %s21769_s22, %s21763_s17 }
 0xa2e   : > { %p21766_p4 = pneg %p21765_p12 }
 0xa2f   : > { %p21772_p2 = por %p21771_p0, %p21770_p13 }
 0xa31   : > { %p21773_p5 = pnand %p21772_p2, %p21766_p4 }
 0xa33   : > { %21776 = shalt.err (!%p21773_p5)
}
 0xa34   : > { %s21777_s3 = scalar_lea.hbm %s24044_s14, 128  ;;  %s21781_s28 = scalar_lea.hbm %s24112_s8, 512 }
 0xa35   : > { %p21778_p3 = scmp.ne.s32.totalorder %s24044_s14, %s21777_s3  ;;  %p21782_p1 = scmp.lt.u32.totalorder %s24044_s14, %s24112_s8 }
 0xa36   : > { %p21783_p8 = scmp.lt.u32.totalorder %s21781_s28, %s21777_s3  ;;  %p21785_p7 = scmp.lt.u32.totalorder %s21777_s3, %s24044_s14 }
 0xa37   : > { %p21779_p10 = pnand %p21778_p3, %p24359_p9 }
 0xa38   : > { %p21784_p6 = por %p21783_p8, %p21782_p1 }
 0xa39   : > { %p21780_p11 = pneg %p21779_p10 }
 0xa3a   : > { %p21786_p12 = por %p21785_p7, %p21784_p6 }
 0xa3c   : > { %p21787_p4 = pnand %p21786_p12, %p21780_p11 }
 0xa3e   : > { %21790 = shalt.err (!%p21787_p4)
}
 0xa3f   : > { %21533 = dma.vmem_to_hbm [thread:$0]  (%p24359_p9), %s16661_s26, 128, %s24044_s14, %s16647_s9  }
 0xa40   : > { %s21882_s21 = smov [#allocation13]   ;;  %p24360_p0 = scmp.eq.s32.totalorder %s21954_s15, 3 }
 0xa41   : > { %s16671_s17 = sshll.u32 %s21882_s21, 4  ;;  %s16672_s17 = int_to_ptr.vmem [resolvable:$true] %s16671_s17 }
 0xa42   : > { %s21791_s25 = scalar_lea.vmem %s16672_s17, 16  ;;  %s21797_s19 = scalar_lea.vmem %s16672_s17, 32 }
 0xa43   : > { %p21792_p13 = scmp.ne.s32.totalorder %s16672_s17, %s21791_s25  ;;  %p21798_p3 = scmp.lt.s32.totalorder %s16672_s17, %s16672_s17 }
 0xa44   : > { %p21799_p10 = scmp.lt.s32.totalorder %s21797_s19, %s21791_s25 }
 0xa45   : > { %p21793_p2 = pnand %p21792_p13, %p24360_p0 }
 0xa46   : > { %p21800_p1 = por %p21799_p10, %p21798_p3 }
 0xa47   : > { %p21794_p5 = pneg %p21793_p2 }
 0xa49   : > { %p21801_p8 = pnand %p21800_p1, %p21794_p5 }
 0xa4b   : > { %21804 = shalt.err (!%p21801_p8)
}
 0xa4c   : > { %s24361_s29 = sld [smem:[#allocation60_spill]]  ;;  %p24362_p11 = pmov %p24360_p0 }
 0xa52   : > { %s21805_s16 = scalar_lea.hbm %s24361_s29, 16 }
 0xa53   : > { %p21806_p9 = scmp.ne.s32.totalorder %s24361_s29, %s21805_s16  ;;  %p21811_p12 = scmp.lt.u32.totalorder %s21805_s16, %s24361_s29 }
 0xa55   : > { %p21807_p6 = pnand %p21806_p9, %p24362_p11 }
 0xa57   : > { %p21808_p7 = pneg %p21807_p6 }
 0xa59   : > { %p21813_p4 = pnand %p21811_p12, %p21808_p7 }
 0xa5b   : > { %21816 = shalt.err (!%p21813_p4)
}
 0xa5c   : > { %p24363_p13 = pmov %p24360_p0 }
 0xa5e   : > { %21535 = dma.vmem_to_hbm [thread:$0]  (%p24363_p13), %s16672_s17, 16, %s24361_s29, [#allocation14]  }
 0xa5f   : > { %21846 = dma.done.wait (%p24360_p0), [#allocation14], 16   ;;  %p24364_p2 = pmov %p24360_p0 }
 0xa61   : > { %21848 = vsyncadd (%p24364_p2), [#allocation14], 4294967280 }
 0xa62 PF: > { %p21571_p5 = scmp.ge.s32.totalorder %s21867_s12, 2  ;;  %s16687_s18 = sand.u32 1, %s21855_s30  }
 0xa63   : > { %p24365_p3 = scmp.ne.s32.totalorder %s24224_s13, 0  ;;  %s16688_s21 = scalar_lea.sflag [#allocation5], %s16687_s18 }
 0xa65   : > { %p21557_p10 = pnand %p21571_p5, %p24365_p3 }
 0xa67   : > { %21850 = dma.done.wait (!%p21557_p10), %s16688_s21, 128  }
 0xa68   : > { %21852 = vsyncadd (!%p21557_p10), %s16688_s21, 4294967168  ;;  %p26_p1 = scmp.ge.s32.totalorder %s22082_s27, 6   ;;  %s24366_s30 = smov %s21859_s10 }
 0xa69   : > { %s24367_s10 = smov %s21863_s11  ;;  %s24368_s11 = smov %s22093_s24 }
 0xa6a   : > { %s24369_s12 = smov %s22082_s27  ;;  %28 = sbr.rel (!%p26_p1) target bundleno = 11 (0xb), region = 135 }
 0xa71   :  { %16693 = vsyncpa [#allocation4], 1 }
 0xa72   :  { %16695 = vsyncpa [#allocation4 + $0x1], 1 }
 0xa73   :  { %16696 = vsyncpa [#allocation7], 1 }
 0xa74   :  { %16697 = vsyncpa [#allocation10], 1 }
 0xa75   :  { %16698 = vsyncpa [#allocation5], 1 }
 0xa76   :  { %16700 = vsyncpa [#allocation5 + $0x1], 1 }
 0xa77   :  { %16701 = vsyncpa [#allocation14], 1 }

</bundles_post_ra>
